<compile_context>
chip_gen: v7x
topology: tpu7x:2x2x1
jax: 0.10.0
libtpu: 0.0.40
codegen_flags: <defaults>
</compile_context>

<pallas_src>
import functools
import math

import jax
import jax.numpy as jnp
from jax.experimental import pallas as pl
from jax.experimental.pallas import tpu as pltpu

# Layer widths of the autoencoder (encoder then decoder).
IN_FEATURES = 17 * 48                      # 816
PADDED_EDGE = 896                          # 816 rounded up to a multiple of 128
DIMS = [IN_FEATURES, 1024, 512, 256, 128, 64, 128, 256, 512, 1024, IN_FEATURES]
N_LAYERS = len(DIMS) - 1                   # 10 Linear layers in the module

# Activation after each original Linear: relu for hidden layers, identity
# after the 64-dim bottleneck (index 4), sigmoid after the last layer.
_ACTS = ["relu", "relu", "relu", "relu", "none",
         "relu", "relu", "relu", "relu", "sigmoid"]

# Fused kernel layer list: layers 4 (128->64, identity) and 5 (64->128, relu)
# are algebraically merged into a single 128->128 layer with relu.
DIMS_FUSED_PAD = [PADDED_EDGE, 1024, 512, 256, 128, 128, 256, 512, 1024, PADDED_EDGE]
N_FUSED = len(DIMS_FUSED_PAD) - 1          # 9 fused layers
_ACTS_FUSED = ["relu"] * (N_FUSED - 1) + ["sigmoid"]


def _round_up(v, m):
    return ((v + m - 1) // m) * m


@functools.lru_cache(maxsize=1)
def _hw_config():
    """Returns (tm_cap, vmem_limit_bytes) based on TPU generation."""
    try:
        vmem_bytes = int(pltpu.get_tpu_info().vmem_capacity_bytes)
    except Exception:
        vmem_bytes = 64 << 20  # conservative (v7x) fallback
    if vmem_bytes >= (128 << 20):          # v5e / v6e: 128 MiB physical VMEM
        return 512, 96 << 20
    return 256, 48 << 20                   # v7x: 64 MiB physical VMEM


def _const_block_spec(shape):
    """Full-array block with a constant index_map, single-buffered."""
    try:
        return pl.BlockSpec(shape, lambda i: (0, 0),
                            pipeline_mode=pl.Buffered(1))
    except TypeError:
        # Older Pallas without pipeline_mode: fall back to default buffering.
        return pl.BlockSpec(shape, lambda i: (0, 0))


def _tile_rows(B, tm_cap):
    """Batch tile size: multiple of 16, <= tm_cap, >=2 tiles when B > 128,
    chosen to minimize padded rows."""
    B16 = _round_up(max(B, 1), 16)
    if B <= 128 and B16 <= tm_cap:
        return B16
    n_tiles = max(2, -(-B16 // tm_cap))
    tm = _round_up(-(-B // n_tiles), 16)
    return min(tm, tm_cap)


def autoencoder_kernel(x_ref, *rest):
    """rest = (w1, b1, ..., w9, b9, o_ref).

    x_ref : (TM, 896) bf16 batch tile.
    w_i   : (in, out) bf16, resident in VMEM (constant index_map, Buffered(1)).
    b_i   : (1, out)  f32.
    o_ref : (TM, 896) bf16.
    """
    o_ref = rest[-1]
    param_refs = rest[:-1]

    h = x_ref[...]  # bf16
    for i in range(N_FUSED):
        w = param_refs[2 * i][...]        # bf16 (in, out)
        b = param_refs[2 * i + 1][...]    # f32  (1, out)
        acc = jnp.dot(h, w, preferred_element_type=jnp.float32) + b
        if _ACTS_FUSED[i] == "relu":
            acc = jnp.maximum(acc, 0.0)
        else:                              # sigmoid (last layer)
            acc = jax.nn.sigmoid(acc)
        if i < N_FUSED - 1:
            h = acc.astype(jnp.bfloat16)   # bf16 operands for the next MXU pass
        else:
            h = acc
    o_ref[...] = h.astype(o_ref.dtype)


def init_params(key):
    """Deterministic init mimicking PyTorch's default Linear init
    (uniform(-1/sqrt(fan_in), 1/sqrt(fan_in))). Weights stored (in, out)."""
    params = []
    for i in range(N_LAYERS):
        fan_in, fan_out = DIMS[i], DIMS[i + 1]
        key, kw, kb = jax.random.split(key, 3)
        bound = 1.0 / math.sqrt(fan_in)
        w = jax.random.uniform(kw, (fan_in, fan_out), jnp.float32, -bound, bound)
        b = jax.random.uniform(kb, (1, fan_out), jnp.float32, -bound, bound)
        params.append((w, b))
    return params


def prepare_params(params):
    """Fuse the identity-activation bottleneck pair, pad 816-wide edges to
    896, cast weights to bf16 (biases stay f32)."""
    # Fuse layer 4 (128->64, identity) with layer 5 (64->128):
    #   h @ W4 + b4, then @ W5 + b5  ==  h @ (W4 @ W5) + (b4 @ W5 + b5)
    w4, b4 = params[4]
    w5, b5 = params[5]
    w_fused = w4 @ w5                 # (128, 128) f32
    b_fused = b4 @ w5 + b5            # (1, 128)   f32
    merged = list(params[:4]) + [(w_fused, b_fused)] + list(params[6:])
    assert len(merged) == N_FUSED

    flat = []
    for i, (w, b) in enumerate(merged):
        if i == 0:  # pad K dim of first weight (extra rows hit zero-padded x)
            w = jnp.pad(w, ((0, PADDED_EDGE - IN_FEATURES), (0, 0)))
        if i == N_FUSED - 1:  # pad N dim of last weight + bias (sliced off)
            w = jnp.pad(w, ((0, 0), (0, PADDED_EDGE - IN_FEATURES)))
            b = jnp.pad(b, ((0, 0), (0, PADDED_EDGE - IN_FEATURES)))
        flat.extend([w.astype(jnp.bfloat16), b.astype(jnp.float32)])
    return tuple(flat)


@jax.jit
def autoencoder_forward(x, flat_params):
    B = x.shape[0]
    tm_cap, vmem_limit = _hw_config()

    TM = _tile_rows(B, tm_cap)
    Bp = _round_up(B, TM)
    grid = (Bp // TM,)

    # Flatten() then zero-pad batch and feature edge to (Bp, 896) bf16.
    xf = jnp.reshape(x, (B, IN_FEATURES)).astype(jnp.float32)
    xf = jnp.pad(xf, ((0, Bp - B), (0, PADDED_EDGE - IN_FEATURES)))
    xf = xf.astype(jnp.bfloat16)

    # x/out are batch-tiled (double-buffered); weights/biases are full-array,
    # constant index_map, single-buffered -> DMA'd once, resident in VMEM.
    in_specs = [pl.BlockSpec((TM, PADDED_EDGE), lambda i: (i, 0))]
    for p in flat_params:
        in_specs.append(_const_block_spec(p.shape))
    out_specs = pl.BlockSpec((TM, PADDED_EDGE), lambda i: (i, 0))

    flops = 2 * Bp * sum(DIMS_FUSED_PAD[i] * DIMS_FUSED_PAD[i + 1]
                         for i in range(N_FUSED))
    weight_bytes = sum(int(p.size) * p.dtype.itemsize for p in flat_params)
    bytes_accessed = weight_bytes + int(xf.size) * 2 + Bp * PADDED_EDGE * 2

    out = pl.pallas_call(
        autoencoder_kernel,
        out_shape=jax.ShapeDtypeStruct((Bp, PADDED_EDGE), jnp.bfloat16),
        grid=grid,
        in_specs=in_specs,
        out_specs=out_specs,
        compiler_params=pltpu.CompilerParams(
            dimension_semantics=("parallel",),
            vmem_limit_bytes=vmem_limit,
        ),
        cost_estimate=pl.CostEstimate(
            flops=flops,
            transcendentals=Bp * PADDED_EDGE,
            bytes_accessed=bytes_accessed,
        ),
    )(xf, *flat_params)

    # Strip batch/feature padding, cast to f32, then .reshape(-1, 48, 17).
    out = out[:B, :IN_FEATURES].astype(jnp.float32)
    return jnp.reshape(out, (-1, 48, 17))


def _reference_forward(x, params):
    """Pure-JAX f32 reference (matches the PyTorch module, unfused)."""
    h = jnp.reshape(x, (x.shape[0], IN_FEATURES)).astype(jnp.float32)
    for i, (w, b) in enumerate(params):
        h = h @ w + b
        if _ACTS[i] == "relu":
            h = jnp.maximum(h, 0.0)
        elif _ACTS[i] == "sigmoid":
            h = jax.nn.sigmoid(h)
    return jnp.reshape(h, (-1, 48, 17))


if __name__ == "__main__":
    key = jax.random.PRNGKey(0)
    key, kx = jax.random.split(key)

    # Small batch; input shape consistent with the forward (flattens to 816).
    B = 2
    x = jax.random.uniform(kx, (B, 48, 17), jnp.float32)

    params = init_params(key)
    flat_params = prepare_params(params)

    y = autoencoder_forward(x, flat_params)
    y = jax.block_until_ready(y)

    assert y.shape == (B, 48, 17), y.shape
    assert y.dtype == jnp.float32
    assert bool(jnp.all(jnp.isfinite(y)))
    # Sigmoid output must lie in [0, 1].
    assert bool(jnp.all((y >= 0.0) & (y <= 1.0)))
    # bf16 matmuls / activations / output with f32 accumulation: allow small
    # drift vs the f32 reference.
    y_ref = _reference_forward(x, params)
    assert bool(jnp.max(jnp.abs(y - y_ref)) < 5e-2)

    print("KERNEL_OK")
</pallas_src>

<mosaic_0001>
module attributes {stable_mosaic.version = 11 : i64} {
  func.func @autoencoder_kernel(%arg0: i32, %arg1: memref<16x896xbf16, #tpu.memory_space<vmem>>, %arg2: memref<896x1024xbf16, #tpu.memory_space<vmem>>, %arg3: memref<1x1024xf32, #tpu.memory_space<vmem>>, %arg4: memref<1024x512xbf16, #tpu.memory_space<vmem>>, %arg5: memref<1x512xf32, #tpu.memory_space<vmem>>, %arg6: memref<512x256xbf16, #tpu.memory_space<vmem>>, %arg7: memref<1x256xf32, #tpu.memory_space<vmem>>, %arg8: memref<256x128xbf16, #tpu.memory_space<vmem>>, %arg9: memref<1x128xf32, #tpu.memory_space<vmem>>, %arg10: memref<128x128xbf16, #tpu.memory_space<vmem>>, %arg11: memref<1x128xf32, #tpu.memory_space<vmem>>, %arg12: memref<128x256xbf16, #tpu.memory_space<vmem>>, %arg13: memref<1x256xf32, #tpu.memory_space<vmem>>, %arg14: memref<256x512xbf16, #tpu.memory_space<vmem>>, %arg15: memref<1x512xf32, #tpu.memory_space<vmem>>, %arg16: memref<512x1024xbf16, #tpu.memory_space<vmem>>, %arg17: memref<1x1024xf32, #tpu.memory_space<vmem>>, %arg18: memref<1024x896xbf16, #tpu.memory_space<vmem>>, %arg19: memref<1x896xf32, #tpu.memory_space<vmem>>, %arg20: memref<16x896xbf16, #tpu.memory_space<vmem>>) attributes {dimension_semantics = [#tpu.dimension_semantics<parallel>], iteration_bounds = array<i64: 1>, scalar_prefetch = 0 : i64, scratch_operands = 0 : i64, tpu.core_type = #tpu.core_type<tc>, window_params = [{transform_indices = @transform_0, window_bounds = array<i64: 16, 896>}, {pipeline_mode = #tpu.pipeline_mode<synchronous>, transform_indices = @transform_1, window_bounds = array<i64: 896, 1024>}, {pipeline_mode = #tpu.pipeline_mode<synchronous>, transform_indices = @transform_2, window_bounds = array<i64: 1, 1024>}, {pipeline_mode = #tpu.pipeline_mode<synchronous>, transform_indices = @transform_3, window_bounds = array<i64: 1024, 512>}, {pipeline_mode = #tpu.pipeline_mode<synchronous>, transform_indices = @transform_4, window_bounds = array<i64: 1, 512>}, {pipeline_mode = #tpu.pipeline_mode<synchronous>, transform_indices = @transform_5, window_bounds = array<i64: 512, 256>}, {pipeline_mode = #tpu.pipeline_mode<synchronous>, transform_indices = @transform_6, window_bounds = array<i64: 1, 256>}, {pipeline_mode = #tpu.pipeline_mode<synchronous>, transform_indices = @transform_7, window_bounds = array<i64: 256, 128>}, {pipeline_mode = #tpu.pipeline_mode<synchronous>, transform_indices = @transform_8, window_bounds = array<i64: 1, 128>}, {pipeline_mode = #tpu.pipeline_mode<synchronous>, transform_indices = @transform_9, window_bounds = array<i64: 128, 128>}, {pipeline_mode = #tpu.pipeline_mode<synchronous>, transform_indices = @transform_10, window_bounds = array<i64: 1, 128>}, {pipeline_mode = #tpu.pipeline_mode<synchronous>, transform_indices = @transform_11, window_bounds = array<i64: 128, 256>}, {pipeline_mode = #tpu.pipeline_mode<synchronous>, transform_indices = @transform_12, window_bounds = array<i64: 1, 256>}, {pipeline_mode = #tpu.pipeline_mode<synchronous>, transform_indices = @transform_13, window_bounds = array<i64: 256, 512>}, {pipeline_mode = #tpu.pipeline_mode<synchronous>, transform_indices = @transform_14, window_bounds = array<i64: 1, 512>}, {pipeline_mode = #tpu.pipeline_mode<synchronous>, transform_indices = @transform_15, window_bounds = array<i64: 512, 1024>}, {pipeline_mode = #tpu.pipeline_mode<synchronous>, transform_indices = @transform_16, window_bounds = array<i64: 1, 1024>}, {pipeline_mode = #tpu.pipeline_mode<synchronous>, transform_indices = @transform_17, window_bounds = array<i64: 1024, 896>}, {pipeline_mode = #tpu.pipeline_mode<synchronous>, transform_indices = @transform_18, window_bounds = array<i64: 1, 896>}, {transform_indices = @transform_19, window_bounds = array<i64: 16, 896>}]} {
    %c0 = arith.constant 0 : index
    %c0_0 = arith.constant 0 : index
    %0 = vector.load %arg1[%c0, %c0_0] : memref<16x896xbf16, #tpu.memory_space<vmem>>, vector<16x896xbf16>
    %c0_1 = arith.constant 0 : index
    %c0_2 = arith.constant 0 : index
    %1 = vector.load %arg2[%c0_1, %c0_2] : memref<896x1024xbf16, #tpu.memory_space<vmem>>, vector<896x1024xbf16>
    %c0_3 = arith.constant 0 : index
    %c0_4 = arith.constant 0 : index
    %2 = vector.load %arg3[%c0_3, %c0_4] : memref<1x1024xf32, #tpu.memory_space<vmem>>, vector<1x1024xf32>
    %cst = arith.constant dense<0.000000e+00> : vector<16x1024xf32>
    %3 = tpu.matmul %0, %1, %cst {dimension_numbers = #tpu.dot_dimension_numbers<[1], [0], [0], [1], [0, 0, 1, 1], [], []>} : vector<16x896xbf16>, vector<896x1024xbf16>, vector<16x1024xf32> -> vector<16x1024xf32>
    %4 = vector.broadcast %2 : vector<1x1024xf32> to vector<16x1024xf32>
    %5 = arith.addf %3, %4 : vector<16x1024xf32>
    %cst_5 = arith.constant 0.000000e+00 : f32
    %6 = vector.broadcast %cst_5 : f32 to vector<16x1024xf32>
    %7 = arith.maximumf %5, %6 : vector<16x1024xf32>
    %8 = arith.truncf %7 : vector<16x1024xf32> to vector<16x1024xbf16>
    %c0_6 = arith.constant 0 : index
    %c0_7 = arith.constant 0 : index
    %9 = vector.load %arg4[%c0_6, %c0_7] : memref<1024x512xbf16, #tpu.memory_space<vmem>>, vector<1024x512xbf16>
    %c0_8 = arith.constant 0 : index
    %c0_9 = arith.constant 0 : index
    %10 = vector.load %arg5[%c0_8, %c0_9] : memref<1x512xf32, #tpu.memory_space<vmem>>, vector<1x512xf32>
    %cst_10 = arith.constant dense<0.000000e+00> : vector<16x512xf32>
    %11 = tpu.matmul %8, %9, %cst_10 {dimension_numbers = #tpu.dot_dimension_numbers<[1], [0], [0], [1], [0, 0, 1, 1], [], []>} : vector<16x1024xbf16>, vector<1024x512xbf16>, vector<16x512xf32> -> vector<16x512xf32>
    %12 = vector.broadcast %10 : vector<1x512xf32> to vector<16x512xf32>
    %13 = arith.addf %11, %12 : vector<16x512xf32>
    %cst_11 = arith.constant 0.000000e+00 : f32
    %14 = vector.broadcast %cst_11 : f32 to vector<16x512xf32>
    %15 = arith.maximumf %13, %14 : vector<16x512xf32>
    %16 = arith.truncf %15 : vector<16x512xf32> to vector<16x512xbf16>
    %c0_12 = arith.constant 0 : index
    %c0_13 = arith.constant 0 : index
    %17 = vector.load %arg6[%c0_12, %c0_13] : memref<512x256xbf16, #tpu.memory_space<vmem>>, vector<512x256xbf16>
    %c0_14 = arith.constant 0 : index
    %c0_15 = arith.constant 0 : index
    %18 = vector.load %arg7[%c0_14, %c0_15] : memref<1x256xf32, #tpu.memory_space<vmem>>, vector<1x256xf32>
    %cst_16 = arith.constant dense<0.000000e+00> : vector<16x256xf32>
    %19 = tpu.matmul %16, %17, %cst_16 {dimension_numbers = #tpu.dot_dimension_numbers<[1], [0], [0], [1], [0, 0, 1, 1], [], []>} : vector<16x512xbf16>, vector<512x256xbf16>, vector<16x256xf32> -> vector<16x256xf32>
    %20 = vector.broadcast %18 : vector<1x256xf32> to vector<16x256xf32>
    %21 = arith.addf %19, %20 : vector<16x256xf32>
    %cst_17 = arith.constant 0.000000e+00 : f32
    %22 = vector.broadcast %cst_17 : f32 to vector<16x256xf32>
    %23 = arith.maximumf %21, %22 : vector<16x256xf32>
    %24 = arith.truncf %23 : vector<16x256xf32> to vector<16x256xbf16>
    %c0_18 = arith.constant 0 : index
    %c0_19 = arith.constant 0 : index
    %25 = vector.load %arg8[%c0_18, %c0_19] : memref<256x128xbf16, #tpu.memory_space<vmem>>, vector<256x128xbf16>
    %c0_20 = arith.constant 0 : index
    %c0_21 = arith.constant 0 : index
    %26 = vector.load %arg9[%c0_20, %c0_21] : memref<1x128xf32, #tpu.memory_space<vmem>>, vector<1x128xf32>
    %cst_22 = arith.constant dense<0.000000e+00> : vector<16x128xf32>
    %27 = tpu.matmul %24, %25, %cst_22 {dimension_numbers = #tpu.dot_dimension_numbers<[1], [0], [0], [1], [0, 0, 1, 1], [], []>} : vector<16x256xbf16>, vector<256x128xbf16>, vector<16x128xf32> -> vector<16x128xf32>
    %28 = vector.broadcast %26 : vector<1x128xf32> to vector<16x128xf32>
    %29 = arith.addf %27, %28 : vector<16x128xf32>
    %cst_23 = arith.constant 0.000000e+00 : f32
    %30 = vector.broadcast %cst_23 : f32 to vector<16x128xf32>
    %31 = arith.maximumf %29, %30 : vector<16x128xf32>
    %32 = arith.truncf %31 : vector<16x128xf32> to vector<16x128xbf16>
    %c0_24 = arith.constant 0 : index
    %c0_25 = arith.constant 0 : index
    %33 = vector.load %arg10[%c0_24, %c0_25] : memref<128x128xbf16, #tpu.memory_space<vmem>>, vector<128x128xbf16>
    %c0_26 = arith.constant 0 : index
    %c0_27 = arith.constant 0 : index
    %34 = vector.load %arg11[%c0_26, %c0_27] : memref<1x128xf32, #tpu.memory_space<vmem>>, vector<1x128xf32>
    %cst_28 = arith.constant dense<0.000000e+00> : vector<16x128xf32>
    %35 = tpu.matmul %32, %33, %cst_28 {dimension_numbers = #tpu.dot_dimension_numbers<[1], [0], [0], [1], [0, 0, 1, 1], [], []>} : vector<16x128xbf16>, vector<128x128xbf16>, vector<16x128xf32> -> vector<16x128xf32>
    %36 = vector.broadcast %34 : vector<1x128xf32> to vector<16x128xf32>
    %37 = arith.addf %35, %36 : vector<16x128xf32>
    %cst_29 = arith.constant 0.000000e+00 : f32
    %38 = vector.broadcast %cst_29 : f32 to vector<16x128xf32>
    %39 = arith.maximumf %37, %38 : vector<16x128xf32>
    %40 = arith.truncf %39 : vector<16x128xf32> to vector<16x128xbf16>
    %c0_30 = arith.constant 0 : index
    %c0_31 = arith.constant 0 : index
    %41 = vector.load %arg12[%c0_30, %c0_31] : memref<128x256xbf16, #tpu.memory_space<vmem>>, vector<128x256xbf16>
    %c0_32 = arith.constant 0 : index
    %c0_33 = arith.constant 0 : index
    %42 = vector.load %arg13[%c0_32, %c0_33] : memref<1x256xf32, #tpu.memory_space<vmem>>, vector<1x256xf32>
    %cst_34 = arith.constant dense<0.000000e+00> : vector<16x256xf32>
    %43 = tpu.matmul %40, %41, %cst_34 {dimension_numbers = #tpu.dot_dimension_numbers<[1], [0], [0], [1], [0, 0, 1, 1], [], []>} : vector<16x128xbf16>, vector<128x256xbf16>, vector<16x256xf32> -> vector<16x256xf32>
    %44 = vector.broadcast %42 : vector<1x256xf32> to vector<16x256xf32>
    %45 = arith.addf %43, %44 : vector<16x256xf32>
    %cst_35 = arith.constant 0.000000e+00 : f32
    %46 = vector.broadcast %cst_35 : f32 to vector<16x256xf32>
    %47 = arith.maximumf %45, %46 : vector<16x256xf32>
    %48 = arith.truncf %47 : vector<16x256xf32> to vector<16x256xbf16>
    %c0_36 = arith.constant 0 : index
    %c0_37 = arith.constant 0 : index
    %49 = vector.load %arg14[%c0_36, %c0_37] : memref<256x512xbf16, #tpu.memory_space<vmem>>, vector<256x512xbf16>
    %c0_38 = arith.constant 0 : index
    %c0_39 = arith.constant 0 : index
    %50 = vector.load %arg15[%c0_38, %c0_39] : memref<1x512xf32, #tpu.memory_space<vmem>>, vector<1x512xf32>
    %cst_40 = arith.constant dense<0.000000e+00> : vector<16x512xf32>
    %51 = tpu.matmul %48, %49, %cst_40 {dimension_numbers = #tpu.dot_dimension_numbers<[1], [0], [0], [1], [0, 0, 1, 1], [], []>} : vector<16x256xbf16>, vector<256x512xbf16>, vector<16x512xf32> -> vector<16x512xf32>
    %52 = vector.broadcast %50 : vector<1x512xf32> to vector<16x512xf32>
    %53 = arith.addf %51, %52 : vector<16x512xf32>
    %cst_41 = arith.constant 0.000000e+00 : f32
    %54 = vector.broadcast %cst_41 : f32 to vector<16x512xf32>
    %55 = arith.maximumf %53, %54 : vector<16x512xf32>
    %56 = arith.truncf %55 : vector<16x512xf32> to vector<16x512xbf16>
    %c0_42 = arith.constant 0 : index
    %c0_43 = arith.constant 0 : index
    %57 = vector.load %arg16[%c0_42, %c0_43] : memref<512x1024xbf16, #tpu.memory_space<vmem>>, vector<512x1024xbf16>
    %c0_44 = arith.constant 0 : index
    %c0_45 = arith.constant 0 : index
    %58 = vector.load %arg17[%c0_44, %c0_45] : memref<1x1024xf32, #tpu.memory_space<vmem>>, vector<1x1024xf32>
    %cst_46 = arith.constant dense<0.000000e+00> : vector<16x1024xf32>
    %59 = tpu.matmul %56, %57, %cst_46 {dimension_numbers = #tpu.dot_dimension_numbers<[1], [0], [0], [1], [0, 0, 1, 1], [], []>} : vector<16x512xbf16>, vector<512x1024xbf16>, vector<16x1024xf32> -> vector<16x1024xf32>
    %60 = vector.broadcast %58 : vector<1x1024xf32> to vector<16x1024xf32>
    %61 = arith.addf %59, %60 : vector<16x1024xf32>
    %cst_47 = arith.constant 0.000000e+00 : f32
    %62 = vector.broadcast %cst_47 : f32 to vector<16x1024xf32>
    %63 = arith.maximumf %61, %62 : vector<16x1024xf32>
    %64 = arith.truncf %63 : vector<16x1024xf32> to vector<16x1024xbf16>
    %c0_48 = arith.constant 0 : index
    %c0_49 = arith.constant 0 : index
    %65 = vector.load %arg18[%c0_48, %c0_49] : memref<1024x896xbf16, #tpu.memory_space<vmem>>, vector<1024x896xbf16>
    %c0_50 = arith.constant 0 : index
    %c0_51 = arith.constant 0 : index
    %66 = vector.load %arg19[%c0_50, %c0_51] : memref<1x896xf32, #tpu.memory_space<vmem>>, vector<1x896xf32>
    %cst_52 = arith.constant dense<0.000000e+00> : vector<16x896xf32>
    %67 = tpu.matmul %64, %65, %cst_52 {dimension_numbers = #tpu.dot_dimension_numbers<[1], [0], [0], [1], [0, 0, 1, 1], [], []>} : vector<16x1024xbf16>, vector<1024x896xbf16>, vector<16x896xf32> -> vector<16x896xf32>
    %68 = vector.broadcast %66 : vector<1x896xf32> to vector<16x896xf32>
    %69 = arith.addf %67, %68 : vector<16x896xf32>
    %70 = arith.negf %69 : vector<16x896xf32>
    %71 = math.exp %70 : vector<16x896xf32>
    %cst_53 = arith.constant 1.000000e+00 : f32
    %72 = vector.broadcast %cst_53 : f32 to vector<16x896xf32>
    %73 = arith.addf %72, %71 : vector<16x896xf32>
    %74 = arith.divf %72, %73 : vector<16x896xf32>
    %75 = arith.truncf %74 : vector<16x896xf32> to vector<16x896xbf16>
    %c0_54 = arith.constant 0 : index
    %c0_55 = arith.constant 0 : index
    %76 = vector.load %arg20[%c0_54, %c0_55] : memref<16x896xbf16, #tpu.memory_space<vmem>>, vector<16x896xbf16>
    tpu.vector_store %arg20[%c0_54, %c0_55], %75 {strides = array<i32>} : memref<16x896xbf16, #tpu.memory_space<vmem>>, vector<16x896xbf16>,
    return
  }
  func.func @transform_0(%arg0: i32) -> (i32, i32) {
    %c0_i32 = arith.constant 0 : i32
    %c0_i32_0 = arith.constant 0 : i32
    return %arg0, %c0_i32 : i32, i32
  }
  func.func @transform_1(%arg0: i32) -> (i32, i32) {
    %c0_i32 = arith.constant 0 : i32
    %c0_i32_0 = arith.constant 0 : i32
    %c0_i32_1 = arith.constant 0 : i32
    return %c0_i32, %c0_i32_0 : i32, i32
  }
  func.func @transform_2(%arg0: i32) -> (i32, i32) {
    %c0_i32 = arith.constant 0 : i32
    %c0_i32_0 = arith.constant 0 : i32
    %c0_i32_1 = arith.constant 0 : i32
    return %c0_i32, %c0_i32_0 : i32, i32
  }
  func.func @transform_3(%arg0: i32) -> (i32, i32) {
    %c0_i32 = arith.constant 0 : i32
    %c0_i32_0 = arith.constant 0 : i32
    %c0_i32_1 = arith.constant 0 : i32
    return %c0_i32, %c0_i32_0 : i32, i32
  }
  func.func @transform_4(%arg0: i32) -> (i32, i32) {
    %c0_i32 = arith.constant 0 : i32
    %c0_i32_0 = arith.constant 0 : i32
    %c0_i32_1 = arith.constant 0 : i32
    return %c0_i32, %c0_i32_0 : i32, i32
  }
  func.func @transform_5(%arg0: i32) -> (i32, i32) {
    %c0_i32 = arith.constant 0 : i32
    %c0_i32_0 = arith.constant 0 : i32
    %c0_i32_1 = arith.constant 0 : i32
    return %c0_i32, %c0_i32_0 : i32, i32
  }
  func.func @transform_6(%arg0: i32) -> (i32, i32) {
    %c0_i32 = arith.constant 0 : i32
    %c0_i32_0 = arith.constant 0 : i32
    %c0_i32_1 = arith.constant 0 : i32
    return %c0_i32, %c0_i32_0 : i32, i32
  }
  func.func @transform_7(%arg0: i32) -> (i32, i32) {
    %c0_i32 = arith.constant 0 : i32
    %c0_i32_0 = arith.constant 0 : i32
    %c0_i32_1 = arith.constant 0 : i32
    return %c0_i32, %c0_i32_0 : i32, i32
  }
  func.func @transform_8(%arg0: i32) -> (i32, i32) {
    %c0_i32 = arith.constant 0 : i32
    %c0_i32_0 = arith.constant 0 : i32
    %c0_i32_1 = arith.constant 0 : i32
    return %c0_i32, %c0_i32_0 : i32, i32
  }
  func.func @transform_9(%arg0: i32) -> (i32, i32) {
    %c0_i32 = arith.constant 0 : i32
    %c0_i32_0 = arith.constant 0 : i32
    %c0_i32_1 = arith.constant 0 : i32
    return %c0_i32, %c0_i32_0 : i32, i32
  }
  func.func @transform_10(%arg0: i32) -> (i32, i32) {
    %c0_i32 = arith.constant 0 : i32
    %c0_i32_0 = arith.constant 0 : i32
    %c0_i32_1 = arith.constant 0 : i32
    return %c0_i32, %c0_i32_0 : i32, i32
  }
  func.func @transform_11(%arg0: i32) -> (i32, i32) {
    %c0_i32 = arith.constant 0 : i32
    %c0_i32_0 = arith.constant 0 : i32
    %c0_i32_1 = arith.constant 0 : i32
    return %c0_i32, %c0_i32_0 : i32, i32
  }
  func.func @transform_12(%arg0: i32) -> (i32, i32) {
    %c0_i32 = arith.constant 0 : i32
    %c0_i32_0 = arith.constant 0 : i32
    %c0_i32_1 = arith.constant 0 : i32
    return %c0_i32, %c0_i32_0 : i32, i32
  }
  func.func @transform_13(%arg0: i32) -> (i32, i32) {
    %c0_i32 = arith.constant 0 : i32
    %c0_i32_0 = arith.constant 0 : i32
    %c0_i32_1 = arith.constant 0 : i32
    return %c0_i32, %c0_i32_0 : i32, i32
  }
  func.func @transform_14(%arg0: i32) -> (i32, i32) {
    %c0_i32 = arith.constant 0 : i32
    %c0_i32_0 = arith.constant 0 : i32
    %c0_i32_1 = arith.constant 0 : i32
    return %c0_i32, %c0_i32_0 : i32, i32
  }
  func.func @transform_15(%arg0: i32) -> (i32, i32) {
    %c0_i32 = arith.constant 0 : i32
    %c0_i32_0 = arith.constant 0 : i32
    %c0_i32_1 = arith.constant 0 : i32
    return %c0_i32, %c0_i32_0 : i32, i32
  }
  func.func @transform_16(%arg0: i32) -> (i32, i32) {
    %c0_i32 = arith.constant 0 : i32
    %c0_i32_0 = arith.constant 0 : i32
    %c0_i32_1 = arith.constant 0 : i32
    return %c0_i32, %c0_i32_0 : i32, i32
  }
  func.func @transform_17(%arg0: i32) -> (i32, i32) {
    %c0_i32 = arith.constant 0 : i32
    %c0_i32_0 = arith.constant 0 : i32
    %c0_i32_1 = arith.constant 0 : i32
    return %c0_i32, %c0_i32_0 : i32, i32
  }
  func.func @transform_18(%arg0: i32) -> (i32, i32) {
    %c0_i32 = arith.constant 0 : i32
    %c0_i32_0 = arith.constant 0 : i32
    %c0_i32_1 = arith.constant 0 : i32
    return %c0_i32, %c0_i32_0 : i32, i32
  }
  func.func @transform_19(%arg0: i32) -> (i32, i32) {
    %c0_i32 = arith.constant 0 : i32
    %c0_i32_0 = arith.constant 0 : i32
    return %arg0, %c0_i32 : i32, i32
  }
}

</mosaic_0001>

<bundles_post_ra>
// kernel: autoencoder_forward.1
= control target key start
LH: loop header
LB: loop body
LE: loop exit
PB: predicated region body
PF: predicated region fallthrough
CT: control target
= control target key end

     0   :  { %s17193_s0 = inlined_call_operand.vmem [shape: bf16[16,896], index: 0, kind: input, shape index: {}]   ;;  %s17194_s1 = inlined_call_operand.hbm [shape: bf16[896,1024], index: 1, kind: input, shape index: {}]   ;;  %s17195_s2 = inlined_call_operand.hbm [shape: f32[1,1024], index: 2, kind: input, shape index: {}]   ;;  %s17196_s3 = inlined_call_operand.hbm [shape: bf16[1024,512], index: 3, kind: input, shape index: {}]   ;;  %s17197_s4 = inlined_call_operand.hbm [shape: f32[1,512], index: 4, kind: input, shape index: {}]   ;;  %s17198_s5 = inlined_call_operand.hbm [shape: bf16[512,256], index: 5, kind: input, shape index: {}]   ;;  %s17199_s6 = inlined_call_operand.hbm [shape: f32[1,256], index: 6, kind: input, shape index: {}]   ;;  %s17200_s7 = inlined_call_operand.hbm [shape: bf16[256,128], index: 7, kind: input, shape index: {}]   ;;  %s17201_s8 = inlined_call_operand.hbm [shape: f32[1,128], index: 8, kind: input, shape index: {}]   ;;  %s17202_s9 = inlined_call_operand.hbm [shape: bf16[128,128], index: 9, kind: input, shape index: {}]   ;;  %s17203_s10 = inlined_call_operand.hbm [shape: f32[1,128], index: 10, kind: input, shape index: {}]   ;;  %s17204_s11 = inlined_call_operand.hbm [shape: bf16[128,256], index: 11, kind: input, shape index: {}]   ;;  %s17205_s12 = inlined_call_operand.hbm [shape: f32[1,256], index: 12, kind: input, shape index: {}]   ;;  %s17206_s13 = inlined_call_operand.hbm [shape: bf16[256,512], index: 13, kind: input, shape index: {}]   ;;  %s17207_s14 = inlined_call_operand.hbm [shape: f32[1,512], index: 14, kind: input, shape index: {}]   ;;  %s17208_s15 = inlined_call_operand.hbm [shape: bf16[512,1024], index: 15, kind: input, shape index: {}]   ;;  %s17209_s16 = inlined_call_operand.hbm [shape: f32[1,1024], index: 16, kind: input, shape index: {}]   ;;  %s17210_s17 = inlined_call_operand.hbm [shape: bf16[1024,896], index: 17, kind: input, shape index: {}]   ;;  %s17211_s18 = inlined_call_operand.hbm [shape: f32[1,896], index: 18, kind: input, shape index: {}]   ;;  %s17212_s19 = inlined_call_operand.vmem [shape: bf16[16,896], index: 19, kind: output, shape index: {}]  }
   0x1   :  { %17217 = sst [smem:[#allocation40_spill]] %s17193_s0 }
   0x2   :  { %17218 = sst [smem:[#allocation41_spill]] %s17194_s1 }
   0x3   :  { %17219 = sst [smem:[#allocation42_spill]] %s17195_s2 }
   0x4   :  { %17220 = sst [smem:[#allocation43_spill]] %s17196_s3 }
   0x5   :  { %24 = vsyncpa [#allocation3], 0 }
   0x6   :  { %25 = vsyncpa [#allocation5], 0 }
   0x7   :  { %26 = vsyncpa [#allocation8], 0 }
   0x8   :  { %27 = vsyncpa [#allocation11], 0 }
   0x9   :  { %28 = vsyncpa [#allocation14], 0 }
   0xa   :  { %29 = vsyncpa [#allocation17], 0 }
   0xb   :  { %30 = vsyncpa [#allocation20], 0 }
   0xc   :  { %31 = vsyncpa [#allocation23], 0 }
   0xd   :  { %32 = vsyncpa [#allocation26], 0 }
   0xe   :  { %33 = vsyncpa [#allocation29], 0  ;;  %s16491_s0 = smov [#allocation4]   ;;  %s16492_s20 = smov [#allocation7]  }
   0xf   :  { %s54_s30 = sshll.u32 %s16491_s0, 4  ;;  %s76_s21 = sshll.u32 %s16492_s20, 4  ;;  %s55_s30 = int_to_ptr.vmem [resolvable:$true] %s54_s30  ;;  %s77_s21 = int_to_ptr.vmem [resolvable:$true] %s76_s21 }
  0x10   :  { %s17221_s2 = sld [smem:[#allocation42_spill]] }
  0x16   :  { %s16075_s23 = scalar_lea.hbm %s17221_s2, 128 }
  0x17   :  { %p16076_p0 = scmp.ne.s32.totalorder %s17221_s2, %s16075_s23  ;;  %p16079_p1 = scmp.lt.u32.totalorder %s16075_s23, %s17221_s2 }
  0x19   :  { %p16081_p2 = pnand %p16079_p1, %p16076_p0 }
  0x1b   :  { %16084 = shalt.err (!%p16081_p2)
}
  0x1c   :  { %s16085_s27 = scalar_lea.vmem %s55_s30, 128  ;;  %p16090_p4 = scmp.lt.s32.totalorder %s55_s30, %s55_s30 }
  0x1d   :  { %p16086_p3 = scmp.ne.s32.totalorder %s55_s30, %s16085_s27  ;;  %p16091_p5 = scmp.lt.s32.totalorder %s16085_s27, %s16085_s27 }
  0x1f   :  { %p16092_p6 = por %p16091_p5, %p16090_p4 }
  0x21   :  { %p16093_p7 = pnand %p16092_p6, %p16086_p3 }
  0x23   :  { %16096 = shalt.err (!%p16093_p7)
}
  0x24   :  { %57 = dma.hbm_to_vmem [thread:$0]  %s17221_s2, 128, %s55_s30, [#allocation5]  }
  0x25   :  { %s16097_s1 = scalar_lea.hbm %s17197_s4, 64 }
  0x26   :  { %p16098_p8 = scmp.ne.s32.totalorder %s17197_s4, %s16097_s1  ;;  %p16101_p9 = scmp.lt.u32.totalorder %s16097_s1, %s17197_s4 }
  0x28   :  { %p16103_p10 = pnand %p16101_p9, %p16098_p8 }
  0x2a   :  { %16106 = shalt.err (!%p16103_p10)
}
  0x2b   :  { %s16107_s3 = scalar_lea.vmem %s77_s21, 64  ;;  %p16112_p12 = scmp.lt.s32.totalorder %s77_s21, %s77_s21 }
  0x2c   :  { %p16108_p11 = scmp.ne.s32.totalorder %s77_s21, %s16107_s3  ;;  %p16113_p13 = scmp.lt.s32.totalorder %s16107_s3, %s16107_s3 }
  0x2e   :  { %p16114_p0 = por %p16113_p13, %p16112_p12 }
  0x30   :  { %p16115_p1 = pnand %p16114_p0, %p16108_p11 }
  0x32   :  { %16118 = shalt.err (!%p16115_p1)
}
  0x33   :  { %79 = dma.hbm_to_vmem [thread:$0]  %s17197_s4, 64, %s77_s21, [#allocation8]  }
  0x34   :  { %s16493_s26 = smov [#allocation10]   ;;  %s16494_s28 = smov [#allocation13]  }
  0x35   :  { %s98_s27 = sshll.u32 %s16493_s26, 4  ;;  %s120_s29 = sshll.u32 %s16494_s28, 4  ;;  %s99_s27 = int_to_ptr.vmem [resolvable:$true] %s98_s27  ;;  %s121_s29 = int_to_ptr.vmem [resolvable:$true] %s120_s29 }
  0x36   :  { %s16119_s1 = scalar_lea.hbm %s17199_s6, 32 }
  0x37   :  { %p16120_p2 = scmp.ne.s32.totalorder %s17199_s6, %s16119_s1  ;;  %p16123_p3 = scmp.lt.u32.totalorder %s16119_s1, %s17199_s6 }
  0x39   :  { %p16125_p4 = pnand %p16123_p3, %p16120_p2 }
  0x3b   :  { %16128 = shalt.err (!%p16125_p4)
}
  0x3c   :  { %s16129_s4 = scalar_lea.vmem %s99_s27, 32  ;;  %p16134_p6 = scmp.lt.s32.totalorder %s99_s27, %s99_s27 }
  0x3d   :  { %p16130_p5 = scmp.ne.s32.totalorder %s99_s27, %s16129_s4  ;;  %p16135_p7 = scmp.lt.s32.totalorder %s16129_s4, %s16129_s4 }
  0x3f   :  { %p16136_p8 = por %p16135_p7, %p16134_p6 }
  0x41   :  { %p16137_p9 = pnand %p16136_p8, %p16130_p5 }
  0x43   :  { %16140 = shalt.err (!%p16137_p9)
}
  0x44   :  { %101 = dma.hbm_to_vmem [thread:$0]  %s17199_s6, 32, %s99_s27, [#allocation11]  }
  0x45   :  { %s16141_s26 = scalar_lea.hbm %s17201_s8, 16 }
  0x46   :  { %p16142_p10 = scmp.ne.s32.totalorder %s17201_s8, %s16141_s26  ;;  %p16145_p11 = scmp.lt.u32.totalorder %s16141_s26, %s17201_s8 }
  0x48   :  { %p16147_p12 = pnand %p16145_p11, %p16142_p10 }
  0x4a   :  { %16150 = shalt.err (!%p16147_p12)
}
  0x4b   :  { %s16151_s22 = scalar_lea.vmem %s121_s29, 16  ;;  %s16155_s24 = scalar_lea.vmem %s121_s29, 32 }
  0x4c   :  { %p16152_p13 = scmp.ne.s32.totalorder %s121_s29, %s16151_s22  ;;  %p16156_p0 = scmp.lt.s32.totalorder %s121_s29, %s121_s29 }
  0x4d   :  { %p16157_p1 = scmp.lt.s32.totalorder %s16155_s24, %s16151_s22 }
  0x4f   :  { %p16158_p2 = por %p16157_p1, %p16156_p0 }
  0x51   :  { %p16159_p3 = pnand %p16158_p2, %p16152_p13 }
  0x53   :  { %16162 = shalt.err (!%p16159_p3)
}
  0x54   :  { %123 = dma.hbm_to_vmem [thread:$0]  %s17201_s8, 16, %s121_s29, [#allocation14]  }
  0x55   :  { %s16495_s23 = smov [#allocation16]   ;;  %s16496_s4 = smov [#allocation19]  }
  0x56   :  { %s142_s25 = sshll.u32 %s16495_s23, 4  ;;  %s164_s21 = sshll.u32 %s16496_s4, 4  ;;  %s143_s25 = int_to_ptr.vmem [resolvable:$true] %s142_s25  ;;  %s165_s21 = int_to_ptr.vmem [resolvable:$true] %s164_s21 }
  0x57   :  { %s16163_s2 = scalar_lea.hbm %s17203_s10, 16 }
  0x58   :  { %p16164_p4 = scmp.ne.s32.totalorder %s17203_s10, %s16163_s2  ;;  %p16167_p5 = scmp.lt.u32.totalorder %s16163_s2, %s17203_s10 }
  0x5a   :  { %p16169_p6 = pnand %p16167_p5, %p16164_p4 }
  0x5c   :  { %16172 = shalt.err (!%p16169_p6)
}
  0x5d   :  { %s16173_s8 = scalar_lea.vmem %s143_s25, 16  ;;  %s16177_s29 = scalar_lea.vmem %s143_s25, 32 }
  0x5e   :  { %p16174_p7 = scmp.ne.s32.totalorder %s143_s25, %s16173_s8  ;;  %p16178_p8 = scmp.lt.s32.totalorder %s143_s25, %s143_s25 }
  0x5f   :  { %p16179_p9 = scmp.lt.s32.totalorder %s16177_s29, %s16173_s8 }
  0x61   :  { %p16180_p10 = por %p16179_p9, %p16178_p8 }
  0x63   :  { %p16181_p11 = pnand %p16180_p10, %p16174_p7 }
  0x65   :  { %16184 = shalt.err (!%p16181_p11)
}
  0x66   :  { %145 = dma.hbm_to_vmem [thread:$0]  %s17203_s10, 16, %s143_s25, [#allocation17]  }
  0x67   :  { %s16185_s27 = scalar_lea.hbm %s17205_s12, 32 }
  0x68   :  { %p16186_p12 = scmp.ne.s32.totalorder %s17205_s12, %s16185_s27  ;;  %p16189_p13 = scmp.lt.u32.totalorder %s16185_s27, %s17205_s12 }
  0x6a   :  { %p16191_p0 = pnand %p16189_p13, %p16186_p12 }
  0x6c   :  { %16194 = shalt.err (!%p16191_p0)
}
  0x6d   :  { %s16195_s2 = scalar_lea.vmem %s165_s21, 32  ;;  %p16200_p2 = scmp.lt.s32.totalorder %s165_s21, %s165_s21 }
  0x6e   :  { %p16196_p1 = scmp.ne.s32.totalorder %s165_s21, %s16195_s2  ;;  %p16201_p3 = scmp.lt.s32.totalorder %s16195_s2, %s16195_s2 }
  0x70   :  { %p16202_p4 = por %p16201_p3, %p16200_p2 }
  0x72   :  { %p16203_p5 = pnand %p16202_p4, %p16196_p1 }
  0x74   :  { %16206 = shalt.err (!%p16203_p5)
}
  0x75   :  { %167 = dma.hbm_to_vmem [thread:$0]  %s17205_s12, 32, %s165_s21, [#allocation20]  }
  0x76   :  { %s16497_s26 = smov [#allocation22]   ;;  %s16498_s0 = smov [#allocation25]  }
  0x77   :  { %s186_s28 = sshll.u32 %s16497_s26, 4  ;;  %s208_s20 = sshll.u32 %s16498_s0, 4  ;;  %s187_s28 = int_to_ptr.vmem [resolvable:$true] %s186_s28  ;;  %s209_s20 = int_to_ptr.vmem [resolvable:$true] %s208_s20 }
  0x78   :  { %s16207_s1 = scalar_lea.hbm %s17207_s14, 64 }
  0x79   :  { %p16208_p6 = scmp.ne.s32.totalorder %s17207_s14, %s16207_s1  ;;  %p16211_p7 = scmp.lt.u32.totalorder %s16207_s1, %s17207_s14 }
  0x7b   :  { %p16213_p8 = pnand %p16211_p7, %p16208_p6 }
  0x7d   :  { %16216 = shalt.err (!%p16213_p8)
}
  0x7e   :  { %s16217_s12 = scalar_lea.vmem %s187_s28, 64  ;;  %p16222_p10 = scmp.lt.s32.totalorder %s187_s28, %s187_s28 }
  0x7f   :  { %p16218_p9 = scmp.ne.s32.totalorder %s187_s28, %s16217_s12  ;;  %p16223_p11 = scmp.lt.s32.totalorder %s16217_s12, %s16217_s12 }
  0x81   :  { %p16224_p12 = por %p16223_p11, %p16222_p10 }
  0x83   :  { %p16225_p13 = pnand %p16224_p12, %p16218_p9 }
  0x85   :  { %16228 = shalt.err (!%p16225_p13)
}
  0x86   :  { %189 = dma.hbm_to_vmem [thread:$0]  %s17207_s14, 64, %s187_s28, [#allocation23]  }
  0x87   :  { %s16229_s30 = scalar_lea.hbm %s17209_s16, 128 }
  0x88   :  { %p16230_p0 = scmp.ne.s32.totalorder %s17209_s16, %s16229_s30  ;;  %p16233_p1 = scmp.lt.u32.totalorder %s16229_s30, %s17209_s16 }
  0x8a   :  { %p16235_p2 = pnand %p16233_p1, %p16230_p0 }
  0x8c   :  { %16238 = shalt.err (!%p16235_p2)
}
  0x8d   :  { %s16239_s0 = scalar_lea.vmem %s209_s20, 128  ;;  %p16244_p4 = scmp.lt.s32.totalorder %s209_s20, %s209_s20 }
  0x8e   :  { %p16240_p3 = scmp.ne.s32.totalorder %s209_s20, %s16239_s0  ;;  %p16245_p5 = scmp.lt.s32.totalorder %s16239_s0, %s16239_s0 }
  0x90   :  { %p16246_p6 = por %p16245_p5, %p16244_p4 }
  0x92   :  { %p16247_p7 = pnand %p16246_p6, %p16240_p3 }
  0x94   :  { %16250 = shalt.err (!%p16247_p7)
}
  0x95   :  { %211 = dma.hbm_to_vmem [thread:$0]  %s17209_s16, 128, %s209_s20, [#allocation26]  }
  0x96   :  { %s16499_s8 = smov [#allocation2]   ;;  %s17222_s24 = sld [smem:[#allocation41_spill]] }
  0x97   :  { %s41_s29 = sshll.u32 %s16499_s8, 4  ;;  %s42_s29 = int_to_ptr.vmem [resolvable:$true] %s41_s29 }
  0x9c   :  { %s16251_s6 = scalar_lea.hbm %s17222_s24, 57344 }
  0x9d   :  { %p16252_p8 = scmp.ne.s32.totalorder %s17222_s24, %s16251_s6  ;;  %p16255_p9 = scmp.lt.u32.totalorder %s16251_s6, %s17222_s24 }
  0x9f   :  { %p16257_p10 = pnand %p16255_p9, %p16252_p8 }
  0xa1   :  { %16260 = shalt.err (!%p16257_p10)
}
  0xa2   :  { %s16261_s4 = scalar_lea.vmem %s42_s29, 57344  ;;  %p16266_p12 = scmp.lt.s32.totalorder %s42_s29, %s42_s29 }
  0xa3   :  { %p16262_p11 = scmp.ne.s32.totalorder %s42_s29, %s16261_s4  ;;  %p16267_p13 = scmp.lt.s32.totalorder %s16261_s4, %s16261_s4 }
  0xa5   :  { %p16268_p0 = por %p16267_p13, %p16266_p12 }
  0xa7   :  { %p16269_p1 = pnand %p16268_p0, %p16262_p11 }
  0xa9   :  { %16272 = shalt.err (!%p16269_p1)
}
  0xaa   :  { %s16500_s16 = smov 512   ;;  %s16501_s20 = smov 32  }
  0xab   :  { %47 = dma.hbm_to_vmem [thread:$0]  %s17222_s24, 57344, %s42_s29, [#allocation3], %s16500_s16, %s16500_s16, %s16501_s20  }
  0xac   :  { %s16502_s2 = smov [#allocation6]   ;;  %s17223_s0 = sld [smem:[#allocation43_spill]] }
  0xad   :  { %s63_s10 = sshll.u32 %s16502_s2, 4  ;;  %s64_s10 = int_to_ptr.vmem [resolvable:$true] %s63_s10 }
  0xb2   :  { %s16273_s14 = scalar_lea.hbm %s17223_s0, 32768 }
  0xb3   :  { %p16274_p2 = scmp.ne.s32.totalorder %s17223_s0, %s16273_s14  ;;  %p16277_p3 = scmp.lt.u32.totalorder %s16273_s14, %s17223_s0 }
  0xb5   :  { %p16279_p4 = pnand %p16277_p3, %p16274_p2 }
  0xb7   :  { %16282 = shalt.err (!%p16279_p4)
}
  0xb8   :  { %s16283_s6 = scalar_lea.vmem %s64_s10, 32768  ;;  %p16288_p6 = scmp.lt.s32.totalorder %s64_s10, %s64_s10 }
  0xb9   :  { %p16284_p5 = scmp.ne.s32.totalorder %s64_s10, %s16283_s6  ;;  %p16289_p7 = scmp.lt.s32.totalorder %s16283_s6, %s16283_s6 }
  0xbb   :  { %p16290_p8 = por %p16289_p7, %p16288_p6 }
  0xbd   :  { %p16291_p9 = pnand %p16290_p8, %p16284_p5 }
  0xbf   :  { %16294 = shalt.err (!%p16291_p9)
}
  0xc0   :  { %s16503_s29 = smov 256   ;;  %s16504_s24 = smov 16  }
  0xc1   :  { %69 = dma.hbm_to_vmem [thread:$0]  %s17223_s0, 32768, %s64_s10, [#allocation5], %s16503_s29, %s16503_s29, %s16504_s24  }
  0xc2   :  { %s16505_s21 = smov [#allocation9]   ;;  %s16295_s30 = scalar_lea.hbm %s17198_s5, 8192 }
  0xc3   :  { %s85_s23 = sshll.u32 %s16505_s21, 4  ;;  %p16296_p10 = scmp.ne.s32.totalorder %s17198_s5, %s16295_s30  ;;  %s86_s23 = int_to_ptr.vmem [resolvable:$true] %s85_s23 }
  0xc4   :  { %p16299_p11 = scmp.lt.u32.totalorder %s16295_s30, %s17198_s5 }
  0xc6   :  { %p16301_p12 = pnand %p16299_p11, %p16296_p10 }
  0xc8   :  { %16304 = shalt.err (!%p16301_p12)
}
  0xc9   :  { %s16305_s28 = scalar_lea.vmem %s86_s23, 8192  ;;  %p16310_p0 = scmp.lt.s32.totalorder %s86_s23, %s86_s23 }
  0xca   :  { %p16306_p13 = scmp.ne.s32.totalorder %s86_s23, %s16305_s28  ;;  %p16311_p1 = scmp.lt.s32.totalorder %s16305_s28, %s16305_s28 }
  0xcc   :  { %p16312_p2 = por %p16311_p1, %p16310_p0 }
  0xce   :  { %p16313_p3 = pnand %p16312_p2, %p16306_p13 }
  0xd0   :  { %16316 = shalt.err (!%p16313_p3)
}
  0xd1   :  { %s16506_s10 = smov 128   ;;  %s16507_s0 = smov 8  }
  0xd2   :  { %91 = dma.hbm_to_vmem [thread:$0]  %s17198_s5, 8192, %s86_s23, [#allocation8], %s16506_s10, %s16506_s10, %s16507_s0  }
  0xd3   :  { %s16508_s22 = smov [#allocation12]   ;;  %s16317_s21 = scalar_lea.hbm %s17200_s7, 2048 }
  0xd4   :  { %s107_s6 = sshll.u32 %s16508_s22, 4  ;;  %p16318_p4 = scmp.ne.s32.totalorder %s17200_s7, %s16317_s21  ;;  %s108_s6 = int_to_ptr.vmem [resolvable:$true] %s107_s6 }
  0xd5   :  { %p16321_p5 = scmp.lt.u32.totalorder %s16317_s21, %s17200_s7 }
  0xd7   :  { %p16323_p6 = pnand %p16321_p5, %p16318_p4 }
  0xd9   :  { %16326 = shalt.err (!%p16323_p6)
}
  0xda   :  { %s16327_s25 = scalar_lea.vmem %s108_s6, 2048  ;;  %p16332_p8 = scmp.lt.s32.totalorder %s108_s6, %s108_s6 }
  0xdb   :  { %p16328_p7 = scmp.ne.s32.totalorder %s108_s6, %s16327_s25  ;;  %p16333_p9 = scmp.lt.s32.totalorder %s16327_s25, %s16327_s25 }
  0xdd   :  { %p16334_p10 = por %p16333_p9, %p16332_p8 }
  0xdf   :  { %p16335_p11 = pnand %p16334_p10, %p16328_p7 }
  0xe1   :  { %16338 = shalt.err (!%p16335_p11)
}
  0xe2   :  { %s16509_s5 = smov 64   ;;  %s16510_s23 = smov 4  }
  0xe3   :  { %113 = dma.hbm_to_vmem [thread:$0]  %s17200_s7, 2048, %s108_s6, [#allocation11], %s16509_s5, %s16509_s5, %s16510_s23  }
  0xe4   :  { %s16511_s28 = smov [#allocation15]   ;;  %s16512_s1 = smov [#allocation18]  }
  0xe5   :  { %s129_s8 = sshll.u32 %s16511_s28, 4  ;;  %s151_s22 = sshll.u32 %s16512_s1, 4  ;;  %s130_s8 = int_to_ptr.vmem [resolvable:$true] %s129_s8  ;;  %s16775_s22 = int_to_ptr.vmem [resolvable:$true] %s151_s22 }
  0xe6   :  { %s16339_s21 = scalar_lea.hbm %s17202_s9, 1024 }
  0xe7   :  { %p16340_p12 = scmp.ne.s32.totalorder %s17202_s9, %s16339_s21  ;;  %p16343_p13 = scmp.lt.u32.totalorder %s16339_s21, %s17202_s9 }
  0xe9   :  { %p16345_p0 = pnand %p16343_p13, %p16340_p12 }
  0xeb   :  { %16348 = shalt.err (!%p16345_p0)
}
  0xec   :  { %s16349_s7 = scalar_lea.vmem %s130_s8, 1024  ;;  %p16354_p2 = scmp.lt.s32.totalorder %s130_s8, %s130_s8 }
  0xed   :  { %p16350_p1 = scmp.ne.s32.totalorder %s130_s8, %s16349_s7  ;;  %p16355_p3 = scmp.lt.s32.totalorder %s16349_s7, %s16349_s7 }
  0xef   :  { %p16356_p4 = por %p16355_p3, %p16354_p2 }
  0xf1   :  { %p16357_p5 = pnand %p16356_p4, %p16350_p1 }
  0xf3   :  { %16360 = shalt.err (!%p16357_p5)
}
  0xf4   :  { %135 = dma.hbm_to_vmem [thread:$0]  %s17202_s9, 1024, %s130_s8, [#allocation14], %s16509_s5, %s16509_s5, %s16510_s23  }
  0xf5   :  { %s16361_s28 = scalar_lea.hbm %s17204_s11, 2048 }
  0xf6   :  { %p16362_p6 = scmp.ne.s32.totalorder %s17204_s11, %s16361_s28  ;;  %p16365_p7 = scmp.lt.u32.totalorder %s16361_s28, %s17204_s11 }
  0xf8   :  { %p16367_p8 = pnand %p16365_p7, %p16362_p6 }
  0xfa   :  { %16370 = shalt.err (!%p16367_p8)
}
  0xfb   :  { %s16371_s4 = scalar_lea.vmem %s16775_s22, 2048  ;;  %p16376_p10 = scmp.lt.s32.totalorder %s16775_s22, %s16775_s22 }
  0xfc   :  { %p16372_p9 = scmp.ne.s32.totalorder %s16775_s22, %s16371_s4  ;;  %p16377_p11 = scmp.lt.s32.totalorder %s16371_s4, %s16371_s4 }
  0xfe   :  { %p16378_p12 = por %p16377_p11, %p16376_p10 }
 0x100   :  { %p16379_p13 = pnand %p16378_p12, %p16372_p9 }
 0x102   :  { %16382 = shalt.err (!%p16379_p13)
}
 0x103   :  { %157 = dma.hbm_to_vmem [thread:$0]  %s17204_s11, 2048, %s16775_s22, [#allocation17], %s16506_s10, %s16506_s10, %s16507_s0  }
 0x104   :  { %s16513_s23 = smov [#allocation21]   ;;  %s16514_s3 = smov [#allocation24]  }
 0x105   :  { %s173_s8 = sshll.u32 %s16513_s23, 4  ;;  %s195_s30 = sshll.u32 %s16514_s3, 4  ;;  %s174_s8 = int_to_ptr.vmem [resolvable:$true] %s173_s8  ;;  %s16809_s30 = int_to_ptr.vmem [resolvable:$true] %s195_s30 }
 0x106   :  { %s16383_s6 = scalar_lea.hbm %s17206_s13, 8192 }
 0x107   :  { %p16384_p0 = scmp.ne.s32.totalorder %s17206_s13, %s16383_s6  ;;  %p16387_p1 = scmp.lt.u32.totalorder %s16383_s6, %s17206_s13 }
 0x109   :  { %p16389_p2 = pnand %p16387_p1, %p16384_p0 }
 0x10b   :  { %16392 = shalt.err (!%p16389_p2)
}
 0x10c   :  { %s16393_s11 = scalar_lea.vmem %s174_s8, 8192  ;;  %p16398_p4 = scmp.lt.s32.totalorder %s174_s8, %s174_s8 }
 0x10d   :  { %p16394_p3 = scmp.ne.s32.totalorder %s174_s8, %s16393_s11  ;;  %p16399_p5 = scmp.lt.s32.totalorder %s16393_s11, %s16393_s11 }
 0x10f   :  { %p16400_p6 = por %p16399_p5, %p16398_p4 }
 0x111   :  { %p16401_p7 = pnand %p16400_p6, %p16394_p3 }
 0x113   :  { %16404 = shalt.err (!%p16401_p7)
}
 0x114   :  { %179 = dma.hbm_to_vmem [thread:$0]  %s17206_s13, 8192, %s174_s8, [#allocation20], %s16503_s29, %s16503_s29, %s16504_s24  }
 0x115   :  { %s16405_s27 = scalar_lea.hbm %s17208_s15, 32768 }
 0x116   :  { %p16406_p8 = scmp.ne.s32.totalorder %s17208_s15, %s16405_s27  ;;  %p16409_p9 = scmp.lt.u32.totalorder %s16405_s27, %s17208_s15 }
 0x118   :  { %p16411_p10 = pnand %p16409_p9, %p16406_p8 }
 0x11a   :  { %16414 = shalt.err (!%p16411_p10)
}
 0x11b   :  { %s16415_s5 = scalar_lea.vmem %s16809_s30, 32768  ;;  %p16420_p12 = scmp.lt.s32.totalorder %s16809_s30, %s16809_s30 }
 0x11c   :  { %p16416_p11 = scmp.ne.s32.totalorder %s16809_s30, %s16415_s5  ;;  %p16421_p13 = scmp.lt.s32.totalorder %s16415_s5, %s16415_s5 }
 0x11e   :  { %p16422_p0 = por %p16421_p13, %p16420_p12 }
 0x120   :  { %p16423_p1 = pnand %p16422_p0, %p16416_p11 }
 0x122   :  { %16426 = shalt.err (!%p16423_p1)
}
 0x123   :  { %201 = dma.hbm_to_vmem [thread:$0]  %s17208_s15, 32768, %s16809_s30, [#allocation23], %s16500_s16, %s16500_s16, %s16501_s20  }
 0x124   :  { %s16515_s24 = smov [#allocation27]   ;;  %s16427_s2 = scalar_lea.hbm %s17210_s17, 57344 }
 0x125   :  { %s217_s23 = sshll.u32 %s16515_s24, 4  ;;  %p16428_p2 = scmp.ne.s32.totalorder %s17210_s17, %s16427_s2  ;;  %s218_s23 = int_to_ptr.vmem [resolvable:$true] %s217_s23 }
 0x126   :  { %p16431_p3 = scmp.lt.u32.totalorder %s16427_s2, %s17210_s17 }
 0x128   :  { %p16433_p4 = pnand %p16431_p3, %p16428_p2 }
 0x12a   :  { %16436 = shalt.err (!%p16433_p4)
}
 0x12b   :  { %s16437_s14 = scalar_lea.vmem %s218_s23, 57344  ;;  %p16442_p6 = scmp.lt.s32.totalorder %s218_s23, %s218_s23 }
 0x12c   :  { %p16438_p5 = scmp.ne.s32.totalorder %s218_s23, %s16437_s14  ;;  %p16443_p7 = scmp.lt.s32.totalorder %s16437_s14, %s16437_s14 }
 0x12e   :  { %p16444_p8 = por %p16443_p7, %p16442_p6 }
 0x130   :  { %p16445_p9 = pnand %p16444_p8, %p16438_p5 }
 0x132   :  { %16448 = shalt.err (!%p16445_p9)
}
 0x133   :  { %s16516_s15 = smov 448   ;;  %s16517_s16 = smov 28  }
 0x134   :  { %223 = dma.hbm_to_vmem [thread:$0]  %s17210_s17, 57344, %s218_s23, [#allocation26], %s16516_s15, %s16516_s15, %s16517_s16  }
 0x135   :  { %s16518_s28 = smov [#allocation28]   ;;  %s16449_s22 = scalar_lea.hbm %s17211_s18, 112 }
 0x136   :  { %s230_s11 = sshll.u32 %s16518_s28, 4  ;;  %p16450_p10 = scmp.ne.s32.totalorder %s17211_s18, %s16449_s22  ;;  %s231_s11 = int_to_ptr.vmem [resolvable:$true] %s230_s11 }
 0x137   :  { %p16453_p11 = scmp.lt.u32.totalorder %s16449_s22, %s17211_s18 }
 0x139   :  { %p16455_p12 = pnand %p16453_p11, %p16450_p10 }
 0x13b   :  { %16458 = shalt.err (!%p16455_p12)
}
 0x13c   :  { %s16459_s4 = scalar_lea.vmem %s231_s11, 112  ;;  %s16463_s17 = scalar_lea.vmem %s231_s11, 128 }
 0x13d   :  { %p16460_p13 = scmp.ne.s32.totalorder %s231_s11, %s16459_s4  ;;  %p16464_p0 = scmp.lt.s32.totalorder %s231_s11, %s231_s11 }
 0x13e   :  { %p16465_p1 = scmp.lt.s32.totalorder %s16463_s17, %s16459_s4 }
 0x140   :  { %p16466_p2 = por %p16465_p1, %p16464_p0 }
 0x142   :  { %p16467_p3 = pnand %p16466_p2, %p16460_p13 }
 0x144   :  { %16470 = shalt.err (!%p16467_p3)
}
 0x145   :  { %233 = dma.hbm_to_vmem [thread:$0]  %s17211_s18, 112, %s231_s11, [#allocation29]  }
 0x146   :  { %16471 = dma.done.wait [#allocation3], 57344  }
 0x147   :  { %16472 = vsyncadd [#allocation3], 4294909952 }
 0x148   :  { %16473 = dma.done.wait [#allocation5], 32896  }
 0x149   :  { %16474 = vsyncadd [#allocation5], 4294934400 }
 0x14a   :  { %16475 = dma.done.wait [#allocation8], 8256  }
 0x14b   :  { %16476 = vsyncadd [#allocation8], 4294959040 }
 0x14c   :  { %16477 = dma.done.wait [#allocation11], 2080  }
 0x14d   :  { %16478 = vsyncadd [#allocation11], 4294965216 }
 0x14e   :  { %16479 = dma.done.wait [#allocation14], 1040  }
 0x14f   :  { %16480 = vsyncadd [#allocation14], 4294966256 }
 0x150   :  { %16481 = dma.done.wait [#allocation17], 2064  }
 0x151   :  { %16482 = vsyncadd [#allocation17], 4294965232 }
 0x152   :  { %16483 = dma.done.wait [#allocation20], 8224  }
 0x153   :  { %16484 = vsyncadd [#allocation20], 4294959072 }
 0x154   :  { %16485 = dma.done.wait [#allocation23], 32832  }
 0x155   :  { %16486 = vsyncadd [#allocation23], 4294934464 }
 0x156   :  { %16487 = dma.done.wait [#allocation26], 57472  }
 0x157   :  { %16488 = vsyncadd [#allocation26], 4294909824 }
 0x158   :  { %16489 = dma.done.wait [#allocation29], 112  }
 0x159   :  { %16490 = vsyncadd [#allocation29], 4294967184  ;;  %v297_v0 = vld [vmem:[#allocation2] sm:$0xff]  ;;  %v426_v2 = vld [vmem:[#allocation2 + $0x408] sm:$0xff]  ;;  %s17224_s29 = sld [smem:[#allocation40_spill]]  ;;  %vm16521_vm0 = vmmov 0  }
 0x15a   :  { %v301_v1 = vld [vmem:[#allocation2 + $0x20] sm:$0xff]  ;;  %v430_v4 = vld [vmem:[#allocation2 + $0x428] sm:$0xff] }
 0x15b   :  { %v12769_v3 = vcombine.high %v297_v0, %v301_v1  ;;  %v12768_v5 = vcombine.low %v297_v0, %v301_v1  ;;  %v305_v6 = vld [vmem:[#allocation2 + $0x40] sm:$0xff]  ;;  %v12899_v8 = vcombine.high %v426_v2, %v430_v4  ;;  %v12898_v9 = vcombine.low %v426_v2, %v430_v4  ;;  %v434_v11 = vld [vmem:[#allocation2 + $0x448] sm:$0xff] }
 0x15c   :  { %v309_v7 = vld [vmem:[#allocation2 + $0x60] sm:$0xff]  ;;  %v438_v12 = vld [vmem:[#allocation2 + $0x468] sm:$0xff] }
 0x15d   :  { %v12777_v10 = vcombine.high %v305_v6, %v309_v7  ;;  %v313_v13 = vld [vmem:[#allocation2 + $0x80] sm:$0xff]  ;;  %3063 = vmatprep.subr.bf16.mxu0 %v12769_v3  ;;  %v12907_v14 = vcombine.high %v434_v11, %v438_v12  ;;  %v442_v16 = vld [vmem:[#allocation2 + $0x488] sm:$0xff]  ;;  %3278 = vmatprep.subr.bf16.mxu1 %v12899_v8  ;;  %v12776_v18 = vcombine.low %v305_v6, %v309_v7 }
 0x15e   :  { %v317_v15 = vld [vmem:[#allocation2 + $0xa0] sm:$0xff]  ;;  %v446_v17 = vld [vmem:[#allocation2 + $0x4a8] sm:$0xff]  ;;  %3064 = vmatpush1.bf16.msra.mxu0 %v12768_v5  ;;  %3279 = vmatpush1.bf16.msra.mxu1 %v12898_v9  ;;  %v12906_v19 = vcombine.low %v434_v11, %v438_v12 }
 0x15f   :  { %3065 = vmatprep.subr.bf16.mxu0 %v12777_v10  ;;  %v12785_v20 = vcombine.high %v313_v13, %v317_v15  ;;  %3280 = vmatprep.subr.bf16.mxu1 %v12907_v14  ;;  %v12915_v21 = vcombine.high %v442_v16, %v446_v17  ;;  %v321_v22 = vld [vmem:[#allocation2 + $0xc0] sm:$0xff]  ;;  %v450_v24 = vld [vmem:[#allocation2 + $0x4c8] sm:$0xff]  ;;  %v12784_v26 = vcombine.low %v313_v13, %v317_v15 }
 0x160   :  { %v325_v23 = vld [vmem:[#allocation2 + $0xe0] sm:$0xff]  ;;  %v454_v25 = vld [vmem:[#allocation2 + $0x4e8] sm:$0xff]  ;;  %v12914_v27 = vcombine.low %v442_v16, %v446_v17 }
 0x161   :  { %v12793_v28 = vcombine.high %v321_v22, %v325_v23  ;;  %v12923_v29 = vcombine.high %v450_v24, %v454_v25  ;;  %v329_v30 = vld [vmem:[#allocation2 + $0x100] sm:$0xff]  ;;  %v458_v32 = vld [vmem:[#allocation2 + $0x508] sm:$0xff]  ;;  %v12792_v34 = vcombine.low %v321_v22, %v325_v23  ;;  %v12922_v35 = vcombine.low %v450_v24, %v454_v25 }
 0x162   :  { %3066 = vmatpush1.bf16.msra.mxu0 %v12776_v18  ;;  %3281 = vmatpush1.bf16.msra.mxu1 %v12906_v19  ;;  %v333_v31 = vld [vmem:[#allocation2 + $0x120] sm:$0xff]  ;;  %v462_v33 = vld [vmem:[#allocation2 + $0x528] sm:$0xff] }
 0x163   :  { %3067 = vmatprep.subr.bf16.mxu0 %v12785_v20  ;;  %3282 = vmatprep.subr.bf16.mxu1 %v12915_v21  ;;  %v12801_v36 = vcombine.high %v329_v30, %v333_v31  ;;  %v12931_v37 = vcombine.high %v458_v32, %v462_v33  ;;  %v337_v38 = vld [vmem:[#allocation2 + $0x140] sm:$0xff]  ;;  %v466_v40 = vld [vmem:[#allocation2 + $0x548] sm:$0xff]  ;;  %v12800_v42 = vcombine.low %v329_v30, %v333_v31 }
 0x164   :  { %v341_v39 = vld [vmem:[#allocation2 + $0x160] sm:$0xff]  ;;  %v470_v41 = vld [vmem:[#allocation2 + $0x568] sm:$0xff]  ;;  %v12930_v43 = vcombine.low %v458_v32, %v462_v33 }
 0x165   :  { %v12809_v44 = vcombine.high %v337_v38, %v341_v39  ;;  %v12939_v45 = vcombine.high %v466_v40, %v470_v41  ;;  %v345_v46 = vld [vmem:[#allocation2 + $0x180] sm:$0xff]  ;;  %v474_v48 = vld [vmem:[#allocation2 + $0x588] sm:$0xff]  ;;  %v12808_v50 = vcombine.low %v337_v38, %v341_v39  ;;  %v12938_v52 = vcombine.low %v466_v40, %v470_v41 }
 0x166   :  { %3068 = vmatpush1.bf16.msra.mxu0 %v12784_v26  ;;  %3283 = vmatpush1.bf16.msra.mxu1 %v12914_v27  ;;  %v349_v47 = vld [vmem:[#allocation2 + $0x1a0] sm:$0xff]  ;;  %v478_v49 = vld [vmem:[#allocation2 + $0x5a8] sm:$0xff] }
 0x167   :  { %3069 = vmatprep.subr.bf16.mxu0 %v12793_v28  ;;  %3284 = vmatprep.subr.bf16.mxu1 %v12923_v29  ;;  %v353_v51 = vld [vmem:[#allocation2 + $0x1c0] sm:$0xff]  ;;  %v12817_v53 = vcombine.high %v345_v46, %v349_v47  ;;  %v12947_v55 = vcombine.high %v474_v48, %v478_v49  ;;  %v482_v56 = vld [vmem:[#allocation2 + $0x5c8] sm:$0xff]  ;;  %v12816_v60 = vcombine.low %v345_v46, %v349_v47 }
 0x168   :  { %v357_v54 = vld [vmem:[#allocation2 + $0x1e0] sm:$0xff]  ;;  %v486_v57 = vld [vmem:[#allocation2 + $0x5e8] sm:$0xff]  ;;  %v12946_v61 = vcombine.low %v474_v48, %v478_v49 }
 0x169   :  { %v14730_v58 = vld [vmem:[%s17224_s29 + $0x4] ss:$28 sps:$4 sm:$0xff]   ;;  %v16876_v59 = vld [vmem:[%s17224_s29 + $0xc] ss:$28 sps:$4 sm:$0xff]   ;;  %v12825_v62 = vcombine.high %v353_v51, %v357_v54  ;;  %v12955_v63 = vcombine.high %v482_v56, %v486_v57  ;;  %v12824_v4 = vcombine.low %v353_v51, %v357_v54  ;;  %v12954_v5 = vcombine.low %v482_v56, %v486_v57 }
 0x16a   :  { %3070 = vmatpush1.bf16.msra.mxu0 %v12792_v34  ;;  %3285 = vmatpush1.bf16.msra.mxu1 %v12922_v35  ;;  %v361_v0 = vld [vmem:[#allocation2 + $0x200] sm:$0xff]  ;;  %v490_v2 = vld [vmem:[#allocation2 + $0x608] sm:$0xff] }
 0x16b   :  { %3071 = vmatprep.subr.bf16.mxu0 %v12801_v36  ;;  %3286 = vmatprep.subr.bf16.mxu1 %v12931_v37  ;;  %v365_v1 = vld [vmem:[#allocation2 + $0x220] sm:$0xff]  ;;  %v494_v3 = vld [vmem:[#allocation2 + $0x628] sm:$0xff] }
 0x16c   :  { %3095 = vmatprep.mubr.bf16.mxu0 %v14730_v58  ;;  %3310 = vmatprep.mubr.bf16.mxu1 %v16876_v59  ;;  %v12833_v6 = vcombine.high %v361_v0, %v365_v1  ;;  %v12963_v7 = vcombine.high %v490_v2, %v494_v3  ;;  %v369_v8 = vld [vmem:[#allocation2 + $0x240] sm:$0xff]  ;;  %v498_v10 = vld [vmem:[#allocation2 + $0x648] sm:$0xff]  ;;  %v12832_v12 = vcombine.low %v361_v0, %v365_v1 }
 0x16d   :  { %v373_v9 = vld [vmem:[#allocation2 + $0x260] sm:$0xff]  ;;  %v502_v11 = vld [vmem:[#allocation2 + $0x668] sm:$0xff]  ;;  %v12962_v13 = vcombine.low %v490_v2, %v494_v3 }
 0x16e   :  { %3072 = vmatpush1.bf16.msra.mxu0 %v12800_v42  ;;  %3287 = vmatpush1.bf16.msra.mxu1 %v12930_v43  ;;  %v12841_v14 = vcombine.high %v369_v8, %v373_v9  ;;  %v12971_v15 = vcombine.high %v498_v10, %v502_v11  ;;  %v377_v16 = vld [vmem:[#allocation2 + $0x280] sm:$0xff]  ;;  %v506_v18 = vld [vmem:[#allocation2 + $0x688] sm:$0xff]  ;;  %v12840_v20 = vcombine.low %v369_v8, %v373_v9 }
 0x16f   :  { %3073 = vmatprep.subr.bf16.mxu0 %v12809_v44  ;;  %3288 = vmatprep.subr.bf16.mxu1 %v12939_v45  ;;  %v381_v17 = vld [vmem:[#allocation2 + $0x2a0] sm:$0xff]  ;;  %v510_v19 = vld [vmem:[#allocation2 + $0x6a8] sm:$0xff]  ;;  %v12970_v21 = vcombine.low %v498_v10, %v502_v11 }
 0x170   :  { %v12849_v22 = vcombine.high %v377_v16, %v381_v17  ;;  %v12979_v23 = vcombine.high %v506_v18, %v510_v19  ;;  %v385_v24 = vld [vmem:[#allocation2 + $0x2c0] sm:$0xff]  ;;  %v514_v26 = vld [vmem:[#allocation2 + $0x6c8] sm:$0xff]  ;;  %v12848_v28 = vcombine.low %v377_v16, %v381_v17  ;;  %v12978_v29 = vcombine.low %v506_v18, %v510_v19 }
 0x171   :  { %v389_v25 = vld [vmem:[#allocation2 + $0x2e0] sm:$0xff]  ;;  %v518_v27 = vld [vmem:[#allocation2 + $0x6e8] sm:$0xff] }
 0x172   :  { %3074 = vmatpush1.bf16.msra.mxu0 %v12808_v50  ;;  %3289 = vmatpush1.bf16.msra.mxu1 %v12938_v52  ;;  %v12857_v30 = vcombine.high %v385_v24, %v389_v25  ;;  %v12987_v31 = vcombine.high %v514_v26, %v518_v27  ;;  %v393_v32 = vld [vmem:[#allocation2 + $0x300] sm:$0xff]  ;;  %v522_v34 = vld [vmem:[#allocation2 + $0x708] sm:$0xff]  ;;  %v12856_v36 = vcombine.low %v385_v24, %v389_v25 }
 0x173   :  { %3075 = vmatprep.subr.bf16.mxu0 %v12817_v53  ;;  %3290 = vmatprep.subr.bf16.mxu1 %v12947_v55  ;;  %v397_v33 = vld [vmem:[#allocation2 + $0x320] sm:$0xff]  ;;  %v526_v35 = vld [vmem:[#allocation2 + $0x728] sm:$0xff]  ;;  %v12986_v37 = vcombine.low %v514_v26, %v518_v27 }
 0x174   :  { %v12865_v38 = vcombine.high %v393_v32, %v397_v33  ;;  %v401_v39 = vld [vmem:[#allocation2 + $0x340] sm:$0xff]  ;;  %v12995_v40 = vcombine.high %v522_v34, %v526_v35  ;;  %v530_v42 = vld [vmem:[#allocation2 + $0x748] sm:$0xff]  ;;  %v12864_v44 = vcombine.low %v393_v32, %v397_v33  ;;  %v12994_v45 = vcombine.low %v522_v34, %v526_v35 }
 0x175   :  { %v405_v41 = vld [vmem:[#allocation2 + $0x360] sm:$0xff]  ;;  %v534_v43 = vld [vmem:[#allocation2 + $0x768] sm:$0xff] }
 0x176   :  { %3076 = vmatpush1.bf16.msra.mxu0 %v12816_v60  ;;  %3291 = vmatpush1.bf16.msra.mxu1 %v12946_v61  ;;  %v12873_v46 = vcombine.high %v401_v39, %v405_v41  ;;  %v13003_v47 = vcombine.high %v530_v42, %v534_v43  ;;  %v409_v48 = vld [vmem:[#allocation2 + $0x380] sm:$0xff]  ;;  %v538_v50 = vld [vmem:[#allocation2 + $0x788] sm:$0xff]  ;;  %v12872_v52 = vcombine.low %v401_v39, %v405_v41 }
 0x177   :  { %3077 = vmatprep.subr.bf16.mxu0 %v12825_v62  ;;  %3292 = vmatprep.subr.bf16.mxu1 %v12955_v63  ;;  %v413_v49 = vld [vmem:[#allocation2 + $0x3a0] sm:$0xff]  ;;  %v542_v51 = vld [vmem:[#allocation2 + $0x7a8] sm:$0xff]  ;;  %v13002_v53 = vcombine.low %v530_v42, %v534_v43 }
 0x178   :  { %v12881_v54 = vcombine.high %v409_v48, %v413_v49  ;;  %v13011_v55 = vcombine.high %v538_v50, %v542_v51  ;;  %v417_v56 = vld [vmem:[#allocation2 + $0x3c0] sm:$0xff]  ;;  %v546_v58 = vld [vmem:[#allocation2 + $0x7c8] sm:$0xff]  ;;  %v12880_v61 = vcombine.low %v409_v48, %v413_v49  ;;  %v13010_v62 = vcombine.low %v538_v50, %v542_v51 }
 0x179   :  { %v421_v57 = vld [vmem:[#allocation2 + $0x3e0] sm:$0xff]  ;;  %v550_v60 = vld [vmem:[#allocation2 + $0x7e8] sm:$0xff] }
 0x17a   :  { %3078 = vmatpush1.bf16.msra.mxu0 %v12824_v4  ;;  %3293 = vmatpush1.bf16.msra.mxu1 %v12954_v5  ;;  %v12889_v63 = vcombine.high %v417_v56, %v421_v57  ;;  %v13019_v0 = vcombine.high %v546_v58, %v550_v60  ;;  %v425_v1 = vld [vmem:[#allocation2 + $0x400] sm:$0xff]  ;;  %v554_v3 = vld [vmem:[#allocation2 + $0x808] sm:$0xff]  ;;  %v12888_v5 = vcombine.low %v417_v56, %v421_v57 }
 0x17b   :  { %3079 = vmatprep.subr.bf16.mxu0 %v12833_v6  ;;  %3294 = vmatprep.subr.bf16.mxu1 %v12963_v7  ;;  %v429_v2 = vld [vmem:[#allocation2 + $0x420] sm:$0xff]  ;;  %v558_v4 = vld [vmem:[#allocation2 + $0x828] sm:$0xff]  ;;  %v13018_v6 = vcombine.low %v546_v58, %v550_v60 }
 0x17c   :  { %v12897_v7 = vcombine.high %v425_v1, %v429_v2  ;;  %v13027_v8 = vcombine.high %v554_v3, %v558_v4  ;;  %v433_v9 = vld [vmem:[#allocation2 + $0x440] sm:$0xff]  ;;  %v13026_v16 = vcombine.low %v554_v3, %v558_v4  ;;  %v590_v39 = vld [vmem:[#allocation2 + $0x928] sm:$0xff] }
 0x17d   :  { %v437_v10 = vld [vmem:[#allocation2 + $0x460] sm:$0xff] }
 0x17e   :  { %3080 = vmatpush1.bf16.msra.mxu0 %v12832_v12  ;;  %3295 = vmatpush1.bf16.msra.mxu1 %v12962_v13  ;;  %v14734_v11 = vld [vmem:[%s17224_s29] ss:$28 sps:$4 sm:$0xff]   ;;  %v562_v12 = vld [vmem:[#allocation2 + $0x848] sm:$0xff]  ;;  %v12905_v17 = vcombine.high %v433_v9, %v437_v10  ;;  %v12904_v24 = vcombine.low %v433_v9, %v437_v10 }
 0x17f   :  { %3081 = vmatprep.subr.bf16.mxu0 %v12841_v14  ;;  %3296 = vmatprep.subr.bf16.mxu1 %v12971_v15  ;;  %v566_v13 = vld [vmem:[#allocation2 + $0x868] sm:$0xff]  ;;  %v12896_v14 = vcombine.low %v425_v1, %v429_v2  ;;  %v441_v19 = vld [vmem:[#allocation2 + $0x480] sm:$0xff] }
 0x180   :  { %v16885_v15 = vld [vmem:[%s17224_s29 + $0x8] ss:$28 sps:$4 sm:$0xff]   ;;  %v13035_v18 = vcombine.high %v562_v12, %v566_v13  ;;  %v13034_v25 = vcombine.low %v562_v12, %v566_v13 }
 0x181   :  { %v457_v35 = vld [vmem:[#allocation2 + $0x500] sm:$0xff]  ;;  %v626_v13 = vld [vmem:[#allocation2 + $0xa48] sm:$0xff] }
 0x182   :  { %3082 = vmatpush1.bf16.msra.mxu0 %v12840_v20  ;;  %3297 = vmatpush1.bf16.msra.mxu1 %v12970_v21  ;;  %v445_v20 = vld [vmem:[#allocation2 + $0x4a0] sm:$0xff]  ;;  %v570_v21 = vld [vmem:[#allocation2 + $0x888] sm:$0xff] }
 0x183   :  { %3083 = vmatprep.subr.bf16.mxu0 %v12849_v22  ;;  %3298 = vmatprep.subr.bf16.mxu1 %v12979_v23  ;;  %v574_v22 = vld [vmem:[#allocation2 + $0x8a8] sm:$0xff]  ;;  %v16890_v23 = vld [vmem:[%s17224_s29 + $0x14] ss:$28 sps:$4 sm:$0xff]   ;;  %v12913_v26 = vcombine.high %v441_v19, %v445_v20  ;;  %v12912_v32 = vcombine.low %v441_v19, %v445_v20  ;;  %v465_v42 = vld [vmem:[#allocation2 + $0x540] sm:$0xff] }
 0x184   :  { %v13043_v27 = vcombine.high %v570_v21, %v574_v22  ;;  %v13042_v33 = vcombine.low %v570_v21, %v574_v22  ;;  %v469_v43 = vld [vmem:[#allocation2 + $0x560] sm:$0xff]  ;;  %v634_v22 = vld [vmem:[#allocation2 + $0xa88] sm:$0xff] }
 0x185   :  { %v12937_v49 = vcombine.high %v465_v42, %v469_v43  ;;  %v473_v50 = vld [vmem:[#allocation2 + $0x580] sm:$0xff] }
 0x186   :  { %3084 = vmatpush1.bf16.msra.mxu0 %v12848_v28  ;;  %3299 = vmatpush1.bf16.msra.mxu1 %v12978_v29  ;;  %v449_v28 = vld [vmem:[#allocation2 + $0x4c0] sm:$0xff] }
 0x187   :  { %3085 = vmatprep.subr.bf16.mxu0 %v12857_v30  ;;  %3300 = vmatprep.subr.bf16.mxu1 %v12987_v31  ;;  %v453_v29 = vld [vmem:[#allocation2 + $0x4e0] sm:$0xff]  ;;  %v578_v30 = vld [vmem:[#allocation2 + $0x8c8] sm:$0xff] }
 0x188   :  { %v582_v31 = vld [vmem:[#allocation2 + $0x8e8] sm:$0xff]  ;;  %v12921_v34 = vcombine.high %v449_v28, %v453_v29  ;;  %v477_v51 = vld [vmem:[#allocation2 + $0x5a0] sm:$0xff] }
 0x189   :  { %v12945_v57 = vcombine.high %v473_v50, %v477_v51  ;;  %v481_v58 = vld [vmem:[#allocation2 + $0x5c0] sm:$0xff] }
 0x18a   :  { %3086 = vmatpush1.bf16.msra.mxu0 %v12856_v36  ;;  %3301 = vmatpush1.bf16.msra.mxu1 %v12986_v37  ;;  %v461_v36 = vld [vmem:[#allocation2 + $0x520] sm:$0xff]  ;;  %v586_v37 = vld [vmem:[#allocation2 + $0x908] sm:$0xff] }
 0x18b   :  { %3087 = vmatprep.subr.bf16.mxu0 %v12865_v38  ;;  %3302 = vmatprep.subr.bf16.mxu1 %v12995_v40  ;;  %v13051_v38 = vcombine.high %v578_v30, %v582_v31  ;;  %v12920_v40 = vcombine.low %v449_v28, %v453_v29  ;;  %v12929_v41 = vcombine.high %v457_v35, %v461_v36  ;;  %v485_v60 = vld [vmem:[#allocation2 + $0x5e0] sm:$0xff] }
 0x18c   :  { %v13058_v48 = vcombine.low %v586_v37, %v590_v39  ;;  %v12953_v2 = vcombine.high %v481_v58, %v485_v60  ;;  %v489_v3 = vld [vmem:[#allocation2 + $0x600] sm:$0xff] }
 0x18d   :  { %v493_v4 = vld [vmem:[#allocation2 + $0x620] sm:$0xff] }
 0x18e   :  { %3088 = vmatpush1.bf16.msra.mxu0 %v12864_v44  ;;  %3303 = vmatpush1.bf16.msra.mxu1 %v12994_v45  ;;  %v594_v44 = vld [vmem:[#allocation2 + $0x948] sm:$0xff]  ;;  %v13059_v45 = vcombine.high %v586_v37, %v590_v39  ;;  %v12961_v10 = vcombine.high %v489_v3, %v493_v4  ;;  %v501_v12 = vld [vmem:[#allocation2 + $0x660] sm:$0xff] }
 0x18f   :  { %3089 = vmatprep.subr.bf16.mxu0 %v12873_v46  ;;  %3304 = vmatprep.subr.bf16.mxu1 %v13003_v47  ;;  %v598_v46 = vld [vmem:[#allocation2 + $0x968] sm:$0xff]  ;;  %v12928_v47 = vcombine.low %v457_v35, %v461_v36  ;;  %v505_v20 = vld [vmem:[#allocation2 + $0x680] sm:$0xff] }
 0x190   :  { %v13066_v56 = vcombine.low %v594_v44, %v598_v46  ;;  %v509_v21 = vld [vmem:[#allocation2 + $0x6a0] sm:$0xff]  ;;  %v650_v39 = vld [vmem:[#allocation2 + $0xb08] sm:$0xff] }
 0x191   :  { %v12977_v28 = vcombine.high %v505_v20, %v509_v21  ;;  %v513_v29 = vld [vmem:[#allocation2 + $0x6c0] sm:$0xff] }
 0x192   :  { %3090 = vmatpush1.bf16.msra.mxu0 %v12872_v52  ;;  %3305 = vmatpush1.bf16.msra.mxu1 %v13002_v53  ;;  %v602_v52 = vld [vmem:[#allocation2 + $0x988] sm:$0xff]  ;;  %v13067_v53 = vcombine.high %v594_v44, %v598_v46  ;;  %v521_v37 = vld [vmem:[#allocation2 + $0x700] sm:$0xff] }
 0x193   :  { %3091 = vmatprep.subr.bf16.mxu0 %v12881_v54  ;;  %3306 = vmatprep.subr.bf16.mxu1 %v13011_v55  ;;  %v606_v54 = vld [vmem:[#allocation2 + $0x9a8] sm:$0xff]  ;;  %v12936_v55 = vcombine.low %v465_v42, %v469_v43  ;;  %v529_v44 = vld [vmem:[#allocation2 + $0x740] sm:$0xff] }
 0x194   :  { %v13074_v1 = vcombine.low %v602_v52, %v606_v54  ;;  %v658_v46 = vld [vmem:[#allocation2 + $0xb48] sm:$0xff] }
 0x196   :  { %3092 = vmatpush1.bf16.msra.mxu0 %v12880_v61  ;;  %3307 = vmatpush1.bf16.msra.mxu1 %v13010_v62  ;;  %v610_v61 = vld [vmem:[#allocation2 + $0x9c8] sm:$0xff]  ;;  %v13075_v62 = vcombine.high %v602_v52, %v606_v54  ;;  %v537_v52 = vld [vmem:[#allocation2 + $0x780] sm:$0xff] }
 0x197   :  { %3093 = vmatprep.subr.bf16.mxu0 %v12889_v63  ;;  %3308 = vmatprep.subr.bf16.mxu1 %v13019_v0  ;;  %v614_v63 = vld [vmem:[#allocation2 + $0x9e8] sm:$0xff]  ;;  %v12944_v0 = vcombine.low %v473_v50, %v477_v51 }
 0x198   :  { %v13082_v9 = vcombine.low %v610_v61, %v614_v63  ;;  %v666_v54 = vld [vmem:[#allocation2 + $0xb88] sm:$0xff] }
 0x19a   :  { %3094 = vmatpush1.bf16.msra.mxu0 %v12888_v5  ;;  %3309 = vmatpush1.bf16.msra.mxu1 %v13018_v6  ;;  %v618_v5 = vld [vmem:[#allocation2 + $0xa08] sm:$0xff]  ;;  %v13083_v6 = vcombine.high %v610_v61, %v614_v63  ;;  %v545_v61 = vld [vmem:[#allocation2 + $0x7c0] sm:$0xff] }
 0x19b   :  { %3106 = vmatprep.subr.bf16.mxu0 %v12897_v7  ;;  %3321 = vmatprep.subr.bf16.mxu1 %v13027_v8  ;;  %v622_v7 = vld [vmem:[#allocation2 + $0xa28] sm:$0xff]  ;;  %v12952_v8 = vcombine.low %v481_v58, %v485_v60 }
 0x19c   :  { %v674_v63 = vld [vmem:[#allocation2 + $0xbc8] sm:$0xff] }
 0x19d   :  { %3096 = vmatmul.mubr.bf16.vlgmr.msra.gmra.mrb[0].mxu0 %v14734_v11  ;;  %3311 = vmatmul.mubr.bf16.vlgmr.msra.gmra.mrb[0].mxu1 %v16885_v15  ;;  %v497_v11 = vld [vmem:[#allocation2 + $0x640] sm:$0xff] }
 0x19e   :  { %3107 = vmatpush1.bf16.msra.mxu0 %v12896_v14  ;;  %3322 = vmatpush1.bf16.msra.mxu1 %v13026_v16  ;;  %v13091_v14 = vcombine.high %v618_v5, %v622_v7  ;;  %v630_v16 = vld [vmem:[#allocation2 + $0xa68] sm:$0xff]  ;;  %v12969_v19 = vcombine.high %v497_v11, %v501_v12 }
 0x19f   :  { %3108 = vmatprep.subr.bf16.mxu0 %v12905_v17  ;;  %3323 = vmatprep.subr.bf16.mxu1 %v13035_v18  ;;  %v12960_v17 = vcombine.low %v489_v3, %v493_v4  ;;  %v13090_v18 = vcombine.low %v618_v5, %v622_v7  ;;  %v553_v5 = vld [vmem:[#allocation2 + $0x800] sm:$0xff]  ;;  %v682_v7 = vld [vmem:[#allocation2 + $0xc08] sm:$0xff] }
 0x1a0   :  { %3138 = vmatprep.mubr.bf16.mxu0 %v16876_v59  ;;  %3353 = vmatprep.mubr.bf16.mxu1 %v16890_v23  ;;  %v13050_v59 = vcombine.low %v578_v30, %v582_v31  ;;  %v517_v30 = vld [vmem:[#allocation2 + $0x6e0] sm:$0xff]  ;;  %v642_v31 = vld [vmem:[#allocation2 + $0xac8] sm:$0xff] }
 0x1a1   :  { %v12985_v36 = vcombine.high %v513_v29, %v517_v30 }
 0x1a2   :  { %3109 = vmatpush1.bf16.msra.mxu0 %v12904_v24  ;;  %3324 = vmatpush1.bf16.msra.mxu1 %v13034_v25  ;;  %v13099_v24 = vcombine.high %v626_v13, %v630_v16  ;;  %v638_v25 = vld [vmem:[#allocation2 + $0xaa8] sm:$0xff] }
 0x1a3   :  { %3110 = vmatprep.subr.bf16.mxu0 %v12913_v26  ;;  %3325 = vmatprep.subr.bf16.mxu1 %v13043_v27  ;;  %v12968_v26 = vcombine.low %v497_v11, %v501_v12  ;;  %v13098_v27 = vcombine.low %v626_v13, %v630_v16  ;;  %v13106_v35 = vcombine.low %v634_v22, %v638_v25  ;;  %v561_v13 = vld [vmem:[#allocation2 + $0x840] sm:$0xff]  ;;  %v690_v16 = vld [vmem:[#allocation2 + $0xc48] sm:$0xff] }
 0x1a6   :  { %3111 = vmatpush1.bf16.msra.mxu0 %v12912_v32  ;;  %3326 = vmatpush1.bf16.msra.mxu1 %v13042_v33  ;;  %v13107_v32 = vcombine.high %v634_v22, %v638_v25  ;;  %v646_v33 = vld [vmem:[#allocation2 + $0xae8] sm:$0xff]  ;;  %v573_v25 = vld [vmem:[#allocation2 + $0x8a0] sm:$0xff] }
 0x1a7   :  { %3112 = vmatprep.subr.bf16.mxu0 %v12921_v34  ;;  %3327 = vmatprep.subr.bf16.mxu1 %v13051_v38  ;;  %v12976_v34 = vcombine.low %v505_v20, %v509_v21  ;;  %v525_v38 = vld [vmem:[#allocation2 + $0x720] sm:$0xff]  ;;  %v13114_v42 = vcombine.low %v642_v31, %v646_v33 }
 0x1a8   :  { %v12993_v43 = vcombine.high %v521_v37, %v525_v38 }
 0x1aa   :  { %3113 = vmatpush1.bf16.msra.mxu0 %v12920_v40  ;;  %3328 = vmatpush1.bf16.msra.mxu1 %v13050_v59  ;;  %v13115_v40 = vcombine.high %v642_v31, %v646_v33  ;;  %v654_v59 = vld [vmem:[#allocation2 + $0xb28] sm:$0xff]  ;;  %v581_v33 = vld [vmem:[#allocation2 + $0x8e0] sm:$0xff] }
 0x1ab   :  { %3114 = vmatprep.subr.bf16.mxu0 %v12929_v41  ;;  %3329 = vmatprep.subr.bf16.mxu1 %v13059_v45  ;;  %v12984_v41 = vcombine.low %v513_v29, %v517_v30  ;;  %v533_v45 = vld [vmem:[#allocation2 + $0x760] sm:$0xff]  ;;  %v13122_v50 = vcombine.low %v650_v39, %v654_v59 }
 0x1ac   :  { %v13001_v51 = vcombine.high %v529_v44, %v533_v45 }
 0x1ae   :  { %3115 = vmatpush1.bf16.msra.mxu0 %v12928_v47  ;;  %3330 = vmatpush1.bf16.msra.mxu1 %v13058_v48  ;;  %v13123_v47 = vcombine.high %v650_v39, %v654_v59  ;;  %v662_v48 = vld [vmem:[#allocation2 + $0xb68] sm:$0xff]  ;;  %v589_v59 = vld [vmem:[#allocation2 + $0x920] sm:$0xff] }
 0x1af   :  { %3116 = vmatprep.subr.bf16.mxu0 %v12937_v49  ;;  %3331 = vmatprep.subr.bf16.mxu1 %v13067_v53  ;;  %v12992_v49 = vcombine.low %v521_v37, %v525_v38  ;;  %v541_v53 = vld [vmem:[#allocation2 + $0x7a0] sm:$0xff]  ;;  %v13130_v58 = vcombine.low %v658_v46, %v662_v48  ;;  %v16519_v37 = vmov 0  }
 0x1b0   :  { %v13009_v60 = vcombine.high %v537_v52, %v541_v53 }
 0x1b2   :  { %3117 = vmatpush1.bf16.msra.mxu0 %v12936_v55  ;;  %3332 = vmatpush1.bf16.msra.mxu1 %v13066_v56  ;;  %v13131_v55 = vcombine.high %v658_v46, %v662_v48  ;;  %v670_v56 = vld [vmem:[#allocation2 + $0xba8] sm:$0xff] }
 0x1b3   :  { %3118 = vmatprep.subr.bf16.mxu0 %v12945_v57  ;;  %3333 = vmatprep.subr.bf16.mxu1 %v13075_v62  ;;  %v13000_v57 = vcombine.low %v529_v44, %v533_v45  ;;  %v549_v62 = vld [vmem:[#allocation2 + $0x7e0] sm:$0xff]  ;;  %v13138_v3 = vcombine.low %v666_v54, %v670_v56  ;;  %v722_v48 = vld [vmem:[#allocation2 + $0xd48] sm:$0xff] }
 0x1b4   :  { %v13017_v4 = vcombine.high %v545_v61, %v549_v62 }
 0x1b6   :  { %3119 = vmatpush1.bf16.msra.mxu0 %v12944_v0  ;;  %3334 = vmatpush1.bf16.msra.mxu1 %v13074_v1  ;;  %v13139_v0 = vcombine.high %v666_v54, %v670_v56  ;;  %v678_v1 = vld [vmem:[#allocation2 + $0xbe8] sm:$0xff]  ;;  %v601_v54 = vld [vmem:[#allocation2 + $0x980] sm:$0xff] }
 0x1b7   :  { %3120 = vmatprep.subr.bf16.mxu0 %v12953_v2  ;;  %3335 = vmatprep.subr.bf16.mxu1 %v13083_v6  ;;  %v13008_v2 = vcombine.low %v537_v52, %v541_v53  ;;  %v557_v6 = vld [vmem:[#allocation2 + $0x820] sm:$0xff]  ;;  %v13146_v11 = vcombine.low %v674_v63, %v678_v1  ;;  %v730_v56 = vld [vmem:[#allocation2 + $0xd88] sm:$0xff] }
 0x1b8   :  { %v13025_v12 = vcombine.high %v553_v5, %v557_v6  ;;  %v13024_v20 = vcombine.low %v553_v5, %v557_v6 }
 0x1ba   :  { %3121 = vmatpush1.bf16.msra.mxu0 %v12952_v8  ;;  %3336 = vmatpush1.bf16.msra.mxu1 %v13082_v9  ;;  %v13147_v8 = vcombine.high %v674_v63, %v678_v1  ;;  %v686_v9 = vld [vmem:[#allocation2 + $0xc28] sm:$0xff]  ;;  %v609_v63 = vld [vmem:[#allocation2 + $0x9c0] sm:$0xff] }
 0x1bb   :  { %3122 = vmatprep.subr.bf16.mxu0 %v12961_v10  ;;  %3337 = vmatprep.subr.bf16.mxu1 %v13091_v14  ;;  %v13016_v10 = vcombine.low %v545_v61, %v549_v62  ;;  %v565_v14 = vld [vmem:[#allocation2 + $0x860] sm:$0xff]  ;;  %v13154_v21 = vcombine.low %v682_v7, %v686_v9  ;;  %v738_v1 = vld [vmem:[#allocation2 + $0xdc8] sm:$0xff] }
 0x1bc   :  { %v13033_v22 = vcombine.high %v561_v13, %v565_v14  ;;  %v13032_v29 = vcombine.low %v561_v13, %v565_v14 }
 0x1be   :  { %3123 = vmatpush1.bf16.msra.mxu0 %v12960_v17  ;;  %3338 = vmatpush1.bf16.msra.mxu1 %v13090_v18  ;;  %v13155_v17 = vcombine.high %v682_v7, %v686_v9  ;;  %v16898_v18 = vld [vmem:[%s17224_s29 + $0x10] ss:$28 sps:$4 sm:$0xff]   ;;  %v617_v7 = vld [vmem:[#allocation2 + $0xa00] sm:$0xff]  ;;  %v300_v9 = vld [vmem:[#allocation2 + $0x18] sm:$0xff] }
 0x1bf   :  { %3124 = vmatprep.subr.bf16.mxu0 %v12969_v19  ;;  %3339 = vmatprep.subr.bf16.mxu1 %v13099_v24  ;;  %v694_v19 = vld [vmem:[#allocation2 + $0xc68] sm:$0xff]  ;;  %v569_v24 = vld [vmem:[#allocation2 + $0x880] sm:$0xff] }
 0x1c0   :  { %v13162_v30 = vcombine.low %v690_v16, %v694_v19  ;;  %v13041_v31 = vcombine.high %v569_v24, %v573_v25 }
 0x1c2   :  { %3125 = vmatpush1.bf16.msra.mxu0 %v12968_v26  ;;  %3340 = vmatpush1.bf16.msra.mxu1 %v13098_v27  ;;  %v698_v26 = vld [vmem:[#allocation2 + $0xc88] sm:$0xff]  ;;  %v13163_v27 = vcombine.high %v690_v16, %v694_v19  ;;  %v625_v16 = vld [vmem:[#allocation2 + $0xa40] sm:$0xff]  ;;  %v308_v19 = vld [vmem:[#allocation2 + $0x58] sm:$0xff] }
 0x1c3   :  { %3126 = vmatprep.subr.bf16.mxu0 %v12977_v28  ;;  %3341 = vmatprep.subr.bf16.mxu1 %v13107_v32  ;;  %v702_v28 = vld [vmem:[#allocation2 + $0xca8] sm:$0xff]  ;;  %v577_v32 = vld [vmem:[#allocation2 + $0x8c0] sm:$0xff] }
 0x1c4   :  { %v13170_v38 = vcombine.low %v698_v26, %v702_v28  ;;  %v13049_v39 = vcombine.high %v577_v32, %v581_v33  ;;  %v13048_v44 = vcombine.low %v577_v32, %v581_v33 }
 0x1c6   :  { %3127 = vmatpush1.bf16.msra.mxu0 %v12976_v34  ;;  %3342 = vmatpush1.bf16.msra.mxu1 %v13106_v35  ;;  %v706_v34 = vld [vmem:[#allocation2 + $0xcc8] sm:$0xff]  ;;  %v13171_v35 = vcombine.high %v698_v26, %v702_v28  ;;  %v637_v28 = vld [vmem:[#allocation2 + $0xaa0] sm:$0xff] }
 0x1c7   :  { %3128 = vmatprep.subr.bf16.mxu0 %v12985_v36  ;;  %3343 = vmatprep.subr.bf16.mxu1 %v13115_v40  ;;  %v710_v36 = vld [vmem:[#allocation2 + $0xce8] sm:$0xff]  ;;  %v585_v40 = vld [vmem:[#allocation2 + $0x900] sm:$0xff] }
 0x1c8   :  { %v13178_v45 = vcombine.low %v706_v34, %v710_v36  ;;  %v13057_v46 = vcombine.high %v585_v40, %v589_v59 }
 0x1ca   :  { %3129 = vmatpush1.bf16.msra.mxu0 %v12984_v41  ;;  %3344 = vmatpush1.bf16.msra.mxu1 %v13114_v42  ;;  %v714_v41 = vld [vmem:[#allocation2 + $0xd08] sm:$0xff]  ;;  %v13179_v42 = vcombine.high %v706_v34, %v710_v36  ;;  %v645_v36 = vld [vmem:[#allocation2 + $0xae0] sm:$0xff] }
 0x1cb   :  { %3130 = vmatprep.subr.bf16.mxu0 %v12993_v43  ;;  %3345 = vmatprep.subr.bf16.mxu1 %v13123_v47  ;;  %v718_v43 = vld [vmem:[#allocation2 + $0xd28] sm:$0xff]  ;;  %v593_v47 = vld [vmem:[#allocation2 + $0x940] sm:$0xff] }
 0x1cc   :  { %v13186_v52 = vcombine.low %v714_v41, %v718_v43 }
 0x1ce   :  { %3131 = vmatpush1.bf16.msra.mxu0 %v12992_v49  ;;  %3346 = vmatpush1.bf16.msra.mxu1 %v13122_v50  ;;  %v13187_v49 = vcombine.high %v714_v41, %v718_v43  ;;  %v726_v50 = vld [vmem:[#allocation2 + $0xd68] sm:$0xff]  ;;  %v649_v43 = vld [vmem:[#allocation2 + $0xb00] sm:$0xff] }
 0x1cf   :  { %3132 = vmatprep.subr.bf16.mxu0 %v13001_v51  ;;  %3347 = vmatprep.subr.bf16.mxu1 %v13131_v55  ;;  %v13056_v51 = vcombine.low %v585_v40, %v589_v59  ;;  %v605_v55 = vld [vmem:[#allocation2 + $0x9a0] sm:$0xff]  ;;  %v13194_v61 = vcombine.low %v722_v48, %v726_v50 }
 0x1d0   :  { %v13073_v62 = vcombine.high %v601_v54, %v605_v55  ;;  %v16913_v40 = vld [vmem:[%s17224_s29 + $0x4] ss:$28 sps:$4 sm:$0xff]  }
 0x1d2   :  { %3133 = vmatpush1.bf16.msra.mxu0 %v13000_v57  ;;  %3348 = vmatpush1.bf16.msra.mxu1 %v13130_v58  ;;  %v13195_v57 = vcombine.high %v722_v48, %v726_v50  ;;  %v734_v58 = vld [vmem:[#allocation2 + $0xda8] sm:$0xff]  ;;  %v657_v50 = vld [vmem:[#allocation2 + $0xb40] sm:$0xff] }
 0x1d3   :  { %3134 = vmatprep.subr.bf16.mxu0 %v13009_v60  ;;  %3349 = vmatprep.subr.bf16.mxu1 %v13139_v0  ;;  %v613_v0 = vld [vmem:[#allocation2 + $0x9e0] sm:$0xff]  ;;  %v13202_v5 = vcombine.low %v730_v56, %v734_v58 }
 0x1d4   :  { %v13081_v6 = vcombine.high %v609_v63, %v613_v0 }
 0x1d6   :  { %3135 = vmatpush1.bf16.msra.mxu0 %v13008_v2  ;;  %3350 = vmatpush1.bf16.msra.mxu1 %v13138_v3  ;;  %v13203_v2 = vcombine.high %v730_v56, %v734_v58  ;;  %v742_v3 = vld [vmem:[#allocation2 + $0xde8] sm:$0xff]  ;;  %v665_v58 = vld [vmem:[#allocation2 + $0xb80] sm:$0xff] }
 0x1d7   :  { %3136 = vmatprep.subr.bf16.mxu0 %v13017_v4  ;;  %3351 = vmatprep.subr.bf16.mxu1 %v13147_v8  ;;  %v13072_v4 = vcombine.low %v601_v54, %v605_v55  ;;  %v621_v8 = vld [vmem:[#allocation2 + $0xa20] sm:$0xff]  ;;  %v13210_v13 = vcombine.low %v738_v1, %v742_v3  ;;  %v344_v54 = vld [vmem:[#allocation2 + $0x178] sm:$0xff] }
 0x1d8   :  { %v13089_v14 = vcombine.high %v617_v7, %v621_v8 }
 0x1da   :  { %3137 = vmatpush1.bf16.msra.mxu0 %v13016_v10  ;;  %3352 = vmatpush1.bf16.msra.mxu1 %v13146_v11  ;;  %v13211_v10 = vcombine.high %v738_v1, %v742_v3  ;;  %v304_v11 = vld [vmem:[#allocation2 + $0x38] sm:$0xff]  ;;  %v673_v3 = vld [vmem:[#allocation2 + $0xbc0] sm:$0xff] }
 0x1db   :  { %3149 = vmatprep.subr.bf16.mxu0 %v13025_v12  ;;  %3364 = vmatprep.subr.bf16.mxu1 %v13155_v17  ;;  %v13080_v12 = vcombine.low %v609_v63, %v613_v0  ;;  %v629_v17 = vld [vmem:[#allocation2 + $0xa60] sm:$0xff]  ;;  %v352_v63 = vld [vmem:[#allocation2 + $0x1b8] sm:$0xff] }
 0x1dc   :  { %v13097_v26 = vcombine.high %v625_v16, %v629_v17  ;;  %v13096_v32 = vcombine.low %v625_v16, %v629_v17  ;;  %v368_v16 = vld [vmem:[#allocation2 + $0x238] sm:$0xff] }
 0x1dd   :  { %3139 = vmatmul.mubr.bf16.vlgmr.msra.gmra.mrb[0].mxu0 %v16885_v15  ;;  %3354 = vmatmul.mubr.bf16.vlgmr.msra.gmra.mrb[0].mxu1 %v16898_v18  ;;  %v13040_v15 = vcombine.low %v569_v24, %v573_v25  ;;  %v13088_v24 = vcombine.low %v617_v7, %v621_v8  ;;  %v12774_v25 = vcombine.low %v300_v9, %v304_v11  ;;  %v360_v7 = vld [vmem:[#allocation2 + $0x1f8] sm:$0xff] }
 0x1de   :  { %3150 = vmatpush1.bf16.msra.mxu0 %v13024_v20  ;;  %3365 = vmatpush1.bf16.msra.mxu1 %v13154_v21  ;;  %v12775_v20 = vcombine.high %v300_v9, %v304_v11  ;;  %v16907_v21 = vld [vmem:[%s17224_s29 + $0x18] ss:$28 sps:$4 sm:$0xff]   ;;  %v681_v11 = vld [vmem:[#allocation2 + $0xc00] sm:$0xff] }
 0x1df   :  { %3151 = vmatprep.subr.bf16.mxu0 %v13033_v22  ;;  %3366 = vmatprep.subr.bf16.mxu1 %v13163_v27  ;;  %v312_v22 = vld [vmem:[#allocation2 + $0x78] sm:$0xff]  ;;  %v633_v27 = vld [vmem:[#allocation2 + $0xa80] sm:$0xff] }
 0x1e0   :  { %3396 = vmatprep.mubr.bf16.mxu1 %v16519_v37  ;;  %3181 = vmatprep.mubr.bf16.mxu0 %v16890_v23  ;;  %v597_v23 = vld [vmem:[#allocation2 + $0x960] sm:$0xff]  ;;  %v12782_v33 = vcombine.low %v308_v19, %v312_v22  ;;  %v13105_v34 = vcombine.high %v633_v27, %v637_v28  ;;  %v13104_v59 = vcombine.low %v633_v27, %v637_v28  ;;  %v376_v27 = vld [vmem:[#allocation2 + $0x278] sm:$0xff] }
 0x1e1   :  { %v13065_v53 = vcombine.high %v593_v47, %v597_v23  ;;  %v13064_v60 = vcombine.low %v593_v47, %v597_v23  ;;  %v336_v47 = vld [vmem:[#allocation2 + $0x138] sm:$0xff] }
 0x1e2   :  { %3152 = vmatpush1.bf16.msra.mxu0 %v13032_v29  ;;  %3367 = vmatpush1.bf16.msra.mxu1 %v13162_v30  ;;  %v316_v29 = vld [vmem:[#allocation2 + $0x98] sm:$0xff]  ;;  %v12783_v30 = vcombine.high %v308_v19, %v312_v22  ;;  %v689_v22 = vld [vmem:[#allocation2 + $0xc40] sm:$0xff] }
 0x1e3   :  { %3153 = vmatprep.subr.bf16.mxu0 %v13041_v31  ;;  %3368 = vmatprep.subr.bf16.mxu1 %v13171_v35  ;;  %v320_v31 = vld [vmem:[#allocation2 + $0xb8] sm:$0xff]  ;;  %v641_v35 = vld [vmem:[#allocation2 + $0xac0] sm:$0xff] }
 0x1e4   :  { %v12790_v41 = vcombine.low %v316_v29, %v320_v31  ;;  %v13112_v23 = vcombine.low %v641_v35, %v645_v36 }
 0x1e6   :  { %3154 = vmatpush1.bf16.msra.mxu0 %v13040_v15  ;;  %3369 = vmatpush1.bf16.msra.mxu1 %v13170_v38  ;;  %v324_v15 = vld [vmem:[#allocation2 + $0xd8] sm:$0xff]  ;;  %v12791_v38 = vcombine.high %v316_v29, %v320_v31  ;;  %v697_v31 = vld [vmem:[#allocation2 + $0xc80] sm:$0xff] }
 0x1e7   :  { %3155 = vmatprep.subr.bf16.mxu0 %v13049_v39  ;;  %3370 = vmatprep.subr.bf16.mxu1 %v13179_v42  ;;  %v328_v39 = vld [vmem:[#allocation2 + $0xf8] sm:$0xff]  ;;  %v13113_v42 = vcombine.high %v641_v35, %v645_v36 }
 0x1e8   :  { %v12798_v48 = vcombine.low %v324_v15, %v328_v39  ;;  %v384_v35 = vld [vmem:[#allocation2 + $0x2b8] sm:$0xff] }
 0x1ea   :  { %3156 = vmatpush1.bf16.msra.mxu0 %v13048_v44  ;;  %3371 = vmatpush1.bf16.msra.mxu1 %v13178_v45  ;;  %v653_v44 = vld [vmem:[#allocation2 + $0xb20] sm:$0xff]  ;;  %v332_v45 = vld [vmem:[#allocation2 + $0x118] sm:$0xff] }
 0x1eb   :  { %3157 = vmatprep.subr.bf16.mxu0 %v13057_v46  ;;  %3372 = vmatprep.subr.bf16.mxu1 %v13187_v49  ;;  %v12799_v46 = vcombine.high %v324_v15, %v328_v39  ;;  %v13121_v49 = vcombine.high %v649_v43, %v653_v44  ;;  %v13120_v55 = vcombine.low %v649_v43, %v653_v44  ;;  %v705_v39 = vld [vmem:[#allocation2 + $0xcc0] sm:$0xff]  ;;  %v392_v43 = vld [vmem:[#allocation2 + $0x2f8] sm:$0xff] }
 0x1ec   :  { %v12806_v56 = vcombine.low %v332_v45, %v336_v47 }
 0x1ee   :  { %3158 = vmatpush1.bf16.msra.mxu0 %v13056_v51  ;;  %3373 = vmatpush1.bf16.msra.mxu1 %v13186_v52  ;;  %v661_v51 = vld [vmem:[#allocation2 + $0xb60] sm:$0xff]  ;;  %v340_v52 = vld [vmem:[#allocation2 + $0x158] sm:$0xff] }
 0x1ef   :  { %3159 = vmatprep.subr.bf16.mxu0 %v13065_v53  ;;  %3374 = vmatprep.subr.bf16.mxu1 %v13195_v57  ;;  %v12807_v53 = vcombine.high %v332_v45, %v336_v47  ;;  %v13129_v57 = vcombine.high %v657_v50, %v661_v51  ;;  %v13128_v0 = vcombine.low %v657_v50, %v661_v51  ;;  %v717_v47 = vld [vmem:[#allocation2 + $0xd20] sm:$0xff] }
 0x1f0   :  { %v12814_v1 = vcombine.low %v340_v52, %v344_v54 }
 0x1f2   :  { %3160 = vmatpush1.bf16.msra.mxu0 %v13064_v60  ;;  %3375 = vmatpush1.bf16.msra.mxu1 %v13194_v61  ;;  %v669_v60 = vld [vmem:[#allocation2 + $0xba0] sm:$0xff]  ;;  %v348_v61 = vld [vmem:[#allocation2 + $0x198] sm:$0xff] }
 0x1f3   :  { %3161 = vmatprep.subr.bf16.mxu0 %v13073_v62  ;;  %3376 = vmatprep.subr.bf16.mxu1 %v13203_v2  ;;  %v12815_v62 = vcombine.high %v340_v52, %v344_v54  ;;  %v13137_v2 = vcombine.high %v665_v58, %v669_v60  ;;  %v13136_v8 = vcombine.low %v665_v58, %v669_v60  ;;  %v725_v54 = vld [vmem:[#allocation2 + $0xd60] sm:$0xff] }
 0x1f4   :  { %v12822_v9 = vcombine.low %v348_v61, %v352_v63 }
 0x1f6   :  { %3162 = vmatpush1.bf16.msra.mxu0 %v13072_v4  ;;  %3377 = vmatpush1.bf16.msra.mxu1 %v13202_v5  ;;  %v677_v4 = vld [vmem:[#allocation2 + $0xbe0] sm:$0xff]  ;;  %v356_v5 = vld [vmem:[#allocation2 + $0x1d8] sm:$0xff] }
 0x1f7   :  { %3163 = vmatprep.subr.bf16.mxu0 %v13081_v6  ;;  %3378 = vmatprep.subr.bf16.mxu1 %v13211_v10  ;;  %v12823_v6 = vcombine.high %v348_v61, %v352_v63  ;;  %v13145_v10 = vcombine.high %v673_v3, %v677_v4  ;;  %v13144_v17 = vcombine.low %v673_v3, %v677_v4  ;;  %v733_v63 = vld [vmem:[#allocation2 + $0xda0] sm:$0xff] }
 0x1f8   :  { %v12830_v19 = vcombine.low %v356_v5, %v360_v7 }
 0x1fa   :  { %3164 = vmatpush1.bf16.msra.mxu0 %v13080_v12  ;;  %3379 = vmatpush1.bf16.msra.mxu1 %v13210_v13  ;;  %v685_v12 = vld [vmem:[#allocation2 + $0xc20] sm:$0xff]  ;;  %v364_v13 = vld [vmem:[#allocation2 + $0x218] sm:$0xff] }
 0x1fb   :  { %3165 = vmatprep.subr.bf16.mxu0 %v13089_v14  ;;  %3579 = vmatprep.subr.bf16.mxu1 %v12775_v20  ;;  %v12831_v14 = vcombine.high %v356_v5, %v360_v7  ;;  %v13153_v20 = vcombine.high %v681_v11, %v685_v12  ;;  %v13152_v28 = vcombine.low %v681_v11, %v685_v12  ;;  %v741_v7 = vld [vmem:[#allocation2 + $0xde0] sm:$0xff] }
 0x1fc   :  { %v12838_v29 = vcombine.low %v364_v13, %v368_v16 }
 0x1fd   :  { %3397 = vmatmul.mubr.bf16.vlgmr.msra.gmra.mrb[0].mxu1 %v16907_v21 }
 0x1fe   :  { %3166 = vmatpush1.bf16.msra.mxu0 %v13088_v24  ;;  %3580 = vmatpush1.bf16.msra.mxu1 %v12774_v25  ;;  %v693_v24 = vld [vmem:[#allocation2 + $0xc60] sm:$0xff]  ;;  %v372_v25 = vld [vmem:[#allocation2 + $0x258] sm:$0xff] }
 0x1ff   :  { %3167 = vmatprep.subr.bf16.mxu0 %v13097_v26  ;;  %3581 = vmatprep.subr.bf16.mxu1 %v12783_v30  ;;  %v12839_v26 = vcombine.high %v364_v13, %v368_v16  ;;  %v13161_v30 = vcombine.high %v689_v22, %v693_v24  ;;  %v13160_v36 = vcombine.low %v689_v22, %v693_v24  ;;  %v302_v16 = vld [vmem:[#allocation2 + $0x28] sm:$0xff] }
 0x200   :  { %3611 = vmatprep.mubr.bf16.mxu1 %v16913_v40  ;;  %v12846_v15 = vcombine.low %v372_v25, %v376_v27 }
 0x202   :  { %3168 = vmatpush1.bf16.msra.mxu0 %v13096_v32  ;;  %3582 = vmatpush1.bf16.msra.mxu1 %v12782_v33  ;;  %v701_v32 = vld [vmem:[#allocation2 + $0xca0] sm:$0xff]  ;;  %v380_v33 = vld [vmem:[#allocation2 + $0x298] sm:$0xff] }
 0x203   :  { %3169 = vmatprep.subr.bf16.mxu0 %v13105_v34  ;;  %3583 = vmatprep.subr.bf16.mxu1 %v12791_v38  ;;  %v12847_v34 = vcombine.high %v372_v25, %v376_v27  ;;  %v13169_v38 = vcombine.high %v697_v31, %v701_v32  ;;  %v13168_v44 = vcombine.low %v697_v31, %v701_v32  ;;  %v310_v27 = vld [vmem:[#allocation2 + $0x68] sm:$0xff] }
 0x204   :  { %v12854_v45 = vcombine.low %v380_v33, %v384_v35 }
 0x206   :  { %3170 = vmatpush1.bf16.msra.mxu0 %v13104_v59  ;;  %3584 = vmatpush1.bf16.msra.mxu1 %v12790_v41  ;;  %v709_v59 = vld [vmem:[#allocation2 + $0xce0] sm:$0xff]  ;;  %v388_v41 = vld [vmem:[#allocation2 + $0x2d8] sm:$0xff] }
 0x207   :  { %3171 = vmatprep.subr.bf16.mxu0 %v13113_v42  ;;  %3585 = vmatprep.subr.bf16.mxu1 %v12799_v46  ;;  %v12855_v42 = vcombine.high %v380_v33, %v384_v35  ;;  %v713_v46 = vld [vmem:[#allocation2 + $0xd00] sm:$0xff]  ;;  %v13176_v50 = vcombine.low %v705_v39, %v709_v59  ;;  %v12862_v51 = vcombine.low %v388_v41, %v392_v43  ;;  %v318_v35 = vld [vmem:[#allocation2 + $0xa8] sm:$0xff] }
 0x208   :  { %v13185_v52 = vcombine.high %v713_v46, %v717_v47  ;;  %v13184_v58 = vcombine.low %v713_v46, %v717_v47  ;;  %v456_v46 = vld [vmem:[#allocation2 + $0x4f8] sm:$0xff] }
 0x20a   :  { %3172 = vmatpush1.bf16.msra.mxu0 %v13112_v23  ;;  %3586 = vmatpush1.bf16.msra.mxu1 %v12798_v48  ;;  %v396_v23 = vld [vmem:[#allocation2 + $0x318] sm:$0xff]  ;;  %v12863_v48 = vcombine.high %v388_v41, %v392_v43  ;;  %v322_v43 = vld [vmem:[#allocation2 + $0xc8] sm:$0xff] }
 0x20b   :  { %3173 = vmatprep.subr.bf16.mxu0 %v13121_v49  ;;  %3587 = vmatprep.subr.bf16.mxu1 %v12807_v53  ;;  %v400_v49 = vld [vmem:[#allocation2 + $0x338] sm:$0xff]  ;;  %v721_v53 = vld [vmem:[#allocation2 + $0xd40] sm:$0xff] }
 0x20c   :  { %v12870_v60 = vcombine.low %v396_v23, %v400_v49  ;;  %v13193_v61 = vcombine.high %v721_v53, %v725_v54  ;;  %v13192_v3 = vcombine.low %v721_v53, %v725_v54  ;;  %v464_v53 = vld [vmem:[#allocation2 + $0x538] sm:$0xff] }
 0x20e   :  { %3174 = vmatpush1.bf16.msra.mxu0 %v13120_v55  ;;  %3588 = vmatpush1.bf16.msra.mxu1 %v12806_v56  ;;  %v404_v55 = vld [vmem:[#allocation2 + $0x358] sm:$0xff]  ;;  %v12871_v56 = vcombine.high %v396_v23, %v400_v49  ;;  %v330_v49 = vld [vmem:[#allocation2 + $0x108] sm:$0xff] }
 0x20f   :  { %3175 = vmatprep.subr.bf16.mxu0 %v13129_v57  ;;  %3589 = vmatprep.subr.bf16.mxu1 %v12815_v62  ;;  %v408_v57 = vld [vmem:[#allocation2 + $0x378] sm:$0xff]  ;;  %v729_v62 = vld [vmem:[#allocation2 + $0xd80] sm:$0xff] }
 0x210   :  { %v12878_v4 = vcombine.low %v404_v55, %v408_v57  ;;  %v13201_v5 = vcombine.high %v729_v62, %v733_v63  ;;  %v13200_v11 = vcombine.low %v729_v62, %v733_v63 }
 0x212   :  { %3176 = vmatpush1.bf16.msra.mxu0 %v13128_v0  ;;  %3590 = vmatpush1.bf16.msra.mxu1 %v12814_v1  ;;  %v412_v0 = vld [vmem:[#allocation2 + $0x398] sm:$0xff]  ;;  %v12879_v1 = vcombine.high %v404_v55, %v408_v57  ;;  %v342_v57 = vld [vmem:[#allocation2 + $0x168] sm:$0xff] }
 0x213   :  { %3177 = vmatprep.subr.bf16.mxu0 %v13137_v2  ;;  %3591 = vmatprep.subr.bf16.mxu1 %v12823_v6  ;;  %v416_v2 = vld [vmem:[#allocation2 + $0x3b8] sm:$0xff]  ;;  %v737_v6 = vld [vmem:[#allocation2 + $0xdc0] sm:$0xff] }
 0x214   :  { %v12886_v12 = vcombine.low %v412_v0, %v416_v2  ;;  %v13209_v13 = vcombine.high %v737_v6, %v741_v7  ;;  %v13208_v22 = vcombine.low %v737_v6, %v741_v7 }
 0x216   :  { %3178 = vmatpush1.bf16.msra.mxu0 %v13136_v8  ;;  %3592 = vmatpush1.bf16.msra.mxu1 %v12822_v9  ;;  %v420_v8 = vld [vmem:[#allocation2 + $0x3d8] sm:$0xff]  ;;  %v12887_v9 = vcombine.high %v412_v0, %v416_v2  ;;  %v350_v2 = vld [vmem:[#allocation2 + $0x1a8] sm:$0xff] }
 0x217   :  { %3179 = vmatprep.subr.bf16.mxu0 %v13145_v10  ;;  %3593 = vmatprep.subr.bf16.mxu1 %v12831_v14  ;;  %v424_v10 = vld [vmem:[#allocation2 + $0x3f8] sm:$0xff]  ;;  %v298_v14 = vld [vmem:[#allocation2 + $0x8] sm:$0xff] }
 0x218   :  { %v12894_v24 = vcombine.low %v420_v8, %v424_v10  ;;  %v12771_v25 = vcombine.high %v298_v14, %v302_v16  ;;  %v12770_v31 = vcombine.low %v298_v14, %v302_v16 }
 0x21a   :  { %3180 = vmatpush1.bf16.msra.mxu0 %v13144_v17  ;;  %3594 = vmatpush1.bf16.msra.mxu1 %v12830_v19  ;;  %v428_v17 = vld [vmem:[#allocation2 + $0x418] sm:$0xff]  ;;  %v12895_v19 = vcombine.high %v420_v8, %v424_v10  ;;  %v358_v10 = vld [vmem:[#allocation2 + $0x1e8] sm:$0xff] }
 0x21b   :  { %3192 = vmatprep.subr.bf16.mxu0 %v13153_v20  ;;  %3595 = vmatprep.subr.bf16.mxu1 %v12839_v26  ;;  %v432_v20 = vld [vmem:[#allocation2 + $0x438] sm:$0xff]  ;;  %v306_v26 = vld [vmem:[#allocation2 + $0x48] sm:$0xff] }
 0x21c   :  { %v12902_v32 = vcombine.low %v428_v17, %v432_v20  ;;  %v12779_v33 = vcombine.high %v306_v26, %v310_v27 }
 0x21d   :  { %3182 = vmatmul.mubr.bf16.vlgmr.msra.gmra.mrb[0].mxu0 %v16898_v18  ;;  %v13177_v18 = vcombine.high %v705_v39, %v709_v59  ;;  %v16922_v39 = vld [vmem:[%s17224_s29] ss:$28 sps:$4 sm:$0xff]   ;;  %v12778_v59 = vcombine.low %v306_v26, %v310_v27 }
 0x21e   :  { %3193 = vmatpush1.bf16.msra.mxu0 %v13152_v28  ;;  %3224 = vmatprep.mubr.bf16.mxu0 %v16519_v37  ;;  %v436_v28 = vld [vmem:[#allocation2 + $0x458] sm:$0xff] }
 0x21f   :  { %3596 = vmatpush1.bf16.msra.mxu1 %v12838_v29  ;;  %3194 = vmatprep.subr.bf16.mxu0 %v13161_v30  ;;  %v12903_v29 = vcombine.high %v428_v17, %v432_v20  ;;  %v440_v30 = vld [vmem:[#allocation2 + $0x478] sm:$0xff]  ;;  %v366_v20 = vld [vmem:[#allocation2 + $0x228] sm:$0xff] }
 0x220   :  { %3597 = vmatprep.subr.bf16.mxu1 %v12847_v34  ;;  %v314_v34 = vld [vmem:[#allocation2 + $0x88] sm:$0xff]  ;;  %v12910_v41 = vcombine.low %v436_v28, %v440_v30 }
 0x221   :  { %v12786_v47 = vcombine.low %v314_v34, %v318_v35 }
 0x222   :  { %3195 = vmatpush1.bf16.msra.mxu0 %v13160_v36  ;;  %v444_v36 = vld [vmem:[#allocation2 + $0x498] sm:$0xff] }
 0x223   :  { %3598 = vmatpush1.bf16.msra.mxu1 %v12846_v15  ;;  %3196 = vmatprep.subr.bf16.mxu0 %v13169_v38  ;;  %v12911_v15 = vcombine.high %v436_v28, %v440_v30  ;;  %v448_v38 = vld [vmem:[#allocation2 + $0x4b8] sm:$0xff]  ;;  %v374_v30 = vld [vmem:[#allocation2 + $0x268] sm:$0xff] }
 0x224   :  { %3599 = vmatprep.subr.bf16.mxu1 %v12855_v42  ;;  %v12787_v42 = vcombine.high %v314_v34, %v318_v35  ;;  %v12918_v23 = vcombine.low %v444_v36, %v448_v38 }
 0x226   :  { %3197 = vmatpush1.bf16.msra.mxu0 %v13168_v44  ;;  %v326_v44 = vld [vmem:[#allocation2 + $0xe8] sm:$0xff] }
 0x227   :  { %3600 = vmatpush1.bf16.msra.mxu1 %v12854_v45  ;;  %3198 = vmatprep.subr.bf16.mxu0 %v13177_v18  ;;  %v452_v45 = vld [vmem:[#allocation2 + $0x4d8] sm:$0xff]  ;;  %v12919_v18 = vcombine.high %v444_v36, %v448_v38  ;;  %v12794_v54 = vcombine.low %v322_v43, %v326_v44  ;;  %v382_v38 = vld [vmem:[#allocation2 + $0x2a8] sm:$0xff] }
 0x228   :  { %3601 = vmatprep.subr.bf16.mxu1 %v12863_v48  ;;  %v12795_v48 = vcombine.high %v322_v43, %v326_v44 }
 0x22a   :  { %3199 = vmatpush1.bf16.msra.mxu0 %v13176_v50  ;;  %v334_v50 = vld [vmem:[#allocation2 + $0x128] sm:$0xff] }
 0x22b   :  { %3602 = vmatpush1.bf16.msra.mxu1 %v12862_v51  ;;  %3200 = vmatprep.subr.bf16.mxu0 %v13185_v52  ;;  %v460_v51 = vld [vmem:[#allocation2 + $0x518] sm:$0xff]  ;;  %v12927_v52 = vcombine.high %v452_v45, %v456_v46  ;;  %v12803_v55 = vcombine.high %v330_v49, %v334_v50  ;;  %v12802_v62 = vcombine.low %v330_v49, %v334_v50 }
 0x22c   :  { %3603 = vmatprep.subr.bf16.mxu1 %v12871_v56  ;;  %v338_v56 = vld [vmem:[#allocation2 + $0x148] sm:$0xff]  ;;  %v12934_v63 = vcombine.low %v460_v51, %v464_v53 }
 0x22d   :  { %v12811_v0 = vcombine.high %v338_v56, %v342_v57  ;;  %v12810_v6 = vcombine.low %v338_v56, %v342_v57 }
 0x22e   :  { %3201 = vmatpush1.bf16.msra.mxu0 %v13184_v58  ;;  %v468_v58 = vld [vmem:[#allocation2 + $0x558] sm:$0xff] }
 0x22f   :  { %3604 = vmatpush1.bf16.msra.mxu1 %v12870_v60  ;;  %3202 = vmatprep.subr.bf16.mxu0 %v13193_v61  ;;  %v12935_v60 = vcombine.high %v460_v51, %v464_v53  ;;  %v472_v61 = vld [vmem:[#allocation2 + $0x578] sm:$0xff]  ;;  %v394_v51 = vld [vmem:[#allocation2 + $0x308] sm:$0xff] }
 0x230   :  { %3605 = vmatprep.subr.bf16.mxu1 %v12879_v1  ;;  %v346_v1 = vld [vmem:[#allocation2 + $0x188] sm:$0xff]  ;;  %v12942_v7 = vcombine.low %v468_v58, %v472_v61  ;;  %v524_v53 = vld [vmem:[#allocation2 + $0x718] sm:$0xff] }
 0x231   :  { %v12819_v8 = vcombine.high %v346_v1, %v350_v2  ;;  %v12818_v14 = vcombine.low %v346_v1, %v350_v2 }
 0x232   :  { %3203 = vmatpush1.bf16.msra.mxu0 %v13192_v3  ;;  %v476_v3 = vld [vmem:[#allocation2 + $0x598] sm:$0xff] }
 0x233   :  { %3606 = vmatpush1.bf16.msra.mxu1 %v12878_v4  ;;  %3204 = vmatprep.subr.bf16.mxu0 %v13201_v5  ;;  %v12943_v4 = vcombine.high %v468_v58, %v472_v61  ;;  %v480_v5 = vld [vmem:[#allocation2 + $0x5b8] sm:$0xff]  ;;  %v402_v58 = vld [vmem:[#allocation2 + $0x348] sm:$0xff] }
 0x234   :  { %3607 = vmatprep.subr.bf16.mxu1 %v12887_v9  ;;  %v354_v9 = vld [vmem:[#allocation2 + $0x1c8] sm:$0xff]  ;;  %v12950_v16 = vcombine.low %v476_v3, %v480_v5  ;;  %v532_v61 = vld [vmem:[#allocation2 + $0x758] sm:$0xff] }
 0x235   :  { %v12827_v17 = vcombine.high %v354_v9, %v358_v10  ;;  %v12826_v26 = vcombine.low %v354_v9, %v358_v10 }
 0x236   :  { %3205 = vmatpush1.bf16.msra.mxu0 %v13200_v11  ;;  %v484_v11 = vld [vmem:[#allocation2 + $0x5d8] sm:$0xff] }
 0x237   :  { %3608 = vmatpush1.bf16.msra.mxu1 %v12886_v12  ;;  %3206 = vmatprep.subr.bf16.mxu0 %v13209_v13  ;;  %v12951_v12 = vcombine.high %v476_v3, %v480_v5  ;;  %v488_v13 = vld [vmem:[#allocation2 + $0x5f8] sm:$0xff]  ;;  %v410_v3 = vld [vmem:[#allocation2 + $0x388] sm:$0xff] }
 0x238   :  { %3609 = vmatprep.subr.bf16.mxu1 %v12895_v19  ;;  %v362_v19 = vld [vmem:[#allocation2 + $0x208] sm:$0xff]  ;;  %v12958_v27 = vcombine.low %v484_v11, %v488_v13  ;;  %v540_v5 = vld [vmem:[#allocation2 + $0x798] sm:$0xff] }
 0x239   :  { %v12835_v28 = vcombine.high %v362_v19, %v366_v20  ;;  %v12834_v34 = vcombine.low %v362_v19, %v366_v20 }
 0x23a   :  { %3207 = vmatpush1.bf16.msra.mxu0 %v13208_v22  ;;  %v492_v22 = vld [vmem:[#allocation2 + $0x618] sm:$0xff] }
 0x23b   :  { %3610 = vmatpush1.bf16.msra.mxu1 %v12894_v24  ;;  %3235 = vmatprep.subr.bf16.mxu0 %v12771_v25  ;;  %v12959_v24 = vcombine.high %v484_v11, %v488_v13  ;;  %v496_v25 = vld [vmem:[#allocation2 + $0x638] sm:$0xff]  ;;  %v418_v11 = vld [vmem:[#allocation2 + $0x3c8] sm:$0xff] }
 0x23c   :  { %3622 = vmatprep.subr.bf16.mxu1 %v12903_v29  ;;  %v370_v29 = vld [vmem:[#allocation2 + $0x248] sm:$0xff]  ;;  %v12966_v35 = vcombine.low %v492_v22, %v496_v25  ;;  %v548_v13 = vld [vmem:[#allocation2 + $0x7d8] sm:$0xff] }
 0x23d   :  { %3225 = vmatmul.mubr.bf16.vlgmr.msra.gmra.mrb[0].mxu0 %v16907_v21  ;;  %v16062_v21 = vld [vmem:[%s17224_s29 + $0xc] ss:$28 sps:$4 sm:$0xff]   ;;  %v12843_v36 = vcombine.high %v370_v29, %v374_v30  ;;  %v12842_v43 = vcombine.low %v370_v29, %v374_v30 }
 0x23e   :  { %3236 = vmatpush1.bf16.msra.mxu0 %v12770_v31  ;;  %3612 = vmatmul.mubr.bf16.vlgmr.msra.gmra.mrb[4].mxu1 %v16922_v39  ;;  %v500_v31 = vld [vmem:[#allocation2 + $0x658] sm:$0xff] }
 0x23f   :  { %3623 = vmatpush1.bf16.msra.mxu1 %v12902_v32  ;;  %3237 = vmatprep.subr.bf16.mxu0 %v12779_v33  ;;  %v12967_v32 = vcombine.high %v492_v22, %v496_v25  ;;  %v504_v33 = vld [vmem:[#allocation2 + $0x678] sm:$0xff]  ;;  %v299_v22 = vld [vmem:[#allocation2 + $0x10] sm:$0xff] }
 0x240   :  { %3624 = vmatprep.subr.bf16.mxu1 %v12911_v15  ;;  %3267 = vmatprep.mubr.bf16.mxu0 %v16913_v40  ;;  %v12926_v40 = vcombine.low %v452_v45, %v456_v46  ;;  %v378_v15 = vld [vmem:[#allocation2 + $0x288] sm:$0xff]  ;;  %v12974_v44 = vcombine.low %v500_v31, %v504_v33  ;;  %v556_v25 = vld [vmem:[#allocation2 + $0x818] sm:$0xff] }
 0x241   :  { %3654 = vmatprep.mubr.bf16.mxu1 %v16062_v21  ;;  %v12851_v45 = vcombine.high %v378_v15, %v382_v38  ;;  %v390_v46 = vld [vmem:[#allocation2 + $0x2e8] sm:$0xff]  ;;  %v516_v21 = vld [vmem:[#allocation2 + $0x6d8] sm:$0xff] }
 0x242   :  { %3238 = vmatpush1.bf16.msra.mxu0 %v12778_v59  ;;  %v508_v59 = vld [vmem:[#allocation2 + $0x698] sm:$0xff] }
 0x243   :  { %3625 = vmatpush1.bf16.msra.mxu1 %v12910_v41  ;;  %3239 = vmatprep.subr.bf16.mxu0 %v12787_v42  ;;  %v12975_v41 = vcombine.high %v500_v31, %v504_v33  ;;  %v512_v42 = vld [vmem:[#allocation2 + $0x6b8] sm:$0xff]  ;;  %v307_v31 = vld [vmem:[#allocation2 + $0x50] sm:$0xff] }
 0x244   :  { %3626 = vmatprep.subr.bf16.mxu1 %v12919_v18  ;;  %v386_v18 = vld [vmem:[#allocation2 + $0x2c8] sm:$0xff]  ;;  %v12982_v49 = vcombine.low %v508_v59, %v512_v42  ;;  %v564_v33 = vld [vmem:[#allocation2 + $0x858] sm:$0xff] }
 0x245   :  { %v12859_v50 = vcombine.high %v386_v18, %v390_v46 }
 0x246   :  { %3240 = vmatpush1.bf16.msra.mxu0 %v12786_v47  ;;  %v12983_v47 = vcombine.high %v508_v59, %v512_v42  ;;  %v315_v59 = vld [vmem:[#allocation2 + $0x90] sm:$0xff]  ;;  %v572_v42 = vld [vmem:[#allocation2 + $0x898] sm:$0xff] }
 0x247   :  { %3627 = vmatpush1.bf16.msra.mxu1 %v12918_v23  ;;  %3241 = vmatprep.subr.bf16.mxu0 %v12795_v48  ;;  %v520_v23 = vld [vmem:[#allocation2 + $0x6f8] sm:$0xff]  ;;  %v12850_v48 = vcombine.low %v378_v15, %v382_v38 }
 0x248   :  { %3628 = vmatprep.subr.bf16.mxu1 %v12927_v52  ;;  %v398_v52 = vld [vmem:[#allocation2 + $0x328] sm:$0xff]  ;;  %v12990_v56 = vcombine.low %v516_v21, %v520_v23 }
 0x249   :  { %v12867_v57 = vcombine.high %v394_v51, %v398_v52 }
 0x24a   :  { %3242 = vmatpush1.bf16.msra.mxu0 %v12794_v54  ;;  %v12991_v54 = vcombine.high %v516_v21, %v520_v23  ;;  %v327_v23 = vld [vmem:[#allocation2 + $0xf0] sm:$0xff] }
 0x24b   :  { %3629 = vmatpush1.bf16.msra.mxu1 %v12926_v40  ;;  %3243 = vmatprep.subr.bf16.mxu0 %v12803_v55  ;;  %v528_v40 = vld [vmem:[#allocation2 + $0x738] sm:$0xff]  ;;  %v12858_v55 = vcombine.low %v386_v18, %v390_v46 }
 0x24c   :  { %3630 = vmatprep.subr.bf16.mxu1 %v12935_v60  ;;  %v406_v60 = vld [vmem:[#allocation2 + $0x368] sm:$0xff]  ;;  %v12998_v1 = vcombine.low %v524_v53, %v528_v40 }
 0x24d   :  { %v12875_v2 = vcombine.high %v402_v58, %v406_v60 }
 0x24e   :  { %3244 = vmatpush1.bf16.msra.mxu0 %v12802_v62  ;;  %v12999_v62 = vcombine.high %v524_v53, %v528_v40  ;;  %v331_v40 = vld [vmem:[#allocation2 + $0x110] sm:$0xff] }
 0x24f   :  { %3631 = vmatpush1.bf16.msra.mxu1 %v12934_v63  ;;  %3245 = vmatprep.subr.bf16.mxu0 %v12811_v0  ;;  %v536_v63 = vld [vmem:[#allocation2 + $0x778] sm:$0xff]  ;;  %v12866_v0 = vcombine.low %v394_v51, %v398_v52  ;;  %v16065_v51 = vld [vmem:[%s17224_s29 + $0x14] ss:$28 sps:$4 sm:$0xff]  }
 0x250   :  { %3632 = vmatprep.subr.bf16.mxu1 %v12943_v4  ;;  %v414_v4 = vld [vmem:[#allocation2 + $0x3a8] sm:$0xff]  ;;  %v13006_v9 = vcombine.low %v532_v61, %v536_v63 }
 0x251   :  { %v12883_v10 = vcombine.high %v410_v3, %v414_v4 }
 0x252   :  { %3246 = vmatpush1.bf16.msra.mxu0 %v12810_v6  ;;  %v13007_v6 = vcombine.high %v532_v61, %v536_v63  ;;  %v339_v63 = vld [vmem:[#allocation2 + $0x150] sm:$0xff] }
 0x253   :  { %3633 = vmatpush1.bf16.msra.mxu1 %v12942_v7  ;;  %3247 = vmatprep.subr.bf16.mxu0 %v12819_v8  ;;  %v544_v7 = vld [vmem:[#allocation2 + $0x7b8] sm:$0xff]  ;;  %v12874_v8 = vcombine.low %v402_v58, %v406_v60 }
 0x254   :  { %3634 = vmatprep.subr.bf16.mxu1 %v12951_v12  ;;  %v422_v12 = vld [vmem:[#allocation2 + $0x3e8] sm:$0xff]  ;;  %v13014_v19 = vcombine.low %v540_v5, %v544_v7  ;;  %v592_v58 = vld [vmem:[#allocation2 + $0x938] sm:$0xff] }
 0x255   :  { %v12891_v20 = vcombine.high %v418_v11, %v422_v12 }
 0x256   :  { %3248 = vmatpush1.bf16.msra.mxu0 %v12818_v14  ;;  %v13015_v14 = vcombine.high %v540_v5, %v544_v7  ;;  %v347_v7 = vld [vmem:[#allocation2 + $0x190] sm:$0xff] }
 0x257   :  { %3635 = vmatpush1.bf16.msra.mxu1 %v12950_v16  ;;  %3249 = vmatprep.subr.bf16.mxu0 %v12827_v17  ;;  %v552_v16 = vld [vmem:[#allocation2 + $0x7f8] sm:$0xff]  ;;  %v12882_v17 = vcombine.low %v410_v3, %v414_v4 }
 0x258   :  { %3636 = vmatprep.subr.bf16.mxu1 %v12959_v24  ;;  %v303_v24 = vld [vmem:[#allocation2 + $0x30] sm:$0xff]  ;;  %v13022_v29 = vcombine.low %v548_v13, %v552_v16  ;;  %v600_v3 = vld [vmem:[#allocation2 + $0x978] sm:$0xff] }
 0x259   :  { %v12773_v30 = vcombine.high %v299_v22, %v303_v24 }
 0x25a   :  { %3250 = vmatpush1.bf16.msra.mxu0 %v12826_v26  ;;  %v13023_v26 = vcombine.high %v548_v13, %v552_v16  ;;  %v355_v16 = vld [vmem:[#allocation2 + $0x1d0] sm:$0xff] }
 0x25b   :  { %3637 = vmatpush1.bf16.msra.mxu1 %v12958_v27  ;;  %3251 = vmatprep.subr.bf16.mxu0 %v12835_v28  ;;  %v560_v27 = vld [vmem:[#allocation2 + $0x838] sm:$0xff]  ;;  %v12890_v28 = vcombine.low %v418_v11, %v422_v12 }
 0x25c   :  { %3638 = vmatprep.subr.bf16.mxu1 %v12967_v32  ;;  %v311_v32 = vld [vmem:[#allocation2 + $0x70] sm:$0xff]  ;;  %v13030_v15 = vcombine.low %v556_v25, %v560_v27  ;;  %v608_v11 = vld [vmem:[#allocation2 + $0x9b8] sm:$0xff] }
 0x25d   :  { %v12781_v38 = vcombine.high %v307_v31, %v311_v32  ;;  %v12780_v18 = vcombine.low %v307_v31, %v311_v32  ;;  %v624_v31 = vld [vmem:[#allocation2 + $0xa38] sm:$0xff] }
 0x25e   :  { %3252 = vmatpush1.bf16.msra.mxu0 %v12834_v34  ;;  %v13031_v34 = vcombine.high %v556_v25, %v560_v27  ;;  %v363_v27 = vld [vmem:[#allocation2 + $0x210] sm:$0xff] }
 0x25f   :  { %3639 = vmatpush1.bf16.msra.mxu1 %v12966_v35  ;;  %3253 = vmatprep.subr.bf16.mxu0 %v12843_v36  ;;  %v568_v35 = vld [vmem:[#allocation2 + $0x878] sm:$0xff]  ;;  %v12772_v36 = vcombine.low %v299_v22, %v303_v24 }
 0x260   :  { %3640 = vmatprep.subr.bf16.mxu1 %v12975_v41  ;;  %v319_v41 = vld [vmem:[#allocation2 + $0xb0] sm:$0xff]  ;;  %v13038_v46 = vcombine.low %v564_v33, %v568_v35  ;;  %v616_v22 = vld [vmem:[#allocation2 + $0x9f8] sm:$0xff] }
 0x261   :  { %v12789_v21 = vcombine.high %v315_v59, %v319_v41  ;;  %v12788_v52 = vcombine.low %v315_v59, %v319_v41  ;;  %v632_v59 = vld [vmem:[#allocation2 + $0xa78] sm:$0xff] }
 0x262   :  { %3254 = vmatpush1.bf16.msra.mxu0 %v12842_v43  ;;  %v13039_v43 = vcombine.high %v564_v33, %v568_v35  ;;  %v371_v35 = vld [vmem:[#allocation2 + $0x250] sm:$0xff] }
 0x263   :  { %3641 = vmatpush1.bf16.msra.mxu1 %v12974_v44  ;;  %3255 = vmatprep.subr.bf16.mxu0 %v12851_v45  ;;  %v576_v44 = vld [vmem:[#allocation2 + $0x8b8] sm:$0xff]  ;;  %v16063_v45 = vld [vmem:[%s17224_s29 + $0x8] ss:$28 sps:$4 sm:$0xff]  }
 0x264   :  { %3642 = vmatprep.subr.bf16.mxu1 %v12983_v47  ;;  %v323_v47 = vld [vmem:[#allocation2 + $0xd0] sm:$0xff]  ;;  %v13046_v53 = vcombine.low %v572_v42, %v576_v44 }
 0x265   :  { %v12796_v60 = vcombine.low %v323_v47, %v327_v23 }
 0x266   :  { %3256 = vmatpush1.bf16.msra.mxu0 %v12850_v48  ;;  %v580_v48 = vld [vmem:[#allocation2 + $0x8d8] sm:$0xff] }
 0x267   :  { %3643 = vmatpush1.bf16.msra.mxu1 %v12982_v49  ;;  %3257 = vmatprep.subr.bf16.mxu0 %v12859_v50  ;;  %v13047_v49 = vcombine.high %v572_v42, %v576_v44  ;;  %v584_v50 = vld [vmem:[#allocation2 + $0x8f8] sm:$0xff]  ;;  %v379_v44 = vld [vmem:[#allocation2 + $0x290] sm:$0xff] }
 0x268   :  { %3644 = vmatprep.subr.bf16.mxu1 %v12991_v54  ;;  %v12797_v54 = vcombine.high %v323_v47, %v327_v23  ;;  %v13054_v61 = vcombine.low %v580_v48, %v584_v50 }
 0x26a   :  { %3258 = vmatpush1.bf16.msra.mxu0 %v12858_v55  ;;  %v335_v55 = vld [vmem:[#allocation2 + $0x130] sm:$0xff] }
 0x26b   :  { %3645 = vmatpush1.bf16.msra.mxu1 %v12990_v56  ;;  %3259 = vmatprep.subr.bf16.mxu0 %v12867_v57  ;;  %v588_v56 = vld [vmem:[#allocation2 + $0x918] sm:$0xff]  ;;  %v13055_v57 = vcombine.high %v580_v48, %v584_v50  ;;  %v12804_v4 = vcombine.low %v331_v40, %v335_v55  ;;  %v391_v50 = vld [vmem:[#allocation2 + $0x2f0] sm:$0xff] }
 0x26c   :  { %3646 = vmatprep.subr.bf16.mxu1 %v12999_v62  ;;  %v12805_v62 = vcombine.high %v331_v40, %v335_v55  ;;  %v13062_v5 = vcombine.low %v588_v56, %v592_v58  ;;  %v395_v55 = vld [vmem:[#allocation2 + $0x310] sm:$0xff] }
 0x26e   :  { %3260 = vmatpush1.bf16.msra.mxu0 %v12866_v0  ;;  %v343_v0 = vld [vmem:[#allocation2 + $0x170] sm:$0xff] }
 0x26f   :  { %3647 = vmatpush1.bf16.msra.mxu1 %v12998_v1  ;;  %3261 = vmatprep.subr.bf16.mxu0 %v12875_v2  ;;  %v596_v1 = vld [vmem:[#allocation2 + $0x958] sm:$0xff]  ;;  %v13063_v2 = vcombine.high %v588_v56, %v592_v58  ;;  %v12812_v12 = vcombine.low %v339_v63, %v343_v0  ;;  %v399_v56 = vld [vmem:[#allocation2 + $0x330] sm:$0xff] }
 0x270   :  { %3648 = vmatprep.subr.bf16.mxu1 %v13007_v6  ;;  %v12813_v6 = vcombine.high %v339_v63, %v343_v0  ;;  %v13070_v13 = vcombine.low %v596_v1, %v600_v3  ;;  %v12869_v63 = vcombine.high %v395_v55, %v399_v56  ;;  %v403_v0 = vld [vmem:[#allocation2 + $0x350] sm:$0xff] }
 0x272   :  { %3262 = vmatpush1.bf16.msra.mxu0 %v12874_v8  ;;  %v351_v8 = vld [vmem:[#allocation2 + $0x1b0] sm:$0xff] }
 0x273   :  { %3649 = vmatpush1.bf16.msra.mxu1 %v13006_v9  ;;  %3263 = vmatprep.subr.bf16.mxu0 %v12883_v10  ;;  %v604_v9 = vld [vmem:[#allocation2 + $0x998] sm:$0xff]  ;;  %v13071_v10 = vcombine.high %v596_v1, %v600_v3  ;;  %v12820_v24 = vcombine.low %v347_v7, %v351_v8  ;;  %v407_v1 = vld [vmem:[#allocation2 + $0x370] sm:$0xff] }
 0x274   :  { %3650 = vmatprep.subr.bf16.mxu1 %v13015_v14  ;;  %v12821_v14 = vcombine.high %v347_v7, %v351_v8  ;;  %v13078_v25 = vcombine.low %v604_v9, %v608_v11  ;;  %v12877_v7 = vcombine.high %v403_v0, %v407_v1  ;;  %v411_v8 = vld [vmem:[#allocation2 + $0x390] sm:$0xff] }
 0x276   :  { %3264 = vmatpush1.bf16.msra.mxu0 %v12882_v17  ;;  %v359_v17 = vld [vmem:[#allocation2 + $0x1f0] sm:$0xff] }
 0x277   :  { %3651 = vmatpush1.bf16.msra.mxu1 %v13014_v19  ;;  %3265 = vmatprep.subr.bf16.mxu0 %v12891_v20  ;;  %v13079_v19 = vcombine.high %v604_v9, %v608_v11  ;;  %v612_v20 = vld [vmem:[#allocation2 + $0x9d8] sm:$0xff]  ;;  %v12828_v32 = vcombine.low %v355_v16, %v359_v17  ;;  %v415_v9 = vld [vmem:[#allocation2 + $0x3b0] sm:$0xff] }
 0x278   :  { %3652 = vmatprep.subr.bf16.mxu1 %v13023_v26  ;;  %v12829_v26 = vcombine.high %v355_v16, %v359_v17  ;;  %v13086_v33 = vcombine.low %v612_v20, %v616_v22  ;;  %v12885_v16 = vcombine.high %v411_v8, %v415_v9  ;;  %v419_v17 = vld [vmem:[#allocation2 + $0x3d0] sm:$0xff] }
 0x27a   :  { %3266 = vmatpush1.bf16.msra.mxu0 %v12890_v28  ;;  %v367_v28 = vld [vmem:[#allocation2 + $0x230] sm:$0xff] }
 0x27b   :  { %3653 = vmatpush1.bf16.msra.mxu1 %v13022_v29  ;;  %3407 = vmatprep.subr.bf16.mxu0 %v12773_v30  ;;  %v13087_v29 = vcombine.high %v612_v20, %v616_v22  ;;  %v620_v30 = vld [vmem:[#allocation2 + $0xa18] sm:$0xff]  ;;  %v12836_v41 = vcombine.low %v363_v27, %v367_v28 }
 0x27c   :  { %3665 = vmatprep.subr.bf16.mxu1 %v13031_v34  ;;  %v12837_v34 = vcombine.high %v363_v27, %v367_v28  ;;  %v13094_v42 = vcombine.low %v620_v30, %v624_v31  ;;  %v676_v20 = vld [vmem:[#allocation2 + $0xbd8] sm:$0xff]  ;;  %v427_v28 = vld [vmem:[#allocation2 + $0x410] sm:$0xff] }
 0x27d   :  { %3268 = vmatmul.mubr.bf16.vlgmr.msra.gmra.mrb[4].mxu0 %v16922_v39  ;;  %v16064_v39 = vld [vmem:[%s17224_s29 + $0x4] ss:$28 sps:$4 sm:$0xff]  }
 0x27e   :  { %3408 = vmatpush1.bf16.msra.mxu0 %v12772_v36  ;;  %3655 = vmatmul.mubr.bf16.vlgmr.msra.gmra.mrb[4].mxu1 %v16063_v45  ;;  %v375_v36 = vld [vmem:[#allocation2 + $0x270] sm:$0xff] }
 0x27f   :  { %3666 = vmatpush1.bf16.msra.mxu1 %v13030_v15  ;;  %3409 = vmatprep.subr.bf16.mxu0 %v12781_v38  ;;  %v13095_v15 = vcombine.high %v620_v30, %v624_v31  ;;  %v628_v38 = vld [vmem:[#allocation2 + $0xa58] sm:$0xff]  ;;  %v383_v45 = vld [vmem:[#allocation2 + $0x2b0] sm:$0xff]  ;;  %v12844_v47 = vcombine.low %v371_v35, %v375_v36 }
 0x280   :  { %3667 = vmatprep.subr.bf16.mxu1 %v13039_v43  ;;  %3439 = vmatprep.mubr.bf16.mxu0 %v16064_v39  ;;  %v12845_v43 = vcombine.high %v371_v35, %v375_v36  ;;  %v13102_v23 = vcombine.low %v628_v38, %v632_v59  ;;  %v12853_v48 = vcombine.high %v379_v44, %v383_v45  ;;  %v644_v39 = vld [vmem:[#allocation2 + $0xad8] sm:$0xff]  ;;  %v435_v36 = vld [vmem:[#allocation2 + $0x450] sm:$0xff] }
 0x281   :  { %3697 = vmatprep.mubr.bf16.mxu1 %v16065_v51  ;;  %v684_v30 = vld [vmem:[#allocation2 + $0xc18] sm:$0xff] }
 0x282   :  { %3410 = vmatpush1.bf16.msra.mxu0 %v12780_v18  ;;  %v13103_v18 = vcombine.high %v628_v38, %v632_v59  ;;  %v692_v38 = vld [vmem:[#allocation2 + $0xc58] sm:$0xff] }
 0x283   :  { %3668 = vmatpush1.bf16.msra.mxu1 %v13038_v46  ;;  %3411 = vmatprep.subr.bf16.mxu0 %v12789_v21  ;;  %v636_v46 = vld [vmem:[#allocation2 + $0xa98] sm:$0xff] }
 0x284   :  { %3669 = vmatprep.subr.bf16.mxu1 %v13047_v49  ;;  %v640_v21 = vld [vmem:[#allocation2 + $0xab8] sm:$0xff]  ;;  %v387_v49 = vld [vmem:[#allocation2 + $0x2d0] sm:$0xff] }
 0x285   :  { %v13111_v51 = vcombine.high %v636_v46, %v640_v21  ;;  %v12861_v40 = vcombine.high %v387_v49, %v391_v50 }
 0x286   :  { %3412 = vmatpush1.bf16.msra.mxu0 %v12788_v52  ;;  %v648_v52 = vld [vmem:[#allocation2 + $0xaf8] sm:$0xff] }
 0x287   :  { %3670 = vmatpush1.bf16.msra.mxu1 %v13046_v53  ;;  %3413 = vmatprep.subr.bf16.mxu0 %v12797_v54  ;;  %v12852_v53 = vcombine.low %v379_v44, %v383_v45  ;;  %v13110_v54 = vcombine.low %v636_v46, %v640_v21  ;;  %v13119_v58 = vcombine.high %v644_v39, %v648_v52  ;;  %v443_v45 = vld [vmem:[#allocation2 + $0x490] sm:$0xff]  ;;  %v700_v46 = vld [vmem:[#allocation2 + $0xc98] sm:$0xff] }
 0x288   :  { %3671 = vmatprep.subr.bf16.mxu1 %v13055_v57  ;;  %v652_v57 = vld [vmem:[#allocation2 + $0xb18] sm:$0xff] }
 0x28a   :  { %3414 = vmatpush1.bf16.msra.mxu0 %v12796_v60  ;;  %v656_v60 = vld [vmem:[#allocation2 + $0xb38] sm:$0xff] }
 0x28b   :  { %3672 = vmatpush1.bf16.msra.mxu1 %v13054_v61  ;;  %3415 = vmatprep.subr.bf16.mxu0 %v12805_v62  ;;  %v12860_v61 = vcombine.low %v387_v49, %v391_v50  ;;  %v13118_v62 = vcombine.low %v644_v39, %v648_v52  ;;  %v13127_v3 = vcombine.high %v652_v57, %v656_v60  ;;  %v455_v52 = vld [vmem:[#allocation2 + $0x4f0] sm:$0xff] }
 0x28c   :  { %3673 = vmatprep.subr.bf16.mxu1 %v13063_v2  ;;  %v660_v2 = vld [vmem:[#allocation2 + $0xb58] sm:$0xff] }
 0x28e   :  { %3416 = vmatpush1.bf16.msra.mxu0 %v12804_v4  ;;  %v664_v4 = vld [vmem:[#allocation2 + $0xb78] sm:$0xff] }
 0x28f   :  { %3674 = vmatpush1.bf16.msra.mxu1 %v13062_v5  ;;  %3417 = vmatprep.subr.bf16.mxu0 %v12813_v6  ;;  %v12868_v5 = vcombine.low %v395_v55, %v399_v56  ;;  %v13126_v6 = vcombine.low %v652_v57, %v656_v60  ;;  %v13135_v11 = vcombine.high %v660_v2, %v664_v4  ;;  %v16068_v55 = vld [vmem:[%s17224_s29 + $0xc] ss:$28 sps:$4 sm:$0xff]   ;;  %v459_v60 = vld [vmem:[#allocation2 + $0x510] sm:$0xff] }
 0x290   :  { %3675 = vmatprep.subr.bf16.mxu1 %v13071_v10  ;;  %v668_v10 = vld [vmem:[#allocation2 + $0xb98] sm:$0xff] }
 0x292   :  { %3418 = vmatpush1.bf16.msra.mxu0 %v12812_v12  ;;  %v672_v12 = vld [vmem:[#allocation2 + $0xbb8] sm:$0xff] }
 0x293   :  { %3676 = vmatpush1.bf16.msra.mxu1 %v13070_v13  ;;  %3419 = vmatprep.subr.bf16.mxu0 %v12821_v14  ;;  %v12876_v13 = vcombine.low %v403_v0, %v407_v1  ;;  %v13134_v14 = vcombine.low %v660_v2, %v664_v4  ;;  %v13143_v22 = vcombine.high %v668_v10, %v672_v12  ;;  %v720_v0 = vld [vmem:[#allocation2 + $0xd38] sm:$0xff]  ;;  %v467_v4 = vld [vmem:[#allocation2 + $0x550] sm:$0xff] }
 0x294   :  { %3677 = vmatprep.subr.bf16.mxu1 %v13079_v19  ;;  %v423_v19 = vld [vmem:[#allocation2 + $0x3f0] sm:$0xff] }
 0x295   :  { %v12893_v27 = vcombine.high %v419_v17, %v423_v19 }
 0x296   :  { %3420 = vmatpush1.bf16.msra.mxu0 %v12820_v24  ;;  %v680_v24 = vld [vmem:[#allocation2 + $0xbf8] sm:$0xff] }
 0x297   :  { %3678 = vmatpush1.bf16.msra.mxu1 %v13078_v25  ;;  %3421 = vmatprep.subr.bf16.mxu0 %v12829_v26  ;;  %v12884_v25 = vcombine.low %v411_v8, %v415_v9  ;;  %v13142_v26 = vcombine.low %v668_v10, %v672_v12  ;;  %v13151_v31 = vcombine.high %v676_v20, %v680_v24  ;;  %v728_v8 = vld [vmem:[#allocation2 + $0xd78] sm:$0xff]  ;;  %v475_v12 = vld [vmem:[#allocation2 + $0x590] sm:$0xff] }
 0x298   :  { %3679 = vmatprep.subr.bf16.mxu1 %v13087_v29  ;;  %v431_v29 = vld [vmem:[#allocation2 + $0x430] sm:$0xff] }
 0x299   :  { %v12901_v35 = vcombine.high %v427_v28, %v431_v29 }
 0x29a   :  { %3422 = vmatpush1.bf16.msra.mxu0 %v12828_v32  ;;  %v688_v32 = vld [vmem:[#allocation2 + $0xc38] sm:$0xff] }
 0x29b   :  { %3680 = vmatpush1.bf16.msra.mxu1 %v13086_v33  ;;  %3423 = vmatprep.subr.bf16.mxu0 %v12837_v34  ;;  %v12892_v33 = vcombine.low %v419_v17, %v423_v19  ;;  %v13150_v34 = vcombine.low %v676_v20, %v680_v24  ;;  %v13159_v59 = vcombine.high %v684_v30, %v688_v32  ;;  %v736_v17 = vld [vmem:[#allocation2 + $0xdb8] sm:$0xff]  ;;  %v483_v24 = vld [vmem:[#allocation2 + $0x5d0] sm:$0xff] }
 0x29c   :  { %3681 = vmatprep.subr.bf16.mxu1 %v13095_v15  ;;  %v439_v15 = vld [vmem:[#allocation2 + $0x470] sm:$0xff] }
 0x29d   :  { %v12909_v44 = vcombine.high %v435_v36, %v439_v15  ;;  %v12908_v49 = vcombine.low %v435_v36, %v439_v15  ;;  %v495_v15 = vld [vmem:[#allocation2 + $0x630] sm:$0xff] }
 0x29e   :  { %3424 = vmatpush1.bf16.msra.mxu0 %v12836_v41  ;;  %v696_v41 = vld [vmem:[#allocation2 + $0xc78] sm:$0xff] }
 0x29f   :  { %3682 = vmatpush1.bf16.msra.mxu1 %v13094_v42  ;;  %3425 = vmatprep.subr.bf16.mxu0 %v12845_v43  ;;  %v12900_v42 = vcombine.low %v427_v28, %v431_v29  ;;  %v13158_v43 = vcombine.low %v684_v30, %v688_v32  ;;  %v13167_v21 = vcombine.high %v692_v38, %v696_v41  ;;  %v744_v28 = vld [vmem:[#allocation2 + $0xdf8] sm:$0xff] }
 0x2a0   :  { %3683 = vmatprep.subr.bf16.mxu1 %v13103_v18  ;;  %v447_v18 = vld [vmem:[#allocation2 + $0x4b0] sm:$0xff]  ;;  %v13166_v50 = vcombine.low %v692_v38, %v696_v41 }
 0x2a1   :  { %v12917_v39 = vcombine.high %v443_v45, %v447_v18  ;;  %v12916_v56 = vcombine.low %v443_v45, %v447_v18  ;;  %v503_v45 = vld [vmem:[#allocation2 + $0x670] sm:$0xff] }
 0x2a2   :  { %3426 = vmatpush1.bf16.msra.mxu0 %v12844_v47  ;;  %v704_v47 = vld [vmem:[#allocation2 + $0xcb8] sm:$0xff]  ;;  %v14740_v18 = vld [vmem:[#allocation6 + $0x8] ss:$16 sps:$4 sm:$0xff]  }
 0x2a3   :  { %3684 = vmatpush1.bf16.msra.mxu1 %v13102_v23  ;;  %3427 = vmatprep.subr.bf16.mxu0 %v12853_v48  ;;  %v16066_v23 = vld [vmem:[%s17224_s29] ss:$28 sps:$4 sm:$0xff]   ;;  %v16067_v48 = vld [vmem:[%s17224_s29 + $0x10] ss:$28 sps:$4 sm:$0xff]   ;;  %v13174_v57 = vcombine.low %v700_v46, %v704_v47 }
 0x2a4   :  { %3685 = vmatprep.subr.bf16.mxu1 %v13111_v51  ;;  %v451_v51 = vld [vmem:[#allocation2 + $0x4d0] sm:$0xff] }
 0x2a5   :  { %v12924_v1 = vcombine.low %v451_v51, %v455_v52 }
 0x2a6   :  { %3428 = vmatpush1.bf16.msra.mxu0 %v12852_v53  ;;  %v708_v53 = vld [vmem:[#allocation2 + $0xcd8] sm:$0xff] }
 0x2a7   :  { %3686 = vmatpush1.bf16.msra.mxu1 %v13110_v54  ;;  %3429 = vmatprep.subr.bf16.mxu0 %v12861_v40  ;;  %v13175_v54 = vcombine.high %v700_v46, %v704_v47  ;;  %v712_v40 = vld [vmem:[#allocation2 + $0xcf8] sm:$0xff]  ;;  %v507_v47 = vld [vmem:[#allocation2 + $0x690] sm:$0xff] }
 0x2a8   :  { %3687 = vmatprep.subr.bf16.mxu1 %v13119_v58  ;;  %v12925_v58 = vcombine.high %v451_v51, %v455_v52  ;;  %v13182_v2 = vcombine.low %v708_v53, %v712_v40  ;;  %v14748_v51 = vld [vmem:[#allocation6 + $0x4c] ss:$16 sps:$4 sm:$0xff]  }
 0x2aa   :  { %3430 = vmatpush1.bf16.msra.mxu0 %v12860_v61  ;;  %v463_v61 = vld [vmem:[#allocation2 + $0x530] sm:$0xff] }
 0x2ab   :  { %3688 = vmatpush1.bf16.msra.mxu1 %v13118_v62  ;;  %3431 = vmatprep.subr.bf16.mxu0 %v12869_v63  ;;  %v716_v62 = vld [vmem:[#allocation2 + $0xd18] sm:$0xff]  ;;  %v13183_v63 = vcombine.high %v708_v53, %v712_v40  ;;  %v12932_v9 = vcombine.low %v459_v60, %v463_v61  ;;  %v515_v53 = vld [vmem:[#allocation2 + $0x6d0] sm:$0xff] }
 0x2ac   :  { %3689 = vmatprep.subr.bf16.mxu1 %v13127_v3  ;;  %v12933_v3 = vcombine.high %v459_v60, %v463_v61  ;;  %v13190_v10 = vcombine.low %v716_v62, %v720_v0  ;;  %v14746_v40 = vld [vmem:[#allocation6 + $0x48] ss:$16 sps:$4 sm:$0xff]  }
 0x2ad   :  { %v14749_v61 = vld [vmem:[#allocation6 + $0x68] ss:$16 sps:$4 sm:$0xff]  }
 0x2ae   :  { %3432 = vmatpush1.bf16.msra.mxu0 %v12868_v5  ;;  %v471_v5 = vld [vmem:[#allocation2 + $0x570] sm:$0xff] }
 0x2af   :  { %3690 = vmatpush1.bf16.msra.mxu1 %v13126_v6  ;;  %3433 = vmatprep.subr.bf16.mxu0 %v12877_v7  ;;  %v724_v6 = vld [vmem:[#allocation2 + $0xd58] sm:$0xff]  ;;  %v13191_v7 = vcombine.high %v716_v62, %v720_v0  ;;  %v12940_v19 = vcombine.low %v467_v4, %v471_v5  ;;  %v531_v0 = vld [vmem:[#allocation2 + $0x750] sm:$0xff] }
 0x2b0   :  { %3691 = vmatprep.subr.bf16.mxu1 %v13135_v11  ;;  %v12941_v11 = vcombine.high %v467_v4, %v471_v5  ;;  %v13198_v20 = vcombine.low %v724_v6, %v728_v8  ;;  %v14757_v5 = vld [vmem:[#allocation6 + $0xac] ss:$16 sps:$4 sm:$0xff]  }
 0x2b2   :  { %3434 = vmatpush1.bf16.msra.mxu0 %v12876_v13  ;;  %v479_v13 = vld [vmem:[#allocation2 + $0x5b0] sm:$0xff] }
 0x2b3   :  { %3692 = vmatpush1.bf16.msra.mxu1 %v13134_v14  ;;  %3435 = vmatprep.subr.bf16.mxu0 %v12885_v16  ;;  %v732_v14 = vld [vmem:[#allocation2 + $0xd98] sm:$0xff]  ;;  %v13199_v16 = vcombine.high %v724_v6, %v728_v8  ;;  %v12948_v30 = vcombine.low %v475_v12, %v479_v13  ;;  %v539_v6 = vld [vmem:[#allocation2 + $0x790] sm:$0xff] }
 0x2b4   :  { %3693 = vmatprep.subr.bf16.mxu1 %v13143_v22  ;;  %v12949_v22 = vcombine.high %v475_v12, %v479_v13  ;;  %v13206_v32 = vcombine.low %v732_v14, %v736_v17  ;;  %v547_v12 = vld [vmem:[#allocation2 + $0x7d0] sm:$0xff] }
 0x2b5   :  { %v551_v13 = vld [vmem:[#allocation2 + $0x7f0] sm:$0xff] }
 0x2b6   :  { %3436 = vmatpush1.bf16.msra.mxu0 %v12884_v25  ;;  %v487_v25 = vld [vmem:[#allocation2 + $0x5f0] sm:$0xff] }
 0x2b7   :  { %3694 = vmatpush1.bf16.msra.mxu1 %v13142_v26  ;;  %3437 = vmatprep.subr.bf16.mxu0 %v12893_v27  ;;  %v13207_v26 = vcombine.high %v732_v14, %v736_v17  ;;  %v740_v27 = vld [vmem:[#allocation2 + $0xdd8] sm:$0xff] }
 0x2b8   :  { %3695 = vmatprep.subr.bf16.mxu1 %v13151_v31  ;;  %v13215_v36 = vcombine.high %v740_v27, %v744_v28  ;;  %v13214_v41 = vcombine.low %v740_v27, %v744_v28  ;;  %v14766_v27 = vld [vmem:[#allocation6 + $0x10c] ss:$16 sps:$4 sm:$0xff]  }
 0x2b9   :  { %v563_v28 = vld [vmem:[#allocation2 + $0x850] sm:$0xff] }
 0x2ba   :  { %3438 = vmatpush1.bf16.msra.mxu0 %v12892_v33  ;;  %v12957_v33 = vcombine.high %v483_v24, %v487_v25 }
 0x2bb   :  { %3696 = vmatpush1.bf16.msra.mxu1 %v13150_v34  ;;  %3450 = vmatprep.subr.bf16.mxu0 %v12901_v35  ;;  %v491_v34 = vld [vmem:[#allocation2 + $0x610] sm:$0xff] }
 0x2bc   :  { %3708 = vmatprep.subr.bf16.mxu1 %v13159_v59  ;;  %v12956_v59 = vcombine.low %v483_v24, %v487_v25  ;;  %v12964_v46 = vcombine.low %v491_v34, %v495_v15  ;;  %v13021_v24 = vcombine.high %v547_v12, %v551_v13  ;;  %v14761_v25 = vld [vmem:[#allocation6 + $0xe8] ss:$16 sps:$4 sm:$0xff]  }
 0x2bd   :  { %3440 = vmatmul.mubr.bf16.vlgmr.msra.gmra.mrb[8].mxu0 %v16066_v23 }
 0x2be   :  { %3451 = vmatpush1.bf16.msra.mxu0 %v12900_v42  ;;  %3698 = vmatmul.mubr.bf16.vlgmr.msra.gmra.mrb[4].mxu1 %v16067_v48  ;;  %v12965_v42 = vcombine.high %v491_v34, %v495_v15  ;;  %v511_v48 = vld [vmem:[#allocation2 + $0x6b0] sm:$0xff] }
 0x2bf   :  { %3709 = vmatpush1.bf16.msra.mxu1 %v13158_v43  ;;  %3452 = vmatprep.subr.bf16.mxu0 %v12909_v44  ;;  %v14742_v43 = vld [vmem:[#allocation6 + $0xc] ss:$16 sps:$4 sm:$0xff]   ;;  %v12981_v52 = vcombine.high %v507_v47, %v511_v48 }
 0x2c0   :  { %3710 = vmatprep.subr.bf16.mxu1 %v13167_v21  ;;  %3740 = vmatprep.mubr.bf16.mxu1 %v16519_v37  ;;  %v499_v44 = vld [vmem:[#allocation2 + $0x650] sm:$0xff] }
 0x2c1   :  { %3482 = vmatprep.mubr.bf16.mxu0 %v16068_v55  ;;  %v14745_v21 = vld [vmem:[#allocation6 + $0x2c] ss:$16 sps:$4 sm:$0xff]   ;;  %v12973_v23 = vcombine.high %v499_v44, %v503_v45  ;;  %v12980_v55 = vcombine.low %v507_v47, %v511_v48  ;;  %v14770_v48 = vld [vmem:[#allocation6 + $0x148] ss:$16 sps:$4 sm:$0xff]  }
 0x2c2   :  { %3453 = vmatpush1.bf16.msra.mxu0 %v12908_v49  ;;  %v14743_v49 = vld [vmem:[#allocation6 + $0x28] ss:$16 sps:$4 sm:$0xff]  }
 0x2c3   :  { %3711 = vmatpush1.bf16.msra.mxu1 %v13166_v50  ;;  %3454 = vmatprep.subr.bf16.mxu0 %v12917_v39  ;;  %v16069_v50 = vld [vmem:[%s17224_s29 + $0x18] ss:$28 sps:$4 sm:$0xff]   ;;  %v12972_v39 = vcombine.low %v499_v44, %v503_v45 }
 0x2c4   :  { %3712 = vmatprep.subr.bf16.mxu1 %v13175_v54  ;;  %v519_v54 = vld [vmem:[#allocation2 + $0x6f0] sm:$0xff] }
 0x2c5   :  { %v12989_v60 = vcombine.high %v515_v53, %v519_v54  ;;  %v12988_v62 = vcombine.low %v515_v53, %v519_v54  ;;  %v571_v15 = vld [vmem:[#allocation2 + $0x890] sm:$0xff] }
 0x2c6   :  { %3455 = vmatpush1.bf16.msra.mxu0 %v12916_v56  ;;  %v14751_v56 = vld [vmem:[#allocation6 + $0x6c] ss:$16 sps:$4 sm:$0xff]   ;;  %v14773_v54 = vld [vmem:[#allocation6 + $0x168] ss:$16 sps:$4 sm:$0xff]  }
 0x2c7   :  { %3713 = vmatpush1.bf16.msra.mxu1 %v13174_v57  ;;  %3456 = vmatprep.subr.bf16.mxu0 %v12925_v58  ;;  %v523_v57 = vld [vmem:[#allocation2 + $0x710] sm:$0xff] }
 0x2c8   :  { %3714 = vmatprep.subr.bf16.mxu1 %v13183_v63  ;;  %v527_v58 = vld [vmem:[#allocation2 + $0x730] sm:$0xff] }
 0x2c9   :  { %v14754_v63 = vld [vmem:[#allocation6 + $0x8c] ss:$16 sps:$4 sm:$0xff]   ;;  %v12996_v4 = vcombine.low %v523_v57, %v527_v58 }
 0x2ca   :  { %3457 = vmatpush1.bf16.msra.mxu0 %v12924_v1  ;;  %v535_v1 = vld [vmem:[#allocation2 + $0x770] sm:$0xff] }
 0x2cb   :  { %3715 = vmatpush1.bf16.msra.mxu1 %v13182_v2  ;;  %3458 = vmatprep.subr.bf16.mxu0 %v12933_v3  ;;  %v12997_v2 = vcombine.high %v523_v57, %v527_v58  ;;  %v14752_v3 = vld [vmem:[#allocation6 + $0x88] ss:$16 sps:$4 sm:$0xff]   ;;  %v13005_v8 = vcombine.high %v531_v0, %v535_v1  ;;  %v14772_v45 = vld [vmem:[#allocation6 + $0x14c] ss:$16 sps:$4 sm:$0xff]  }
 0x2cc   :  { %3716 = vmatprep.subr.bf16.mxu1 %v13191_v7  ;;  %v543_v7 = vld [vmem:[#allocation2 + $0x7b0] sm:$0xff] }
 0x2cd   :  { %v13013_v14 = vcombine.high %v539_v6, %v543_v7  ;;  %v13012_v17 = vcombine.low %v539_v6, %v543_v7  ;;  %v599_v57 = vld [vmem:[#allocation2 + $0x970] sm:$0xff] }
 0x2ce   :  { %3459 = vmatpush1.bf16.msra.mxu0 %v12932_v9  ;;  %v14755_v9 = vld [vmem:[#allocation6 + $0xa8] ss:$16 sps:$4 sm:$0xff]  }
 0x2cf   :  { %3717 = vmatpush1.bf16.msra.mxu1 %v13190_v10  ;;  %3460 = vmatprep.subr.bf16.mxu0 %v12941_v11  ;;  %v13004_v10 = vcombine.low %v531_v0, %v535_v1  ;;  %v14760_v11 = vld [vmem:[#allocation6 + $0xcc] ss:$16 sps:$4 sm:$0xff]   ;;  %v14779_v6 = vld [vmem:[#allocation6 + $0x1a8] ss:$16 sps:$4 sm:$0xff]  }
 0x2d0   :  { %3718 = vmatprep.subr.bf16.mxu1 %v13199_v16  ;;  %v16949_v29 = vpop.f32.mrb[0].mxu1  ;;  %v14758_v16 = vld [vmem:[#allocation6 + $0xc8] ss:$16 sps:$4 sm:$0xff]   ;;  %v14781_v1 = vld [vmem:[#allocation6 + $0x1ac] ss:$16 sps:$4 sm:$0xff]  }
 0x2d1   :  { %v16951_v31 = vpop.f32.mrb[1].mxu1 }
 0x2d2   :  { %3461 = vmatpush1.bf16.msra.mxu0 %v12940_v19  ;;  %v16953_v35 = vpop.f32.mrb[2].mxu1  ;;  %v14763_v19 = vld [vmem:[#allocation6 + $0xec] ss:$16 sps:$4 sm:$0xff]  }
 0x2d3   :  { %3719 = vmatpush1.bf16.msra.mxu1 %v13198_v20  ;;  %3462 = vmatprep.subr.bf16.mxu0 %v12949_v22  ;;  %v16955_v38 = vpop.f32.mrb[3].mxu1  ;;  %v555_v20 = vld [vmem:[#allocation2 + $0x810] sm:$0xff] }
 0x2d4   :  { %3720 = vmatprep.subr.bf16.mxu1 %v13207_v26  ;;  %v559_v22 = vld [vmem:[#allocation2 + $0x830] sm:$0xff]  ;;  %v13020_v26 = vcombine.low %v547_v12, %v551_v13 }
 0x2d5   :  { %v13028_v34 = vcombine.low %v555_v20, %v559_v22 }
 0x2d6   :  { %3463 = vmatpush1.bf16.msra.mxu0 %v12948_v30  ;;  %v567_v30 = vld [vmem:[#allocation2 + $0x870] sm:$0xff] }
 0x2d7   :  { %3721 = vmatpush1.bf16.msra.mxu1 %v13206_v32  ;;  %3464 = vmatprep.subr.bf16.mxu0 %v12957_v33  ;;  %v13029_v32 = vcombine.high %v555_v20, %v559_v22  ;;  %v14764_v33 = vld [vmem:[#allocation6 + $0x108] ss:$16 sps:$4 sm:$0xff]   ;;  %v13036_v44 = vcombine.low %v563_v28, %v567_v30 }
 0x2d8   :  { %3722 = vmatprep.subr.bf16.mxu1 %v13215_v36  ;;  %v14769_v36 = vld [vmem:[#allocation6 + $0x12c] ss:$16 sps:$4 sm:$0xff]  }
 0x2da   :  { %3465 = vmatpush1.bf16.msra.mxu0 %v12956_v59  ;;  %v575_v59 = vld [vmem:[#allocation2 + $0x8b0] sm:$0xff] }
 0x2db   :  { %3723 = vmatpush1.bf16.msra.mxu1 %v13214_v41  ;;  %3466 = vmatprep.subr.bf16.mxu0 %v12965_v42  ;;  %v13037_v41 = vcombine.high %v563_v28, %v567_v30  ;;  %v16070_v42 = vld [vmem:[%s17224_s29 + $0x8] ss:$28 sps:$4 sm:$0xff]   ;;  %v13045_v47 = vcombine.high %v571_v15, %v575_v59  ;;  %v623_v30 = vld [vmem:[#allocation2 + $0xa30] sm:$0xff] }
 0x2dc   :  { %5505 = vmatprep.subr.bf16.mxu1 %v14742_v43  ;;  %v14767_v43 = vld [vmem:[#allocation6 + $0x128] ss:$16 sps:$4 sm:$0xff]  }
 0x2de   :  { %3467 = vmatpush1.bf16.msra.mxu0 %v12964_v46  ;;  %3741 = vmatmul.mubr.bf16.vlgmr.msra.gmra.mrb[4].mxu1 %v16069_v50  ;;  %v583_v46 = vld [vmem:[#allocation2 + $0x8f0] sm:$0xff] }
 0x2df   :  { %5506 = vmatpush1.bf16.msra.mxu1 %v14740_v18  ;;  %3468 = vmatprep.subr.bf16.mxu0 %v12973_v23  ;;  %v579_v18 = vld [vmem:[#allocation2 + $0x8d0] sm:$0xff]  ;;  %v747_v23 = vlaneseq }
 0x2e0   :  { %5507 = vmatprep.subr.bf16.mxu1 %v14745_v21  ;;  %v16071_v21 = vld [vmem:[%s17224_s29 + $0x14] ss:$28 sps:$4 sm:$0xff]  }
 0x2e1   :  { %v14775_v50 = vld [vmem:[#allocation6 + $0x16c] ss:$16 sps:$4 sm:$0xff]   ;;  %v16966_v53 = vshrl.u32 %v747_v23, 7 }
 0x2e2   :  { %3469 = vmatpush1.bf16.msra.mxu0 %v12972_v39  ;;  %v587_v39 = vld [vmem:[#allocation2 + $0x910] sm:$0xff] }
 0x2e3   :  { %5508 = vmatpush1.bf16.msra.mxu1 %v14743_v49  ;;  %3470 = vmatprep.subr.bf16.mxu0 %v12981_v52  ;;  %v13044_v49 = vcombine.low %v571_v15, %v575_v59  ;;  %v13053_v52 = vcombine.high %v579_v18, %v583_v46  ;;  %v16974_v0 = vsub.s32 1, %v16966_v53  ;;  %v14793_v23 = vld [vmem:[#allocation6 + $0x22c] ss:$16 sps:$4 sm:$0xff]  }
 0x2e4   :  { %5509 = vmatprep.subr.bf16.mxu1 %v14748_v51  ;;  %v591_v51 = vld [vmem:[#allocation2 + $0x930] sm:$0xff] }
 0x2e5   :  { %v13061_v58 = vcombine.high %v587_v39, %v591_v51 }
 0x2e6   :  { %3471 = vmatpush1.bf16.msra.mxu0 %v12980_v55  ;;  %v14778_v55 = vld [vmem:[#allocation6 + $0x18c] ss:$16 sps:$4 sm:$0xff]  }
 0x2e7   :  { %5510 = vmatpush1.bf16.msra.mxu1 %v14746_v40  ;;  %3472 = vmatprep.subr.bf16.mxu0 %v12989_v60  ;;  %v13052_v40 = vcombine.low %v579_v18, %v583_v46  ;;  %v16968_v60 = vld [vmem:[#allocation4] sm:$0xff] }
 0x2e8   :  { %5511 = vmatprep.subr.bf16.mxu1 %v14751_v56  ;;  %v595_v56 = vld [vmem:[#allocation2 + $0x950] sm:$0xff]  ;;  %v754_v7 = vrot.slane %v16968_v60, %v16974_v0 }
 0x2ea   :  { %3473 = vmatpush1.bf16.msra.mxu0 %v12988_v62  ;;  %v16971_v62 = vsub.s32 0, %v16966_v53 }
 0x2eb   :  { %5512 = vmatpush1.bf16.msra.mxu1 %v14749_v61  ;;  %3474 = vmatprep.subr.bf16.mxu0 %v12997_v2  ;;  %v14776_v61 = vld [vmem:[#allocation6 + $0x188] ss:$16 sps:$4 sm:$0xff]  }
 0x2ec   :  { %5513 = vmatprep.subr.bf16.mxu1 %v14754_v63  ;;  %v13060_v63 = vcombine.low %v587_v39, %v591_v51  ;;  %v603_v2 = vld [vmem:[#allocation2 + $0x990] sm:$0xff] }
 0x2ed   :  { %v14791_v39 = vld [vmem:[#allocation6 + $0x228] ss:$16 sps:$4 sm:$0xff]  }
 0x2ee   :  { %3475 = vmatpush1.bf16.msra.mxu0 %v12996_v4  ;;  %v13069_v4 = vcombine.high %v595_v56, %v599_v57 }
 0x2ef   :  { %5514 = vmatpush1.bf16.msra.mxu1 %v14752_v3  ;;  %3476 = vmatprep.subr.bf16.mxu0 %v13005_v8  ;;  %v607_v3 = vld [vmem:[#allocation2 + $0x9b0] sm:$0xff]  ;;  %v13068_v8 = vcombine.low %v595_v56, %v599_v57 }
 0x2f0   :  { %5515 = vmatprep.subr.bf16.mxu1 %v14757_v5  ;;  %v750_v5 = vrot.slane %v16968_v60, %v16971_v62  ;;  %v13077_v12 = vcombine.high %v603_v2, %v607_v3  ;;  %v13076_v22 = vcombine.low %v603_v2, %v607_v3  ;;  %v14794_v56 = vld [vmem:[#allocation6 + $0x248] ss:$16 sps:$4 sm:$0xff]  }
 0x2f1   :  { %v14797_v2 = vld [vmem:[#allocation6 + $0x268] ss:$16 sps:$4 sm:$0xff]  }
 0x2f2   :  { %3477 = vmatpush1.bf16.msra.mxu0 %v13004_v10  ;;  %v611_v10 = vld [vmem:[#allocation2 + $0x9d0] sm:$0xff] }
 0x2f3   :  { %5516 = vmatpush1.bf16.msra.mxu1 %v14755_v9  ;;  %3478 = vmatprep.subr.bf16.mxu0 %v13013_v14  ;;  %v14784_v9 = vld [vmem:[#allocation6 + $0x1cc] ss:$16 sps:$4 sm:$0xff]  }
 0x2f4   :  { %5517 = vmatprep.subr.bf16.mxu1 %v14760_v11  ;;  %v615_v11 = vld [vmem:[#allocation2 + $0x9f0] sm:$0xff] }
 0x2f5   :  { %v13085_v28 = vcombine.high %v611_v10, %v615_v11 }
 0x2f6   :  { %3479 = vmatpush1.bf16.msra.mxu0 %v13012_v17  ;;  %v14782_v17 = vld [vmem:[#allocation6 + $0x1c8] ss:$16 sps:$4 sm:$0xff]  }
 0x2f7   :  { %5518 = vmatpush1.bf16.msra.mxu1 %v14758_v16  ;;  %3480 = vmatprep.subr.bf16.mxu0 %v13021_v24  ;;  %v14787_v24 = vld [vmem:[#allocation6 + $0x1ec] ss:$16 sps:$4 sm:$0xff]  }
 0x2f8   :  { %5519 = vmatprep.subr.bf16.mxu1 %v14763_v19 }
 0x2fa   :  { %3481 = vmatpush1.bf16.msra.mxu0 %v13020_v26 }
 0x2fb   :  { %5520 = vmatpush1.bf16.msra.mxu1 %v14761_v25  ;;  %3493 = vmatprep.subr.bf16.mxu0 %v13029_v32  ;;  %v619_v25 = vld [vmem:[#allocation2 + $0xa10] sm:$0xff] }
 0x2fc   :  { %5521 = vmatprep.subr.bf16.mxu1 %v14766_v27  ;;  %v13093_v18 = vcombine.high %v619_v25, %v623_v30 }
 0x2fd   :  { %3483 = vmatmul.mubr.bf16.vlgmr.msra.gmra.mrb[8].mxu0 %v16070_v42  ;;  %v14790_v42 = vld [vmem:[#allocation6 + $0x20c] ss:$16 sps:$4 sm:$0xff]  }
 0x2fe   :  { %3494 = vmatpush1.bf16.msra.mxu0 %v13028_v34  ;;  %3525 = vmatprep.mubr.bf16.mxu0 %v16071_v21  ;;  %v14788_v21 = vld [vmem:[#allocation6 + $0x208] ss:$16 sps:$4 sm:$0xff]  }
 0x2ff   :  { %5522 = vmatpush1.bf16.msra.mxu1 %v14764_v33  ;;  %3495 = vmatprep.subr.bf16.mxu0 %v13037_v41  ;;  %v13084_v41 = vcombine.low %v611_v10, %v615_v11  ;;  %v14805_v10 = vld [vmem:[#allocation6 + $0x2ac] ss:$16 sps:$4 sm:$0xff]  }
 0x300   :  { %5523 = vmatprep.subr.bf16.mxu1 %v14769_v36  ;;  %v14785_v36 = vld [vmem:[#allocation6 + $0x1e8] ss:$16 sps:$4 sm:$0xff]  }
 0x301   :  { %v667_v11 = vld [vmem:[#allocation2 + $0xb90] sm:$0xff] }
 0x302   :  { %3496 = vmatpush1.bf16.msra.mxu0 %v13036_v44  ;;  %v631_v44 = vld [vmem:[#allocation2 + $0xa70] sm:$0xff] }
 0x303   :  { %5524 = vmatpush1.bf16.msra.mxu1 %v14767_v43  ;;  %3497 = vmatprep.subr.bf16.mxu0 %v13045_v47  ;;  %v627_v43 = vld [vmem:[#allocation2 + $0xa50] sm:$0xff]  ;;  %v13092_v47 = vcombine.low %v619_v25, %v623_v30 }
 0x304   :  { %5525 = vmatprep.subr.bf16.mxu1 %v14772_v45  ;;  %v13100_v51 = vcombine.low %v627_v43, %v631_v44 }
 0x306   :  { %3498 = vmatpush1.bf16.msra.mxu0 %v13044_v49  ;;  %v13101_v49 = vcombine.high %v627_v43, %v631_v44  ;;  %v14817_v43 = vld [vmem:[#allocation6 + $0x32c] ss:$16 sps:$4 sm:$0xff]  }
 0x307   :  { %5526 = vmatpush1.bf16.msra.mxu1 %v14770_v48  ;;  %3499 = vmatprep.subr.bf16.mxu0 %v13053_v52  ;;  %v635_v48 = vld [vmem:[#allocation2 + $0xa90] sm:$0xff] }
 0x308   :  { %5527 = vmatprep.subr.bf16.mxu1 %v14775_v50  ;;  %v639_v50 = vld [vmem:[#allocation2 + $0xab0] sm:$0xff] }
 0x309   :  { %v14796_v52 = vld [vmem:[#allocation6 + $0x24c] ss:$16 sps:$4 sm:$0xff]   ;;  %v13108_v57 = vcombine.low %v635_v48, %v639_v50 }
 0x30a   :  { %3500 = vmatpush1.bf16.msra.mxu0 %v13052_v40  ;;  %v647_v40 = vld [vmem:[#allocation2 + $0xaf0] sm:$0xff] }
 0x30b   :  { %5528 = vmatpush1.bf16.msra.mxu1 %v14773_v54  ;;  %3501 = vmatprep.subr.bf16.mxu0 %v13061_v58  ;;  %v643_v54 = vld [vmem:[#allocation2 + $0xad0] sm:$0xff] }
 0x30c   :  { %5529 = vmatprep.subr.bf16.mxu1 %v14778_v55  ;;  %v13109_v55 = vcombine.high %v635_v48, %v639_v50  ;;  %v14799_v58 = vld [vmem:[#allocation6 + $0x26c] ss:$16 sps:$4 sm:$0xff]   ;;  %v13116_v3 = vcombine.low %v643_v54, %v647_v40 }
 0x30d   :  { %v699_v44 = vld [vmem:[#allocation2 + $0xc90] sm:$0xff] }
 0x30e   :  { %3502 = vmatpush1.bf16.msra.mxu0 %v13060_v63  ;;  %v655_v63 = vld [vmem:[#allocation2 + $0xb30] sm:$0xff] }
 0x30f   :  { %5530 = vmatpush1.bf16.msra.mxu1 %v14776_v61  ;;  %3503 = vmatprep.subr.bf16.mxu0 %v13069_v4  ;;  %v651_v61 = vld [vmem:[#allocation2 + $0xb10] sm:$0xff] }
 0x310   :  { %v3226_v13 = vpop.f32.mrb[0].mxu0  ;;  %5531 = vmatprep.subr.bf16.mxu1 %v14781_v1  ;;  %v13117_v1 = vcombine.high %v643_v54, %v647_v40  ;;  %v14802_v4 = vld [vmem:[#allocation6 + $0x28c] ss:$16 sps:$4 sm:$0xff]  }
 0x311   :  { %v14515_v14 = vadd.f32 %v3226_v13, %v750_v5  ;;  %v3228_v16 = vpop.f32.mrb[1].mxu0  ;;  %v707_v50 = vld [vmem:[#allocation2 + $0xcd0] sm:$0xff] }
 0x312   :  { %v14516_v19 = vadd.f32 %v3228_v16, %v754_v7  ;;  %v3230_v20 = vpop.f32.mrb[2].mxu0  ;;  %3504 = vmatpush1.bf16.msra.mxu0 %v13068_v8  ;;  %v14800_v8 = vld [vmem:[#allocation6 + $0x288] ss:$16 sps:$4 sm:$0xff]   ;;  %v14823_v40 = vld [vmem:[#allocation6 + $0x36c] ss:$16 sps:$4 sm:$0xff]  }
 0x313   :  { %v14517_v26 = vadd.f32 %v3230_v20, %v750_v5  ;;  %5532 = vmatpush1.bf16.msra.mxu1 %v14779_v6  ;;  %v3232_v27 = vpop.f32.mrb[3].mxu0  ;;  %3505 = vmatprep.subr.bf16.mxu0 %v13077_v12  ;;  %v3751_v32 = vmax.f32 %v14515_v14, 0.0  ;;  %v659_v5 = vld [vmem:[#allocation2 + $0xb50] sm:$0xff] }
 0x314   :  { %v14518_v33 = vadd.f32 %v3232_v27, %v754_v7  ;;  %5533 = vmatprep.subr.bf16.mxu1 %v14784_v9  ;;  %v3752_v15 = vmax.f32 %v14516_v19, 0.0  ;;  %v663_v6 = vld [vmem:[#allocation2 + $0xb70] sm:$0xff]  ;;  %v13125_v7 = vcombine.high %v651_v61, %v655_v63  ;;  %v13124_v9 = vcombine.low %v651_v61, %v655_v63 }
 0x315   :  { %v3759_v34 = vmax.f32 %v14517_v26, 0.0  ;;  %v671_v12 = vld [vmem:[#allocation2 + $0xbb0] sm:$0xff]  ;;  %v13133_v13 = vcombine.high %v659_v5, %v663_v6  ;;  %v13132_v16 = vcombine.low %v659_v5, %v663_v6  ;;  %v16991_v5 = vsub.s32 2, %v16966_v53 }
 0x316   :  { %v3760_v59 = vmax.f32 %v14518_v33, 0.0  ;;  %3506 = vmatpush1.bf16.msra.mxu0 %v13076_v22  ;;  %v14803_v14 = vld [vmem:[#allocation6 + $0x2a8] ss:$16 sps:$4 sm:$0xff]   ;;  %v13141_v22 = vcombine.high %v667_v11, %v671_v12  ;;  %v13140_v25 = vcombine.low %v667_v11, %v671_v12  ;;  %v14811_v26 = vld [vmem:[#allocation6 + $0x2ec] ss:$16 sps:$4 sm:$0xff]  }
 0x317   :  { %v16980_v45 = vpack.c.bf16 %v3759_v34, %v3751_v32  ;;  %5534 = vmatpush1.bf16.msra.mxu1 %v14782_v17  ;;  %3507 = vmatprep.subr.bf16.mxu0 %v13085_v28  ;;  %v14808_v17 = vld [vmem:[#allocation6 + $0x2cc] ss:$16 sps:$4 sm:$0xff]   ;;  %v14809_v32 = vld [vmem:[#allocation6 + $0x2e8] ss:$16 sps:$4 sm:$0xff]   ;;  %v758_v12 = vrot.slane %v16968_v60, %v16991_v5 }
 0x318   :  { %v16982_v46 = vpack.c.bf16 %v3760_v59, %v3752_v15  ;;  %5535 = vmatprep.subr.bf16.mxu1 %v14787_v24  ;;  %v675_v19 = vld [vmem:[#allocation2 + $0xbd0] sm:$0xff] }
 0x319   :  { %v679_v20 = vld [vmem:[#allocation2 + $0xbf0] sm:$0xff] }
 0x31a   :  { %3508 = vmatpush1.bf16.msra.mxu0 %v13084_v41  ;;  %5537 = vmatprep.mubr.bf16.mxu1 %v16982_v46  ;;  %v14806_v24 = vld [vmem:[#allocation6 + $0x2c8] ss:$16 sps:$4 sm:$0xff]   ;;  %v13149_v30 = vcombine.high %v675_v19, %v679_v20  ;;  %v13148_v33 = vcombine.low %v675_v19, %v679_v20  ;;  %v14814_v34 = vld [vmem:[#allocation6 + $0x30c] ss:$16 sps:$4 sm:$0xff]  }
 0x31b   :  { %5536 = vmatpush1.bf16.msra.mxu1 %v14785_v36  ;;  %3509 = vmatprep.subr.bf16.mxu0 %v13093_v18  ;;  %v683_v27 = vld [vmem:[#allocation2 + $0xc10] sm:$0xff] }
 0x31c   :  { %5548 = vmatprep.subr.bf16.mxu1 %v14790_v42  ;;  %v687_v28 = vld [vmem:[#allocation2 + $0xc30] sm:$0xff] }
 0x31d   :  { %v691_v36 = vld [vmem:[#allocation2 + $0xc50] sm:$0xff]  ;;  %v13157_v59 = vcombine.high %v683_v27, %v687_v28  ;;  %v13156_v42 = vcombine.low %v683_v27, %v687_v28 }
 0x31e   :  { %5538 = vmatmul.mubr.bf16.vlgmr.msra.gmra.mrb[8].mxu1 %v16980_v45  ;;  %3510 = vmatpush1.bf16.msra.mxu0 %v13092_v47  ;;  %v695_v15 = vld [vmem:[#allocation2 + $0xc70] sm:$0xff] }
 0x31f   :  { %5549 = vmatpush1.bf16.msra.mxu1 %v14788_v21  ;;  %3511 = vmatprep.subr.bf16.mxu0 %v13101_v49  ;;  %v14812_v41 = vld [vmem:[#allocation6 + $0x308] ss:$16 sps:$4 sm:$0xff]   ;;  %v13165_v21 = vcombine.high %v691_v36, %v695_v15  ;;  %v13164_v48 = vcombine.low %v691_v36, %v695_v15  ;;  %v14820_v49 = vld [vmem:[#allocation6 + $0x34c] ss:$16 sps:$4 sm:$0xff]  }
 0x320   :  { %5550 = vmatprep.subr.bf16.mxu1 %v14793_v23  ;;  %v703_v18 = vld [vmem:[#allocation2 + $0xcb0] sm:$0xff] }
 0x321   :  { %v16072_v47 = vld [vmem:[%s17224_s29 + $0x10] ss:$28 sps:$4 sm:$0xff]   ;;  %v13172_v54 = vcombine.low %v699_v44, %v703_v18  ;;  %v14826_v63 = vld [vmem:[#allocation6 + $0x38c] ss:$16 sps:$4 sm:$0xff]  }
 0x322   :  { %3512 = vmatpush1.bf16.msra.mxu0 %v13100_v51  ;;  %v14815_v23 = vld [vmem:[#allocation6 + $0x328] ss:$16 sps:$4 sm:$0xff]   ;;  %v13173_v51 = vcombine.high %v699_v44, %v703_v18 }
 0x323   :  { %5551 = vmatpush1.bf16.msra.mxu1 %v14791_v39  ;;  %3513 = vmatprep.subr.bf16.mxu0 %v13109_v55  ;;  %v711_v39 = vld [vmem:[#allocation2 + $0xcf0] sm:$0xff] }
 0x324   :  { %5552 = vmatprep.subr.bf16.mxu1 %v14796_v52  ;;  %v14818_v52 = vld [vmem:[#allocation6 + $0x348] ss:$16 sps:$4 sm:$0xff]   ;;  %v13180_v61 = vcombine.low %v707_v50, %v711_v39 }
 0x325   :  { %v715_v55 = vld [vmem:[#allocation2 + $0xd10] sm:$0xff] }
 0x326   :  { %3514 = vmatpush1.bf16.msra.mxu0 %v13108_v57  ;;  %v13181_v57 = vcombine.high %v707_v50, %v711_v39  ;;  %v739_v19 = vld [vmem:[#allocation2 + $0xdd0] sm:$0xff] }
 0x327   :  { %5553 = vmatpush1.bf16.msra.mxu1 %v14794_v56  ;;  %3515 = vmatprep.subr.bf16.mxu0 %v13117_v1  ;;  %v719_v56 = vld [vmem:[#allocation2 + $0xd30] sm:$0xff] }
 0x328   :  { %5554 = vmatprep.subr.bf16.mxu1 %v14799_v58  ;;  %v14821_v58 = vld [vmem:[#allocation6 + $0x368] ss:$16 sps:$4 sm:$0xff]   ;;  %v13188_v6 = vcombine.low %v715_v55, %v719_v56 }
 0x329   :  { %v723_v1 = vld [vmem:[#allocation2 + $0xd50] sm:$0xff] }
 0x32a   :  { %3516 = vmatpush1.bf16.msra.mxu0 %v13116_v3  ;;  %v13189_v3 = vcombine.high %v715_v55, %v719_v56  ;;  %v743_v20 = vld [vmem:[#allocation2 + $0xdf0] sm:$0xff]  ;;  %v14842_v56 = vld [vmem:[#allocation6 + $0x40] ss:$16 sps:$4 sm:$0xff]  }
 0x32b   :  { %5555 = vmatpush1.bf16.msra.mxu1 %v14797_v2  ;;  %3517 = vmatprep.subr.bf16.mxu0 %v13125_v7  ;;  %v727_v2 = vld [vmem:[#allocation2 + $0xd70] sm:$0xff]  ;;  %v16994_v7 = vsub.s32 3, %v16966_v53  ;;  %v13213_v15 = vcombine.high %v739_v19, %v743_v20  ;;  %v13212_v44 = vcombine.low %v739_v19, %v743_v20  ;;  %v14857_v19 = vld [vmem:[#allocation6 + $0xe0] ss:$16 sps:$4 sm:$0xff]   ;;  %v14862_v20 = vld [vmem:[#allocation6 + $0x104] ss:$16 sps:$4 sm:$0xff]  }
 0x32c   :  { %5556 = vmatprep.subr.bf16.mxu1 %v14802_v4  ;;  %v14824_v4 = vld [vmem:[#allocation6 + $0x388] ss:$16 sps:$4 sm:$0xff]   ;;  %v13197_v11 = vcombine.high %v723_v1, %v727_v2  ;;  %v14943_v55 = vld [vmem:[#allocation6 + $0x42c] ss:$16 sps:$4 sm:$0xff]  }
 0x32d   :  { %v14833_v18 = vld [vmem:[#allocation6 + $0x3e8] ss:$16 sps:$4 sm:$0xff]  }
 0x32e   :  { %3518 = vmatpush1.bf16.msra.mxu0 %v13124_v9  ;;  %v731_v9 = vld [vmem:[#allocation2 + $0xd90] sm:$0xff] }
 0x32f   :  { %5557 = vmatpush1.bf16.msra.mxu1 %v14800_v8  ;;  %3519 = vmatprep.subr.bf16.mxu0 %v13133_v13  ;;  %v14829_v8 = vld [vmem:[#allocation6 + $0x3ac] ss:$16 sps:$4 sm:$0xff]   ;;  %v14827_v13 = vld [vmem:[#allocation6 + $0x3a8] ss:$16 sps:$4 sm:$0xff]  }
 0x330   :  { %5558 = vmatprep.subr.bf16.mxu1 %v14805_v10  ;;  %v735_v10 = vld [vmem:[#allocation2 + $0xdb0] sm:$0xff] }
 0x332   :  { %3520 = vmatpush1.bf16.msra.mxu0 %v13132_v16  ;;  %v13196_v16 = vcombine.low %v723_v1, %v727_v2  ;;  %v14850_v1 = vld [vmem:[#allocation6 + $0x84] ss:$16 sps:$4 sm:$0xff]   ;;  %v14955_v2 = vld [vmem:[#allocation6 + $0x46c] ss:$16 sps:$4 sm:$0xff]  }
 0x333   :  { %5559 = vmatpush1.bf16.msra.mxu1 %v14803_v14  ;;  %3521 = vmatprep.subr.bf16.mxu0 %v13141_v22  ;;  %v762_v14 = vrot.slane %v16968_v60, %v16994_v7  ;;  %v13205_v22 = vcombine.high %v731_v9, %v735_v10 }
 0x334   :  { %5560 = vmatprep.subr.bf16.mxu1 %v14808_v17  ;;  %v14832_v17 = vld [vmem:[#allocation6 + $0x3cc] ss:$16 sps:$4 sm:$0xff]  }
 0x336   :  { %3522 = vmatpush1.bf16.msra.mxu0 %v13140_v25 }
 0x337   :  { %5561 = vmatpush1.bf16.msra.mxu1 %v14806_v24  ;;  %3523 = vmatprep.subr.bf16.mxu0 %v13149_v30  ;;  %v13204_v30 = vcombine.low %v731_v9, %v735_v10  ;;  %v14851_v9 = vld [vmem:[#allocation6 + $0xa0] ss:$16 sps:$4 sm:$0xff]   ;;  %v14856_v10 = vld [vmem:[#allocation6 + $0xc4] ss:$16 sps:$4 sm:$0xff]  }
 0x338   :  { %5562 = vmatprep.subr.bf16.mxu1 %v14811_v26 }
 0x33a   :  { %3524 = vmatpush1.bf16.msra.mxu0 %v13148_v33  ;;  %v14835_v33 = vld [vmem:[#allocation6 + $0x3ec] ss:$16 sps:$4 sm:$0xff]  }
 0x33b   :  { %5563 = vmatpush1.bf16.msra.mxu1 %v14809_v32  ;;  %3536 = vmatprep.subr.bf16.mxu0 %v13157_v59  ;;  %v14830_v32 = vld [vmem:[#allocation6 + $0x3c8] ss:$16 sps:$4 sm:$0xff]  }
 0x33c   :  { %5564 = vmatprep.subr.bf16.mxu1 %v14814_v34 }
 0x33d   :  { %3526 = vmatmul.mubr.bf16.vlgmr.msra.gmra.mrb[8].mxu0 %v16072_v47 }
 0x33e   :  { %3537 = vmatpush1.bf16.msra.mxu0 %v13156_v42  ;;  %3568 = vmatprep.mubr.bf16.mxu0 %v16519_v37 }
 0x33f   :  { %5565 = vmatpush1.bf16.msra.mxu1 %v14812_v41  ;;  %3538 = vmatprep.subr.bf16.mxu0 %v13165_v21  ;;  %v14838_v21 = vld [vmem:[#allocation6 + $0x4] ss:$16 sps:$4 sm:$0xff]  }
 0x340   :  { %5566 = vmatprep.subr.bf16.mxu1 %v14817_v43 }
 0x342   :  { %3539 = vmatpush1.bf16.msra.mxu0 %v13164_v48 }
 0x343   :  { %5567 = vmatpush1.bf16.msra.mxu1 %v14815_v23  ;;  %3540 = vmatprep.subr.bf16.mxu0 %v13173_v51  ;;  %v14839_v51 = vld [vmem:[#allocation6 + $0x20] ss:$16 sps:$4 sm:$0xff]  }
 0x344   :  { %5568 = vmatprep.subr.bf16.mxu1 %v14820_v49  ;;  %v14836_v49 = vld [vmem:[#allocation6] ss:$16 sps:$4 sm:$0xff]  }
 0x346   :  { %3541 = vmatpush1.bf16.msra.mxu0 %v13172_v54  ;;  %v14937_v54 = vld [vmem:[#allocation6 + $0x40c] ss:$16 sps:$4 sm:$0xff]  }
 0x347   :  { %5569 = vmatpush1.bf16.msra.mxu1 %v14818_v52  ;;  %3542 = vmatprep.subr.bf16.mxu0 %v13181_v57  ;;  %v14844_v52 = vld [vmem:[#allocation6 + $0x44] ss:$16 sps:$4 sm:$0xff]  }
 0x348   :  { %5570 = vmatprep.subr.bf16.mxu1 %v14823_v40  ;;  %v14941_v40 = vld [vmem:[#allocation6 + $0x428] ss:$16 sps:$4 sm:$0xff]   ;;  %v14847_v57 = vld [vmem:[#allocation6 + $0x64] ss:$16 sps:$4 sm:$0xff]  }
 0x34a   :  { %3543 = vmatpush1.bf16.msra.mxu0 %v13180_v61  ;;  %v14947_v61 = vld [vmem:[#allocation6 + $0x448] ss:$16 sps:$4 sm:$0xff]  }
 0x34b   :  { %5571 = vmatpush1.bf16.msra.mxu1 %v14821_v58  ;;  %3544 = vmatprep.subr.bf16.mxu0 %v13189_v3  ;;  %v14949_v58 = vld [vmem:[#allocation6 + $0x44c] ss:$16 sps:$4 sm:$0xff]   ;;  %v14848_v3 = vld [vmem:[#allocation6 + $0x80] ss:$16 sps:$4 sm:$0xff]  }
 0x34c   :  { %5572 = vmatprep.subr.bf16.mxu1 %v14826_v63  ;;  %v14845_v63 = vld [vmem:[#allocation6 + $0x60] ss:$16 sps:$4 sm:$0xff]  }
 0x34e   :  { %3545 = vmatpush1.bf16.msra.mxu0 %v13188_v6  ;;  %v14961_v6 = vld [vmem:[#allocation6 + $0x48c] ss:$16 sps:$4 sm:$0xff]  }
 0x34f   :  { %5573 = vmatpush1.bf16.msra.mxu1 %v14824_v4  ;;  %3546 = vmatprep.subr.bf16.mxu0 %v13197_v11  ;;  %v14853_v4 = vld [vmem:[#allocation6 + $0xa4] ss:$16 sps:$4 sm:$0xff]   ;;  %v14967_v11 = vld [vmem:[#allocation6 + $0x4ac] ss:$16 sps:$4 sm:$0xff]  }
 0x350   :  { %v3269_v24 = vpop.f32.mrb[4].mxu0  ;;  %5574 = vmatprep.subr.bf16.mxu1 %v14829_v8  ;;  %v14959_v8 = vld [vmem:[#allocation6 + $0x488] ss:$16 sps:$4 sm:$0xff]  }
 0x351   :  { %v3270_v25 = vadd.f32 %v3269_v24, %v758_v12  ;;  %v3271_v26 = vpop.f32.mrb[5].mxu0  ;;  %v14977_v24 = vld [vmem:[#allocation6 + $0x4e8] ss:$16 sps:$4 sm:$0xff]  }
 0x352   :  { %v3272_v27 = vadd.f32 %v3271_v26, %v762_v14  ;;  %v3273_v28 = vpop.f32.mrb[6].mxu0  ;;  %3547 = vmatpush1.bf16.msra.mxu0 %v13196_v16  ;;  %v14973_v16 = vld [vmem:[#allocation6 + $0x4cc] ss:$16 sps:$4 sm:$0xff]   ;;  %v14865_v26 = vld [vmem:[#allocation6 + $0x124] ss:$16 sps:$4 sm:$0xff]  }
 0x353   :  { %v14520_v34 = vadd.f32 %v16949_v29, %v3270_v25  ;;  %v3274_v60 = vadd.f32 %v3273_v28, %v758_v12  ;;  %5575 = vmatpush1.bf16.msra.mxu1 %v14827_v13  ;;  %v3275_v36 = vpop.f32.mrb[7].mxu0  ;;  %3548 = vmatprep.subr.bf16.mxu0 %v13205_v22  ;;  %v14965_v12 = vld [vmem:[#allocation6 + $0x4a8] ss:$16 sps:$4 sm:$0xff]   ;;  %v14854_v13 = vld [vmem:[#allocation6 + $0xc0] ss:$16 sps:$4 sm:$0xff]  }
 0x354   :  { %v14522_v59 = vadd.f32 %v16951_v31, %v3272_v27  ;;  %v3276_v41 = vadd.f32 %v3275_v36, %v762_v14  ;;  %5576 = vmatprep.subr.bf16.mxu1 %v14832_v17  ;;  %v14841_v31 = vld [vmem:[#allocation6 + $0x24] ss:$16 sps:$4 sm:$0xff]   ;;  %v14971_v17 = vld [vmem:[#allocation6 + $0x4c8] ss:$16 sps:$4 sm:$0xff]   ;;  %v14979_v22 = vld [vmem:[#allocation6 + $0x4ec] ss:$16 sps:$4 sm:$0xff]  }
 0x355   :  { %v14524_v42 = vadd.f32 %v16953_v35, %v3274_v60  ;;  %v3753_v47 = vmax.f32 %v14520_v34, 0.0  ;;  %v16073_v35 = vld [vmem:[%s17224_s29 + $0x18] ss:$28 sps:$4 sm:$0xff]   ;;  %v14859_v14 = vld [vmem:[#allocation6 + $0xe4] ss:$16 sps:$4 sm:$0xff]  }
 0x356   :  { %v14526_v43 = vadd.f32 %v16955_v38, %v3276_v41  ;;  %3549 = vmatpush1.bf16.msra.mxu0 %v13204_v30  ;;  %v3754_v29 = vmax.f32 %v14522_v59, 0.0  ;;  %v14935_v38 = vld [vmem:[#allocation6 + $0x408] ss:$16 sps:$4 sm:$0xff]   ;;  %v14860_v25 = vld [vmem:[#allocation6 + $0x100] ss:$16 sps:$4 sm:$0xff]  }
 0x357   :  { %v3761_v23 = vmax.f32 %v14524_v42, 0.0  ;;  %5577 = vmatpush1.bf16.msra.mxu1 %v14830_v32  ;;  %3550 = vmatprep.subr.bf16.mxu0 %v13213_v15  ;;  %v14985_v27 = vld [vmem:[#allocation6 + $0x50c] ss:$16 sps:$4 sm:$0xff]   ;;  %v14983_v28 = vld [vmem:[#allocation6 + $0x508] ss:$16 sps:$4 sm:$0xff]  }
 0x358   :  { %v3762_v48 = vmax.f32 %v14526_v43, 0.0  ;;  %5578 = vmatprep.subr.bf16.mxu1 %v14835_v33  ;;  %v14863_v30 = vld [vmem:[#allocation6 + $0x120] ss:$16 sps:$4 sm:$0xff]   ;;  %v14868_v32 = vld [vmem:[#allocation6 + $0x144] ss:$16 sps:$4 sm:$0xff]  }
 0x359   :  { %v17004_v50 = vpack.c.bf16 %v3761_v23, %v3753_v47  ;;  %v14991_v33 = vld [vmem:[#allocation6 + $0x52c] ss:$16 sps:$4 sm:$0xff]   ;;  %v14989_v34 = vld [vmem:[#allocation6 + $0x528] ss:$16 sps:$4 sm:$0xff]   ;;  %v14866_v60 = vld [vmem:[#allocation6 + $0x140] ss:$16 sps:$4 sm:$0xff]  }
 0x35a   :  { %3551 = vmatpush1.bf16.msra.mxu0 %v13212_v44  ;;  %v17006_v39 = vpack.c.bf16 %v3762_v48, %v3754_v29  ;;  %v14871_v36 = vld [vmem:[#allocation6 + $0x164] ss:$16 sps:$4 sm:$0xff]   ;;  %v14997_v15 = vld [vmem:[#allocation6 + $0x54c] ss:$16 sps:$4 sm:$0xff]   ;;  %v14995_v59 = vld [vmem:[#allocation6 + $0x548] ss:$16 sps:$4 sm:$0xff]  }
 0x35b   :  { %5579 = vmatpush1.bf16.msra.mxu1 %v14833_v18  ;;  %5333 = vmatprep.subr.bf16.mxu0 %v14838_v21  ;;  %v14869_v41 = vld [vmem:[#allocation6 + $0x160] ss:$16 sps:$4 sm:$0xff]   ;;  %v14874_v42 = vld [vmem:[#allocation6 + $0x184] ss:$16 sps:$4 sm:$0xff]   ;;  %v15003_v43 = vld [vmem:[#allocation6 + $0x56c] ss:$16 sps:$4 sm:$0xff]  }
 0x35c   :  { %5580 = vmatprep.mubr.bf16.mxu1 %v17006_v39  ;;  %5591 = vmatprep.subr.bf16.mxu1 %v14937_v54  ;;  %v15001_v44 = vld [vmem:[#allocation6 + $0x568] ss:$16 sps:$4 sm:$0xff]   ;;  %v14872_v18 = vld [vmem:[#allocation6 + $0x180] ss:$16 sps:$4 sm:$0xff]   ;;  %v14877_v21 = vld [vmem:[#allocation6 + $0x1a4] ss:$16 sps:$4 sm:$0xff]  }
 0x35d   :  { %3569 = vmatmul.mubr.bf16.vlgmr.msra.gmra.mrb[8].mxu0 %v16073_v35  ;;  %v15009_v47 = vld [vmem:[#allocation6 + $0x58c] ss:$16 sps:$4 sm:$0xff]   ;;  %v15007_v23 = vld [vmem:[#allocation6 + $0x588] ss:$16 sps:$4 sm:$0xff]   ;;  %v14875_v29 = vld [vmem:[#allocation6 + $0x1a0] ss:$16 sps:$4 sm:$0xff]  }
 0x35e   :  { %5581 = vmatmul.mubr.bf16.vlgmr.msra.gmra.mrb[8].mxu1 %v17004_v50  ;;  %5334 = vmatpush1.bf16.msra.mxu0 %v14836_v49  ;;  %v14880_v48 = vld [vmem:[#allocation6 + $0x1c4] ss:$16 sps:$4 sm:$0xff]   ;;  %v15015_v49 = vld [vmem:[#allocation6 + $0x5ac] ss:$16 sps:$4 sm:$0xff]   ;;  %v14878_v35 = vld [vmem:[#allocation6 + $0x1c0] ss:$16 sps:$4 sm:$0xff]  }
 0x35f   :  { %5365 = vmatprep.mubr.bf16.mxu0 %v16982_v46  ;;  %5335 = vmatprep.subr.bf16.mxu0 %v14841_v31  ;;  %v14953_v46 = vld [vmem:[#allocation6 + $0x468] ss:$16 sps:$4 sm:$0xff]   ;;  %v14884_v54 = vld [vmem:[#allocation6 + $0x200] ss:$16 sps:$4 sm:$0xff]  }
 0x360   :  { %5592 = vmatpush1.bf16.msra.mxu1 %v14935_v38  ;;  %v15013_v31 = vld [vmem:[#allocation6 + $0x5a8] ss:$16 sps:$4 sm:$0xff]   ;;  %v14883_v38 = vld [vmem:[#allocation6 + $0x1e4] ss:$16 sps:$4 sm:$0xff]  }
 0x361   :  { %5593 = vmatprep.subr.bf16.mxu1 %v14943_v55  ;;  %v14887_v55 = vld [vmem:[#allocation6 + $0x220] ss:$16 sps:$4 sm:$0xff]  }
 0x362   :  { %5336 = vmatpush1.bf16.msra.mxu0 %v14839_v51  ;;  %v14881_v51 = vld [vmem:[#allocation6 + $0x1e0] ss:$16 sps:$4 sm:$0xff]  }
 0x363   :  { %5337 = vmatprep.subr.bf16.mxu0 %v14844_v52  ;;  %v14886_v52 = vld [vmem:[#allocation6 + $0x204] ss:$16 sps:$4 sm:$0xff]  }
 0x364   :  { %5594 = vmatpush1.bf16.msra.mxu1 %v14941_v40  ;;  %v14889_v40 = vld [vmem:[#allocation6 + $0x224] ss:$16 sps:$4 sm:$0xff]  }
 0x365   :  { %5595 = vmatprep.subr.bf16.mxu1 %v14949_v58  ;;  %v14895_v58 = vld [vmem:[#allocation6 + $0x264] ss:$16 sps:$4 sm:$0xff]  }
 0x366   :  { %5338 = vmatpush1.bf16.msra.mxu0 %v14842_v56  ;;  %v14892_v56 = vld [vmem:[#allocation6 + $0x244] ss:$16 sps:$4 sm:$0xff]  }
 0x367   :  { %5339 = vmatprep.subr.bf16.mxu0 %v14847_v57  ;;  %v14890_v57 = vld [vmem:[#allocation6 + $0x240] ss:$16 sps:$4 sm:$0xff]  }
 0x368   :  { %5596 = vmatpush1.bf16.msra.mxu1 %v14947_v61  ;;  %v14893_v61 = vld [vmem:[#allocation6 + $0x260] ss:$16 sps:$4 sm:$0xff]  }
 0x369   :  { %5597 = vmatprep.subr.bf16.mxu1 %v14955_v2  ;;  %v17017_v2 = vsub.s32 6, %v16966_v53 }
 0x36a   :  { %5340 = vmatpush1.bf16.msra.mxu0 %v14845_v63  ;;  %v14898_v63 = vld [vmem:[#allocation6 + $0x284] ss:$16 sps:$4 sm:$0xff]  }
 0x36b   :  { %5341 = vmatprep.subr.bf16.mxu0 %v14850_v1  ;;  %v14896_v1 = vld [vmem:[#allocation6 + $0x280] ss:$16 sps:$4 sm:$0xff]  }
 0x36c   :  { %5598 = vmatpush1.bf16.msra.mxu1 %v14953_v46  ;;  %v14899_v46 = vld [vmem:[#allocation6 + $0x2a0] ss:$16 sps:$4 sm:$0xff]  }
 0x36d   :  { %5599 = vmatprep.subr.bf16.mxu1 %v14961_v6  ;;  %v14904_v6 = vld [vmem:[#allocation6 + $0x2c4] ss:$16 sps:$4 sm:$0xff]  }
 0x36e   :  { %5342 = vmatpush1.bf16.msra.mxu0 %v14848_v3  ;;  %v17020_v3 = vld [vmem:[#allocation4] sm:$0xff] }
 0x36f   :  { %5343 = vmatprep.subr.bf16.mxu0 %v14853_v4  ;;  %v774_v4 = vrot.slane %v17020_v3, %v17017_v2 }
 0x370   :  { %5600 = vmatpush1.bf16.msra.mxu1 %v14959_v8 }
 0x371   :  { %5601 = vmatprep.subr.bf16.mxu1 %v14967_v11  ;;  %v14902_v11 = vld [vmem:[#allocation6 + $0x2c0] ss:$16 sps:$4 sm:$0xff]  }
 0x372   :  { %5344 = vmatpush1.bf16.msra.mxu0 %v14851_v9 }
 0x373   :  { %5345 = vmatprep.subr.bf16.mxu0 %v14856_v10  ;;  %v15021_v10 = vld [vmem:[#allocation6 + $0x5cc] ss:$16 sps:$4 sm:$0xff]  }
 0x374   :  { %5602 = vmatpush1.bf16.msra.mxu1 %v14965_v12 }
 0x375   :  { %5603 = vmatprep.subr.bf16.mxu1 %v14973_v16  ;;  %v14907_v16 = vld [vmem:[#allocation6 + $0x2e4] ss:$16 sps:$4 sm:$0xff]  }
 0x376   :  { %5346 = vmatpush1.bf16.msra.mxu0 %v14854_v13 }
 0x377   :  { %5347 = vmatprep.subr.bf16.mxu0 %v14859_v14  ;;  %v15019_v14 = vld [vmem:[#allocation6 + $0x5c8] ss:$16 sps:$4 sm:$0xff]  }
 0x378   :  { %5604 = vmatpush1.bf16.msra.mxu1 %v14971_v17 }
 0x379   :  { %5605 = vmatprep.subr.bf16.mxu1 %v14979_v22 }
 0x37a   :  { %5348 = vmatpush1.bf16.msra.mxu0 %v14857_v19 }
 0x37b   :  { %5349 = vmatprep.subr.bf16.mxu0 %v14862_v20 }
 0x37c   :  { %5606 = vmatpush1.bf16.msra.mxu1 %v14977_v24 }
 0x37d   :  { %5607 = vmatprep.subr.bf16.mxu1 %v14985_v27  ;;  %v15027_v27 = vld [vmem:[#allocation6 + $0x5ec] ss:$16 sps:$4 sm:$0xff]  }
 0x37e   :  { %5350 = vmatpush1.bf16.msra.mxu0 %v14860_v25 }
 0x37f   :  { %5351 = vmatprep.subr.bf16.mxu0 %v14865_v26 }
 0x380   :  { %5608 = vmatpush1.bf16.msra.mxu1 %v14983_v28  ;;  %v14905_v28 = vld [vmem:[#allocation6 + $0x2e0] ss:$16 sps:$4 sm:$0xff]  }
 0x381   :  { %5609 = vmatprep.subr.bf16.mxu1 %v14991_v33  ;;  %v14910_v33 = vld [vmem:[#allocation6 + $0x304] ss:$16 sps:$4 sm:$0xff]  }
 0x382   :  { %5352 = vmatpush1.bf16.msra.mxu0 %v14863_v30 }
 0x383   :  { %5353 = vmatprep.subr.bf16.mxu0 %v14868_v32  ;;  %v15025_v32 = vld [vmem:[#allocation6 + $0x5e8] ss:$16 sps:$4 sm:$0xff]  }
 0x384   :  { %5610 = vmatpush1.bf16.msra.mxu1 %v14989_v34 }
 0x385   :  { %5611 = vmatprep.subr.bf16.mxu1 %v14997_v15  ;;  %v15033_v15 = vld [vmem:[#allocation6 + $0x60c] ss:$16 sps:$4 sm:$0xff]  }
 0x386   :  { %5354 = vmatpush1.bf16.msra.mxu0 %v14866_v60 }
 0x387   :  { %5355 = vmatprep.subr.bf16.mxu0 %v14871_v36 }
 0x388   :  { %5612 = vmatpush1.bf16.msra.mxu1 %v14995_v59  ;;  %v14908_v59 = vld [vmem:[#allocation6 + $0x300] ss:$16 sps:$4 sm:$0xff]  }
 0x389   :  { %5613 = vmatprep.subr.bf16.mxu1 %v15003_v43  ;;  %v14916_v43 = vld [vmem:[#allocation6 + $0x344] ss:$16 sps:$4 sm:$0xff]  }
 0x38a   :  { %5356 = vmatpush1.bf16.msra.mxu0 %v14869_v41  ;;  %v14913_v41 = vld [vmem:[#allocation6 + $0x324] ss:$16 sps:$4 sm:$0xff]  }
 0x38b   :  { %5357 = vmatprep.subr.bf16.mxu0 %v14874_v42  ;;  %v14911_v42 = vld [vmem:[#allocation6 + $0x320] ss:$16 sps:$4 sm:$0xff]  }
 0x38c   :  { %5614 = vmatpush1.bf16.msra.mxu1 %v15001_v44  ;;  %v14914_v44 = vld [vmem:[#allocation6 + $0x340] ss:$16 sps:$4 sm:$0xff]  }
 0x38d   :  { %5615 = vmatprep.subr.bf16.mxu1 %v15009_v47  ;;  %v14922_v47 = vld [vmem:[#allocation6 + $0x384] ss:$16 sps:$4 sm:$0xff]  }
 0x38e   :  { %5358 = vmatpush1.bf16.msra.mxu0 %v14872_v18  ;;  %v14919_v18 = vld [vmem:[#allocation6 + $0x364] ss:$16 sps:$4 sm:$0xff]  }
 0x38f   :  { %5359 = vmatprep.subr.bf16.mxu0 %v14877_v21  ;;  %v14917_v21 = vld [vmem:[#allocation6 + $0x360] ss:$16 sps:$4 sm:$0xff]  }
 0x390   :  { %5616 = vmatpush1.bf16.msra.mxu1 %v15007_v23  ;;  %v14920_v23 = vld [vmem:[#allocation6 + $0x380] ss:$16 sps:$4 sm:$0xff]  }
 0x391   :  { %5617 = vmatprep.subr.bf16.mxu1 %v15015_v49  ;;  %v14928_v49 = vld [vmem:[#allocation6 + $0x3c4] ss:$16 sps:$4 sm:$0xff]  }
 0x392   :  { %5360 = vmatpush1.bf16.msra.mxu0 %v14875_v29  ;;  %v14925_v29 = vld [vmem:[#allocation6 + $0x3a4] ss:$16 sps:$4 sm:$0xff]  }
 0x393   :  { %5361 = vmatprep.subr.bf16.mxu0 %v14880_v48  ;;  %v14923_v48 = vld [vmem:[#allocation6 + $0x3a0] ss:$16 sps:$4 sm:$0xff]  }
 0x394   :  { %5618 = vmatpush1.bf16.msra.mxu1 %v15013_v31  ;;  %v14926_v31 = vld [vmem:[#allocation6 + $0x3c0] ss:$16 sps:$4 sm:$0xff]  }
 0x395   :  { %5619 = vmatprep.subr.bf16.mxu1 %v15021_v10  ;;  %v14988_v10 = vld [vmem:[#allocation6 + $0x524] ss:$16 sps:$4 sm:$0xff]  }
 0x396   :  { %5362 = vmatpush1.bf16.msra.mxu0 %v14878_v35  ;;  %v14931_v35 = vld [vmem:[#allocation6 + $0x3e4] ss:$16 sps:$4 sm:$0xff]  }
 0x397   :  { %5363 = vmatprep.subr.bf16.mxu0 %v14883_v38  ;;  %v14929_v38 = vld [vmem:[#allocation6 + $0x3e0] ss:$16 sps:$4 sm:$0xff]  }
 0x398   :  { %5620 = vmatpush1.bf16.msra.mxu1 %v15019_v14  ;;  %v15000_v14 = vld [vmem:[#allocation6 + $0x564] ss:$16 sps:$4 sm:$0xff]  }
 0x399   :  { %5621 = vmatprep.subr.bf16.mxu1 %v15027_v27  ;;  %v15022_v27 = vld [vmem:[#allocation6 + $0x5e0] ss:$16 sps:$4 sm:$0xff]  }
 0x39a   :  { %5364 = vmatpush1.bf16.msra.mxu0 %v14881_v51  ;;  %v14934_v51 = vld [vmem:[#allocation6 + $0x404] ss:$16 sps:$4 sm:$0xff]  }
 0x39b   :  { %5376 = vmatprep.subr.bf16.mxu0 %v14886_v52  ;;  %v14932_v52 = vld [vmem:[#allocation6 + $0x400] ss:$16 sps:$4 sm:$0xff]  }
 0x39c   :  { %5622 = vmatpush1.bf16.msra.mxu1 %v15025_v32  ;;  %v17036_v32 = vsub.s32 5, %v16966_v53 }
 0x39d   :  { %5366 = vmatmul.mubr.bf16.vlgmr.msra.gmra.mrb[12].mxu0 %v16980_v45  ;;  %v14901_v45 = vld [vmem:[#allocation6 + $0x2a4] ss:$16 sps:$4 sm:$0xff]   ;;  %5634 = vmatprep.subr.bf16.mxu1 %v15033_v15 }
 0x39e   :  { %5377 = vmatpush1.bf16.msra.mxu0 %v14884_v54  ;;  %5408 = vmatprep.mubr.bf16.mxu0 %v17006_v39  ;;  %v777_v39 = vsub.s32 7, %v16966_v53  ;;  %v14940_v54 = vld [vmem:[#allocation6 + $0x424] ss:$16 sps:$4 sm:$0xff]  }
 0x39f   :  { %5378 = vmatprep.subr.bf16.mxu0 %v14889_v40  ;;  %v14938_v40 = vld [vmem:[#allocation6 + $0x420] ss:$16 sps:$4 sm:$0xff]  }
 0x3a0   :  { %v778_v8 = vrot.slane %v17020_v3, %v777_v39 }
 0x3a2   :  { %5379 = vmatpush1.bf16.msra.mxu0 %v14887_v55  ;;  %v14946_v55 = vld [vmem:[#allocation6 + $0x444] ss:$16 sps:$4 sm:$0xff]  }
 0x3a3   :  { %5380 = vmatprep.subr.bf16.mxu0 %v14892_v56  ;;  %v14944_v56 = vld [vmem:[#allocation6 + $0x440] ss:$16 sps:$4 sm:$0xff]  }
 0x3a6   :  { %5381 = vmatpush1.bf16.msra.mxu0 %v14890_v57  ;;  %v14952_v57 = vld [vmem:[#allocation6 + $0x464] ss:$16 sps:$4 sm:$0xff]  }
 0x3a7   :  { %5382 = vmatprep.subr.bf16.mxu0 %v14895_v58  ;;  %v14950_v58 = vld [vmem:[#allocation6 + $0x460] ss:$16 sps:$4 sm:$0xff]  }
 0x3aa   :  { %5383 = vmatpush1.bf16.msra.mxu0 %v14893_v61  ;;  %v14958_v61 = vld [vmem:[#allocation6 + $0x484] ss:$16 sps:$4 sm:$0xff]  }
 0x3ab   :  { %5384 = vmatprep.subr.bf16.mxu0 %v14898_v63  ;;  %v14956_v63 = vld [vmem:[#allocation6 + $0x480] ss:$16 sps:$4 sm:$0xff]  }
 0x3ae   :  { %5385 = vmatpush1.bf16.msra.mxu0 %v14896_v1  ;;  %v14964_v1 = vld [vmem:[#allocation6 + $0x4a4] ss:$16 sps:$4 sm:$0xff]  }
 0x3af   :  { %5386 = vmatprep.subr.bf16.mxu0 %v14901_v45  ;;  %v14962_v45 = vld [vmem:[#allocation6 + $0x4a0] ss:$16 sps:$4 sm:$0xff]  }
 0x3b1   :  { %v3742_v9 = vpop.f32.mrb[4].mxu1 }
 0x3b2   :  { %5387 = vmatpush1.bf16.msra.mxu0 %v14899_v46  ;;  %v14531_v12 = vadd.f32 %v3742_v9, %v774_v4  ;;  %v3744_v13 = vpop.f32.mrb[5].mxu1  ;;  %v14968_v46 = vld [vmem:[#allocation6 + $0x4c0] ss:$16 sps:$4 sm:$0xff]  }
 0x3b3   :  { %5388 = vmatprep.subr.bf16.mxu0 %v14904_v6  ;;  %v14532_v17 = vadd.f32 %v3744_v13, %v778_v8  ;;  %v3746_v19 = vpop.f32.mrb[6].mxu1  ;;  %v14974_v6 = vld [vmem:[#allocation6 + $0x4e0] ss:$16 sps:$4 sm:$0xff]  }
 0x3b4   :  { %v3757_v20 = vmax.f32 %v14531_v12, 0.0  ;;  %v14533_v22 = vadd.f32 %v3746_v19, %v774_v4  ;;  %v3748_v24 = vpop.f32.mrb[7].mxu1  ;;  %v14976_v4 = vld [vmem:[#allocation6 + $0x4e4] ss:$16 sps:$4 sm:$0xff]   ;;  %v14980_v9 = vld [vmem:[#allocation6 + $0x500] ss:$16 sps:$4 sm:$0xff]  }
 0x3b5   :  { %v3758_v25 = vmax.f32 %v14532_v17, 0.0  ;;  %v14534_v26 = vadd.f32 %v3748_v24, %v778_v8  ;;  %v14982_v8 = vld [vmem:[#allocation6 + $0x504] ss:$16 sps:$4 sm:$0xff]   ;;  %v14992_v13 = vld [vmem:[#allocation6 + $0x540] ss:$16 sps:$4 sm:$0xff]  }
 0x3b6   :  { %5389 = vmatpush1.bf16.msra.mxu0 %v14902_v11  ;;  %v3765_v30 = vmax.f32 %v14533_v22, 0.0  ;;  %v14986_v11 = vld [vmem:[#allocation6 + $0x520] ss:$16 sps:$4 sm:$0xff]   ;;  %v14994_v12 = vld [vmem:[#allocation6 + $0x544] ss:$16 sps:$4 sm:$0xff]  }
 0x3b7   :  { %5390 = vmatprep.subr.bf16.mxu0 %v14907_v16  ;;  %v3766_v34 = vmax.f32 %v14534_v26, 0.0  ;;  %v14998_v16 = vld [vmem:[#allocation6 + $0x560] ss:$16 sps:$4 sm:$0xff]   ;;  %v15006_v17 = vld [vmem:[#allocation6 + $0x584] ss:$16 sps:$4 sm:$0xff]  }
 0x3b8   :  { %v17027_v60 = vpack.c.bf16 %v3765_v30, %v3757_v20  ;;  %v15004_v19 = vld [vmem:[#allocation6 + $0x580] ss:$16 sps:$4 sm:$0xff]   ;;  %v15012_v20 = vld [vmem:[#allocation6 + $0x5a4] ss:$16 sps:$4 sm:$0xff]   ;;  %v17033_v30 = vsub.s32 4, %v16966_v53 }
 0x3b9   :  { %v17029_v36 = vpack.c.bf16 %v3766_v34, %v3758_v25  ;;  %v15010_v22 = vld [vmem:[#allocation6 + $0x5a0] ss:$16 sps:$4 sm:$0xff]   ;;  %v15018_v24 = vld [vmem:[#allocation6 + $0x5c4] ss:$16 sps:$4 sm:$0xff]   ;;  %v770_v34 = vrot.slane %v17020_v3, %v17036_v32 }
 0x3ba   :  { %5391 = vmatpush1.bf16.msra.mxu0 %v14905_v28  ;;  %v15016_v25 = vld [vmem:[#allocation6 + $0x5c0] ss:$16 sps:$4 sm:$0xff]   ;;  %v15024_v26 = vld [vmem:[#allocation6 + $0x5e4] ss:$16 sps:$4 sm:$0xff]  }
 0x3bb   :  { %5392 = vmatprep.subr.bf16.mxu0 %v14910_v33  ;;  %v15030_v28 = vld [vmem:[#allocation6 + $0x604] ss:$16 sps:$4 sm:$0xff]   ;;  %v766_v33 = vrot.slane %v17020_v3, %v17033_v30  ;;  %v15039_v3 = vld [vmem:[#allocation6 + $0x62c] ss:$16 sps:$4 sm:$0xff]  }
 0x3be   :  { %5393 = vmatpush1.bf16.msra.mxu0 %v14908_v59 }
 0x3bf   :  { %5394 = vmatprep.subr.bf16.mxu0 %v14913_v41 }
 0x3c2   :  { %5395 = vmatpush1.bf16.msra.mxu0 %v14911_v42 }
 0x3c3   :  { %5396 = vmatprep.subr.bf16.mxu0 %v14916_v43 }
 0x3c6   :  { %5397 = vmatpush1.bf16.msra.mxu0 %v14914_v44 }
 0x3c7   :  { %5398 = vmatprep.subr.bf16.mxu0 %v14919_v18 }
 0x3ca   :  { %5399 = vmatpush1.bf16.msra.mxu0 %v14917_v21 }
 0x3cb   :  { %5400 = vmatprep.subr.bf16.mxu0 %v14922_v47 }
 0x3ce   :  { %5401 = vmatpush1.bf16.msra.mxu0 %v14920_v23 }
 0x3cf   :  { %5402 = vmatprep.subr.bf16.mxu0 %v14925_v29 }
 0x3d2   :  { %5403 = vmatpush1.bf16.msra.mxu0 %v14923_v48 }
 0x3d3   :  { %5404 = vmatprep.subr.bf16.mxu0 %v14928_v49 }
 0x3d6   :  { %5405 = vmatpush1.bf16.msra.mxu0 %v14926_v31 }
 0x3d7   :  { %5406 = vmatprep.subr.bf16.mxu0 %v14931_v35  ;;  %v15028_v35 = vld [vmem:[#allocation6 + $0x600] ss:$16 sps:$4 sm:$0xff]  }
 0x3da   :  { %5407 = vmatpush1.bf16.msra.mxu0 %v14929_v38  ;;  %v15031_v38 = vld [vmem:[#allocation6 + $0x608] ss:$16 sps:$4 sm:$0xff]  }
 0x3db   :  { %5419 = vmatprep.subr.bf16.mxu0 %v14934_v51  ;;  %v15036_v51 = vld [vmem:[#allocation6 + $0x624] ss:$16 sps:$4 sm:$0xff]  }
 0x3dd   :  { %5409 = vmatmul.mubr.bf16.vlgmr.msra.gmra.mrb[12].mxu0 %v17004_v50  ;;  %v14970_v50 = vld [vmem:[#allocation6 + $0x4c4] ss:$16 sps:$4 sm:$0xff]  }
 0x3de   :  { %5420 = vmatpush1.bf16.msra.mxu0 %v14932_v52  ;;  %v15034_v52 = vld [vmem:[#allocation6 + $0x620] ss:$16 sps:$4 sm:$0xff]  }
 0x3df   :  { %5421 = vmatprep.subr.bf16.mxu0 %v14940_v54  ;;  %v15037_v54 = vld [vmem:[#allocation6 + $0x628] ss:$16 sps:$4 sm:$0xff]  }
 0x3e2   :  { %5422 = vmatpush1.bf16.msra.mxu0 %v14938_v40  ;;  %v15042_v40 = vld [vmem:[#allocation6 + $0x644] ss:$16 sps:$4 sm:$0xff]  }
 0x3e3   :  { %5423 = vmatprep.subr.bf16.mxu0 %v14946_v55  ;;  %v15045_v55 = vld [vmem:[#allocation6 + $0x64c] ss:$16 sps:$4 sm:$0xff]  }
 0x3e6   :  { %5424 = vmatpush1.bf16.msra.mxu0 %v14944_v56  ;;  %v15040_v56 = vld [vmem:[#allocation6 + $0x640] ss:$16 sps:$4 sm:$0xff]  }
 0x3e7   :  { %5425 = vmatprep.subr.bf16.mxu0 %v14952_v57  ;;  %v15043_v57 = vld [vmem:[#allocation6 + $0x648] ss:$16 sps:$4 sm:$0xff]  }
 0x3ea   :  { %5426 = vmatpush1.bf16.msra.mxu0 %v14950_v58  ;;  %v15048_v58 = vld [vmem:[#allocation6 + $0x664] ss:$16 sps:$4 sm:$0xff]  }
 0x3eb   :  { %5427 = vmatprep.subr.bf16.mxu0 %v14958_v61  ;;  %v15051_v61 = vld [vmem:[#allocation6 + $0x66c] ss:$16 sps:$4 sm:$0xff]  }
 0x3ee   :  { %5428 = vmatpush1.bf16.msra.mxu0 %v14956_v63  ;;  %v15046_v63 = vld [vmem:[#allocation6 + $0x660] ss:$16 sps:$4 sm:$0xff]  }
 0x3ef   :  { %5429 = vmatprep.subr.bf16.mxu0 %v14964_v1  ;;  %v15049_v1 = vld [vmem:[#allocation6 + $0x668] ss:$16 sps:$4 sm:$0xff]  }
 0x3f2   :  { %5430 = vmatpush1.bf16.msra.mxu0 %v14962_v45  ;;  %v15054_v45 = vld [vmem:[#allocation6 + $0x684] ss:$16 sps:$4 sm:$0xff]  }
 0x3f3   :  { %5431 = vmatprep.subr.bf16.mxu0 %v14970_v50  ;;  %v15052_v50 = vld [vmem:[#allocation6 + $0x680] ss:$16 sps:$4 sm:$0xff]  }
 0x3f6   :  { %5432 = vmatpush1.bf16.msra.mxu0 %v14968_v46  ;;  %v15055_v46 = vld [vmem:[#allocation6 + $0x688] ss:$16 sps:$4 sm:$0xff]  }
 0x3f7   :  { %5433 = vmatprep.subr.bf16.mxu0 %v14976_v4  ;;  %v15060_v4 = vld [vmem:[#allocation6 + $0x6a4] ss:$16 sps:$4 sm:$0xff]  }
 0x3fa   :  { %5434 = vmatpush1.bf16.msra.mxu0 %v14974_v6  ;;  %v15063_v6 = vld [vmem:[#allocation6 + $0x6ac] ss:$16 sps:$4 sm:$0xff]  }
 0x3fb   :  { %5435 = vmatprep.subr.bf16.mxu0 %v14982_v8  ;;  %v15058_v8 = vld [vmem:[#allocation6 + $0x6a0] ss:$16 sps:$4 sm:$0xff]  }
 0x3fe   :  { %5436 = vmatpush1.bf16.msra.mxu0 %v14980_v9  ;;  %v15061_v9 = vld [vmem:[#allocation6 + $0x6a8] ss:$16 sps:$4 sm:$0xff]  }
 0x3ff   :  { %5437 = vmatprep.subr.bf16.mxu0 %v14988_v10  ;;  %v15066_v10 = vld [vmem:[#allocation6 + $0x6c4] ss:$16 sps:$4 sm:$0xff]  }
 0x402   :  { %5438 = vmatpush1.bf16.msra.mxu0 %v14986_v11  ;;  %v15069_v11 = vld [vmem:[#allocation6 + $0x6cc] ss:$16 sps:$4 sm:$0xff]  }
 0x403   :  { %5439 = vmatprep.subr.bf16.mxu0 %v14994_v12  ;;  %v15064_v12 = vld [vmem:[#allocation6 + $0x6c0] ss:$16 sps:$4 sm:$0xff]  }
 0x406   :  { %5440 = vmatpush1.bf16.msra.mxu0 %v14992_v13  ;;  %v15067_v13 = vld [vmem:[#allocation6 + $0x6c8] ss:$16 sps:$4 sm:$0xff]  }
 0x407   :  { %5441 = vmatprep.subr.bf16.mxu0 %v15000_v14  ;;  %v15072_v14 = vld [vmem:[#allocation6 + $0x6e4] ss:$16 sps:$4 sm:$0xff]  }
 0x40a   :  { %5442 = vmatpush1.bf16.msra.mxu0 %v14998_v16  ;;  %v15075_v16 = vld [vmem:[#allocation6 + $0x6ec] ss:$16 sps:$4 sm:$0xff]  }
 0x40b   :  { %5443 = vmatprep.subr.bf16.mxu0 %v15006_v17  ;;  %v15070_v17 = vld [vmem:[#allocation6 + $0x6e0] ss:$16 sps:$4 sm:$0xff]  }
 0x40e   :  { %5444 = vmatpush1.bf16.msra.mxu0 %v15004_v19  ;;  %v15073_v19 = vld [vmem:[#allocation6 + $0x6e8] ss:$16 sps:$4 sm:$0xff]  }
 0x40f   :  { %5445 = vmatprep.subr.bf16.mxu0 %v15012_v20  ;;  %v15078_v20 = vld [vmem:[#allocation6 + $0x704] ss:$16 sps:$4 sm:$0xff]  }
 0x412   :  { %5446 = vmatpush1.bf16.msra.mxu0 %v15010_v22  ;;  %v15081_v22 = vld [vmem:[#allocation6 + $0x70c] ss:$16 sps:$4 sm:$0xff]  }
 0x413   :  { %5447 = vmatprep.subr.bf16.mxu0 %v15018_v24  ;;  %v15076_v24 = vld [vmem:[#allocation6 + $0x700] ss:$16 sps:$4 sm:$0xff]  }
 0x416   :  { %5448 = vmatpush1.bf16.msra.mxu0 %v15016_v25  ;;  %v15079_v25 = vld [vmem:[#allocation6 + $0x708] ss:$16 sps:$4 sm:$0xff]  }
 0x417   :  { %5449 = vmatprep.subr.bf16.mxu0 %v15024_v26  ;;  %v15084_v26 = vld [vmem:[#allocation6 + $0x724] ss:$16 sps:$4 sm:$0xff]  }
 0x41a   :  { %5450 = vmatpush1.bf16.msra.mxu0 %v15022_v27  ;;  %v15087_v27 = vld [vmem:[#allocation6 + $0x72c] ss:$16 sps:$4 sm:$0xff]  }
 0x41b   :  { %5462 = vmatprep.subr.bf16.mxu0 %v15030_v28  ;;  %v15082_v28 = vld [vmem:[#allocation6 + $0x720] ss:$16 sps:$4 sm:$0xff]  }
 0x430   :  { %v3570_v15 = vpop.f32.mrb[8].mxu0 }
 0x431   :  { %v14527_v59 = vadd.f32 %v3570_v15, %v766_v33  ;;  %v3572_v41 = vpop.f32.mrb[9].mxu0  ;;  %v15093_v15 = vld [vmem:[#allocation6 + $0x74c] ss:$16 sps:$4 sm:$0xff]  }
 0x432   :  { %v14528_v42 = vadd.f32 %v3572_v41, %v770_v34  ;;  %v3574_v43 = vpop.f32.mrb[10].mxu0  ;;  %v15091_v41 = vld [vmem:[#allocation6 + $0x748] ss:$16 sps:$4 sm:$0xff]  }
 0x433   :  { %v14529_v44 = vadd.f32 %v3574_v43, %v766_v33  ;;  %v3576_v18 = vpop.f32.mrb[11].mxu0  ;;  %v3755_v47 = vmax.f32 %v14527_v59, 0.0  ;;  %v15085_v33 = vld [vmem:[#allocation6 + $0x728] ss:$16 sps:$4 sm:$0xff]   ;;  %v15088_v59 = vld [vmem:[#allocation6 + $0x740] ss:$16 sps:$4 sm:$0xff]  }
 0x434   :  { %v14530_v21 = vadd.f32 %v3576_v18, %v770_v34  ;;  %v3756_v29 = vmax.f32 %v14528_v42, 0.0  ;;  %v15090_v34 = vld [vmem:[#allocation6 + $0x744] ss:$16 sps:$4 sm:$0xff]   ;;  %v15099_v43 = vld [vmem:[#allocation6 + $0x76c] ss:$16 sps:$4 sm:$0xff]  }
 0x435   :  { %v3763_v23 = vmax.f32 %v14529_v44, 0.0  ;;  %v15096_v42 = vld [vmem:[#allocation6 + $0x764] ss:$16 sps:$4 sm:$0xff]   ;;  %v15094_v44 = vld [vmem:[#allocation6 + $0x760] ss:$16 sps:$4 sm:$0xff]  }
 0x436   :  { %v3764_v48 = vmax.f32 %v14530_v21, 0.0  ;;  %v15097_v18 = vld [vmem:[#allocation6 + $0x768] ss:$16 sps:$4 sm:$0xff]   ;;  %v15102_v21 = vld [vmem:[#allocation6 + $0x784] ss:$16 sps:$4 sm:$0xff]  }
 0x437   :  { %v3771_v49 = vpack.c.bf16 %v3763_v23, %v3755_v47  ;;  %v15105_v47 = vld [vmem:[#allocation6 + $0x78c] ss:$16 sps:$4 sm:$0xff]   ;;  %v15100_v23 = vld [vmem:[#allocation6 + $0x780] ss:$16 sps:$4 sm:$0xff]  }
 0x438   :  { %v3772_v31 = vpack.c.bf16 %v3764_v48, %v3756_v29  ;;  %v15103_v29 = vld [vmem:[#allocation6 + $0x788] ss:$16 sps:$4 sm:$0xff]   ;;  %v15108_v48 = vld [vmem:[#allocation6 + $0x7a4] ss:$16 sps:$4 sm:$0xff]  }
 0x43a   :  { %5451 = vmatprep.mubr.bf16.mxu0 %v3772_v31  ;;  %5623 = vmatprep.mubr.bf16.mxu1 %v3772_v31  ;;  %v15106_v31 = vld [vmem:[#allocation6 + $0x7a0] ss:$16 sps:$4 sm:$0xff]  }
 0x43b   :  { %5452 = vmatmul.mubr.bf16.vlgmr.msra.gmra.mrb[12].mxu0 %v3771_v49  ;;  %5624 = vmatmul.mubr.bf16.vlgmr.msra.gmra.mrb[8].mxu1 %v3771_v49  ;;  %v15111_v49 = vld [vmem:[#allocation6 + $0x7ac] ss:$16 sps:$4 sm:$0xff]  }
 0x43c   :  { %5463 = vmatpush1.bf16.msra.mxu0 %v15028_v35  ;;  %5635 = vmatpush1.bf16.msra.mxu1 %v15031_v38  ;;  %v15109_v35 = vld [vmem:[#allocation6 + $0x7a8] ss:$16 sps:$4 sm:$0xff]   ;;  %v15114_v38 = vld [vmem:[#allocation6 + $0x7c4] ss:$16 sps:$4 sm:$0xff]  }
 0x43d   :  { %5494 = vmatprep.mubr.bf16.mxu0 %v17029_v36  ;;  %5666 = vmatprep.mubr.bf16.mxu1 %v17029_v36  ;;  %v15057_v36 = vld [vmem:[#allocation6 + $0x68c] ss:$16 sps:$4 sm:$0xff]  }
 0x43e   :  { %5464 = vmatprep.subr.bf16.mxu0 %v15036_v51  ;;  %5636 = vmatprep.subr.bf16.mxu1 %v15039_v3  ;;  %v15117_v51 = vld [vmem:[#allocation6 + $0x7cc] ss:$16 sps:$4 sm:$0xff]   ;;  %v15112_v3 = vld [vmem:[#allocation6 + $0x7c0] ss:$16 sps:$4 sm:$0xff]  }
 0x440   :  { %5465 = vmatpush1.bf16.msra.mxu0 %v15034_v52  ;;  %5637 = vmatpush1.bf16.msra.mxu1 %v15037_v54  ;;  %v15115_v52 = vld [vmem:[#allocation6 + $0x7c8] ss:$16 sps:$4 sm:$0xff]   ;;  %v15120_v54 = vld [vmem:[#allocation6 + $0x7e4] ss:$16 sps:$4 sm:$0xff]  }
 0x441   :  { %5466 = vmatprep.subr.bf16.mxu0 %v15042_v40  ;;  %5638 = vmatprep.subr.bf16.mxu1 %v15045_v55  ;;  %v15123_v40 = vld [vmem:[#allocation6 + $0x7ec] ss:$16 sps:$4 sm:$0xff]   ;;  %v15118_v55 = vld [vmem:[#allocation6 + $0x7e0] ss:$16 sps:$4 sm:$0xff]  }
 0x444   :  { %5467 = vmatpush1.bf16.msra.mxu0 %v15040_v56  ;;  %5639 = vmatpush1.bf16.msra.mxu1 %v15043_v57  ;;  %v15121_v56 = vld [vmem:[#allocation6 + $0x7e8] ss:$16 sps:$4 sm:$0xff]  }
 0x445   :  { %5468 = vmatprep.subr.bf16.mxu0 %v15048_v58  ;;  %5640 = vmatprep.subr.bf16.mxu1 %v15051_v61  ;;  %v15126_v57 = vld [vmem:[#allocation9 + $0x4] ss:$8 sps:$4 sm:$0xff]   ;;  %v15124_v58 = vld [vmem:[#allocation9] ss:$8 sps:$4 sm:$0xff]   ;;  %v15129_v61 = vld [vmem:[#allocation9 + $0x14] ss:$8 sps:$4 sm:$0xff]  }
 0x448   :  { %5469 = vmatpush1.bf16.msra.mxu0 %v15046_v63  ;;  %5641 = vmatpush1.bf16.msra.mxu1 %v15049_v1  ;;  %v15127_v63 = vld [vmem:[#allocation9 + $0x10] ss:$8 sps:$4 sm:$0xff]   ;;  %v15132_v1 = vld [vmem:[#allocation9 + $0x24] ss:$8 sps:$4 sm:$0xff]  }
 0x449   :  { %5470 = vmatprep.subr.bf16.mxu0 %v15054_v45  ;;  %5642 = vmatprep.subr.bf16.mxu1 %v15057_v36  ;;  %v15130_v45 = vld [vmem:[#allocation9 + $0x20] ss:$8 sps:$4 sm:$0xff]   ;;  %v15135_v36 = vld [vmem:[#allocation9 + $0x34] ss:$8 sps:$4 sm:$0xff]  }
 0x44c   :  { %5471 = vmatpush1.bf16.msra.mxu0 %v15052_v50  ;;  %5643 = vmatpush1.bf16.msra.mxu1 %v15055_v46  ;;  %v15133_v50 = vld [vmem:[#allocation9 + $0x30] ss:$8 sps:$4 sm:$0xff]   ;;  %v15138_v46 = vld [vmem:[#allocation9 + $0x44] ss:$8 sps:$4 sm:$0xff]  }
 0x44d   :  { %5472 = vmatprep.subr.bf16.mxu0 %v15060_v4  ;;  %5644 = vmatprep.subr.bf16.mxu1 %v15063_v6  ;;  %v15136_v4 = vld [vmem:[#allocation9 + $0x40] ss:$8 sps:$4 sm:$0xff]   ;;  %v15141_v6 = vld [vmem:[#allocation9 + $0x54] ss:$8 sps:$4 sm:$0xff]  }
 0x450   :  { %5473 = vmatpush1.bf16.msra.mxu0 %v15058_v8  ;;  %5645 = vmatpush1.bf16.msra.mxu1 %v15061_v9  ;;  %v15139_v8 = vld [vmem:[#allocation9 + $0x50] ss:$8 sps:$4 sm:$0xff]   ;;  %v15142_v9 = vld [vmem:[#allocation9 + $0x60] ss:$8 sps:$4 sm:$0xff]  }
 0x451   :  { %5474 = vmatprep.subr.bf16.mxu0 %v15066_v10  ;;  %5646 = vmatprep.subr.bf16.mxu1 %v15069_v11  ;;  %v15147_v10 = vld [vmem:[#allocation9 + $0x74] ss:$8 sps:$4 sm:$0xff]   ;;  %v15145_v11 = vld [vmem:[#allocation9 + $0x70] ss:$8 sps:$4 sm:$0xff]  }
 0x454   :  { %5475 = vmatpush1.bf16.msra.mxu0 %v15064_v12  ;;  %5647 = vmatpush1.bf16.msra.mxu1 %v15067_v13  ;;  %v15150_v12 = vld [vmem:[#allocation9 + $0x84] ss:$8 sps:$4 sm:$0xff]   ;;  %v15148_v13 = vld [vmem:[#allocation9 + $0x80] ss:$8 sps:$4 sm:$0xff]  }
 0x455   :  { %5476 = vmatprep.subr.bf16.mxu0 %v15072_v14  ;;  %5648 = vmatprep.subr.bf16.mxu1 %v15075_v16  ;;  %v15153_v14 = vld [vmem:[#allocation9 + $0x94] ss:$8 sps:$4 sm:$0xff]   ;;  %v15151_v16 = vld [vmem:[#allocation9 + $0x90] ss:$8 sps:$4 sm:$0xff]  }
 0x458   :  { %5477 = vmatpush1.bf16.msra.mxu0 %v15070_v17  ;;  %5649 = vmatpush1.bf16.msra.mxu1 %v15073_v19  ;;  %v15156_v17 = vld [vmem:[#allocation9 + $0xa4] ss:$8 sps:$4 sm:$0xff]   ;;  %v15154_v19 = vld [vmem:[#allocation9 + $0xa0] ss:$8 sps:$4 sm:$0xff]  }
 0x459   :  { %5478 = vmatprep.subr.bf16.mxu0 %v15078_v20  ;;  %5650 = vmatprep.subr.bf16.mxu1 %v15081_v22  ;;  %v15159_v20 = vld [vmem:[#allocation9 + $0xb4] ss:$8 sps:$4 sm:$0xff]   ;;  %v15157_v22 = vld [vmem:[#allocation9 + $0xb0] ss:$8 sps:$4 sm:$0xff]  }
 0x45c   :  { %5479 = vmatpush1.bf16.msra.mxu0 %v15076_v24  ;;  %5651 = vmatpush1.bf16.msra.mxu1 %v15079_v25  ;;  %v15162_v24 = vld [vmem:[#allocation9 + $0xc4] ss:$8 sps:$4 sm:$0xff]   ;;  %v15160_v25 = vld [vmem:[#allocation9 + $0xc0] ss:$8 sps:$4 sm:$0xff]  }
 0x45d   :  { %5480 = vmatprep.subr.bf16.mxu0 %v15084_v26  ;;  %5652 = vmatprep.subr.bf16.mxu1 %v15087_v27  ;;  %v15165_v26 = vld [vmem:[#allocation9 + $0xd4] ss:$8 sps:$4 sm:$0xff]   ;;  %v15163_v27 = vld [vmem:[#allocation9 + $0xd0] ss:$8 sps:$4 sm:$0xff]  }
 0x460   :  { %5481 = vmatpush1.bf16.msra.mxu0 %v15082_v28  ;;  %5653 = vmatpush1.bf16.msra.mxu1 %v15085_v33  ;;  %v15168_v28 = vld [vmem:[#allocation9 + $0xe4] ss:$8 sps:$4 sm:$0xff]   ;;  %v15166_v33 = vld [vmem:[#allocation9 + $0xe0] ss:$8 sps:$4 sm:$0xff]  }
 0x461   :  { %5482 = vmatprep.subr.bf16.mxu0 %v15090_v34  ;;  %5654 = vmatprep.subr.bf16.mxu1 %v15093_v15  ;;  %v15171_v34 = vld [vmem:[#allocation9 + $0xf4] ss:$8 sps:$4 sm:$0xff]   ;;  %v15169_v15 = vld [vmem:[#allocation9 + $0xf0] ss:$8 sps:$4 sm:$0xff]  }
 0x464   :  { %5483 = vmatpush1.bf16.msra.mxu0 %v15088_v59  ;;  %5655 = vmatpush1.bf16.msra.mxu1 %v15091_v41  ;;  %v15174_v59 = vld [vmem:[#allocation9 + $0x104] ss:$8 sps:$4 sm:$0xff]  }
 0x465   :  { %5484 = vmatprep.subr.bf16.mxu0 %v15096_v42  ;;  %5656 = vmatprep.subr.bf16.mxu1 %v15099_v43  ;;  %v15220_v41 = vld [vmem:[#allocation12 + $0x40] sm:$0xff]   ;;  %v15222_v43 = vld [vmem:[#allocation12 + $0x48] sm:$0xff]  }
 0x466   :  { %v15221_v42 = vld [vmem:[#allocation12] sm:$0xff]  }
 0x468   :  { %5485 = vmatpush1.bf16.msra.mxu0 %v15094_v44  ;;  %5657 = vmatpush1.bf16.msra.mxu1 %v15097_v18  ;;  %v15223_v44 = vld [vmem:[#allocation12 + $0x8] sm:$0xff]   ;;  %v15224_v18 = vld [vmem:[#allocation12 + $0x50] sm:$0xff]  }
 0x469   :  { %5486 = vmatprep.subr.bf16.mxu0 %v15102_v21  ;;  %5658 = vmatprep.subr.bf16.mxu1 %v15105_v47  ;;  %v15225_v21 = vld [vmem:[#allocation12 + $0x10] sm:$0xff]   ;;  %v15226_v47 = vld [vmem:[#allocation12 + $0x58] sm:$0xff]  }
 0x46c   :  { %5487 = vmatpush1.bf16.msra.mxu0 %v15100_v23  ;;  %5659 = vmatpush1.bf16.msra.mxu1 %v15103_v29  ;;  %v15227_v23 = vld [vmem:[#allocation12 + $0x18] sm:$0xff]   ;;  %v15228_v29 = vld [vmem:[#allocation12 + $0x60] sm:$0xff]  }
 0x46d   :  { %5488 = vmatprep.subr.bf16.mxu0 %v15108_v48  ;;  %5660 = vmatprep.subr.bf16.mxu1 %v15111_v49  ;;  %v15229_v48 = vld [vmem:[#allocation12 + $0x20] sm:$0xff]   ;;  %v15230_v49 = vld [vmem:[#allocation12 + $0x68] sm:$0xff]  }
 0x470   :  { %5489 = vmatpush1.bf16.msra.mxu0 %v15106_v31  ;;  %5661 = vmatpush1.bf16.msra.mxu1 %v15109_v35  ;;  %v4031_v31 = vld [vmem:[#allocation7] sm:$0xf] }
 0x471   :  { %5490 = vmatprep.subr.bf16.mxu0 %v15114_v38  ;;  %5662 = vmatprep.subr.bf16.mxu1 %v15117_v51  ;;  %v4036_v35 = vrot.slane %v4031_v31, %v16971_v62  ;;  %v4044_v38 = vrot.slane %v4031_v31, %v16991_v5  ;;  %v4040_v51 = vrot.slane %v4031_v31, %v16974_v0 }
 0x474   :  { %5491 = vmatpush1.bf16.msra.mxu0 %v15112_v3  ;;  %5663 = vmatpush1.bf16.msra.mxu1 %v15115_v52  ;;  %v4048_v3 = vrot.slane %v4031_v31, %v16994_v7  ;;  %v15207_v31 = vld [vmem:[#allocation9 + $0x1b4] ss:$8 sps:$4 sm:$0xff]  }
 0x475   :  { %5492 = vmatprep.subr.bf16.mxu0 %v15120_v54  ;;  %5664 = vmatprep.subr.bf16.mxu1 %v15123_v40 }
 0x478   :  { %5493 = vmatpush1.bf16.msra.mxu0 %v15118_v55  ;;  %5665 = vmatpush1.bf16.msra.mxu1 %v15121_v56 }
 0x479   :  { %6085 = vmatprep.subr.bf16.mxu0 %v15126_v57  ;;  %14376 = vmatprep.subr.bf16.mxu1 %v15220_v41  ;;  %v15187_v41 = vld [vmem:[#allocation9 + $0x150] ss:$8 sps:$4 sm:$0xff]  }
 0x47b   :  { %5495 = vmatmul.mubr.bf16.vlgmr.msra.gmra.mrb[12].mxu0 %v17027_v60  ;;  %5667 = vmatmul.mubr.bf16.vlgmr.msra.gmra.mrb[8].mxu1 %v17027_v60  ;;  %v15144_v60 = vld [vmem:[#allocation9 + $0x64] ss:$8 sps:$4 sm:$0xff]  }
 0x47c   :  { %6086 = vmatpush1.bf16.msra.mxu0 %v15124_v58  ;;  %14377 = vmatpush3.bf16.msra.mxu1 %v15221_v42  ;;  %v15192_v42 = vld [vmem:[#allocation9 + $0x164] ss:$8 sps:$4 sm:$0xff]  }
 0x47d   :  { %6087 = vmatprep.subr.bf16.mxu0 %v15129_v61  ;;  %14378 = vmatprep.subr.bf16.mxu1 %v15222_v43  ;;  %v15190_v43 = vld [vmem:[#allocation9 + $0x160] ss:$8 sps:$4 sm:$0xff]  }
 0x480   :  { %6088 = vmatpush1.bf16.msra.mxu0 %v15127_v63  ;;  %14379 = vmatpush3.bf16.msra.mxu1 %v15223_v44  ;;  %v15195_v44 = vld [vmem:[#allocation9 + $0x174] ss:$8 sps:$4 sm:$0xff]  }
 0x481   :  { %6089 = vmatprep.subr.bf16.mxu0 %v15132_v1  ;;  %14380 = vmatprep.subr.bf16.mxu1 %v15224_v18  ;;  %v15193_v18 = vld [vmem:[#allocation9 + $0x170] ss:$8 sps:$4 sm:$0xff]  }
 0x484   :  { %6090 = vmatpush1.bf16.msra.mxu0 %v15130_v45  ;;  %14381 = vmatpush3.bf16.msra.mxu1 %v15225_v21  ;;  %v15198_v21 = vld [vmem:[#allocation9 + $0x184] ss:$8 sps:$4 sm:$0xff]  }
 0x485   :  { %6091 = vmatprep.subr.bf16.mxu0 %v15135_v36  ;;  %14382 = vmatprep.subr.bf16.mxu1 %v15226_v47  ;;  %v15196_v47 = vld [vmem:[#allocation9 + $0x180] ss:$8 sps:$4 sm:$0xff]  }
 0x488   :  { %6092 = vmatpush1.bf16.msra.mxu0 %v15133_v50  ;;  %14383 = vmatpush3.bf16.msra.mxu1 %v15227_v23  ;;  %v15201_v23 = vld [vmem:[#allocation9 + $0x194] ss:$8 sps:$4 sm:$0xff]  }
 0x489   :  { %6093 = vmatprep.subr.bf16.mxu0 %v15138_v46  ;;  %14384 = vmatprep.subr.bf16.mxu1 %v15228_v29  ;;  %v15199_v29 = vld [vmem:[#allocation9 + $0x190] ss:$8 sps:$4 sm:$0xff]  }
 0x48c   :  { %6094 = vmatpush1.bf16.msra.mxu0 %v15136_v4  ;;  %14385 = vmatpush3.bf16.msra.mxu1 %v15229_v48  ;;  %v15204_v48 = vld [vmem:[#allocation9 + $0x1a4] ss:$8 sps:$4 sm:$0xff]  }
 0x48d   :  { %6095 = vmatprep.subr.bf16.mxu0 %v15141_v6  ;;  %14386 = vmatprep.subr.bf16.mxu1 %v15230_v49  ;;  %v15202_v49 = vld [vmem:[#allocation9 + $0x1a0] ss:$8 sps:$4 sm:$0xff]  }
 0x490   :  { %6096 = vmatpush1.bf16.msra.mxu0 %v15139_v8 }
 0x491   :  { %6097 = vmatprep.subr.bf16.mxu0 %v15144_v60 }
 0x494   :  { %6098 = vmatpush1.bf16.msra.mxu0 %v15142_v9 }
 0x495   :  { %6099 = vmatprep.subr.bf16.mxu0 %v15147_v10 }
 0x498   :  { %6100 = vmatpush1.bf16.msra.mxu0 %v15145_v11 }
 0x499   :  { %6101 = vmatprep.subr.bf16.mxu0 %v15150_v12 }
 0x49c   :  { %6102 = vmatpush1.bf16.msra.mxu0 %v15148_v13 }
 0x49d   :  { %6103 = vmatprep.subr.bf16.mxu0 %v15153_v14 }
 0x4a0   :  { %6104 = vmatpush1.bf16.msra.mxu0 %v15151_v16 }
 0x4a1   :  { %6105 = vmatprep.subr.bf16.mxu0 %v15156_v17 }
 0x4a4   :  { %6106 = vmatpush1.bf16.msra.mxu0 %v15154_v19 }
 0x4a5   :  { %6107 = vmatprep.subr.bf16.mxu0 %v15159_v20 }
 0x4a8   :  { %6108 = vmatpush1.bf16.msra.mxu0 %v15157_v22  ;;  %v15172_v22 = vld [vmem:[#allocation9 + $0x100] ss:$8 sps:$4 sm:$0xff]  }
 0x4a9   :  { %6109 = vmatprep.subr.bf16.mxu0 %v15162_v24  ;;  %v15177_v24 = vld [vmem:[#allocation9 + $0x114] ss:$8 sps:$4 sm:$0xff]  }
 0x4ac   :  { %6110 = vmatpush1.bf16.msra.mxu0 %v15160_v25  ;;  %v15175_v25 = vld [vmem:[#allocation9 + $0x110] ss:$8 sps:$4 sm:$0xff]  }
 0x4ad   :  { %6111 = vmatprep.subr.bf16.mxu0 %v15165_v26  ;;  %v15180_v26 = vld [vmem:[#allocation9 + $0x124] ss:$8 sps:$4 sm:$0xff]  }
 0x4b0   :  { %6112 = vmatpush1.bf16.msra.mxu0 %v15163_v27  ;;  %v15178_v27 = vld [vmem:[#allocation9 + $0x120] ss:$8 sps:$4 sm:$0xff]  }
 0x4b1   :  { %6113 = vmatprep.subr.bf16.mxu0 %v15168_v28  ;;  %v15183_v28 = vld [vmem:[#allocation9 + $0x134] ss:$8 sps:$4 sm:$0xff]  }
 0x4b4   :  { %6114 = vmatpush1.bf16.msra.mxu0 %v15166_v33  ;;  %v15181_v33 = vld [vmem:[#allocation9 + $0x130] ss:$8 sps:$4 sm:$0xff]  }
 0x4b5   :  { %6115 = vmatprep.subr.bf16.mxu0 %v15171_v34  ;;  %v15186_v34 = vld [vmem:[#allocation9 + $0x144] ss:$8 sps:$4 sm:$0xff]  }
 0x4b8   :  { %6116 = vmatpush1.bf16.msra.mxu0 %v15169_v15  ;;  %v15184_v15 = vld [vmem:[#allocation9 + $0x140] ss:$8 sps:$4 sm:$0xff]  }
 0x4b9   :  { %6128 = vmatprep.subr.bf16.mxu0 %v15174_v59  ;;  %v15189_v59 = vld [vmem:[#allocation9 + $0x154] ss:$8 sps:$4 sm:$0xff]  }
 0x54e   :  { %v5496_v52 = vpop.f32.mrb[12].mxu0  ;;  %v5668_v54 = vpop.f32.mrb[8].mxu1 }
 0x54f   :  { %v14535_v40 = vadd.f32 %v5496_v52, %v4036_v35  ;;  %v14539_v55 = vadd.f32 %v5668_v54, %v4044_v38  ;;  %v5498_v56 = vpop.f32.mrb[13].mxu0  ;;  %v5670_v57 = vpop.f32.mrb[9].mxu1  ;;  %v15211_v52 = vld [vmem:[#allocation9 + $0x1d0] ss:$8 sps:$4 sm:$0xff]   ;;  %v15216_v54 = vld [vmem:[#allocation9 + $0x1e4] ss:$8 sps:$4 sm:$0xff]  }
 0x550   :  { %v14536_v58 = vadd.f32 %v5498_v56, %v4040_v51  ;;  %v14540_v61 = vadd.f32 %v5670_v57, %v4048_v3  ;;  %v5500_v63 = vpop.f32.mrb[14].mxu0  ;;  %v5672_v1 = vpop.f32.mrb[10].mxu1  ;;  %v15217_v56 = vld [vmem:[#allocation9 + $0x1f0] ss:$8 sps:$4 sm:$0xff]  }
 0x551   :  { %v14537_v45 = vadd.f32 %v5500_v63, %v4036_v35  ;;  %v14541_v36 = vadd.f32 %v5672_v1, %v4044_v38  ;;  %v5502_v50 = vpop.f32.mrb[15].mxu0  ;;  %v5674_v46 = vpop.f32.mrb[11].mxu1  ;;  %v5677_v8 = vmax.f32 %v14535_v40, 0.0  ;;  %v5679_v60 = vmax.f32 %v14539_v55, 0.0  ;;  %v15205_v35 = vld [vmem:[#allocation9 + $0x1b0] ss:$8 sps:$4 sm:$0xff]  }
 0x552   :  { %v14538_v4 = vadd.f32 %v5502_v50, %v4040_v51  ;;  %v14542_v6 = vadd.f32 %v5674_v46, %v4048_v3  ;;  %v5678_v11 = vmax.f32 %v14536_v58, 0.0  ;;  %v5680_v12 = vmax.f32 %v14540_v61, 0.0  ;;  %v15210_v38 = vld [vmem:[#allocation9 + $0x1c4] ss:$8 sps:$4 sm:$0xff]   ;;  %v15208_v51 = vld [vmem:[#allocation9 + $0x1c0] ss:$8 sps:$4 sm:$0xff]  }
 0x553   :  { %v5681_v9 = vmax.f32 %v14537_v45, 0.0  ;;  %v5683_v10 = vmax.f32 %v14541_v36, 0.0  ;;  %v15213_v3 = vld [vmem:[#allocation9 + $0x1d4] ss:$8 sps:$4 sm:$0xff]   ;;  %v15214_v40 = vld [vmem:[#allocation9 + $0x1e0] ss:$8 sps:$4 sm:$0xff]  }
 0x554   :  { %v5682_v13 = vmax.f32 %v14538_v4, 0.0  ;;  %v5684_v14 = vmax.f32 %v14542_v6, 0.0  ;;  %v15219_v55 = vld [vmem:[#allocation9 + $0x1f4] ss:$8 sps:$4 sm:$0xff]   ;;  %v15231_v57 = vld [vmem:[#allocation12 + $0x28] sm:$0xff]   ;;  %v16520_v45 = vmov 0.0  }
 0x555   :  { %v5685_v16 = vpack.c.bf16 %v5681_v9, %v5677_v8  ;;  %v17050_v17 = vpack.c.bf16 %v5683_v10, %v5679_v60  ;;  %14387 = vmatpush3.bf16.msra.mxu1 %v15231_v57  ;;  %v15232_v58 = vld [vmem:[#allocation12 + $0x70] sm:$0xff]   ;;  %v15234_v63 = vld [vmem:[#allocation12 + $0x78] sm:$0xff]  }
 0x556   :  { %v5686_v19 = vpack.c.bf16 %v5682_v13, %v5678_v11  ;;  %v5688_v20 = vpack.c.bf16 %v5684_v14, %v5680_v12  ;;  %v15233_v61 = vld [vmem:[#allocation12 + $0x30] sm:$0xff]   ;;  %14388 = vmatprep.subr.bf16.mxu1 %v15232_v58  ;;  %v15235_v1 = vld [vmem:[#allocation12 + $0x38] sm:$0xff]  }
 0x557   :  { %v5753_v36 = vld [vmem:[#allocation10] sm:$0x3]  ;;  %v15264_v58 = vld [vmem:[#allocation18 + $0x64] ss:$8 sps:$4 sm:$0xff]  }
 0x558   :  { %6117 = vmatprep.mubr.bf16.mxu0 %v5686_v19  ;;  %v5758_v50 = vrot.slane %v5753_v36, %v16971_v62  ;;  %v5762_v46 = vrot.slane %v5753_v36, %v16974_v0  ;;  %v15259_v57 = vld [vmem:[#allocation18 + $0x50] ss:$8 sps:$4 sm:$0xff]  }
 0x559   :  { %6118 = vmatmul.mubr.bf16.vlgmr.msra.gmra.mrb[16].mxu0 %v5685_v16  ;;  %14389 = vmatpush3.bf16.msra.mxu1 %v15233_v61  ;;  %v15267_v61 = vld [vmem:[#allocation18 + $0x74] ss:$8 sps:$4 sm:$0xff]  }
 0x55a   :  { %6129 = vmatpush1.bf16.msra.mxu0 %v15172_v22  ;;  %6160 = vmatprep.mubr.bf16.mxu0 %v5688_v20  ;;  %v15236_v22 = vld [vmem:[#allocation15] sm:$0xff]  }
 0x55b   :  { %6130 = vmatprep.subr.bf16.mxu0 %v15177_v24  ;;  %14390 = vmatprep.subr.bf16.mxu1 %v15234_v63  ;;  %v15237_v24 = vld [vmem:[#allocation15 + $0x8] sm:$0xff]   ;;  %v15265_v63 = vld [vmem:[#allocation18 + $0x70] ss:$8 sps:$4 sm:$0xff]  }
 0x55c   :  { %v15273_v36 = vld [vmem:[#allocation21 + $0xc] ss:$16 sps:$4 sm:$0xff]  }
 0x55d   :  { %14391 = vmatpush3.bf16.msra.mxu1 %v15235_v1  ;;  %v15270_v1 = vld [vmem:[#allocation21 + $0x4] ss:$16 sps:$4 sm:$0xff]  }
 0x55e   :  { %6131 = vmatpush1.bf16.msra.mxu0 %v15175_v25  ;;  %14495 = vmatprep.subr.bf16.mxu1 %v16520_v45  ;;  %v15238_v25 = vld [vmem:[#allocation15 + $0x10] sm:$0xff]  }
 0x55f   :  { %6132 = vmatprep.subr.bf16.mxu0 %v15180_v26  ;;  %v15239_v26 = vld [vmem:[#allocation15 + $0x18] sm:$0xff]  }
 0x562   :  { %6133 = vmatpush1.bf16.msra.mxu0 %v15178_v27  ;;  %v15240_v27 = vld [vmem:[#allocation15 + $0x20] sm:$0xff]  }
 0x563   :  { %6134 = vmatprep.subr.bf16.mxu0 %v15183_v28  ;;  %v15241_v28 = vld [vmem:[#allocation15 + $0x28] sm:$0xff]  }
 0x566   :  { %6135 = vmatpush1.bf16.msra.mxu0 %v15181_v33  ;;  %v15242_v33 = vld [vmem:[#allocation15 + $0x30] sm:$0xff]  }
 0x567   :  { %6136 = vmatprep.subr.bf16.mxu0 %v15186_v34  ;;  %v15243_v34 = vld [vmem:[#allocation15 + $0x38] sm:$0xff]  }
 0x56a   :  { %6137 = vmatpush1.bf16.msra.mxu0 %v15184_v15  ;;  %v15246_v15 = vld [vmem:[#allocation18 + $0x4] ss:$8 sps:$4 sm:$0xff]  }
 0x56b   :  { %6138 = vmatprep.subr.bf16.mxu0 %v15189_v59 }
 0x56e   :  { %6139 = vmatpush1.bf16.msra.mxu0 %v15187_v41  ;;  %v13536_v41 = vld [vmem:[#allocation13] ss:$0 sm:$0xff] }
 0x56f   :  { %6140 = vmatprep.subr.bf16.mxu0 %v15192_v42 }
 0x572   :  { %6141 = vmatpush1.bf16.msra.mxu0 %v15190_v43 }
 0x573   :  { %6142 = vmatprep.subr.bf16.mxu0 %v15195_v44 }
 0x576   :  { %6143 = vmatpush1.bf16.msra.mxu0 %v15193_v18 }
 0x577   :  { %6144 = vmatprep.subr.bf16.mxu0 %v15198_v21 }
 0x57a   :  { %6145 = vmatpush1.bf16.msra.mxu0 %v15196_v47 }
 0x57b   :  { %6146 = vmatprep.subr.bf16.mxu0 %v15201_v23 }
 0x57e   :  { %6147 = vmatpush1.bf16.msra.mxu0 %v15199_v29 }
 0x57f   :  { %6148 = vmatprep.subr.bf16.mxu0 %v15204_v48 }
 0x582   :  { %6149 = vmatpush1.bf16.msra.mxu0 %v15202_v49  ;;  %v15244_v49 = vld [vmem:[#allocation18] ss:$8 sps:$4 sm:$0xff]  }
 0x583   :  { %6150 = vmatprep.subr.bf16.mxu0 %v15207_v31 }
 0x586   :  { %6151 = vmatpush1.bf16.msra.mxu0 %v15205_v35  ;;  %v15249_v35 = vld [vmem:[#allocation18 + $0x14] ss:$8 sps:$4 sm:$0xff]  }
 0x587   :  { %6152 = vmatprep.subr.bf16.mxu0 %v15210_v38  ;;  %v15247_v38 = vld [vmem:[#allocation18 + $0x10] ss:$8 sps:$4 sm:$0xff]  }
 0x58a   :  { %6153 = vmatpush1.bf16.msra.mxu0 %v15208_v51  ;;  %v15252_v51 = vld [vmem:[#allocation18 + $0x24] ss:$8 sps:$4 sm:$0xff]  }
 0x58b   :  { %6154 = vmatprep.subr.bf16.mxu0 %v15213_v3  ;;  %v15250_v3 = vld [vmem:[#allocation18 + $0x20] ss:$8 sps:$4 sm:$0xff]  }
 0x58e   :  { %6155 = vmatpush1.bf16.msra.mxu0 %v15211_v52  ;;  %v15255_v52 = vld [vmem:[#allocation18 + $0x34] ss:$8 sps:$4 sm:$0xff]  }
 0x58f   :  { %6156 = vmatprep.subr.bf16.mxu0 %v15216_v54  ;;  %v15253_v54 = vld [vmem:[#allocation18 + $0x30] ss:$8 sps:$4 sm:$0xff]  }
 0x592   :  { %6157 = vmatpush1.bf16.msra.mxu0 %v15214_v40  ;;  %v15258_v40 = vld [vmem:[#allocation18 + $0x44] ss:$8 sps:$4 sm:$0xff]  }
 0x593   :  { %6158 = vmatprep.subr.bf16.mxu0 %v15219_v55  ;;  %v15256_v55 = vld [vmem:[#allocation18 + $0x40] ss:$8 sps:$4 sm:$0xff]  }
 0x596   :  { %6159 = vmatpush1.bf16.msra.mxu0 %v15217_v56  ;;  %v15261_v56 = vld [vmem:[#allocation18 + $0x54] ss:$8 sps:$4 sm:$0xff]  }
 0x597   :  { %7077 = vmatprep.subr.bf16.mxu0 %v15273_v36  ;;  %v15322_v36 = vld [vmem:[#allocation21 + $0x120] ss:$16 sps:$4 sm:$0xff]  }
 0x599   :  { %6161 = vmatmul.mubr.bf16.vlgmr.msra.gmra.mrb[16].mxu0 %v17050_v17 }
 0x66c   :  { %v6162_v4 = vpop.f32.mrb[16].mxu0 }
 0x66d   :  { %v14543_v6 = vadd.f32 %v6162_v4, %v5758_v50  ;;  %v6164_v8 = vpop.f32.mrb[17].mxu0  ;;  %v15285_v4 = vld [vmem:[#allocation21 + $0x4c] ss:$16 sps:$4 sm:$0xff]  }
 0x66e   :  { %v14544_v60 = vadd.f32 %v6164_v8, %v5762_v46  ;;  %v6166_v9 = vpop.f32.mrb[18].mxu0  ;;  %v15291_v8 = vld [vmem:[#allocation21 + $0x6c] ss:$16 sps:$4 sm:$0xff]  }
 0x66f   :  { %v14545_v10 = vadd.f32 %v6166_v9, %v5758_v50  ;;  %v6168_v11 = vpop.f32.mrb[19].mxu0  ;;  %v6171_v13 = vmax.f32 %v14543_v6, 0.0  ;;  %v15279_v50 = vld [vmem:[#allocation21 + $0x2c] ss:$16 sps:$4 sm:$0xff]   ;;  %v15283_v6 = vld [vmem:[#allocation21 + $0x48] ss:$16 sps:$4 sm:$0xff]  }
 0x670   :  { %v14546_v12 = vadd.f32 %v6168_v11, %v5762_v46  ;;  %v6172_v16 = vmax.f32 %v14544_v60, 0.0  ;;  %v15277_v46 = vld [vmem:[#allocation21 + $0x28] ss:$16 sps:$4 sm:$0xff]   ;;  %v15297_v9 = vld [vmem:[#allocation21 + $0x8c] ss:$16 sps:$4 sm:$0xff]  }
 0x671   :  { %v6173_v14 = vmax.f32 %v14545_v10, 0.0  ;;  %v15289_v60 = vld [vmem:[#allocation21 + $0x68] ss:$16 sps:$4 sm:$0xff]   ;;  %v15303_v11 = vld [vmem:[#allocation21 + $0xac] ss:$16 sps:$4 sm:$0xff]  }
 0x672   :  { %v6174_v17 = vmax.f32 %v14546_v12, 0.0  ;;  %v15295_v10 = vld [vmem:[#allocation21 + $0x88] ss:$16 sps:$4 sm:$0xff]  }
 0x673   :  { %v6175_v19 = vpack.c.bf16 %v6173_v14, %v6171_v13  ;;  %v15301_v12 = vld [vmem:[#allocation21 + $0xa8] ss:$16 sps:$4 sm:$0xff]   ;;  %v15309_v13 = vld [vmem:[#allocation21 + $0xcc] ss:$16 sps:$4 sm:$0xff]  }
 0x674   :  { %v6176_v20 = vpack.c.bf16 %v6174_v17, %v6172_v16  ;;  %v15307_v14 = vld [vmem:[#allocation21 + $0xc8] ss:$16 sps:$4 sm:$0xff]   ;;  %v15315_v16 = vld [vmem:[#allocation21 + $0xec] ss:$16 sps:$4 sm:$0xff]  }
 0x675   :  { %v15313_v17 = vld [vmem:[#allocation21 + $0xe8] ss:$16 sps:$4 sm:$0xff]  }
 0x676   :  { %6344 = vmatprep.mubr.bf16.mxu1 %v6176_v20  ;;  %v15319_v20 = vld [vmem:[#allocation21 + $0x108] ss:$16 sps:$4 sm:$0xff]  }
 0x677   :  { %6345 = vmatmul.mubr.bf16.vlgmr.msra.gmra.mrb[12].mxu1 %v6175_v19  ;;  %v15321_v19 = vld [vmem:[#allocation21 + $0x10c] ss:$16 sps:$4 sm:$0xff]  }
 0x678   :  { %14496 = vmatpush3.bf16.msra.mxu1 %v15236_v22  ;;  %14511 = vmatprep.mubr.msk.bf16.mxu1 %vm16521_vm0, %v16520_v45  ;;  %v15327_v22 = vld [vmem:[#allocation21 + $0x12c] ss:$16 sps:$4 sm:$0xff]  }
 0x679   :  { %14497 = vmatprep.subr.bf16.mxu1 %v16520_v45 }
 0x67c   :  { %14498 = vmatpush3.bf16.msra.mxu1 %v15237_v24  ;;  %v15325_v24 = vld [vmem:[#allocation21 + $0x128] ss:$16 sps:$4 sm:$0xff]  }
 0x67d   :  { %14499 = vmatprep.subr.bf16.mxu1 %v16520_v45 }
 0x680   :  { %14500 = vmatpush3.bf16.msra.mxu1 %v15238_v25  ;;  %v15333_v25 = vld [vmem:[#allocation21 + $0x14c] ss:$16 sps:$4 sm:$0xff]  }
 0x681   :  { %14501 = vmatprep.subr.bf16.mxu1 %v16520_v45 }
 0x684   :  { %14502 = vmatpush3.bf16.msra.mxu1 %v15239_v26  ;;  %v15331_v26 = vld [vmem:[#allocation21 + $0x148] ss:$16 sps:$4 sm:$0xff]  }
 0x685   :  { %14503 = vmatprep.subr.bf16.mxu1 %v16520_v45 }
 0x688   :  { %14504 = vmatpush3.bf16.msra.mxu1 %v15240_v27  ;;  %v15339_v27 = vld [vmem:[#allocation21 + $0x16c] ss:$16 sps:$4 sm:$0xff]  }
 0x689   :  { %14505 = vmatprep.subr.bf16.mxu1 %v16520_v45 }
 0x68c   :  { %14506 = vmatpush3.bf16.msra.mxu1 %v15241_v28  ;;  %v15337_v28 = vld [vmem:[#allocation21 + $0x168] ss:$16 sps:$4 sm:$0xff]  }
 0x68d   :  { %14507 = vmatprep.subr.bf16.mxu1 %v16520_v45 }
 0x690   :  { %14508 = vmatpush3.bf16.msra.mxu1 %v15242_v33  ;;  %v15345_v33 = vld [vmem:[#allocation21 + $0x18c] ss:$16 sps:$4 sm:$0xff]  }
 0x691   :  { %14509 = vmatprep.subr.bf16.mxu1 %v16520_v45  ;;  %v15271_v45 = vld [vmem:[#allocation21 + $0x8] ss:$16 sps:$4 sm:$0xff]  }
 0x692   :  { %7078 = vmatpush1.bf16.msra.mxu0 %v15271_v45  ;;  %v15324_v45 = vld [vmem:[#allocation21 + $0x124] ss:$16 sps:$4 sm:$0xff]  }
 0x693   :  { %7079 = vmatprep.subr.bf16.mxu0 %v15279_v50  ;;  %v15330_v50 = vld [vmem:[#allocation21 + $0x144] ss:$16 sps:$4 sm:$0xff]  }
 0x694   :  { %14510 = vmatpush3.bf16.msra.mxu1 %v15243_v34  ;;  %v15343_v34 = vld [vmem:[#allocation21 + $0x188] ss:$16 sps:$4 sm:$0xff]  }
 0x695   :  { %6579 = vmatprep.subr.bf16.mxu1 %v15246_v15  ;;  %v15351_v15 = vld [vmem:[#allocation21 + $0x1ac] ss:$16 sps:$4 sm:$0xff]  }
 0x696   :  { %7080 = vmatpush1.bf16.msra.mxu0 %v15277_v46  ;;  %v15328_v46 = vld [vmem:[#allocation21 + $0x140] ss:$16 sps:$4 sm:$0xff]  }
 0x697   :  { %7081 = vmatprep.subr.bf16.mxu0 %v15285_v4  ;;  %v15336_v4 = vld [vmem:[#allocation21 + $0x164] ss:$16 sps:$4 sm:$0xff]  }
 0x69a   :  { %7082 = vmatpush1.bf16.msra.mxu0 %v15283_v6  ;;  %v15334_v6 = vld [vmem:[#allocation21 + $0x160] ss:$16 sps:$4 sm:$0xff]  }
 0x69b   :  { %7083 = vmatprep.subr.bf16.mxu0 %v15291_v8  ;;  %v15342_v8 = vld [vmem:[#allocation21 + $0x184] ss:$16 sps:$4 sm:$0xff]  }
 0x69e   :  { %7084 = vmatpush1.bf16.msra.mxu0 %v15289_v60  ;;  %v15340_v60 = vld [vmem:[#allocation21 + $0x180] ss:$16 sps:$4 sm:$0xff]  }
 0x69f   :  { %7085 = vmatprep.subr.bf16.mxu0 %v15297_v9  ;;  %v15348_v9 = vld [vmem:[#allocation21 + $0x1a4] ss:$16 sps:$4 sm:$0xff]  }
 0x6a2   :  { %7086 = vmatpush1.bf16.msra.mxu0 %v15295_v10  ;;  %v15346_v10 = vld [vmem:[#allocation21 + $0x1a0] ss:$16 sps:$4 sm:$0xff]  }
 0x6a3   :  { %7087 = vmatprep.subr.bf16.mxu0 %v15303_v11  ;;  %v15354_v11 = vld [vmem:[#allocation21 + $0x1c4] ss:$16 sps:$4 sm:$0xff]  }
 0x6a6   :  { %7088 = vmatpush1.bf16.msra.mxu0 %v15301_v12  ;;  %v15357_v12 = vld [vmem:[#allocation21 + $0x1cc] ss:$16 sps:$4 sm:$0xff]  }
 0x6a7   :  { %7089 = vmatprep.subr.bf16.mxu0 %v15309_v13  ;;  %v15352_v13 = vld [vmem:[#allocation21 + $0x1c0] ss:$16 sps:$4 sm:$0xff]  }
 0x6aa   :  { %7090 = vmatpush1.bf16.msra.mxu0 %v15307_v14  ;;  %v15355_v14 = vld [vmem:[#allocation21 + $0x1c8] ss:$16 sps:$4 sm:$0xff]  }
 0x6ab   :  { %7091 = vmatprep.subr.bf16.mxu0 %v15315_v16  ;;  %v15360_v16 = vld [vmem:[#allocation21 + $0x1e4] ss:$16 sps:$4 sm:$0xff]  }
 0x6ae   :  { %7092 = vmatpush1.bf16.msra.mxu0 %v15313_v17  ;;  %v15363_v17 = vld [vmem:[#allocation21 + $0x1ec] ss:$16 sps:$4 sm:$0xff]  }
 0x6af   :  { %7093 = vmatprep.subr.bf16.mxu0 %v15321_v19  ;;  %v15358_v19 = vld [vmem:[#allocation21 + $0x1e0] ss:$16 sps:$4 sm:$0xff]  }
 0x6b2   :  { %7094 = vmatpush1.bf16.msra.mxu0 %v15319_v20  ;;  %v15361_v20 = vld [vmem:[#allocation21 + $0x1e8] ss:$16 sps:$4 sm:$0xff]  }
 0x6b3   :  { %7095 = vmatprep.subr.bf16.mxu0 %v15327_v22  ;;  %v7132_v22 = vld [vmem:[#allocation24] sm:$0xff] }
 0x6b6   :  { %7096 = vmatpush1.bf16.msra.mxu0 %v15325_v24  ;;  %v7136_v24 = vld [vmem:[#allocation24 + $0x20] sm:$0xff] }
 0x6b7   :  { %7097 = vmatprep.subr.bf16.mxu0 %v15333_v25  ;;  %v7133_v25 = vld [vmem:[#allocation24 + $0x8] sm:$0xff] }
 0x6ba   :  { %7098 = vmatpush1.bf16.msra.mxu0 %v15331_v26  ;;  %v13642_v26 = vcombine.low %v7132_v22, %v7136_v24 }
 0x6bb   :  { %7099 = vmatprep.subr.bf16.mxu0 %v15339_v27  ;;  %v13643_v27 = vcombine.high %v7132_v22, %v7136_v24  ;;  %v7172_v22 = vld [vmem:[#allocation24 + $0x140] sm:$0xff] }
 0x6bc   :  { %v7176_v24 = vld [vmem:[#allocation24 + $0x160] sm:$0xff] }
 0x6be   :  { %7100 = vmatpush1.bf16.msra.mxu0 %v15337_v28  ;;  %v7137_v28 = vld [vmem:[#allocation24 + $0x28] sm:$0xff] }
 0x6bf   :  { %7101 = vmatprep.subr.bf16.mxu0 %v15345_v33  ;;  %v13644_v33 = vcombine.low %v7133_v25, %v7137_v28 }
 0x6c2   :  { %7102 = vmatpush1.bf16.msra.mxu0 %v15343_v34  ;;  %v13645_v34 = vcombine.high %v7133_v25, %v7137_v28  ;;  %v7173_v25 = vld [vmem:[#allocation24 + $0x148] sm:$0xff] }
 0x6c3   :  { %7103 = vmatprep.subr.bf16.mxu0 %v15351_v15  ;;  %v6487_v15 = vld [vmem:[#allocation19] sm:$0x3] }
 0x74a   :  { %v14392_v59 = vpop.f32.mrb[12].mxu1 }
 0x74b   :  { %v14393_v42 = vpop.f32.mrb[13].mxu1 }
 0x74c   :  { %v14394_v43 = vadd.f32 %v14393_v42, %v14392_v59  ;;  %v14395_v44 = vpop.f32.mrb[14].mxu1  ;;  %v15349_v59 = vld [vmem:[#allocation21 + $0x1a8] ss:$16 sps:$4 sm:$0xff]  }
 0x74d   :  { %v14396_v18 = vpop.f32.mrb[15].mxu1  ;;  %7104 = vmatpush1.bf16.msra.mxu0 %v15349_v59  ;;  %v6492_v59 = vrot.slane %v6487_v15, %v16971_v62 }
 0x74e   :  { %v6347_v21 = vadd.f32 %v14394_v43, %v13536_v41  ;;  %v14397_v47 = vadd.f32 %v14396_v18, %v14395_v44  ;;  %7105 = vmatprep.subr.bf16.mxu0 %v15357_v12  ;;  %v7168_v12 = vld [vmem:[#allocation24 + $0x120] sm:$0xff] }
 0x750   :  { %v6350_v23 = vadd.f32 %v14397_v47, %v13536_v41  ;;  %v6353_v29 = vmax.f32 %v6347_v21, 0.0  ;;  %v13553_v41 = vld [vmem:[#allocation16] ss:$0 sm:$0xff] }
 0x751   :  { %7106 = vmatpush1.bf16.msra.mxu0 %v15355_v14  ;;  %v7169_v14 = vld [vmem:[#allocation24 + $0x128] sm:$0xff] }
 0x752   :  { %v6354_v48 = vmax.f32 %v6350_v23, 0.0  ;;  %7107 = vmatprep.subr.bf16.mxu0 %v15363_v17 }
 0x754   :  { %v6355_v31 = vpack.c.bf16 %v6354_v48, %v6353_v29  ;;  %v15268_v48 = vld [vmem:[#allocation21] ss:$16 sps:$4 sm:$0xff]  }
 0x755   :  { %7108 = vmatpush1.bf16.msra.mxu0 %v15361_v20 }
 0x756   :  { %14512 = vmatmul.mubr.bf16.vlgmr.msra.gmra.mrb[16].mxu1 %v6355_v31  ;;  %v15276_v31 = vld [vmem:[#allocation21 + $0x24] ss:$16 sps:$4 sm:$0xff]   ;;  %8796 = vmatprep.subr.bf16.mxu0 %v13645_v34 }
 0x757   :  { %6580 = vmatpush1.bf16.msra.mxu1 %v15244_v49  ;;  %6611 = vmatprep.mubr.bf16.mxu1 %v16519_v37  ;;  %v15262_v37 = vld [vmem:[#allocation18 + $0x60] ss:$8 sps:$4 sm:$0xff]  }
 0x758   :  { %6581 = vmatprep.subr.bf16.mxu1 %v15249_v35  ;;  %v15274_v35 = vld [vmem:[#allocation21 + $0x20] ss:$16 sps:$4 sm:$0xff]  }
 0x75b   :  { %6582 = vmatpush1.bf16.msra.mxu1 %v15247_v38  ;;  %v15282_v38 = vld [vmem:[#allocation21 + $0x44] ss:$16 sps:$4 sm:$0xff]  }
 0x75c   :  { %6583 = vmatprep.subr.bf16.mxu1 %v15252_v51  ;;  %v15280_v51 = vld [vmem:[#allocation21 + $0x40] ss:$16 sps:$4 sm:$0xff]  }
 0x75f   :  { %6584 = vmatpush1.bf16.msra.mxu1 %v15250_v3  ;;  %v15288_v3 = vld [vmem:[#allocation21 + $0x64] ss:$16 sps:$4 sm:$0xff]  }
 0x760   :  { %6585 = vmatprep.subr.bf16.mxu1 %v15255_v52  ;;  %v15286_v52 = vld [vmem:[#allocation21 + $0x60] ss:$16 sps:$4 sm:$0xff]  }
 0x763   :  { %6586 = vmatpush1.bf16.msra.mxu1 %v15253_v54  ;;  %v15294_v54 = vld [vmem:[#allocation21 + $0x84] ss:$16 sps:$4 sm:$0xff]  }
 0x764   :  { %6587 = vmatprep.subr.bf16.mxu1 %v15258_v40  ;;  %v15292_v40 = vld [vmem:[#allocation21 + $0x80] ss:$16 sps:$4 sm:$0xff]  }
 0x767   :  { %6588 = vmatpush1.bf16.msra.mxu1 %v15256_v55  ;;  %v15300_v55 = vld [vmem:[#allocation21 + $0xa4] ss:$16 sps:$4 sm:$0xff]  }
 0x768   :  { %6589 = vmatprep.subr.bf16.mxu1 %v15261_v56  ;;  %v15298_v56 = vld [vmem:[#allocation21 + $0xa0] ss:$16 sps:$4 sm:$0xff]  }
 0x76b   :  { %6590 = vmatpush1.bf16.msra.mxu1 %v15259_v57  ;;  %v15306_v57 = vld [vmem:[#allocation21 + $0xc4] ss:$16 sps:$4 sm:$0xff]  }
 0x76c   :  { %6591 = vmatprep.subr.bf16.mxu1 %v15264_v58  ;;  %v15304_v58 = vld [vmem:[#allocation21 + $0xc0] ss:$16 sps:$4 sm:$0xff]  }
 0x76f   :  { %6592 = vmatpush1.bf16.msra.mxu1 %v15262_v37  ;;  %v15312_v37 = vld [vmem:[#allocation21 + $0xe4] ss:$16 sps:$4 sm:$0xff]  }
 0x770   :  { %6593 = vmatprep.subr.bf16.mxu1 %v15267_v61  ;;  %v15310_v61 = vld [vmem:[#allocation21 + $0xe0] ss:$16 sps:$4 sm:$0xff]  }
 0x773   :  { %6594 = vmatpush1.bf16.msra.mxu1 %v15265_v63  ;;  %v15318_v63 = vld [vmem:[#allocation21 + $0x104] ss:$16 sps:$4 sm:$0xff]  }
 0x774   :  { %7034 = vmatprep.subr.bf16.mxu1 %v15270_v1  ;;  %v15316_v1 = vld [vmem:[#allocation21 + $0x100] ss:$16 sps:$4 sm:$0xff]  }
 0x829   :  { %v6461_v42 = vpop.f32.mrb[16].mxu1 }
 0x82a   :  { %v6462_v43 = vadd.f32 %v13553_v41, %v6461_v42  ;;  %v14513_v44 = vpop.f32.mrb[17].mxu1 }
 0x82b   :  { %v6464_v18 = vpop.f32.mrb[18].mxu1 }
 0x82c   :  { %v6465_v21 = vadd.f32 %v13553_v41, %v6464_v18  ;;  %v14514_v47 = vpop.f32.mrb[19].mxu1  ;;  %v6468_v23 = vmax.f32 %v6462_v43, 0.0  ;;  %v6496_v41 = vrot.slane %v6487_v15, %v16974_v0  ;;  %v7180_v15 = vld [vmem:[#allocation24 + $0x180] sm:$0xff] }
 0x82e   :  { %v6469_v29 = vmax.f32 %v6465_v21, 0.0 }
 0x830   :  { %v6470_v49 = vpack.c.bf16 %v6469_v29, %v6468_v23 }
 0x832   :  { %6612 = vmatmul.mubr.bf16.vlgmr.msra.gmra.mrb[20].mxu1 %v6470_v49 }
 0x833   :  { %7035 = vmatpush1.bf16.msra.mxu1 %v15268_v48 }
 0x834   :  { %7036 = vmatprep.subr.bf16.mxu1 %v15276_v31  ;;  %v7140_v31 = vld [vmem:[#allocation24 + $0x40] sm:$0xff] }
 0x837   :  { %7037 = vmatpush1.bf16.msra.mxu1 %v15274_v35 }
 0x838   :  { %7038 = vmatprep.subr.bf16.mxu1 %v15282_v38 }
 0x83b   :  { %7039 = vmatpush1.bf16.msra.mxu1 %v15280_v51  ;;  %v7144_v51 = vld [vmem:[#allocation24 + $0x60] sm:$0xff] }
 0x83c   :  { %7040 = vmatprep.subr.bf16.mxu1 %v15288_v3  ;;  %v7141_v3 = vld [vmem:[#allocation24 + $0x48] sm:$0xff] }
 0x83f   :  { %7041 = vmatpush1.bf16.msra.mxu1 %v15286_v52  ;;  %v7145_v52 = vld [vmem:[#allocation24 + $0x68] sm:$0xff] }
 0x840   :  { %7042 = vmatprep.subr.bf16.mxu1 %v15294_v54 }
 0x843   :  { %7043 = vmatpush1.bf16.msra.mxu1 %v15292_v40 }
 0x844   :  { %7044 = vmatprep.subr.bf16.mxu1 %v15300_v55  ;;  %v13651_v55 = vcombine.high %v7140_v31, %v7144_v51 }
 0x847   :  { %7045 = vmatpush1.bf16.msra.mxu1 %v15298_v56  ;;  %v13653_v56 = vcombine.high %v7141_v3, %v7145_v52 }
 0x848   :  { %7046 = vmatprep.subr.bf16.mxu1 %v15306_v57  ;;  %v7148_v57 = vld [vmem:[#allocation24 + $0x80] sm:$0xff] }
 0x84b   :  { %7047 = vmatpush1.bf16.msra.mxu1 %v15304_v58  ;;  %v7152_v58 = vld [vmem:[#allocation24 + $0xa0] sm:$0xff] }
 0x84c   :  { %7048 = vmatprep.subr.bf16.mxu1 %v15312_v37  ;;  %v7149_v37 = vld [vmem:[#allocation24 + $0x88] sm:$0xff] }
 0x84f   :  { %7049 = vmatpush1.bf16.msra.mxu1 %v15310_v61  ;;  %v7153_v61 = vld [vmem:[#allocation24 + $0xa8] sm:$0xff] }
 0x850   :  { %7050 = vmatprep.subr.bf16.mxu1 %v15318_v63  ;;  %v13650_v63 = vcombine.low %v7140_v31, %v7144_v51  ;;  %v7196_v51 = vld [vmem:[#allocation24 + $0x200] sm:$0xff] }
 0x853   :  { %7051 = vmatpush1.bf16.msra.mxu1 %v15316_v1  ;;  %v13652_v1 = vcombine.low %v7141_v3, %v7145_v52  ;;  %v7200_v3 = vld [vmem:[#allocation24 + $0x220] sm:$0xff]  ;;  %v7197_v52 = vld [vmem:[#allocation24 + $0x208] sm:$0xff] }
 0x854   :  { %7052 = vmatprep.subr.bf16.mxu1 %v15324_v45  ;;  %v13659_v45 = vcombine.high %v7148_v57, %v7152_v58 }
 0x857   :  { %7053 = vmatpush1.bf16.msra.mxu1 %v15322_v36  ;;  %v13661_v36 = vcombine.high %v7149_v37, %v7153_v61 }
 0x858   :  { %7054 = vmatprep.subr.bf16.mxu1 %v15330_v50  ;;  %v7156_v50 = vld [vmem:[#allocation24 + $0xc0] sm:$0xff] }
 0x85b   :  { %7055 = vmatpush1.bf16.msra.mxu1 %v15328_v46  ;;  %v7160_v46 = vld [vmem:[#allocation24 + $0xe0] sm:$0xff] }
 0x85c   :  { %7056 = vmatprep.subr.bf16.mxu1 %v15336_v4  ;;  %v7157_v4 = vld [vmem:[#allocation24 + $0xc8] sm:$0xff] }
 0x85f   :  { %7057 = vmatpush1.bf16.msra.mxu1 %v15334_v6  ;;  %v7161_v6 = vld [vmem:[#allocation24 + $0xe8] sm:$0xff] }
 0x860   :  { %7058 = vmatprep.subr.bf16.mxu1 %v15342_v8  ;;  %v13658_v8 = vcombine.low %v7148_v57, %v7152_v58  ;;  %v13668_v17 = vcombine.low %v7157_v4, %v7161_v6  ;;  %v7204_v58 = vld [vmem:[#allocation24 + $0x240] sm:$0xff] }
 0x863   :  { %7059 = vmatpush1.bf16.msra.mxu1 %v15340_v60  ;;  %v13660_v60 = vcombine.low %v7149_v37, %v7153_v61  ;;  %v7208_v37 = vld [vmem:[#allocation24 + $0x260] sm:$0xff]  ;;  %v7205_v61 = vld [vmem:[#allocation24 + $0x248] sm:$0xff] }
 0x864   :  { %7060 = vmatprep.subr.bf16.mxu1 %v15348_v9  ;;  %v13667_v9 = vcombine.high %v7156_v50, %v7160_v46 }
 0x867   :  { %7061 = vmatpush1.bf16.msra.mxu1 %v15346_v10  ;;  %v13669_v10 = vcombine.high %v7157_v4, %v7161_v6  ;;  %v7216_v4 = vld [vmem:[#allocation24 + $0x2a0] sm:$0xff]  ;;  %v7213_v6 = vld [vmem:[#allocation24 + $0x288] sm:$0xff] }
 0x868   :  { %7062 = vmatprep.subr.bf16.mxu1 %v15354_v11  ;;  %v7164_v11 = vld [vmem:[#allocation24 + $0x100] sm:$0xff] }
 0x86b   :  { %7063 = vmatpush1.bf16.msra.mxu1 %v15352_v13  ;;  %v7165_v13 = vld [vmem:[#allocation24 + $0x108] sm:$0xff] }
 0x86c   :  { %7064 = vmatprep.subr.bf16.mxu1 %v15360_v16  ;;  %v13666_v16 = vcombine.low %v7156_v50, %v7160_v46  ;;  %v13677_v20 = vcombine.high %v7165_v13, %v7169_v14  ;;  %v13676_v28 = vcombine.low %v7165_v13, %v7169_v14  ;;  %v7212_v46 = vld [vmem:[#allocation24 + $0x280] sm:$0xff]  ;;  %v7221_v14 = vld [vmem:[#allocation24 + $0x2c8] sm:$0xff] }
 0x86d   :  { %v7224_v13 = vld [vmem:[#allocation24 + $0x2e0] sm:$0xff] }
 0x86f   :  { %7065 = vmatpush1.bf16.msra.mxu1 %v15358_v19  ;;  %v13675_v19 = vcombine.high %v7164_v11, %v7168_v12 }
 0x870   :  { %8710 = vmatprep.subr.bf16.mxu1 %v13643_v27  ;;  %v13674_v27 = vcombine.low %v7164_v11, %v7168_v12  ;;  %v7220_v12 = vld [vmem:[#allocation24 + $0x2c0] sm:$0xff] }
 0x905   :  { %v6613_v42 = vpop.f32.mrb[20].mxu1 }
 0x906   :  { %v6614_v43 = vadd.f32 %v6613_v42, %v6492_v59  ;;  %v6615_v44 = vpop.f32.mrb[21].mxu1  ;;  %v7185_v42 = vld [vmem:[#allocation24 + $0x1a8] sm:$0xff] }
 0x907   :  { %v6616_v18 = vadd.f32 %v6615_v44, %v6496_v41  ;;  %v6617_v21 = vpop.f32.mrb[22].mxu1 }
 0x908   :  { %v6618_v47 = vadd.f32 %v6617_v21, %v6492_v59  ;;  %v6619_v23 = vpop.f32.mrb[23].mxu1  ;;  %v6622_v48 = vmax.f32 %v6614_v43, 0.0  ;;  %v7184_v59 = vld [vmem:[#allocation24 + $0x1a0] sm:$0xff]  ;;  %v13682_v43 = vcombine.low %v7172_v22, %v7176_v24 }
 0x909   :  { %v6620_v29 = vadd.f32 %v6619_v23, %v6496_v41  ;;  %v6623_v35 = vmax.f32 %v6616_v18, 0.0  ;;  %v7181_v41 = vld [vmem:[#allocation24 + $0x188] sm:$0xff]  ;;  %v13691_v18 = vcombine.high %v7180_v15, %v7184_v59  ;;  %v7192_v23 = vld [vmem:[#allocation24 + $0x1e0] sm:$0xff] }
 0x90a   :  { %v6624_v49 = vmax.f32 %v6618_v47, 0.0  ;;  %v13693_v21 = vcombine.high %v7181_v41, %v7185_v42  ;;  %v7188_v47 = vld [vmem:[#allocation24 + $0x1c0] sm:$0xff]  ;;  %v13692_v31 = vcombine.low %v7181_v41, %v7185_v42  ;;  %v7237_v42 = vld [vmem:[#allocation24 + $0x348] sm:$0xff] }
 0x90b   :  { %v6625_v38 = vmax.f32 %v6620_v29, 0.0  ;;  %v7189_v29 = vld [vmem:[#allocation24 + $0x1c8] sm:$0xff]  ;;  %v7240_v41 = vld [vmem:[#allocation24 + $0x360] sm:$0xff] }
 0x90c   :  { %v6626_v54 = vpack.c.bf16 %v6624_v49, %v6622_v48  ;;  %v7193_v48 = vld [vmem:[#allocation24 + $0x1e8] sm:$0xff]  ;;  %v13690_v49 = vcombine.low %v7180_v15, %v7184_v59  ;;  %v7236_v59 = vld [vmem:[#allocation24 + $0x340] sm:$0xff] }
 0x90d   :  { %v6627_v40 = vpack.c.bf16 %v6625_v38, %v6623_v35  ;;  %v13699_v35 = vcombine.high %v7188_v47, %v7192_v23  ;;  %v13701_v38 = vcombine.high %v7189_v29, %v7193_v48 }
 0x90f   :  { %7066 = vmatprep.mubr.bf16.mxu1 %v6627_v40  ;;  %7109 = vmatprep.mubr.bf16.mxu0 %v6627_v40  ;;  %v13698_v40 = vcombine.low %v7188_v47, %v7192_v23  ;;  %v13746_v23 = vcombine.low %v7236_v59, %v7240_v41 }
 0x910   :  { %7067 = vmatmul.mubr.bf16.vlgmr.msra.gmra.mrb[24].mxu1 %v6626_v54  ;;  %7110 = vmatmul.mubr.bf16.vlgmr.msra.gmra.mrb[20].mxu0 %v6626_v54  ;;  %v7201_v54 = vld [vmem:[#allocation24 + $0x228] sm:$0xff] }
 0x911   :  { %8711 = vmatpush1.bf16.msra.mxu1 %v13642_v26  ;;  %8797 = vmatpush1.bf16.msra.mxu0 %v13644_v33  ;;  %v7177_v26 = vld [vmem:[#allocation24 + $0x168] sm:$0xff]  ;;  %v13683_v33 = vcombine.high %v7172_v22, %v7176_v24  ;;  %v13709_v57 = vcombine.high %v7197_v52, %v7201_v54  ;;  %v7228_v24 = vld [vmem:[#allocation24 + $0x300] sm:$0xff] }
 0x912   :  { %8712 = vmatprep.subr.bf16.mxu1 %v13651_v55  ;;  %8798 = vmatprep.subr.bf16.mxu0 %v13653_v56  ;;  %v13685_v34 = vcombine.high %v7173_v25, %v7177_v26  ;;  %v13684_v44 = vcombine.low %v7173_v25, %v7177_v26  ;;  %v13700_v55 = vcombine.low %v7189_v29, %v7193_v48  ;;  %v7232_v25 = vld [vmem:[#allocation24 + $0x320] sm:$0xff]  ;;  %v7229_v26 = vld [vmem:[#allocation24 + $0x308] sm:$0xff] }
 0x913   :  { %v13707_v56 = vcombine.high %v7196_v51, %v7200_v3  ;;  %v7244_v48 = vld [vmem:[#allocation24 + $0x380] sm:$0xff] }
 0x915   :  { %8713 = vmatpush1.bf16.msra.mxu1 %v13650_v63  ;;  %8799 = vmatpush1.bf16.msra.mxu0 %v13652_v1  ;;  %v7209_v63 = vld [vmem:[#allocation24 + $0x268] sm:$0xff]  ;;  %v13706_v1 = vcombine.low %v7196_v51, %v7200_v3 }
 0x916   :  { %8714 = vmatprep.subr.bf16.mxu1 %v13659_v45  ;;  %8800 = vmatprep.subr.bf16.mxu0 %v13661_v36  ;;  %v13708_v45 = vcombine.low %v7197_v52, %v7201_v54  ;;  %v13715_v36 = vcombine.high %v7204_v58, %v7208_v37  ;;  %v13717_v50 = vcombine.high %v7205_v61, %v7209_v63  ;;  %v7252_v54 = vld [vmem:[#allocation24 + $0x3c0] sm:$0xff] }
 0x919   :  { %8715 = vmatpush1.bf16.msra.mxu1 %v13658_v8  ;;  %8801 = vmatpush1.bf16.msra.mxu0 %v13660_v60  ;;  %v7217_v8 = vld [vmem:[#allocation24 + $0x2a8] sm:$0xff]  ;;  %v13714_v60 = vcombine.low %v7204_v58, %v7208_v37 }
 0x91a   :  { %8716 = vmatprep.subr.bf16.mxu1 %v13667_v9  ;;  %8802 = vmatprep.subr.bf16.mxu0 %v13669_v10  ;;  %v13716_v9 = vcombine.low %v7205_v61, %v7209_v63  ;;  %v13723_v10 = vcombine.high %v7212_v46, %v7216_v4  ;;  %v13725_v11 = vcombine.high %v7213_v6, %v7217_v8  ;;  %v7260_v63 = vld [vmem:[#allocation24 + $0x400] sm:$0xff] }
 0x91d   :  { %8717 = vmatpush1.bf16.msra.mxu1 %v13666_v16  ;;  %8803 = vmatpush1.bf16.msra.mxu0 %v13668_v17  ;;  %v7225_v16 = vld [vmem:[#allocation24 + $0x2e8] sm:$0xff]  ;;  %v13722_v17 = vcombine.low %v7212_v46, %v7216_v4 }
 0x91e   :  { %8718 = vmatprep.subr.bf16.mxu1 %v13675_v19  ;;  %8804 = vmatprep.subr.bf16.mxu0 %v13677_v20  ;;  %v13724_v19 = vcombine.low %v7213_v6, %v7217_v8  ;;  %v13731_v20 = vcombine.high %v7220_v12, %v7224_v13  ;;  %v13733_v22 = vcombine.high %v7221_v14, %v7225_v16  ;;  %v6692_v8 = vld [vmem:[#allocation22] sm:$0xf] }
 0x921   :  { %8719 = vmatpush1.bf16.msra.mxu1 %v13674_v27  ;;  %8805 = vmatpush1.bf16.msra.mxu0 %v13676_v28  ;;  %v7233_v27 = vld [vmem:[#allocation24 + $0x328] sm:$0xff]  ;;  %v13730_v28 = vcombine.low %v7220_v12, %v7224_v13 }
 0x922   :  { %8720 = vmatprep.subr.bf16.mxu1 %v13683_v33  ;;  %8806 = vmatprep.subr.bf16.mxu0 %v13685_v34  ;;  %v13732_v33 = vcombine.low %v7221_v14, %v7225_v16  ;;  %v13739_v34 = vcombine.high %v7228_v24, %v7232_v25  ;;  %v13741_v15 = vcombine.high %v7229_v26, %v7233_v27 }
 0x925   :  { %8721 = vmatpush1.bf16.msra.mxu1 %v13682_v43  ;;  %8807 = vmatpush1.bf16.msra.mxu0 %v13684_v44  ;;  %v7241_v43 = vld [vmem:[#allocation24 + $0x368] sm:$0xff]  ;;  %v13738_v44 = vcombine.low %v7228_v24, %v7232_v25 }
 0x926   :  { %8722 = vmatprep.subr.bf16.mxu1 %v13691_v18  ;;  %8808 = vmatprep.subr.bf16.mxu0 %v13693_v21  ;;  %v13740_v18 = vcombine.low %v7229_v26, %v7233_v27  ;;  %v13747_v21 = vcombine.high %v7236_v59, %v7240_v41  ;;  %v13749_v47 = vcombine.high %v7237_v42, %v7241_v43 }
 0x927   :  { %v13748_v29 = vcombine.low %v7237_v42, %v7241_v43 }
 0x929   :  { %8723 = vmatpush1.bf16.msra.mxu1 %v13690_v49  ;;  %8809 = vmatpush1.bf16.msra.mxu0 %v13692_v31  ;;  %v7248_v49 = vld [vmem:[#allocation24 + $0x3a0] sm:$0xff]  ;;  %v7245_v31 = vld [vmem:[#allocation24 + $0x388] sm:$0xff] }
 0x92a   :  { %8724 = vmatprep.subr.bf16.mxu1 %v13699_v35  ;;  %8810 = vmatprep.subr.bf16.mxu0 %v13701_v38  ;;  %v13755_v35 = vcombine.high %v7244_v48, %v7248_v49  ;;  %v7249_v38 = vld [vmem:[#allocation24 + $0x3a8] sm:$0xff]  ;;  %v13754_v51 = vcombine.low %v7244_v48, %v7248_v49  ;;  %v7272_v49 = vld [vmem:[#allocation24 + $0x460] sm:$0xff] }
 0x92b   :  { %v13756_v3 = vcombine.low %v7245_v31, %v7249_v38  ;;  %v13757_v52 = vcombine.high %v7245_v31, %v7249_v38  ;;  %v7269_v31 = vld [vmem:[#allocation24 + $0x448] sm:$0xff] }
 0x92d   :  { %8725 = vmatpush1.bf16.msra.mxu1 %v13698_v40  ;;  %8811 = vmatpush1.bf16.msra.mxu0 %v13700_v55  ;;  %v7256_v40 = vld [vmem:[#allocation24 + $0x3e0] sm:$0xff]  ;;  %v7253_v55 = vld [vmem:[#allocation24 + $0x3c8] sm:$0xff] }
 0x92e   :  { %8726 = vmatprep.subr.bf16.mxu1 %v13707_v56  ;;  %8812 = vmatprep.subr.bf16.mxu0 %v13709_v57  ;;  %v13763_v56 = vcombine.high %v7252_v54, %v7256_v40  ;;  %v7257_v57 = vld [vmem:[#allocation24 + $0x3e8] sm:$0xff]  ;;  %v13762_v58 = vcombine.low %v7252_v54, %v7256_v40  ;;  %v7280_v40 = vld [vmem:[#allocation24 + $0x4a0] sm:$0xff] }
 0x92f   :  { %v13764_v37 = vcombine.low %v7253_v55, %v7257_v57  ;;  %v13765_v61 = vcombine.high %v7253_v55, %v7257_v57  ;;  %v7277_v55 = vld [vmem:[#allocation24 + $0x488] sm:$0xff] }
 0x931   :  { %8727 = vmatpush1.bf16.msra.mxu1 %v13706_v1  ;;  %8813 = vmatpush1.bf16.msra.mxu0 %v13708_v45  ;;  %v7264_v1 = vld [vmem:[#allocation24 + $0x420] sm:$0xff]  ;;  %v7261_v45 = vld [vmem:[#allocation24 + $0x408] sm:$0xff] }
 0x932   :  { %8728 = vmatprep.subr.bf16.mxu1 %v13715_v36  ;;  %8814 = vmatprep.subr.bf16.mxu0 %v13717_v50  ;;  %v13771_v36 = vcombine.high %v7260_v63, %v7264_v1  ;;  %v7265_v50 = vld [vmem:[#allocation24 + $0x428] sm:$0xff]  ;;  %v13770_v46 = vcombine.low %v7260_v63, %v7264_v1  ;;  %v7284_v63 = vld [vmem:[#allocation24 + $0x4c0] sm:$0xff] }
 0x933   :  { %v13772_v4 = vcombine.low %v7261_v45, %v7265_v50  ;;  %v13773_v6 = vcombine.high %v7261_v45, %v7265_v50  ;;  %v7288_v1 = vld [vmem:[#allocation24 + $0x4e0] sm:$0xff]  ;;  %v7285_v45 = vld [vmem:[#allocation24 + $0x4c8] sm:$0xff] }
 0x935   :  { %8729 = vmatpush1.bf16.msra.mxu1 %v13714_v60  ;;  %8815 = vmatpush1.bf16.msra.mxu0 %v13716_v9  ;;  %v6697_v60 = vrot.slane %v6692_v8, %v16971_v62  ;;  %v6705_v9 = vrot.slane %v6692_v8, %v16991_v5 }
 0x936   :  { %8730 = vmatprep.subr.bf16.mxu1 %v13723_v10  ;;  %8816 = vmatprep.subr.bf16.mxu0 %v13725_v11  ;;  %v6701_v10 = vrot.slane %v6692_v8, %v16974_v0  ;;  %v6709_v11 = vrot.slane %v6692_v8, %v16994_v7  ;;  %v7292_v8 = vld [vmem:[#allocation24 + $0x500] sm:$0xff] }
 0x939   :  { %8731 = vmatpush1.bf16.msra.mxu1 %v13722_v17  ;;  %8817 = vmatpush1.bf16.msra.mxu0 %v13724_v19 }
 0x93a   :  { %8732 = vmatprep.subr.bf16.mxu1 %v13731_v20  ;;  %8818 = vmatprep.subr.bf16.mxu0 %v13733_v22 }
 0x93d   :  { %8733 = vmatpush1.bf16.msra.mxu1 %v13730_v28  ;;  %8819 = vmatpush1.bf16.msra.mxu0 %v13732_v33 }
 0x93e   :  { %8734 = vmatprep.subr.bf16.mxu1 %v13739_v34  ;;  %8820 = vmatprep.subr.bf16.mxu0 %v13741_v15 }
 0x941   :  { %8735 = vmatpush1.bf16.msra.mxu1 %v13738_v44  ;;  %8821 = vmatpush1.bf16.msra.mxu0 %v13740_v18 }
 0x942   :  { %8736 = vmatprep.subr.bf16.mxu1 %v13747_v21  ;;  %8822 = vmatprep.subr.bf16.mxu0 %v13749_v47 }
 0x945   :  { %8737 = vmatpush1.bf16.msra.mxu1 %v13746_v23  ;;  %8823 = vmatpush1.bf16.msra.mxu0 %v13748_v29  ;;  %v7268_v23 = vld [vmem:[#allocation24 + $0x440] sm:$0xff] }
 0x946   :  { %8738 = vmatprep.subr.bf16.mxu1 %v13755_v35  ;;  %8824 = vmatprep.subr.bf16.mxu0 %v13757_v52  ;;  %v7273_v35 = vld [vmem:[#allocation24 + $0x468] sm:$0xff]  ;;  %v13779_v52 = vcombine.high %v7268_v23, %v7272_v49  ;;  %v13778_v57 = vcombine.low %v7268_v23, %v7272_v49 }
 0x947   :  { %v13781_v54 = vcombine.high %v7269_v31, %v7273_v35 }
 0x949   :  { %8739 = vmatpush1.bf16.msra.mxu1 %v13754_v51  ;;  %8825 = vmatpush1.bf16.msra.mxu0 %v13756_v3  ;;  %v7276_v3 = vld [vmem:[#allocation24 + $0x480] sm:$0xff] }
 0x94a   :  { %8740 = vmatprep.subr.bf16.mxu1 %v13763_v56  ;;  %8826 = vmatprep.subr.bf16.mxu0 %v13765_v61  ;;  %v7281_v56 = vld [vmem:[#allocation24 + $0x4a8] sm:$0xff]  ;;  %v13786_v50 = vcombine.low %v7276_v3, %v7280_v40 }
 0x94b   :  { %v13789_v61 = vcombine.high %v7277_v55, %v7281_v56 }
 0x94d   :  { %8741 = vmatpush1.bf16.msra.mxu1 %v13762_v58  ;;  %8827 = vmatpush1.bf16.msra.mxu0 %v13764_v37  ;;  %v13780_v58 = vcombine.low %v7269_v31, %v7273_v35  ;;  %v13787_v37 = vcombine.high %v7276_v3, %v7280_v40  ;;  %v7324_v35 = vld [vmem:[#allocation24 + $0x600] sm:$0xff] }
 0x94e   :  { %8753 = vmatprep.subr.bf16.mxu1 %v13771_v36  ;;  %8839 = vmatprep.subr.bf16.mxu0 %v13773_v6  ;;  %v7289_v36 = vld [vmem:[#allocation24 + $0x4e8] sm:$0xff]  ;;  %v13788_v6 = vcombine.low %v7277_v55, %v7281_v56  ;;  %v7328_v3 = vld [vmem:[#allocation24 + $0x620] sm:$0xff] }
 0x94f   :  { %v13835_v56 = vcombine.high %v7324_v35, %v7328_v3 }
 0x9e3   :  { %v7068_v12 = vpop.f32.mrb[24].mxu1  ;;  %v7111_v13 = vpop.f32.mrb[20].mxu0 }
 0x9e4   :  { %v7069_v14 = vadd.f32 %v7068_v12, %v6697_v60  ;;  %v7112_v16 = vadd.f32 %v7111_v13, %v6705_v9  ;;  %v7070_v17 = vpop.f32.mrb[25].mxu1  ;;  %v7113_v19 = vpop.f32.mrb[21].mxu0  ;;  %v13796_v12 = vcombine.low %v7285_v45, %v7289_v36 }
 0x9e5   :  { %v7071_v20 = vadd.f32 %v7070_v17, %v6701_v10  ;;  %v7114_v22 = vadd.f32 %v7113_v19, %v6709_v11  ;;  %v7072_v24 = vpop.f32.mrb[26].mxu1  ;;  %v7115_v25 = vpop.f32.mrb[22].mxu0  ;;  %v7304_v17 = vld [vmem:[#allocation24 + $0x560] sm:$0xff]  ;;  %v7301_v19 = vld [vmem:[#allocation24 + $0x548] sm:$0xff] }
 0x9e6   :  { %v7073_v26 = vadd.f32 %v7072_v24, %v6697_v60  ;;  %v7116_v27 = vadd.f32 %v7115_v25, %v6705_v9  ;;  %v7074_v28 = vpop.f32.mrb[27].mxu1  ;;  %v7117_v33 = vpop.f32.mrb[23].mxu0  ;;  %v7120_v59 = vmax.f32 %v7069_v14, 0.0  ;;  %v7122_v41 = vmax.f32 %v7112_v16, 0.0  ;;  %v7296_v60 = vld [vmem:[#allocation24 + $0x520] sm:$0xff]  ;;  %v7293_v9 = vld [vmem:[#allocation24 + $0x508] sm:$0xff] }
 0x9e7   :  { %v7075_v34 = vadd.f32 %v7074_v28, %v6701_v10  ;;  %v7118_v15 = vadd.f32 %v7117_v33, %v6709_v11  ;;  %v7121_v44 = vmax.f32 %v7071_v20, 0.0  ;;  %v7123_v18 = vmax.f32 %v7114_v22, 0.0  ;;  %v7297_v10 = vld [vmem:[#allocation24 + $0x528] sm:$0xff]  ;;  %v7300_v16 = vld [vmem:[#allocation24 + $0x540] sm:$0xff] }
 0x9e8   :  { %v7124_v42 = vmax.f32 %v7073_v26, 0.0  ;;  %v7126_v43 = vmax.f32 %v7116_v27, 0.0  ;;  %v13794_v11 = vcombine.low %v7284_v63, %v7288_v1  ;;  %v13803_v13 = vcombine.high %v7292_v8, %v7296_v60  ;;  %v7305_v20 = vld [vmem:[#allocation24 + $0x568] sm:$0xff]  ;;  %v7308_v27 = vld [vmem:[#allocation24 + $0x580] sm:$0xff] }
 0x9e9   :  { %v7125_v21 = vmax.f32 %v7075_v34, 0.0  ;;  %v7127_v47 = vmax.f32 %v7118_v15, 0.0  ;;  %v13805_v14 = vcombine.high %v7293_v9, %v7297_v10  ;;  %v13802_v22 = vcombine.low %v7292_v8, %v7296_v60  ;;  %v7312_v28 = vld [vmem:[#allocation24 + $0x5a0] sm:$0xff]  ;;  %v7309_v33 = vld [vmem:[#allocation24 + $0x588] sm:$0xff] }
 0x9ea   :  { %v17062_v29 = vpack.c.bf16 %v7124_v42, %v7120_v59  ;;  %v17064_v48 = vpack.c.bf16 %v7126_v43, %v7122_v41  ;;  %v13804_v24 = vcombine.low %v7293_v9, %v7297_v10  ;;  %v13811_v25 = vcombine.high %v7300_v16, %v7304_v17  ;;  %v7313_v34 = vld [vmem:[#allocation24 + $0x5a8] sm:$0xff]  ;;  %v7316_v43 = vld [vmem:[#allocation24 + $0x5c0] sm:$0xff] }
 0x9eb   :  { %v17066_v38 = vpack.c.bf16 %v7125_v21, %v7121_v44  ;;  %v17068_v51 = vpack.c.bf16 %v7127_v47, %v7123_v18  ;;  %v13813_v26 = vcombine.high %v7301_v19, %v7305_v20  ;;  %v13810_v15 = vcombine.low %v7300_v16, %v7304_v17  ;;  %v7320_v44 = vld [vmem:[#allocation24 + $0x5e0] sm:$0xff]  ;;  %v7317_v18 = vld [vmem:[#allocation24 + $0x5c8] sm:$0xff] }
 0x9ec   :  { %v13812_v59 = vcombine.low %v7301_v19, %v7305_v20  ;;  %v13819_v41 = vcombine.high %v7308_v27, %v7312_v28  ;;  %v13821_v42 = vcombine.high %v7309_v33, %v7313_v34  ;;  %v7321_v21 = vld [vmem:[#allocation24 + $0x5e8] sm:$0xff]  ;;  %v13818_v47 = vcombine.low %v7308_v27, %v7312_v28 }
 0x9ed   :  { %8742 = vmatprep.mubr.bf16.mxu1 %v17066_v38  ;;  %8828 = vmatprep.mubr.bf16.mxu0 %v17066_v38  ;;  %v13820_v23 = vcombine.low %v7309_v33, %v7313_v34  ;;  %v13827_v49 = vcombine.high %v7316_v43, %v7320_v44  ;;  %v13829_v31 = vcombine.high %v7317_v18, %v7321_v21  ;;  %v7345_v8 = vld [vmem:[#allocation24 + $0x6a8] sm:$0xff] }
 0x9ee   :  { %8743 = vmatmul.mubr.bf16.vlgmr.msra.gmra.mrb[28].mxu1 %v17062_v29  ;;  %8829 = vmatmul.mubr.bf16.vlgmr.msra.gmra.mrb[24].mxu0 %v17062_v29  ;;  %v13826_v40 = vcombine.low %v7316_v43, %v7320_v44  ;;  %v13828_v55 = vcombine.low %v7317_v18, %v7321_v21  ;;  %v7353_v16 = vld [vmem:[#allocation24 + $0x6e8] sm:$0xff] }
 0x9ef   :  { %8754 = vmatpush1.bf16.msra.mxu1 %v13770_v46  ;;  %8840 = vmatpush1.bf16.msra.mxu0 %v13772_v4  ;;  %v13795_v46 = vcombine.high %v7284_v63, %v7288_v1  ;;  %v13797_v4 = vcombine.high %v7285_v45, %v7289_v36  ;;  %v7337_v63 = vld [vmem:[#allocation24 + $0x668] sm:$0xff]  ;;  %v13834_v1 = vcombine.low %v7324_v35, %v7328_v3 }
 0x9f0   :  { %8785 = vmatprep.mubr.bf16.mxu1 %v17068_v51  ;;  %8871 = vmatprep.mubr.bf16.mxu0 %v17068_v51  ;;  %v7361_v27 = vld [vmem:[#allocation24 + $0x728] sm:$0xff] }
 0x9f1   :  { %8755 = vmatprep.subr.bf16.mxu1 %v13779_v52  ;;  %8841 = vmatprep.subr.bf16.mxu0 %v13781_v54  ;;  %v7325_v52 = vld [vmem:[#allocation24 + $0x608] sm:$0xff] }
 0x9f2   :  { %v7329_v54 = vld [vmem:[#allocation24 + $0x628] sm:$0xff] }
 0x9f3   :  { %8756 = vmatpush1.bf16.msra.mxu1 %v13778_v57  ;;  %8842 = vmatpush1.bf16.msra.mxu0 %v13780_v58  ;;  %v13837_v57 = vcombine.high %v7325_v52, %v7329_v54  ;;  %v7332_v58 = vld [vmem:[#allocation24 + $0x640] sm:$0xff]  ;;  %v13836_v45 = vcombine.low %v7325_v52, %v7329_v54  ;;  %v7369_v43 = vld [vmem:[#allocation24 + $0x768] sm:$0xff] }
 0x9f4   :  { %8757 = vmatprep.subr.bf16.mxu1 %v13787_v37  ;;  %8843 = vmatprep.subr.bf16.mxu0 %v13789_v61  ;;  %v7336_v37 = vld [vmem:[#allocation24 + $0x660] sm:$0xff]  ;;  %v7333_v61 = vld [vmem:[#allocation24 + $0x648] sm:$0xff] }
 0x9f5   :  { %v13843_v36 = vcombine.high %v7332_v58, %v7336_v37  ;;  %v13842_v60 = vcombine.low %v7332_v58, %v7336_v37  ;;  %v13844_v9 = vcombine.low %v7333_v61, %v7337_v63  ;;  %v7377_v35 = vld [vmem:[#allocation24 + $0x7a8] sm:$0xff] }
 0x9f6   :  { %v7385_v58 = vld [vmem:[#allocation24 + $0x7e8] sm:$0xff] }
 0x9f7   :  { %8758 = vmatpush1.bf16.msra.mxu1 %v13786_v50  ;;  %8844 = vmatpush1.bf16.msra.mxu0 %v13788_v6  ;;  %v13845_v50 = vcombine.high %v7333_v61, %v7337_v63  ;;  %v7340_v6 = vld [vmem:[#allocation24 + $0x680] sm:$0xff] }
 0x9f8   :  { %8759 = vmatprep.subr.bf16.mxu1 %v13795_v46  ;;  %8845 = vmatprep.subr.bf16.mxu0 %v13797_v4  ;;  %v7344_v46 = vld [vmem:[#allocation24 + $0x6a0] sm:$0xff]  ;;  %v7341_v4 = vld [vmem:[#allocation24 + $0x688] sm:$0xff] }
 0x9f9   :  { %v13851_v10 = vcombine.high %v7340_v6, %v7344_v46  ;;  %v13850_v17 = vcombine.low %v7340_v6, %v7344_v46  ;;  %v13852_v19 = vcombine.low %v7341_v4, %v7345_v8  ;;  %v7139_v6 = vld [vmem:[#allocation24 + $0x38] sm:$0xff] }
 0x9fb   :  { %8760 = vmatpush1.bf16.msra.mxu1 %v13794_v11  ;;  %8846 = vmatpush1.bf16.msra.mxu0 %v13796_v12  ;;  %v13853_v11 = vcombine.high %v7341_v4, %v7345_v8  ;;  %v7348_v12 = vld [vmem:[#allocation24 + $0x6c0] sm:$0xff] }
 0x9fc   :  { %8761 = vmatprep.subr.bf16.mxu1 %v13803_v13  ;;  %8847 = vmatprep.subr.bf16.mxu0 %v13805_v14  ;;  %v7352_v13 = vld [vmem:[#allocation24 + $0x6e0] sm:$0xff]  ;;  %v7349_v14 = vld [vmem:[#allocation24 + $0x6c8] sm:$0xff] }
 0x9fd   :  { %v13859_v20 = vcombine.high %v7348_v12, %v7352_v13  ;;  %v13858_v28 = vcombine.low %v7348_v12, %v7352_v13  ;;  %v13860_v33 = vcombine.low %v7349_v14, %v7353_v16  ;;  %v7147_v12 = vld [vmem:[#allocation24 + $0x78] sm:$0xff] }
 0x9ff   :  { %8762 = vmatpush1.bf16.msra.mxu1 %v13802_v22  ;;  %8848 = vmatpush1.bf16.msra.mxu0 %v13804_v24  ;;  %v13861_v22 = vcombine.high %v7349_v14, %v7353_v16  ;;  %v7356_v24 = vld [vmem:[#allocation24 + $0x700] sm:$0xff] }
 0xa00   :  { %8763 = vmatprep.subr.bf16.mxu1 %v13811_v25  ;;  %8849 = vmatprep.subr.bf16.mxu0 %v13813_v26  ;;  %v7360_v25 = vld [vmem:[#allocation24 + $0x720] sm:$0xff]  ;;  %v7357_v26 = vld [vmem:[#allocation24 + $0x708] sm:$0xff] }
 0xa01   :  { %v13867_v34 = vcombine.high %v7356_v24, %v7360_v25  ;;  %v13866_v44 = vcombine.low %v7356_v24, %v7360_v25  ;;  %v13868_v18 = vcombine.low %v7357_v26, %v7361_v27  ;;  %v7155_v24 = vld [vmem:[#allocation24 + $0xb8] sm:$0xff] }
 0xa03   :  { %8764 = vmatpush1.bf16.msra.mxu1 %v13810_v15  ;;  %8850 = vmatpush1.bf16.msra.mxu0 %v13812_v59  ;;  %v13869_v15 = vcombine.high %v7357_v26, %v7361_v27  ;;  %v7364_v59 = vld [vmem:[#allocation24 + $0x740] sm:$0xff] }
 0xa04   :  { %8765 = vmatprep.subr.bf16.mxu1 %v13819_v41  ;;  %8851 = vmatprep.subr.bf16.mxu0 %v13821_v42  ;;  %v7368_v41 = vld [vmem:[#allocation24 + $0x760] sm:$0xff]  ;;  %v7365_v42 = vld [vmem:[#allocation24 + $0x748] sm:$0xff] }
 0xa05   :  { %v13875_v21 = vcombine.high %v7364_v59, %v7368_v41  ;;  %v13874_v3 = vcombine.low %v7364_v59, %v7368_v41  ;;  %v13876_v52 = vcombine.low %v7365_v42, %v7369_v43  ;;  %v7163_v59 = vld [vmem:[#allocation24 + $0xf8] sm:$0xff] }
 0xa07   :  { %8766 = vmatpush1.bf16.msra.mxu1 %v13818_v47  ;;  %8852 = vmatpush1.bf16.msra.mxu0 %v13820_v23  ;;  %v13877_v47 = vcombine.high %v7365_v42, %v7369_v43  ;;  %v7372_v23 = vld [vmem:[#allocation24 + $0x780] sm:$0xff] }
 0xa08   :  { %8767 = vmatprep.subr.bf16.mxu1 %v13827_v49  ;;  %8853 = vmatprep.subr.bf16.mxu0 %v13829_v31  ;;  %v7376_v49 = vld [vmem:[#allocation24 + $0x7a0] sm:$0xff]  ;;  %v7373_v31 = vld [vmem:[#allocation24 + $0x788] sm:$0xff] }
 0xa09   :  { %v13883_v54 = vcombine.high %v7372_v23, %v7376_v49  ;;  %v13882_v37 = vcombine.low %v7372_v23, %v7376_v49  ;;  %v13884_v61 = vcombine.low %v7373_v31, %v7377_v35 }
 0xa0b   :  { %8768 = vmatpush1.bf16.msra.mxu1 %v13826_v40  ;;  %8854 = vmatpush1.bf16.msra.mxu0 %v13828_v55  ;;  %v13885_v40 = vcombine.high %v7373_v31, %v7377_v35  ;;  %v7380_v55 = vld [vmem:[#allocation24 + $0x7c0] sm:$0xff] }
 0xa0c   :  { %8769 = vmatprep.subr.bf16.mxu1 %v13835_v56  ;;  %8855 = vmatprep.subr.bf16.mxu0 %v13837_v57  ;;  %v7384_v56 = vld [vmem:[#allocation24 + $0x7e0] sm:$0xff]  ;;  %v7381_v57 = vld [vmem:[#allocation24 + $0x7c8] sm:$0xff] }
 0xa0d   :  { %v13891_v63 = vcombine.high %v7380_v55, %v7384_v56  ;;  %v13890_v46 = vcombine.low %v7380_v55, %v7384_v56  ;;  %v13892_v4 = vcombine.low %v7381_v57, %v7385_v58 }
 0xa0f   :  { %8770 = vmatpush1.bf16.msra.mxu1 %v13834_v1  ;;  %8856 = vmatpush1.bf16.msra.mxu0 %v13836_v45  ;;  %v13893_v1 = vcombine.high %v7381_v57, %v7385_v58  ;;  %v7134_v45 = vld [vmem:[#allocation24 + $0x10] sm:$0xff] }
 0xa10   :  { %8771 = vmatprep.subr.bf16.mxu1 %v13843_v36  ;;  %8857 = vmatprep.subr.bf16.mxu0 %v13845_v50  ;;  %v7138_v36 = vld [vmem:[#allocation24 + $0x30] sm:$0xff]  ;;  %v7135_v50 = vld [vmem:[#allocation24 + $0x18] sm:$0xff] }
 0xa11   :  { %v13647_v8 = vcombine.high %v7134_v45, %v7138_v36  ;;  %v13646_v13 = vcombine.low %v7134_v45, %v7138_v36  ;;  %v13648_v14 = vcombine.low %v7135_v50, %v7139_v6 }
 0xa13   :  { %8772 = vmatpush1.bf16.msra.mxu1 %v13842_v60  ;;  %8858 = vmatpush1.bf16.msra.mxu0 %v13844_v9  ;;  %v13649_v60 = vcombine.high %v7135_v50, %v7139_v6  ;;  %v7142_v9 = vld [vmem:[#allocation24 + $0x50] sm:$0xff] }
 0xa14   :  { %8773 = vmatprep.subr.bf16.mxu1 %v13851_v10  ;;  %8859 = vmatprep.subr.bf16.mxu0 %v13853_v11  ;;  %v7146_v10 = vld [vmem:[#allocation24 + $0x70] sm:$0xff]  ;;  %v7143_v11 = vld [vmem:[#allocation24 + $0x58] sm:$0xff] }
 0xa15   :  { %v13655_v16 = vcombine.high %v7142_v9, %v7146_v10  ;;  %v13654_v25 = vcombine.low %v7142_v9, %v7146_v10  ;;  %v13656_v26 = vcombine.low %v7143_v11, %v7147_v12 }
 0xa17   :  { %8774 = vmatpush1.bf16.msra.mxu1 %v13850_v17  ;;  %8860 = vmatpush1.bf16.msra.mxu0 %v13852_v19  ;;  %v13657_v17 = vcombine.high %v7143_v11, %v7147_v12  ;;  %v7150_v19 = vld [vmem:[#allocation24 + $0x90] sm:$0xff] }
 0xa18   :  { %8775 = vmatprep.subr.bf16.mxu1 %v13859_v20  ;;  %8861 = vmatprep.subr.bf16.mxu0 %v13861_v22  ;;  %v7154_v20 = vld [vmem:[#allocation24 + $0xb0] sm:$0xff]  ;;  %v7151_v22 = vld [vmem:[#allocation24 + $0x98] sm:$0xff] }
 0xa19   :  { %v13663_v27 = vcombine.high %v7150_v19, %v7154_v20  ;;  %v13662_v41 = vcombine.low %v7150_v19, %v7154_v20  ;;  %v13664_v42 = vcombine.low %v7151_v22, %v7155_v24 }
 0xa1b   :  { %8776 = vmatpush1.bf16.msra.mxu1 %v13858_v28  ;;  %8862 = vmatpush1.bf16.msra.mxu0 %v13860_v33  ;;  %v13665_v28 = vcombine.high %v7151_v22, %v7155_v24  ;;  %v7158_v33 = vld [vmem:[#allocation24 + $0xd0] sm:$0xff] }
 0xa1c   :  { %8777 = vmatprep.subr.bf16.mxu1 %v13867_v34  ;;  %8863 = vmatprep.subr.bf16.mxu0 %v13869_v15  ;;  %v7162_v34 = vld [vmem:[#allocation24 + $0xf0] sm:$0xff]  ;;  %v7159_v15 = vld [vmem:[#allocation24 + $0xd8] sm:$0xff] }
 0xa1d   :  { %v13671_v43 = vcombine.high %v7158_v33, %v7162_v34  ;;  %v13670_v23 = vcombine.low %v7158_v33, %v7162_v34  ;;  %v13672_v49 = vcombine.low %v7159_v15, %v7163_v59 }
 0xa1f   :  { %8778 = vmatpush1.bf16.msra.mxu1 %v13866_v44  ;;  %8864 = vmatpush1.bf16.msra.mxu0 %v13868_v18  ;;  %v13673_v44 = vcombine.high %v7159_v15, %v7163_v59  ;;  %v7166_v18 = vld [vmem:[#allocation24 + $0x110] sm:$0xff] }
 0xa20   :  { %8779 = vmatprep.subr.bf16.mxu1 %v13875_v21  ;;  %8865 = vmatprep.subr.bf16.mxu0 %v13877_v47  ;;  %v7170_v21 = vld [vmem:[#allocation24 + $0x130] sm:$0xff]  ;;  %v7171_v47 = vld [vmem:[#allocation24 + $0x138] sm:$0xff] }
 0xa21   :  { %v13679_v31 = vcombine.high %v7166_v18, %v7170_v21  ;;  %v13678_v55 = vcombine.low %v7166_v18, %v7170_v21 }
 0xa23   :  { %8780 = vmatpush1.bf16.msra.mxu1 %v13874_v3  ;;  %8866 = vmatpush1.bf16.msra.mxu0 %v13876_v52  ;;  %v7174_v3 = vld [vmem:[#allocation24 + $0x150] sm:$0xff] }
 0xa24   :  { %8781 = vmatprep.subr.bf16.mxu1 %v13883_v54  ;;  %8867 = vmatprep.subr.bf16.mxu0 %v13885_v40  ;;  %v7178_v52 = vld [vmem:[#allocation24 + $0x170] sm:$0xff]  ;;  %v7175_v54 = vld [vmem:[#allocation24 + $0x158] sm:$0xff] }
 0xa25   :  { %v7179_v40 = vld [vmem:[#allocation24 + $0x178] sm:$0xff]  ;;  %v13687_v57 = vcombine.high %v7174_v3, %v7178_v52  ;;  %v13686_v45 = vcombine.low %v7174_v3, %v7178_v52 }
 0xa26   :  { %v13689_v58 = vcombine.high %v7175_v54, %v7179_v40  ;;  %v13688_v36 = vcombine.low %v7175_v54, %v7179_v40 }
 0xa27   :  { %8782 = vmatpush1.bf16.msra.mxu1 %v13882_v37  ;;  %8868 = vmatpush1.bf16.msra.mxu0 %v13884_v61  ;;  %v7182_v37 = vld [vmem:[#allocation24 + $0x190] sm:$0xff] }
 0xa28   :  { %8783 = vmatprep.subr.bf16.mxu1 %v13891_v63  ;;  %8869 = vmatprep.subr.bf16.mxu0 %v13893_v1  ;;  %v7186_v61 = vld [vmem:[#allocation24 + $0x1b0] sm:$0xff]  ;;  %v7183_v63 = vld [vmem:[#allocation24 + $0x198] sm:$0xff] }
 0xa29   :  { %v7187_v1 = vld [vmem:[#allocation24 + $0x1b8] sm:$0xff]  ;;  %v13695_v50 = vcombine.high %v7182_v37, %v7186_v61  ;;  %v13694_v9 = vcombine.low %v7182_v37, %v7186_v61 }
 0xa2a   :  { %v13697_v6 = vcombine.high %v7183_v63, %v7187_v1  ;;  %v13696_v10 = vcombine.low %v7183_v63, %v7187_v1 }
 0xa2b   :  { %8784 = vmatpush1.bf16.msra.mxu1 %v13890_v46  ;;  %8870 = vmatpush1.bf16.msra.mxu0 %v13892_v4  ;;  %v7190_v46 = vld [vmem:[#allocation24 + $0x1d0] sm:$0xff] }
 0xa2c   :  { %8882 = vmatprep.subr.bf16.mxu1 %v13647_v8  ;;  %8968 = vmatprep.subr.bf16.mxu0 %v13649_v60  ;;  %v7194_v4 = vld [vmem:[#allocation24 + $0x1f0] sm:$0xff]  ;;  %v7191_v8 = vld [vmem:[#allocation24 + $0x1d8] sm:$0xff] }
 0xa2d   :  { %v7195_v60 = vld [vmem:[#allocation24 + $0x1f8] sm:$0xff]  ;;  %v13703_v11 = vcombine.high %v7190_v46, %v7194_v4  ;;  %v13702_v19 = vcombine.low %v7190_v46, %v7194_v4 }
 0xa2e   :  { %8786 = vmatmul.mubr.bf16.vlgmr.msra.gmra.mrb[28].mxu1 %v17064_v48  ;;  %8872 = vmatmul.mubr.bf16.vlgmr.msra.gmra.mrb[24].mxu0 %v17064_v48  ;;  %v13705_v12 = vcombine.high %v7191_v8, %v7195_v60  ;;  %v13704_v20 = vcombine.low %v7191_v8, %v7195_v60 }
 0xa2f   :  { %8883 = vmatpush1.bf16.msra.mxu1 %v13646_v13  ;;  %8914 = vmatprep.mubr.bf16.mxu1 %v17066_v38  ;;  %v7198_v13 = vld [vmem:[#allocation24 + $0x210] sm:$0xff] }
 0xa30   :  { %8969 = vmatpush1.bf16.msra.mxu0 %v13648_v14  ;;  %9000 = vmatprep.mubr.bf16.mxu0 %v17066_v38  ;;  %v7167_v38 = vld [vmem:[#allocation24 + $0x118] sm:$0xff]  ;;  %v7202_v14 = vld [vmem:[#allocation24 + $0x230] sm:$0xff] }
 0xa31   :  { %8884 = vmatprep.subr.bf16.mxu1 %v13655_v16  ;;  %8970 = vmatprep.subr.bf16.mxu0 %v13657_v17  ;;  %v13681_v35 = vcombine.high %v7167_v38, %v7171_v47  ;;  %v13680_v56 = vcombine.low %v7167_v38, %v7171_v47  ;;  %v7199_v16 = vld [vmem:[#allocation24 + $0x218] sm:$0xff]  ;;  %v13711_v22 = vcombine.high %v7198_v13, %v7202_v14 }
 0xa32   :  { %v7203_v17 = vld [vmem:[#allocation24 + $0x238] sm:$0xff]  ;;  %v13710_v33 = vcombine.low %v7198_v13, %v7202_v14 }
 0xa33   :  { %8885 = vmatpush1.bf16.msra.mxu1 %v13654_v25  ;;  %v13713_v24 = vcombine.high %v7199_v16, %v7203_v17  ;;  %v7206_v25 = vld [vmem:[#allocation24 + $0x250] sm:$0xff]  ;;  %v13712_v34 = vcombine.low %v7199_v16, %v7203_v17 }
 0xa34   :  { %8971 = vmatpush1.bf16.msra.mxu0 %v13656_v26  ;;  %8886 = vmatprep.subr.bf16.mxu1 %v13663_v27  ;;  %v7210_v26 = vld [vmem:[#allocation24 + $0x270] sm:$0xff]  ;;  %v7207_v27 = vld [vmem:[#allocation24 + $0x258] sm:$0xff] }
 0xa35   :  { %8972 = vmatprep.subr.bf16.mxu0 %v13665_v28  ;;  %v7211_v28 = vld [vmem:[#allocation24 + $0x278] sm:$0xff]  ;;  %v13719_v15 = vcombine.high %v7206_v25, %v7210_v26  ;;  %v13718_v18 = vcombine.low %v7206_v25, %v7210_v26 }
 0xa36   :  { %v13721_v59 = vcombine.high %v7207_v27, %v7211_v28  ;;  %v13720_v21 = vcombine.low %v7207_v27, %v7211_v28 }
 0xa37   :  { %8887 = vmatpush1.bf16.msra.mxu1 %v13662_v41  ;;  %v7214_v41 = vld [vmem:[#allocation24 + $0x290] sm:$0xff] }
 0xa38   :  { %8973 = vmatpush1.bf16.msra.mxu0 %v13664_v42  ;;  %8888 = vmatprep.subr.bf16.mxu1 %v13671_v43  ;;  %v7218_v42 = vld [vmem:[#allocation24 + $0x2b0] sm:$0xff]  ;;  %v7215_v43 = vld [vmem:[#allocation24 + $0x298] sm:$0xff] }
 0xa39   :  { %8974 = vmatprep.subr.bf16.mxu0 %v13673_v44  ;;  %v7219_v44 = vld [vmem:[#allocation24 + $0x2b8] sm:$0xff]  ;;  %v13727_v38 = vcombine.high %v7214_v41, %v7218_v42  ;;  %v13726_v3 = vcombine.low %v7214_v41, %v7218_v42 }
 0xa3a   :  { %v13729_v47 = vcombine.high %v7215_v43, %v7219_v44  ;;  %v13728_v52 = vcombine.low %v7215_v43, %v7219_v44 }
 0xa3b   :  { %8889 = vmatpush1.bf16.msra.mxu1 %v13670_v23  ;;  %v7222_v23 = vld [vmem:[#allocation24 + $0x2d0] sm:$0xff] }
 0xa3c   :  { %8975 = vmatpush1.bf16.msra.mxu0 %v13672_v49  ;;  %8890 = vmatprep.subr.bf16.mxu1 %v13679_v31  ;;  %v7226_v49 = vld [vmem:[#allocation24 + $0x2f0] sm:$0xff]  ;;  %v7223_v31 = vld [vmem:[#allocation24 + $0x2d8] sm:$0xff] }
 0xa3d   :  { %8976 = vmatprep.subr.bf16.mxu0 %v13681_v35  ;;  %v7227_v35 = vld [vmem:[#allocation24 + $0x2f8] sm:$0xff]  ;;  %v13735_v54 = vcombine.high %v7222_v23, %v7226_v49  ;;  %v13734_v37 = vcombine.low %v7222_v23, %v7226_v49 }
 0xa3e   :  { %v13737_v40 = vcombine.high %v7223_v31, %v7227_v35  ;;  %v13736_v61 = vcombine.low %v7223_v31, %v7227_v35  ;;  %v7275_v23 = vld [vmem:[#allocation24 + $0x478] sm:$0xff]  ;;  %v7278_v35 = vld [vmem:[#allocation24 + $0x490] sm:$0xff] }
 0xa3f   :  { %8891 = vmatpush1.bf16.msra.mxu1 %v13678_v55  ;;  %v7230_v55 = vld [vmem:[#allocation24 + $0x310] sm:$0xff] }
 0xa40   :  { %8977 = vmatpush1.bf16.msra.mxu0 %v13680_v56  ;;  %8892 = vmatprep.subr.bf16.mxu1 %v13687_v57  ;;  %v7234_v56 = vld [vmem:[#allocation24 + $0x330] sm:$0xff]  ;;  %v7231_v57 = vld [vmem:[#allocation24 + $0x318] sm:$0xff] }
 0xa41   :  { %8978 = vmatprep.subr.bf16.mxu0 %v13689_v58  ;;  %v7235_v58 = vld [vmem:[#allocation24 + $0x338] sm:$0xff]  ;;  %v13743_v63 = vcombine.high %v7230_v55, %v7234_v56  ;;  %v13742_v46 = vcombine.low %v7230_v55, %v7234_v56 }
 0xa42   :  { %v13745_v1 = vcombine.high %v7231_v57, %v7235_v58  ;;  %v13744_v4 = vcombine.low %v7231_v57, %v7235_v58 }
 0xa43   :  { %8893 = vmatpush1.bf16.msra.mxu1 %v13686_v45  ;;  %v7238_v45 = vld [vmem:[#allocation24 + $0x350] sm:$0xff] }
 0xa44   :  { %8979 = vmatpush1.bf16.msra.mxu0 %v13688_v36  ;;  %8894 = vmatprep.subr.bf16.mxu1 %v13695_v50  ;;  %v7242_v36 = vld [vmem:[#allocation24 + $0x370] sm:$0xff]  ;;  %v7239_v50 = vld [vmem:[#allocation24 + $0x358] sm:$0xff] }
 0xa45   :  { %8980 = vmatprep.subr.bf16.mxu0 %v13697_v6  ;;  %v7243_v6 = vld [vmem:[#allocation24 + $0x378] sm:$0xff]  ;;  %v13751_v8 = vcombine.high %v7238_v45, %v7242_v36  ;;  %v13750_v13 = vcombine.low %v7238_v45, %v7242_v36 }
 0xa46   :  { %v13753_v60 = vcombine.high %v7239_v50, %v7243_v6  ;;  %v13752_v14 = vcombine.low %v7239_v50, %v7243_v6  ;;  %v7294_v6 = vld [vmem:[#allocation24 + $0x510] sm:$0xff] }
 0xa47   :  { %8895 = vmatpush1.bf16.msra.mxu1 %v13694_v9  ;;  %v7246_v9 = vld [vmem:[#allocation24 + $0x390] sm:$0xff] }
 0xa48   :  { %8981 = vmatpush1.bf16.msra.mxu0 %v13696_v10  ;;  %8896 = vmatprep.subr.bf16.mxu1 %v13703_v11  ;;  %v7250_v10 = vld [vmem:[#allocation24 + $0x3b0] sm:$0xff]  ;;  %v7247_v11 = vld [vmem:[#allocation24 + $0x398] sm:$0xff] }
 0xa49   :  { %8982 = vmatprep.subr.bf16.mxu0 %v13705_v12  ;;  %v7251_v12 = vld [vmem:[#allocation24 + $0x3b8] sm:$0xff]  ;;  %v13759_v16 = vcombine.high %v7246_v9, %v7250_v10  ;;  %v13758_v25 = vcombine.low %v7246_v9, %v7250_v10 }
 0xa4a   :  { %v13761_v17 = vcombine.high %v7247_v11, %v7251_v12  ;;  %v13760_v26 = vcombine.low %v7247_v11, %v7251_v12  ;;  %v7302_v11 = vld [vmem:[#allocation24 + $0x550] sm:$0xff] }
 0xa4b   :  { %8897 = vmatpush1.bf16.msra.mxu1 %v13702_v19  ;;  %v7254_v19 = vld [vmem:[#allocation24 + $0x3d0] sm:$0xff] }
 0xa4c   :  { %8983 = vmatpush1.bf16.msra.mxu0 %v13704_v20  ;;  %8898 = vmatprep.subr.bf16.mxu1 %v13711_v22  ;;  %v7258_v20 = vld [vmem:[#allocation24 + $0x3f0] sm:$0xff]  ;;  %v7255_v22 = vld [vmem:[#allocation24 + $0x3d8] sm:$0xff] }
 0xa4d   :  { %8984 = vmatprep.subr.bf16.mxu0 %v13713_v24  ;;  %v7259_v24 = vld [vmem:[#allocation24 + $0x3f8] sm:$0xff]  ;;  %v13767_v27 = vcombine.high %v7254_v19, %v7258_v20  ;;  %v13766_v41 = vcombine.low %v7254_v19, %v7258_v20  ;;  %v7306_v12 = vld [vmem:[#allocation24 + $0x570] sm:$0xff] }
 0xa4e   :  { %v13769_v28 = vcombine.high %v7255_v22, %v7259_v24  ;;  %v13768_v42 = vcombine.low %v7255_v22, %v7259_v24  ;;  %v13815_v19 = vcombine.high %v7302_v11, %v7306_v12  ;;  %v7310_v22 = vld [vmem:[#allocation24 + $0x590] sm:$0xff] }
 0xa4f   :  { %8899 = vmatpush1.bf16.msra.mxu1 %v13710_v33  ;;  %v7262_v33 = vld [vmem:[#allocation24 + $0x410] sm:$0xff] }
 0xa50   :  { %8985 = vmatpush1.bf16.msra.mxu0 %v13712_v34  ;;  %8900 = vmatprep.subr.bf16.mxu1 %v13719_v15  ;;  %v7266_v34 = vld [vmem:[#allocation24 + $0x430] sm:$0xff]  ;;  %v7263_v15 = vld [vmem:[#allocation24 + $0x418] sm:$0xff] }
 0xa51   :  { %8986 = vmatprep.subr.bf16.mxu0 %v13721_v59  ;;  %v7267_v59 = vld [vmem:[#allocation24 + $0x438] sm:$0xff]  ;;  %v13775_v43 = vcombine.high %v7262_v33, %v7266_v34  ;;  %v7314_v24 = vld [vmem:[#allocation24 + $0x5b0] sm:$0xff] }
 0xa52   :  { %v13777_v44 = vcombine.high %v7263_v15, %v7267_v59  ;;  %v13776_v49 = vcombine.low %v7263_v15, %v7267_v59  ;;  %v7318_v15 = vld [vmem:[#allocation24 + $0x5d0] sm:$0xff] }
 0xa53   :  { %8901 = vmatpush1.bf16.msra.mxu1 %v13718_v18  ;;  %v7270_v18 = vld [vmem:[#allocation24 + $0x450] sm:$0xff] }
 0xa54   :  { %8987 = vmatpush1.bf16.msra.mxu0 %v13720_v21  ;;  %8902 = vmatprep.subr.bf16.mxu1 %v13727_v38  ;;  %v7274_v21 = vld [vmem:[#allocation24 + $0x470] sm:$0xff]  ;;  %v13774_v38 = vcombine.low %v7262_v33, %v7266_v34  ;;  %v13823_v33 = vcombine.high %v7310_v22, %v7314_v24 }
 0xa55   :  { %8988 = vmatprep.subr.bf16.mxu0 %v13729_v47  ;;  %v7271_v47 = vld [vmem:[#allocation24 + $0x458] sm:$0xff]  ;;  %v13783_v31 = vcombine.high %v7270_v18, %v7274_v21  ;;  %v13782_v55 = vcombine.low %v7270_v18, %v7274_v21  ;;  %v7322_v59 = vld [vmem:[#allocation24 + $0x5f0] sm:$0xff] }
 0xa56   :  { %v13784_v56 = vcombine.low %v7271_v47, %v7275_v23  ;;  %v13831_v18 = vcombine.high %v7318_v15, %v7322_v59 }
 0xa57   :  { %8903 = vmatpush1.bf16.msra.mxu1 %v13726_v3  ;;  %v7282_v3 = vld [vmem:[#allocation24 + $0x4b0] sm:$0xff] }
 0xa58   :  { %8989 = vmatpush1.bf16.msra.mxu0 %v13728_v52  ;;  %8904 = vmatprep.subr.bf16.mxu1 %v13735_v54  ;;  %v13785_v52 = vcombine.high %v7271_v47, %v7275_v23  ;;  %v7279_v54 = vld [vmem:[#allocation24 + $0x498] sm:$0xff]  ;;  %v13791_v57 = vcombine.high %v7278_v35, %v7282_v3  ;;  %v13790_v45 = vcombine.low %v7278_v35, %v7282_v3  ;;  %v7330_v47 = vld [vmem:[#allocation24 + $0x630] sm:$0xff] }
 0xa59   :  { %8990 = vmatprep.subr.bf16.mxu0 %v13737_v40  ;;  %v7283_v40 = vld [vmem:[#allocation24 + $0x4b8] sm:$0xff] }
 0xa5a   :  { %v13793_v58 = vcombine.high %v7279_v54, %v7283_v40  ;;  %v7327_v23 = vld [vmem:[#allocation24 + $0x618] sm:$0xff] }
 0xa5b   :  { %8905 = vmatpush1.bf16.msra.mxu1 %v13734_v37  ;;  %v7286_v37 = vld [vmem:[#allocation24 + $0x4d0] sm:$0xff] }
 0xa5c   :  { %8991 = vmatpush1.bf16.msra.mxu0 %v13736_v61  ;;  %8906 = vmatprep.subr.bf16.mxu1 %v13743_v63  ;;  %v7290_v61 = vld [vmem:[#allocation24 + $0x4f0] sm:$0xff]  ;;  %v7287_v63 = vld [vmem:[#allocation24 + $0x4d8] sm:$0xff] }
 0xa5d   :  { %8992 = vmatprep.subr.bf16.mxu0 %v13745_v1  ;;  %v7291_v1 = vld [vmem:[#allocation24 + $0x4f8] sm:$0xff]  ;;  %v13799_v36 = vcombine.high %v7286_v37, %v7290_v61 }
 0xa5e   :  { %v13801_v50 = vcombine.high %v7287_v63, %v7291_v1 }
 0xa5f   :  { %8907 = vmatpush1.bf16.msra.mxu1 %v13742_v46  ;;  %v7298_v46 = vld [vmem:[#allocation24 + $0x530] sm:$0xff] }
 0xa60   :  { %8993 = vmatpush1.bf16.msra.mxu0 %v13744_v4  ;;  %8908 = vmatprep.subr.bf16.mxu1 %v13751_v8  ;;  %v7295_v4 = vld [vmem:[#allocation24 + $0x518] sm:$0xff]  ;;  %v13807_v9 = vcombine.high %v7294_v6, %v7298_v46 }
 0xa61   :  { %8994 = vmatprep.subr.bf16.mxu0 %v13753_v60  ;;  %v7299_v8 = vld [vmem:[#allocation24 + $0x538] sm:$0xff]  ;;  %v13800_v60 = vcombine.low %v7287_v63, %v7291_v1  ;;  %v7342_v63 = vld [vmem:[#allocation24 + $0x690] sm:$0xff] }
 0xa62   :  { %v13809_v10 = vcombine.high %v7295_v4, %v7299_v8  ;;  %v7346_v1 = vld [vmem:[#allocation24 + $0x6b0] sm:$0xff] }
 0xa63   :  { %8909 = vmatpush1.bf16.msra.mxu1 %v13750_v13  ;;  %v7303_v13 = vld [vmem:[#allocation24 + $0x558] sm:$0xff] }
 0xa64   :  { %8995 = vmatpush1.bf16.msra.mxu0 %v13752_v14  ;;  %8910 = vmatprep.subr.bf16.mxu1 %v13759_v16  ;;  %v7307_v14 = vld [vmem:[#allocation24 + $0x578] sm:$0xff]  ;;  %v13806_v16 = vcombine.low %v7294_v6, %v7298_v46  ;;  %v13855_v6 = vcombine.high %v7342_v63, %v7346_v1 }
 0xa65   :  { %8996 = vmatprep.subr.bf16.mxu0 %v13761_v17  ;;  %v13808_v17 = vcombine.low %v7295_v4, %v7299_v8  ;;  %v13817_v20 = vcombine.high %v7303_v13, %v7307_v14  ;;  %v7350_v4 = vld [vmem:[#allocation24 + $0x6d0] sm:$0xff] }
 0xa66   :  { %v7354_v8 = vld [vmem:[#allocation24 + $0x6f0] sm:$0xff] }
 0xa67   :  { %8911 = vmatpush1.bf16.msra.mxu1 %v13758_v25  ;;  %v7311_v25 = vld [vmem:[#allocation24 + $0x598] sm:$0xff] }
 0xa68   :  { %8997 = vmatpush1.bf16.msra.mxu0 %v13760_v26  ;;  %8912 = vmatprep.subr.bf16.mxu1 %v13767_v27  ;;  %v7315_v26 = vld [vmem:[#allocation24 + $0x5b8] sm:$0xff]  ;;  %v13814_v27 = vcombine.low %v7302_v11, %v7306_v12  ;;  %v13863_v11 = vcombine.high %v7350_v4, %v7354_v8 }
 0xa69   :  { %8998 = vmatprep.subr.bf16.mxu0 %v13769_v28  ;;  %v13816_v28 = vcombine.low %v7303_v13, %v7307_v14  ;;  %v13825_v34 = vcombine.high %v7311_v25, %v7315_v26  ;;  %v7358_v13 = vld [vmem:[#allocation24 + $0x710] sm:$0xff] }
 0xa6a   :  { %v7362_v14 = vld [vmem:[#allocation24 + $0x730] sm:$0xff] }
 0xa6b   :  { %8913 = vmatpush1.bf16.msra.mxu1 %v13766_v41  ;;  %v7319_v41 = vld [vmem:[#allocation24 + $0x5d8] sm:$0xff] }
 0xa6c   :  { %8999 = vmatpush1.bf16.msra.mxu0 %v13768_v42  ;;  %8925 = vmatprep.subr.bf16.mxu1 %v13775_v43  ;;  %v7323_v42 = vld [vmem:[#allocation24 + $0x5f8] sm:$0xff]  ;;  %v13822_v43 = vcombine.low %v7310_v22, %v7314_v24  ;;  %v13871_v22 = vcombine.high %v7358_v13, %v7362_v14 }
 0xa6d   :  { %9011 = vmatprep.subr.bf16.mxu0 %v13777_v44  ;;  %v13824_v44 = vcombine.low %v7311_v25, %v7315_v26  ;;  %v13833_v21 = vcombine.high %v7319_v41, %v7323_v42  ;;  %v13832_v35 = vcombine.low %v7319_v41, %v7323_v42  ;;  %v7366_v25 = vld [vmem:[#allocation24 + $0x750] sm:$0xff] }
 0xa6e   :  { %8915 = vmatmul.mubr.bf16.vlgmr.msra.gmra.mrb[32].mxu1 %v17062_v29  ;;  %v7370_v26 = vld [vmem:[#allocation24 + $0x770] sm:$0xff] }
 0xa6f   :  { %9001 = vmatmul.mubr.bf16.vlgmr.msra.gmra.mrb[28].mxu0 %v17062_v29  ;;  %8926 = vmatpush1.bf16.msra.mxu1 %v13774_v38  ;;  %v13792_v29 = vcombine.low %v7279_v54, %v7283_v40  ;;  %v7326_v38 = vld [vmem:[#allocation24 + $0x610] sm:$0xff] }
 0xa70   :  { %8957 = vmatprep.mubr.bf16.mxu1 %v17068_v51  ;;  %9012 = vmatpush1.bf16.msra.mxu0 %v13776_v49  ;;  %v7331_v49 = vld [vmem:[#allocation24 + $0x638] sm:$0xff]  ;;  %v13839_v3 = vcombine.high %v7326_v38, %v7330_v47  ;;  %v7334_v54 = vld [vmem:[#allocation24 + $0x650] sm:$0xff] }
 0xa71   :  { %9043 = vmatprep.mubr.bf16.mxu0 %v17068_v51  ;;  %8927 = vmatprep.subr.bf16.mxu1 %v13783_v31  ;;  %v13798_v51 = vcombine.low %v7286_v37, %v7290_v61  ;;  %v13830_v31 = vcombine.low %v7318_v15, %v7322_v59  ;;  %v7338_v40 = vld [vmem:[#allocation24 + $0x670] sm:$0xff]  ;;  %v13879_v15 = vcombine.high %v7366_v25, %v7370_v26 }
 0xa72   :  { %9013 = vmatprep.subr.bf16.mxu0 %v13785_v52  ;;  %v13841_v52 = vcombine.high %v7327_v23, %v7331_v49  ;;  %v13847_v37 = vcombine.high %v7334_v54, %v7338_v40  ;;  %v7374_v41 = vld [vmem:[#allocation24 + $0x790] sm:$0xff] }
 0xa73   :  { %8928 = vmatpush1.bf16.msra.mxu1 %v13782_v55  ;;  %v7335_v55 = vld [vmem:[#allocation24 + $0x658] sm:$0xff]  ;;  %v7378_v42 = vld [vmem:[#allocation24 + $0x7b0] sm:$0xff] }
 0xa74   :  { %9014 = vmatpush1.bf16.msra.mxu0 %v13784_v56  ;;  %8929 = vmatprep.subr.bf16.mxu1 %v13791_v57  ;;  %v7339_v56 = vld [vmem:[#allocation24 + $0x678] sm:$0xff]  ;;  %v13838_v57 = vcombine.low %v7326_v38, %v7330_v47  ;;  %v13887_v38 = vcombine.high %v7374_v41, %v7378_v42 }
 0xa75   :  { %9015 = vmatprep.subr.bf16.mxu0 %v13793_v58  ;;  %v13840_v58 = vcombine.low %v7327_v23, %v7331_v49  ;;  %v13849_v61 = vcombine.high %v7335_v55, %v7339_v56  ;;  %v7382_v23 = vld [vmem:[#allocation24 + $0x7d0] sm:$0xff] }
 0xa76   :  { %v7386_v49 = vld [vmem:[#allocation24 + $0x7f0] sm:$0xff] }
 0xa77   :  { %8930 = vmatpush1.bf16.msra.mxu1 %v13790_v45  ;;  %v7343_v45 = vld [vmem:[#allocation24 + $0x698] sm:$0xff] }
 0xa78   :  { %9016 = vmatpush1.bf16.msra.mxu0 %v13792_v29  ;;  %8931 = vmatprep.subr.bf16.mxu1 %v13799_v36  ;;  %v7347_v29 = vld [vmem:[#allocation24 + $0x6b8] sm:$0xff]  ;;  %v13846_v36 = vcombine.low %v7334_v54, %v7338_v40  ;;  %v13895_v54 = vcombine.high %v7382_v23, %v7386_v49 }
 0xa79   :  { %9017 = vmatprep.subr.bf16.mxu0 %v13801_v50  ;;  %v13848_v50 = vcombine.low %v7335_v55, %v7339_v56  ;;  %v13857_v46 = vcombine.high %v7343_v45, %v7347_v29  ;;  %v13894_v55 = vcombine.low %v7382_v23, %v7386_v49  ;;  %v15435_v23 = vld [vmem:[#allocation27 + $0x274] ss:$28 sps:$4 sm:$0xff]   ;;  %v15430_v49 = vld [vmem:[#allocation27 + $0x268] ss:$28 sps:$4 sm:$0xff]  }
 0xa7b   :  { %8932 = vmatpush1.bf16.msra.mxu1 %v13798_v51  ;;  %v7351_v51 = vld [vmem:[#allocation24 + $0x6d8] sm:$0xff] }
 0xa7c   :  { %9018 = vmatpush1.bf16.msra.mxu0 %v13800_v60  ;;  %8933 = vmatprep.subr.bf16.mxu1 %v13807_v9  ;;  %v7355_v60 = vld [vmem:[#allocation24 + $0x6f8] sm:$0xff]  ;;  %v13854_v9 = vcombine.low %v7342_v63, %v7346_v1  ;;  %v15372_v63 = vld [vmem:[#allocation27 + $0x3c] ss:$28 sps:$4 sm:$0xff]   ;;  %v15375_v1 = vld [vmem:[#allocation27 + $0x44] ss:$28 sps:$4 sm:$0xff]  }
 0xa7d   :  { %9019 = vmatprep.subr.bf16.mxu0 %v13809_v10  ;;  %v13856_v10 = vcombine.low %v7343_v45, %v7347_v29  ;;  %v13865_v12 = vcombine.high %v7351_v51, %v7355_v60  ;;  %v15370_v45 = vld [vmem:[#allocation27 + $0x38] ss:$28 sps:$4 sm:$0xff]   ;;  %v15373_v29 = vld [vmem:[#allocation27 + $0x40] ss:$28 sps:$4 sm:$0xff]  }
 0xa7f   :  { %8934 = vmatpush1.bf16.msra.mxu1 %v13806_v16  ;;  %v7359_v16 = vld [vmem:[#allocation24 + $0x718] sm:$0xff] }
 0xa80   :  { %9020 = vmatpush1.bf16.msra.mxu0 %v13808_v17  ;;  %8935 = vmatprep.subr.bf16.mxu1 %v13815_v19  ;;  %v7363_v17 = vld [vmem:[#allocation24 + $0x738] sm:$0xff]  ;;  %v13862_v19 = vcombine.low %v7350_v4, %v7354_v8  ;;  %v15384_v4 = vld [vmem:[#allocation27 + $0xac] ss:$28 sps:$4 sm:$0xff]  }
 0xa81   :  { %9021 = vmatprep.subr.bf16.mxu0 %v13817_v20  ;;  %v13864_v20 = vcombine.low %v7351_v51, %v7355_v60  ;;  %v13873_v24 = vcombine.high %v7359_v16, %v7363_v17  ;;  %v15387_v8 = vld [vmem:[#allocation27 + $0xb4] ss:$28 sps:$4 sm:$0xff]   ;;  %v15382_v51 = vld [vmem:[#allocation27 + $0xa8] ss:$28 sps:$4 sm:$0xff]  }
 0xa82   :  { %v15390_v60 = vld [vmem:[#allocation27 + $0xe4] ss:$28 sps:$4 sm:$0xff]  }
 0xa83   :  { %8936 = vmatpush1.bf16.msra.mxu1 %v13814_v27  ;;  %v7367_v27 = vld [vmem:[#allocation24 + $0x758] sm:$0xff] }
 0xa84   :  { %9022 = vmatpush1.bf16.msra.mxu0 %v13816_v28  ;;  %8937 = vmatprep.subr.bf16.mxu1 %v13823_v33  ;;  %v7371_v28 = vld [vmem:[#allocation24 + $0x778] sm:$0xff]  ;;  %v13870_v33 = vcombine.low %v7358_v13, %v7362_v14  ;;  %v15399_v13 = vld [vmem:[#allocation27 + $0x124] ss:$28 sps:$4 sm:$0xff]  }
 0xa85   :  { %9023 = vmatprep.subr.bf16.mxu0 %v13825_v34  ;;  %v13872_v34 = vcombine.low %v7359_v16, %v7363_v17  ;;  %v13881_v59 = vcombine.high %v7367_v27, %v7371_v28  ;;  %v15394_v14 = vld [vmem:[#allocation27 + $0x118] ss:$28 sps:$4 sm:$0xff]   ;;  %v15397_v16 = vld [vmem:[#allocation27 + $0x120] ss:$28 sps:$4 sm:$0xff]  }
 0xa86   :  { %v15402_v17 = vld [vmem:[#allocation27 + $0x154] ss:$28 sps:$4 sm:$0xff]  }
 0xa87   :  { %8938 = vmatpush1.bf16.msra.mxu1 %v13822_v43  ;;  %v7375_v43 = vld [vmem:[#allocation24 + $0x798] sm:$0xff] }
 0xa88   :  { %9024 = vmatpush1.bf16.msra.mxu0 %v13824_v44  ;;  %8939 = vmatprep.subr.bf16.mxu1 %v13831_v18  ;;  %v7379_v44 = vld [vmem:[#allocation24 + $0x7b8] sm:$0xff]  ;;  %v13878_v18 = vcombine.low %v7366_v25, %v7370_v26  ;;  %v15406_v26 = vld [vmem:[#allocation27 + $0x188] ss:$28 sps:$4 sm:$0xff]  }
 0xa89   :  { %9025 = vmatprep.subr.bf16.mxu0 %v13833_v21  ;;  %v13880_v21 = vcombine.low %v7367_v27, %v7371_v28  ;;  %v13889_v47 = vcombine.high %v7375_v43, %v7379_v44  ;;  %v15411_v25 = vld [vmem:[#allocation27 + $0x194] ss:$28 sps:$4 sm:$0xff]   ;;  %v15414_v28 = vld [vmem:[#allocation27 + $0x1c4] ss:$28 sps:$4 sm:$0xff]  }
 0xa8a   :  { %v15409_v27 = vld [vmem:[#allocation27 + $0x190] ss:$28 sps:$4 sm:$0xff]  }
 0xa8b   :  { %8940 = vmatpush1.bf16.msra.mxu1 %v13830_v31  ;;  %v7383_v31 = vld [vmem:[#allocation24 + $0x7d8] sm:$0xff] }
 0xa8c   :  { %9026 = vmatpush1.bf16.msra.mxu0 %v13832_v35  ;;  %8941 = vmatprep.subr.bf16.mxu1 %v13839_v3  ;;  %v7387_v35 = vld [vmem:[#allocation24 + $0x7f8] sm:$0xff]  ;;  %v13886_v3 = vcombine.low %v7374_v41, %v7378_v42  ;;  %v15423_v41 = vld [vmem:[#allocation27 + $0x204] ss:$28 sps:$4 sm:$0xff]  }
 0xa8d   :  { %9027 = vmatprep.subr.bf16.mxu0 %v13841_v52  ;;  %v13888_v52 = vcombine.low %v7375_v43, %v7379_v44  ;;  %v13897_v40 = vcombine.high %v7383_v31, %v7387_v35  ;;  %v13896_v56 = vcombine.low %v7383_v31, %v7387_v35  ;;  %v15418_v42 = vld [vmem:[#allocation27 + $0x1f8] ss:$28 sps:$4 sm:$0xff]   ;;  %v15421_v43 = vld [vmem:[#allocation27 + $0x200] ss:$28 sps:$4 sm:$0xff]   ;;  %v15433_v31 = vld [vmem:[#allocation27 + $0x270] ss:$28 sps:$4 sm:$0xff]  }
 0xa8e   :  { %v15426_v44 = vld [vmem:[#allocation27 + $0x234] ss:$28 sps:$4 sm:$0xff]   ;;  %v15438_v35 = vld [vmem:[#allocation27 + $0x2a4] ss:$28 sps:$4 sm:$0xff]  }
 0xa8f   :  { %8942 = vmatpush1.bf16.msra.mxu1 %v13838_v57  ;;  %v15366_v57 = vld [vmem:[#allocation27 + $0x4] ss:$28 sps:$4 sm:$0xff]  }
 0xa90   :  { %9028 = vmatpush1.bf16.msra.mxu0 %v13840_v58  ;;  %8943 = vmatprep.subr.bf16.mxu1 %v13847_v37  ;;  %v15369_v58 = vld [vmem:[#allocation27 + $0xc] ss:$28 sps:$4 sm:$0xff]   ;;  %v15364_v37 = vld [vmem:[#allocation27] ss:$28 sps:$4 sm:$0xff]  }
 0xa91   :  { %9029 = vmatprep.subr.bf16.mxu0 %v13849_v61  ;;  %v15367_v61 = vld [vmem:[#allocation27 + $0x8] ss:$28 sps:$4 sm:$0xff]  }
 0xa93   :  { %8944 = vmatpush1.bf16.msra.mxu1 %v13846_v36  ;;  %v15378_v36 = vld [vmem:[#allocation27 + $0x74] ss:$28 sps:$4 sm:$0xff]  }
 0xa94   :  { %9030 = vmatpush1.bf16.msra.mxu0 %v13848_v50  ;;  %8945 = vmatprep.subr.bf16.mxu1 %v13855_v6  ;;  %v15381_v50 = vld [vmem:[#allocation27 + $0x7c] ss:$28 sps:$4 sm:$0xff]   ;;  %v15376_v6 = vld [vmem:[#allocation27 + $0x70] ss:$28 sps:$4 sm:$0xff]  }
 0xa95   :  { %9031 = vmatprep.subr.bf16.mxu0 %v13857_v46  ;;  %v15379_v46 = vld [vmem:[#allocation27 + $0x78] ss:$28 sps:$4 sm:$0xff]  }
 0xa97   :  { %8946 = vmatpush1.bf16.msra.mxu1 %v13854_v9  ;;  %v15393_v9 = vld [vmem:[#allocation27 + $0xec] ss:$28 sps:$4 sm:$0xff]  }
 0xa98   :  { %9032 = vmatpush1.bf16.msra.mxu0 %v13856_v10  ;;  %8947 = vmatprep.subr.bf16.mxu1 %v13863_v11  ;;  %v15388_v10 = vld [vmem:[#allocation27 + $0xe0] ss:$28 sps:$4 sm:$0xff]   ;;  %v15391_v11 = vld [vmem:[#allocation27 + $0xe8] ss:$28 sps:$4 sm:$0xff]  }
 0xa99   :  { %9033 = vmatprep.subr.bf16.mxu0 %v13865_v12  ;;  %v15396_v12 = vld [vmem:[#allocation27 + $0x11c] ss:$28 sps:$4 sm:$0xff]  }
 0xa9b   :  { %8948 = vmatpush1.bf16.msra.mxu1 %v13862_v19  ;;  %v15405_v19 = vld [vmem:[#allocation27 + $0x15c] ss:$28 sps:$4 sm:$0xff]  }
 0xa9c   :  { %9034 = vmatpush1.bf16.msra.mxu0 %v13864_v20  ;;  %8949 = vmatprep.subr.bf16.mxu1 %v13871_v22  ;;  %v15400_v20 = vld [vmem:[#allocation27 + $0x150] ss:$28 sps:$4 sm:$0xff]   ;;  %v15403_v22 = vld [vmem:[#allocation27 + $0x158] ss:$28 sps:$4 sm:$0xff]  }
 0xa9d   :  { %9035 = vmatprep.subr.bf16.mxu0 %v13873_v24  ;;  %v15408_v24 = vld [vmem:[#allocation27 + $0x18c] ss:$28 sps:$4 sm:$0xff]  }
 0xa9f   :  { %8950 = vmatpush1.bf16.msra.mxu1 %v13870_v33  ;;  %v15417_v33 = vld [vmem:[#allocation27 + $0x1cc] ss:$28 sps:$4 sm:$0xff]  }
 0xaa0   :  { %9036 = vmatpush1.bf16.msra.mxu0 %v13872_v34  ;;  %8951 = vmatprep.subr.bf16.mxu1 %v13879_v15  ;;  %v15412_v34 = vld [vmem:[#allocation27 + $0x1c0] ss:$28 sps:$4 sm:$0xff]   ;;  %v15415_v15 = vld [vmem:[#allocation27 + $0x1c8] ss:$28 sps:$4 sm:$0xff]  }
 0xaa1   :  { %9037 = vmatprep.subr.bf16.mxu0 %v13881_v59  ;;  %v15420_v59 = vld [vmem:[#allocation27 + $0x1fc] ss:$28 sps:$4 sm:$0xff]  }
 0xaa3   :  { %8952 = vmatpush1.bf16.msra.mxu1 %v13878_v18  ;;  %v15429_v18 = vld [vmem:[#allocation27 + $0x23c] ss:$28 sps:$4 sm:$0xff]  }
 0xaa4   :  { %9038 = vmatpush1.bf16.msra.mxu0 %v13880_v21  ;;  %8953 = vmatprep.subr.bf16.mxu1 %v13887_v38  ;;  %v15424_v21 = vld [vmem:[#allocation27 + $0x230] ss:$28 sps:$4 sm:$0xff]   ;;  %v15427_v38 = vld [vmem:[#allocation27 + $0x238] ss:$28 sps:$4 sm:$0xff]  }
 0xaa5   :  { %9039 = vmatprep.subr.bf16.mxu0 %v13889_v47  ;;  %v15432_v47 = vld [vmem:[#allocation27 + $0x26c] ss:$28 sps:$4 sm:$0xff]  }
 0xaa7   :  { %8954 = vmatpush1.bf16.msra.mxu1 %v13886_v3  ;;  %v15441_v3 = vld [vmem:[#allocation27 + $0x2ac] ss:$28 sps:$4 sm:$0xff]  }
 0xaa8   :  { %9040 = vmatpush1.bf16.msra.mxu0 %v13888_v52  ;;  %8955 = vmatprep.subr.bf16.mxu1 %v13895_v54  ;;  %v15436_v52 = vld [vmem:[#allocation27 + $0x2a0] ss:$28 sps:$4 sm:$0xff]   ;;  %v15439_v54 = vld [vmem:[#allocation27 + $0x2a8] ss:$28 sps:$4 sm:$0xff]  }
 0xaa9   :  { %9041 = vmatprep.subr.bf16.mxu0 %v13897_v40  ;;  %v15444_v40 = vld [vmem:[#allocation27 + $0x2dc] ss:$28 sps:$4 sm:$0xff]  }
 0xaab   :  { %8956 = vmatpush1.bf16.msra.mxu1 %v13894_v55  ;;  %v15447_v55 = vld [vmem:[#allocation27 + $0x2e4] ss:$28 sps:$4 sm:$0xff]  }
 0xaac   :  { %9042 = vmatpush1.bf16.msra.mxu0 %v13896_v56  ;;  %11931 = vmatprep.subr.bf16.mxu1 %v15366_v57  ;;  %v15442_v56 = vld [vmem:[#allocation27 + $0x2d8] ss:$28 sps:$4 sm:$0xff]   ;;  %v15445_v57 = vld [vmem:[#allocation27 + $0x2e0] ss:$28 sps:$4 sm:$0xff]  }
 0xaad   :  { %12103 = vmatprep.subr.bf16.mxu0 %v15369_v58  ;;  %v15450_v58 = vld [vmem:[#allocation27 + $0x314] ss:$28 sps:$4 sm:$0xff]  }
 0xaae   :  { %8958 = vmatmul.mubr.bf16.vlgmr.msra.gmra.mrb[32].mxu1 %v17064_v48 }
 0xaaf   :  { %9044 = vmatmul.mubr.bf16.vlgmr.msra.gmra.mrb[28].mxu0 %v17064_v48  ;;  %11932 = vmatpush1.bf16.msra.mxu1 %v15364_v37  ;;  %v15385_v48 = vld [vmem:[#allocation27 + $0xb0] ss:$28 sps:$4 sm:$0xff]   ;;  %v15453_v37 = vld [vmem:[#allocation27 + $0x31c] ss:$28 sps:$4 sm:$0xff]  }
 0xab0   :  { %12104 = vmatpush1.bf16.msra.mxu0 %v15367_v61  ;;  %11933 = vmatprep.subr.bf16.mxu1 %v15372_v63  ;;  %v15448_v61 = vld [vmem:[#allocation27 + $0x310] ss:$28 sps:$4 sm:$0xff]   ;;  %v15451_v63 = vld [vmem:[#allocation27 + $0x318] ss:$28 sps:$4 sm:$0xff]  }
 0xab1   :  { %12105 = vmatprep.subr.bf16.mxu0 %v15375_v1  ;;  %v15456_v1 = vld [vmem:[#allocation27 + $0x34c] ss:$28 sps:$4 sm:$0xff]  }
 0xab3   :  { %11934 = vmatpush1.bf16.msra.mxu1 %v15370_v45  ;;  %v15459_v45 = vld [vmem:[#allocation27 + $0x354] ss:$28 sps:$4 sm:$0xff]  }
 0xab4   :  { %12106 = vmatpush1.bf16.msra.mxu0 %v15373_v29  ;;  %11935 = vmatprep.subr.bf16.mxu1 %v15378_v36  ;;  %v15454_v29 = vld [vmem:[#allocation27 + $0x348] ss:$28 sps:$4 sm:$0xff]   ;;  %v15457_v36 = vld [vmem:[#allocation27 + $0x350] ss:$28 sps:$4 sm:$0xff]  }
 0xab5   :  { %12107 = vmatprep.subr.bf16.mxu0 %v15381_v50  ;;  %v15462_v50 = vld [vmem:[#allocation27 + $0x384] ss:$28 sps:$4 sm:$0xff]  }
 0xab7   :  { %11936 = vmatpush1.bf16.msra.mxu1 %v15376_v6  ;;  %v15465_v6 = vld [vmem:[#allocation27 + $0x38c] ss:$28 sps:$4 sm:$0xff]  }
 0xab8   :  { %12108 = vmatpush1.bf16.msra.mxu0 %v15379_v46  ;;  %11937 = vmatprep.subr.bf16.mxu1 %v15384_v4  ;;  %v17086_v46 = vld [vmem:[#allocation25] sm:$0xff] }
 0xab9   :  { %12109 = vmatprep.subr.bf16.mxu0 %v15387_v8  ;;  %v7393_v4 = vrot.slane %v17086_v46, %v16971_v62  ;;  %v7401_v8 = vrot.slane %v17086_v46, %v16991_v5 }
 0xabb   :  { %11938 = vmatpush1.bf16.msra.mxu1 %v15382_v51  ;;  %v7397_v51 = vrot.slane %v17086_v46, %v16974_v0 }
 0xabc   :  { %12110 = vmatpush1.bf16.msra.mxu0 %v15385_v48  ;;  %11939 = vmatprep.subr.bf16.mxu1 %v15390_v60  ;;  %v7405_v48 = vrot.slane %v17086_v46, %v16994_v7 }
 0xabd   :  { %12111 = vmatprep.subr.bf16.mxu0 %v15393_v9 }
 0xabf   :  { %11940 = vmatpush1.bf16.msra.mxu1 %v15388_v10 }
 0xac0   :  { %12112 = vmatpush1.bf16.msra.mxu0 %v15391_v11  ;;  %11941 = vmatprep.subr.bf16.mxu1 %v15396_v12 }
 0xac1   :  { %12113 = vmatprep.subr.bf16.mxu0 %v15399_v13 }
 0xac3   :  { %11942 = vmatpush1.bf16.msra.mxu1 %v15394_v14 }
 0xac4   :  { %12114 = vmatpush1.bf16.msra.mxu0 %v15397_v16  ;;  %11943 = vmatprep.subr.bf16.mxu1 %v15402_v17 }
 0xac5   :  { %12115 = vmatprep.subr.bf16.mxu0 %v15405_v19 }
 0xac7   :  { %11944 = vmatpush1.bf16.msra.mxu1 %v15400_v20 }
 0xac8   :  { %12116 = vmatpush1.bf16.msra.mxu0 %v15403_v22  ;;  %11945 = vmatprep.subr.bf16.mxu1 %v15408_v24 }
 0xac9   :  { %12117 = vmatprep.subr.bf16.mxu0 %v15411_v25 }
 0xacb   :  { %11946 = vmatpush1.bf16.msra.mxu1 %v15406_v26 }
 0xacc   :  { %12118 = vmatpush1.bf16.msra.mxu0 %v15409_v27  ;;  %11947 = vmatprep.subr.bf16.mxu1 %v15414_v28 }
 0xacd   :  { %12119 = vmatprep.subr.bf16.mxu0 %v15417_v33 }
 0xacf   :  { %11948 = vmatpush1.bf16.msra.mxu1 %v15412_v34 }
 0xad0   :  { %12120 = vmatpush1.bf16.msra.mxu0 %v15415_v15  ;;  %11949 = vmatprep.subr.bf16.mxu1 %v15420_v59 }
 0xad1   :  { %12121 = vmatprep.subr.bf16.mxu0 %v15423_v41 }
 0xad3   :  { %11950 = vmatpush1.bf16.msra.mxu1 %v15418_v42 }
 0xad4   :  { %12122 = vmatpush1.bf16.msra.mxu0 %v15421_v43  ;;  %11951 = vmatprep.subr.bf16.mxu1 %v15426_v44 }
 0xad5   :  { %12123 = vmatprep.subr.bf16.mxu0 %v15429_v18 }
 0xad7   :  { %11952 = vmatpush1.bf16.msra.mxu1 %v15424_v21 }
 0xad8   :  { %12124 = vmatpush1.bf16.msra.mxu0 %v15427_v38  ;;  %11953 = vmatprep.subr.bf16.mxu1 %v15432_v47  ;;  %v15460_v47 = vld [vmem:[#allocation27 + $0x380] ss:$28 sps:$4 sm:$0xff]  }
 0xad9   :  { %12125 = vmatprep.subr.bf16.mxu0 %v15435_v23  ;;  %v15463_v23 = vld [vmem:[#allocation27 + $0x388] ss:$28 sps:$4 sm:$0xff]  }
 0xadb   :  { %11954 = vmatpush1.bf16.msra.mxu1 %v15430_v49  ;;  %v15468_v49 = vld [vmem:[#allocation27 + $0x3bc] ss:$28 sps:$4 sm:$0xff]  }
 0xadc   :  { %12126 = vmatpush1.bf16.msra.mxu0 %v15433_v31  ;;  %11955 = vmatprep.subr.bf16.mxu1 %v15438_v35  ;;  %v15471_v31 = vld [vmem:[#allocation27 + $0x3c4] ss:$28 sps:$4 sm:$0xff]   ;;  %v15466_v35 = vld [vmem:[#allocation27 + $0x3b8] ss:$28 sps:$4 sm:$0xff]  }
 0xadd   :  { %12127 = vmatprep.subr.bf16.mxu0 %v15441_v3  ;;  %v15469_v3 = vld [vmem:[#allocation27 + $0x3c0] ss:$28 sps:$4 sm:$0xff]  }
 0xadf   :  { %11956 = vmatpush1.bf16.msra.mxu1 %v15436_v52  ;;  %v15474_v52 = vld [vmem:[#allocation27 + $0x3f4] ss:$28 sps:$4 sm:$0xff]  }
 0xae0   :  { %12128 = vmatpush1.bf16.msra.mxu0 %v15439_v54  ;;  %11957 = vmatprep.subr.bf16.mxu1 %v15444_v40  ;;  %v15477_v54 = vld [vmem:[#allocation27 + $0x3fc] ss:$28 sps:$4 sm:$0xff]   ;;  %v15472_v40 = vld [vmem:[#allocation27 + $0x3f0] ss:$28 sps:$4 sm:$0xff]  }
 0xae1   :  { %12129 = vmatprep.subr.bf16.mxu0 %v15447_v55  ;;  %v15475_v55 = vld [vmem:[#allocation27 + $0x3f8] ss:$28 sps:$4 sm:$0xff]  }
 0xae3   :  { %11958 = vmatpush1.bf16.msra.mxu1 %v15442_v56  ;;  %v15480_v56 = vld [vmem:[#allocation27 + $0x42c] ss:$28 sps:$4 sm:$0xff]  }
 0xae4   :  { %12130 = vmatpush1.bf16.msra.mxu0 %v15445_v57  ;;  %11959 = vmatprep.subr.bf16.mxu1 %v15450_v58  ;;  %v15483_v57 = vld [vmem:[#allocation27 + $0x434] ss:$28 sps:$4 sm:$0xff]   ;;  %v15478_v58 = vld [vmem:[#allocation27 + $0x428] ss:$28 sps:$4 sm:$0xff]  }
 0xae5   :  { %12131 = vmatprep.subr.bf16.mxu0 %v15453_v37  ;;  %v15481_v37 = vld [vmem:[#allocation27 + $0x430] ss:$28 sps:$4 sm:$0xff]  }
 0xae7   :  { %11960 = vmatpush1.bf16.msra.mxu1 %v15448_v61  ;;  %v15486_v61 = vld [vmem:[#allocation27 + $0x464] ss:$28 sps:$4 sm:$0xff]  }
 0xae8   :  { %12132 = vmatpush1.bf16.msra.mxu0 %v15451_v63  ;;  %11961 = vmatprep.subr.bf16.mxu1 %v15456_v1  ;;  %v15489_v63 = vld [vmem:[#allocation27 + $0x46c] ss:$28 sps:$4 sm:$0xff]   ;;  %v15484_v1 = vld [vmem:[#allocation27 + $0x460] ss:$28 sps:$4 sm:$0xff]  }
 0xae9   :  { %12133 = vmatprep.subr.bf16.mxu0 %v15459_v45  ;;  %v15487_v45 = vld [vmem:[#allocation27 + $0x468] ss:$28 sps:$4 sm:$0xff]  }
 0xaeb   :  { %11962 = vmatpush1.bf16.msra.mxu1 %v15454_v29  ;;  %v15492_v29 = vld [vmem:[#allocation27 + $0x49c] ss:$28 sps:$4 sm:$0xff]  }
 0xaec   :  { %12134 = vmatpush1.bf16.msra.mxu0 %v15457_v36  ;;  %11974 = vmatprep.subr.bf16.mxu1 %v15462_v50  ;;  %v15495_v36 = vld [vmem:[#allocation27 + $0x4a4] ss:$28 sps:$4 sm:$0xff]   ;;  %v15490_v50 = vld [vmem:[#allocation27 + $0x498] ss:$28 sps:$4 sm:$0xff]  }
 0xaed   :  { %12146 = vmatprep.subr.bf16.mxu0 %v15465_v6  ;;  %v15493_v6 = vld [vmem:[#allocation27 + $0x4a0] ss:$28 sps:$4 sm:$0xff]  }
 0xb01   :  { %v8787_v60 = vpop.f32.mrb[28].mxu1  ;;  %v8873_v9 = vpop.f32.mrb[24].mxu0 }
 0xb02   :  { %v14547_v10 = vadd.f32 %v8787_v60, %v7393_v4  ;;  %v14551_v11 = vadd.f32 %v8873_v9, %v7401_v8  ;;  %v8789_v12 = vpop.f32.mrb[29].mxu1  ;;  %v8875_v13 = vpop.f32.mrb[25].mxu0  ;;  %v15504_v60 = vld [vmem:[#allocation27 + $0x50c] ss:$28 sps:$4 sm:$0xff]   ;;  %v15507_v9 = vld [vmem:[#allocation27 + $0x514] ss:$28 sps:$4 sm:$0xff]  }
 0xb03   :  { %v14548_v14 = vadd.f32 %v8789_v12, %v7397_v51  ;;  %v14552_v16 = vadd.f32 %v8875_v13, %v7405_v48  ;;  %v8791_v17 = vpop.f32.mrb[30].mxu1  ;;  %v8877_v19 = vpop.f32.mrb[26].mxu0  ;;  %v15510_v12 = vld [vmem:[#allocation27 + $0x544] ss:$28 sps:$4 sm:$0xff]   ;;  %v15513_v13 = vld [vmem:[#allocation27 + $0x54c] ss:$28 sps:$4 sm:$0xff]  }
 0xb04   :  { %v14549_v20 = vadd.f32 %v8791_v17, %v7393_v4  ;;  %v14553_v22 = vadd.f32 %v8877_v19, %v7401_v8  ;;  %v8793_v24 = vpop.f32.mrb[31].mxu1  ;;  %v8879_v25 = vpop.f32.mrb[27].mxu0  ;;  %v9054_v28 = vmax.f32 %v14547_v10, 0.0  ;;  %v9056_v33 = vmax.f32 %v14551_v11, 0.0  ;;  %v15498_v4 = vld [vmem:[#allocation27 + $0x4d4] ss:$28 sps:$4 sm:$0xff]  }
 0xb05   :  { %v14550_v26 = vadd.f32 %v8793_v24, %v7397_v51  ;;  %v14554_v27 = vadd.f32 %v8879_v25, %v7405_v48  ;;  %v9055_v59 = vmax.f32 %v14548_v14, 0.0  ;;  %v9057_v41 = vmax.f32 %v14552_v16, 0.0  ;;  %v15501_v8 = vld [vmem:[#allocation27 + $0x4dc] ss:$28 sps:$4 sm:$0xff]   ;;  %v15496_v51 = vld [vmem:[#allocation27 + $0x4d0] ss:$28 sps:$4 sm:$0xff]  }
 0xb06   :  { %v9062_v34 = vmax.f32 %v14549_v20, 0.0  ;;  %v9064_v15 = vmax.f32 %v14553_v22, 0.0  ;;  %v15499_v48 = vld [vmem:[#allocation27 + $0x4d8] ss:$28 sps:$4 sm:$0xff]   ;;  %v15502_v10 = vld [vmem:[#allocation27 + $0x508] ss:$28 sps:$4 sm:$0xff]  }
 0xb07   :  { %v9063_v42 = vmax.f32 %v14550_v26, 0.0  ;;  %v9065_v43 = vmax.f32 %v14554_v27, 0.0  ;;  %v15505_v11 = vld [vmem:[#allocation27 + $0x510] ss:$28 sps:$4 sm:$0xff]   ;;  %v15508_v14 = vld [vmem:[#allocation27 + $0x540] ss:$28 sps:$4 sm:$0xff]  }
 0xb08   :  { %v17096_v44 = vpack.c.bf16 %v9062_v34, %v9054_v28  ;;  %v17098_v18 = vpack.c.bf16 %v9064_v15, %v9056_v33  ;;  %v15511_v16 = vld [vmem:[#allocation27 + $0x548] ss:$28 sps:$4 sm:$0xff]   ;;  %v15516_v17 = vld [vmem:[#allocation27 + $0x57c] ss:$28 sps:$4 sm:$0xff]   ;;  %v15522_v24 = vld [vmem:[#allocation27 + $0x5b4] ss:$28 sps:$4 sm:$0xff]  }
 0xb09   :  { %v17100_v21 = vpack.c.bf16 %v9063_v42, %v9055_v59  ;;  %v17102_v38 = vpack.c.bf16 %v9065_v43, %v9057_v41  ;;  %v15519_v19 = vld [vmem:[#allocation27 + $0x584] ss:$28 sps:$4 sm:$0xff]   ;;  %v15514_v20 = vld [vmem:[#allocation27 + $0x578] ss:$28 sps:$4 sm:$0xff]   ;;  %v15520_v26 = vld [vmem:[#allocation27 + $0x5b0] ss:$28 sps:$4 sm:$0xff]  }
 0xb0a   :  { %v15517_v22 = vld [vmem:[#allocation27 + $0x580] ss:$28 sps:$4 sm:$0xff]   ;;  %v15523_v27 = vld [vmem:[#allocation27 + $0x5b8] ss:$28 sps:$4 sm:$0xff]   ;;  %v15528_v28 = vld [vmem:[#allocation27 + $0x5ec] ss:$28 sps:$4 sm:$0xff]  }
 0xb0b   :  { %11963 = vmatprep.mubr.bf16.mxu1 %v17100_v21  ;;  %12135 = vmatprep.mubr.bf16.mxu0 %v17100_v21  ;;  %v15525_v25 = vld [vmem:[#allocation27 + $0x5bc] ss:$28 sps:$4 sm:$0xff]   ;;  %v15531_v33 = vld [vmem:[#allocation27 + $0x5f4] ss:$28 sps:$4 sm:$0xff]   ;;  %v15526_v34 = vld [vmem:[#allocation27 + $0x5e8] ss:$28 sps:$4 sm:$0xff]  }
 0xb0c   :  { %11964 = vmatmul.mubr.bf16.vlgmr.msra.gmra.mrb[36].mxu1 %v17096_v44  ;;  %12136 = vmatmul.mubr.bf16.vlgmr.msra.gmra.mrb[32].mxu0 %v17096_v44  ;;  %v15529_v15 = vld [vmem:[#allocation27 + $0x5f0] ss:$28 sps:$4 sm:$0xff]   ;;  %v15534_v59 = vld [vmem:[#allocation27 + $0x624] ss:$28 sps:$4 sm:$0xff]  }
 0xb0d   :  { %11975 = vmatpush1.bf16.msra.mxu1 %v15460_v47  ;;  %12147 = vmatpush1.bf16.msra.mxu0 %v15463_v23  ;;  %v15537_v41 = vld [vmem:[#allocation27 + $0x62c] ss:$28 sps:$4 sm:$0xff]   ;;  %v15532_v42 = vld [vmem:[#allocation27 + $0x620] ss:$28 sps:$4 sm:$0xff]  }
 0xb0e   :  { %12006 = vmatprep.mubr.bf16.mxu1 %v17102_v38  ;;  %12178 = vmatprep.mubr.bf16.mxu0 %v17102_v38  ;;  %v15535_v43 = vld [vmem:[#allocation27 + $0x628] ss:$28 sps:$4 sm:$0xff]   ;;  %v15540_v47 = vld [vmem:[#allocation27 + $0x65c] ss:$28 sps:$4 sm:$0xff]  }
 0xb0f   :  { %11976 = vmatprep.subr.bf16.mxu1 %v15468_v49  ;;  %12148 = vmatprep.subr.bf16.mxu0 %v15471_v31  ;;  %v15543_v23 = vld [vmem:[#allocation27 + $0x664] ss:$28 sps:$4 sm:$0xff]   ;;  %v15538_v49 = vld [vmem:[#allocation27 + $0x658] ss:$28 sps:$4 sm:$0xff]  }
 0xb10   :  { %v15541_v31 = vld [vmem:[#allocation27 + $0x660] ss:$28 sps:$4 sm:$0xff]  }
 0xb11   :  { %11977 = vmatpush1.bf16.msra.mxu1 %v15466_v35  ;;  %12149 = vmatpush1.bf16.msra.mxu0 %v15469_v3  ;;  %v15546_v35 = vld [vmem:[#allocation27 + $0x694] ss:$28 sps:$4 sm:$0xff]   ;;  %v15549_v3 = vld [vmem:[#allocation27 + $0x69c] ss:$28 sps:$4 sm:$0xff]  }
 0xb12   :  { %11978 = vmatprep.subr.bf16.mxu1 %v15474_v52  ;;  %12150 = vmatprep.subr.bf16.mxu0 %v15477_v54  ;;  %v15544_v52 = vld [vmem:[#allocation27 + $0x690] ss:$28 sps:$4 sm:$0xff]   ;;  %v15547_v54 = vld [vmem:[#allocation27 + $0x698] ss:$28 sps:$4 sm:$0xff]  }
 0xb15   :  { %11979 = vmatpush1.bf16.msra.mxu1 %v15472_v40  ;;  %12151 = vmatpush1.bf16.msra.mxu0 %v15475_v55  ;;  %v15552_v40 = vld [vmem:[#allocation27 + $0x6cc] ss:$28 sps:$4 sm:$0xff]   ;;  %v15555_v55 = vld [vmem:[#allocation27 + $0x6d4] ss:$28 sps:$4 sm:$0xff]  }
 0xb16   :  { %11980 = vmatprep.subr.bf16.mxu1 %v15480_v56  ;;  %12152 = vmatprep.subr.bf16.mxu0 %v15483_v57  ;;  %v15550_v56 = vld [vmem:[#allocation27 + $0x6c8] ss:$28 sps:$4 sm:$0xff]   ;;  %v15553_v57 = vld [vmem:[#allocation27 + $0x6d0] ss:$28 sps:$4 sm:$0xff]  }
 0xb19   :  { %11981 = vmatpush1.bf16.msra.mxu1 %v15478_v58  ;;  %12153 = vmatpush1.bf16.msra.mxu0 %v15481_v37  ;;  %v15558_v58 = vld [vmem:[#allocation27 + $0x704] ss:$28 sps:$4 sm:$0xff]   ;;  %v15561_v37 = vld [vmem:[#allocation27 + $0x70c] ss:$28 sps:$4 sm:$0xff]  }
 0xb1a   :  { %11982 = vmatprep.subr.bf16.mxu1 %v15486_v61  ;;  %12154 = vmatprep.subr.bf16.mxu0 %v15489_v63  ;;  %v15556_v61 = vld [vmem:[#allocation27 + $0x700] ss:$28 sps:$4 sm:$0xff]   ;;  %v15559_v63 = vld [vmem:[#allocation27 + $0x708] ss:$28 sps:$4 sm:$0xff]  }
 0xb1d   :  { %11983 = vmatpush1.bf16.msra.mxu1 %v15484_v1  ;;  %12155 = vmatpush1.bf16.msra.mxu0 %v15487_v45  ;;  %v15564_v1 = vld [vmem:[#allocation27 + $0x73c] ss:$28 sps:$4 sm:$0xff]   ;;  %v15567_v45 = vld [vmem:[#allocation27 + $0x744] ss:$28 sps:$4 sm:$0xff]  }
 0xb1e   :  { %11984 = vmatprep.subr.bf16.mxu1 %v15492_v29  ;;  %12156 = vmatprep.subr.bf16.mxu0 %v15495_v36  ;;  %v15562_v29 = vld [vmem:[#allocation27 + $0x738] ss:$28 sps:$4 sm:$0xff]   ;;  %v15565_v36 = vld [vmem:[#allocation27 + $0x740] ss:$28 sps:$4 sm:$0xff]  }
 0xb21   :  { %11985 = vmatpush1.bf16.msra.mxu1 %v15490_v50  ;;  %12157 = vmatpush1.bf16.msra.mxu0 %v15493_v6  ;;  %v15570_v50 = vld [vmem:[#allocation27 + $0x774] ss:$28 sps:$4 sm:$0xff]   ;;  %v15573_v6 = vld [vmem:[#allocation27 + $0x77c] ss:$28 sps:$4 sm:$0xff]  }
 0xb22   :  { %11986 = vmatprep.subr.bf16.mxu1 %v15498_v4  ;;  %12158 = vmatprep.subr.bf16.mxu0 %v15501_v8  ;;  %v15568_v4 = vld [vmem:[#allocation27 + $0x770] ss:$28 sps:$4 sm:$0xff]   ;;  %v15571_v8 = vld [vmem:[#allocation27 + $0x778] ss:$28 sps:$4 sm:$0xff]  }
 0xb25   :  { %11987 = vmatpush1.bf16.msra.mxu1 %v15496_v51  ;;  %12159 = vmatpush1.bf16.msra.mxu0 %v15499_v48  ;;  %v15576_v51 = vld [vmem:[#allocation27 + $0x7ac] ss:$28 sps:$4 sm:$0xff]   ;;  %v15579_v48 = vld [vmem:[#allocation27 + $0x7b4] ss:$28 sps:$4 sm:$0xff]  }
 0xb26   :  { %11988 = vmatprep.subr.bf16.mxu1 %v15504_v60  ;;  %12160 = vmatprep.subr.bf16.mxu0 %v15507_v9  ;;  %v15574_v60 = vld [vmem:[#allocation27 + $0x7a8] ss:$28 sps:$4 sm:$0xff]   ;;  %v15577_v9 = vld [vmem:[#allocation27 + $0x7b0] ss:$28 sps:$4 sm:$0xff]  }
 0xb29   :  { %11989 = vmatpush1.bf16.msra.mxu1 %v15502_v10  ;;  %12161 = vmatpush1.bf16.msra.mxu0 %v15505_v11  ;;  %v15582_v10 = vld [vmem:[#allocation27 + $0x7e4] ss:$28 sps:$4 sm:$0xff]   ;;  %v15585_v11 = vld [vmem:[#allocation27 + $0x7ec] ss:$28 sps:$4 sm:$0xff]  }
 0xb2a   :  { %11990 = vmatprep.subr.bf16.mxu1 %v15510_v12  ;;  %12162 = vmatprep.subr.bf16.mxu0 %v15513_v13  ;;  %v15580_v12 = vld [vmem:[#allocation27 + $0x7e0] ss:$28 sps:$4 sm:$0xff]   ;;  %v15583_v13 = vld [vmem:[#allocation27 + $0x7e8] ss:$28 sps:$4 sm:$0xff]  }
 0xb2d   :  { %11991 = vmatpush1.bf16.msra.mxu1 %v15508_v14  ;;  %12163 = vmatpush1.bf16.msra.mxu0 %v15511_v16  ;;  %v15588_v14 = vld [vmem:[#allocation27 + $0x81c] ss:$28 sps:$4 sm:$0xff]   ;;  %v15591_v16 = vld [vmem:[#allocation27 + $0x824] ss:$28 sps:$4 sm:$0xff]  }
 0xb2e   :  { %11992 = vmatprep.subr.bf16.mxu1 %v15516_v17  ;;  %12164 = vmatprep.subr.bf16.mxu0 %v15519_v19  ;;  %v15586_v17 = vld [vmem:[#allocation27 + $0x818] ss:$28 sps:$4 sm:$0xff]   ;;  %v15589_v19 = vld [vmem:[#allocation27 + $0x820] ss:$28 sps:$4 sm:$0xff]  }
 0xb31   :  { %11993 = vmatpush1.bf16.msra.mxu1 %v15514_v20  ;;  %12165 = vmatpush1.bf16.msra.mxu0 %v15517_v22  ;;  %v15594_v20 = vld [vmem:[#allocation27 + $0x854] ss:$28 sps:$4 sm:$0xff]   ;;  %v15597_v22 = vld [vmem:[#allocation27 + $0x85c] ss:$28 sps:$4 sm:$0xff]  }
 0xb32   :  { %11994 = vmatprep.subr.bf16.mxu1 %v15522_v24  ;;  %12166 = vmatprep.subr.bf16.mxu0 %v15525_v25  ;;  %v15592_v24 = vld [vmem:[#allocation27 + $0x850] ss:$28 sps:$4 sm:$0xff]   ;;  %v15595_v25 = vld [vmem:[#allocation27 + $0x858] ss:$28 sps:$4 sm:$0xff]  }
 0xb35   :  { %11995 = vmatpush1.bf16.msra.mxu1 %v15520_v26  ;;  %12167 = vmatpush1.bf16.msra.mxu0 %v15523_v27  ;;  %v15600_v26 = vld [vmem:[#allocation27 + $0x88c] ss:$28 sps:$4 sm:$0xff]   ;;  %v15603_v27 = vld [vmem:[#allocation27 + $0x894] ss:$28 sps:$4 sm:$0xff]  }
 0xb36   :  { %11996 = vmatprep.subr.bf16.mxu1 %v15528_v28  ;;  %12168 = vmatprep.subr.bf16.mxu0 %v15531_v33  ;;  %v15598_v28 = vld [vmem:[#allocation27 + $0x888] ss:$28 sps:$4 sm:$0xff]   ;;  %v15601_v33 = vld [vmem:[#allocation27 + $0x890] ss:$28 sps:$4 sm:$0xff]  }
 0xb39   :  { %11997 = vmatpush1.bf16.msra.mxu1 %v15526_v34  ;;  %12169 = vmatpush1.bf16.msra.mxu0 %v15529_v15  ;;  %v15606_v34 = vld [vmem:[#allocation27 + $0x8c4] ss:$28 sps:$4 sm:$0xff]   ;;  %v15609_v15 = vld [vmem:[#allocation27 + $0x8cc] ss:$28 sps:$4 sm:$0xff]  }
 0xb3a   :  { %11998 = vmatprep.subr.bf16.mxu1 %v15534_v59  ;;  %12170 = vmatprep.subr.bf16.mxu0 %v15537_v41  ;;  %v15604_v59 = vld [vmem:[#allocation27 + $0x8c0] ss:$28 sps:$4 sm:$0xff]   ;;  %v15607_v41 = vld [vmem:[#allocation27 + $0x8c8] ss:$28 sps:$4 sm:$0xff]  }
 0xb3d   :  { %11999 = vmatpush1.bf16.msra.mxu1 %v15532_v42  ;;  %12171 = vmatpush1.bf16.msra.mxu0 %v15535_v43  ;;  %v15612_v42 = vld [vmem:[#allocation27 + $0x8fc] ss:$28 sps:$4 sm:$0xff]   ;;  %v15615_v43 = vld [vmem:[#allocation27 + $0x904] ss:$28 sps:$4 sm:$0xff]  }
 0xb3e   :  { %12000 = vmatprep.subr.bf16.mxu1 %v15540_v47  ;;  %12172 = vmatprep.subr.bf16.mxu0 %v15543_v23  ;;  %v15610_v47 = vld [vmem:[#allocation27 + $0x8f8] ss:$28 sps:$4 sm:$0xff]   ;;  %v15613_v23 = vld [vmem:[#allocation27 + $0x900] ss:$28 sps:$4 sm:$0xff]  }
 0xb41   :  { %12001 = vmatpush1.bf16.msra.mxu1 %v15538_v49  ;;  %12173 = vmatpush1.bf16.msra.mxu0 %v15541_v31  ;;  %v15618_v49 = vld [vmem:[#allocation27 + $0x934] ss:$28 sps:$4 sm:$0xff]   ;;  %v15621_v31 = vld [vmem:[#allocation27 + $0x93c] ss:$28 sps:$4 sm:$0xff]  }
 0xb42   :  { %12002 = vmatprep.subr.bf16.mxu1 %v15546_v35  ;;  %12174 = vmatprep.subr.bf16.mxu0 %v15549_v3  ;;  %v15616_v35 = vld [vmem:[#allocation27 + $0x930] ss:$28 sps:$4 sm:$0xff]   ;;  %v15619_v3 = vld [vmem:[#allocation27 + $0x938] ss:$28 sps:$4 sm:$0xff]  }
 0xb45   :  { %12003 = vmatpush1.bf16.msra.mxu1 %v15544_v52  ;;  %12175 = vmatpush1.bf16.msra.mxu0 %v15547_v54  ;;  %v15624_v52 = vld [vmem:[#allocation27 + $0x96c] ss:$28 sps:$4 sm:$0xff]   ;;  %v15627_v54 = vld [vmem:[#allocation27 + $0x974] ss:$28 sps:$4 sm:$0xff]  }
 0xb46   :  { %12004 = vmatprep.subr.bf16.mxu1 %v15552_v40  ;;  %12176 = vmatprep.subr.bf16.mxu0 %v15555_v55  ;;  %v15622_v40 = vld [vmem:[#allocation27 + $0x968] ss:$28 sps:$4 sm:$0xff]   ;;  %v15625_v55 = vld [vmem:[#allocation27 + $0x970] ss:$28 sps:$4 sm:$0xff]  }
 0xb49   :  { %12005 = vmatpush1.bf16.msra.mxu1 %v15550_v56  ;;  %12177 = vmatpush1.bf16.msra.mxu0 %v15553_v57  ;;  %v15630_v56 = vld [vmem:[#allocation27 + $0x9a4] ss:$28 sps:$4 sm:$0xff]   ;;  %v15633_v57 = vld [vmem:[#allocation27 + $0x9ac] ss:$28 sps:$4 sm:$0xff]  }
 0xb4a   :  { %12017 = vmatprep.subr.bf16.mxu1 %v15558_v58  ;;  %12189 = vmatprep.subr.bf16.mxu0 %v15561_v37  ;;  %v15628_v58 = vld [vmem:[#allocation27 + $0x9a0] ss:$28 sps:$4 sm:$0xff]   ;;  %v15631_v37 = vld [vmem:[#allocation27 + $0x9a8] ss:$28 sps:$4 sm:$0xff]  }
 0xb4c   :  { %12007 = vmatmul.mubr.bf16.vlgmr.msra.gmra.mrb[36].mxu1 %v17098_v18  ;;  %12179 = vmatmul.mubr.bf16.vlgmr.msra.gmra.mrb[32].mxu0 %v17098_v18 }
 0xb4d   :  { %12018 = vmatpush1.bf16.msra.mxu1 %v15556_v61  ;;  %12190 = vmatpush1.bf16.msra.mxu0 %v15559_v63  ;;  %v15636_v61 = vld [vmem:[#allocation27 + $0x9dc] ss:$28 sps:$4 sm:$0xff]   ;;  %v15639_v63 = vld [vmem:[#allocation27 + $0x9e4] ss:$28 sps:$4 sm:$0xff]  }
 0xb4e   :  { %12019 = vmatprep.subr.bf16.mxu1 %v15564_v1  ;;  %12191 = vmatprep.subr.bf16.mxu0 %v15567_v45  ;;  %v15634_v1 = vld [vmem:[#allocation27 + $0x9d8] ss:$28 sps:$4 sm:$0xff]   ;;  %v15637_v45 = vld [vmem:[#allocation27 + $0x9e0] ss:$28 sps:$4 sm:$0xff]  }
 0xb51   :  { %12020 = vmatpush1.bf16.msra.mxu1 %v15562_v29  ;;  %12192 = vmatpush1.bf16.msra.mxu0 %v15565_v36  ;;  %v7409_v29 = vrot.slane %v17086_v46, %v17033_v30  ;;  %v15642_v36 = vld [vmem:[#allocation27 + $0xa14] ss:$28 sps:$4 sm:$0xff]  }
 0xb52   :  { %12021 = vmatprep.subr.bf16.mxu1 %v15570_v50  ;;  %12193 = vmatprep.subr.bf16.mxu0 %v15573_v6  ;;  %v15645_v50 = vld [vmem:[#allocation27 + $0xa1c] ss:$28 sps:$4 sm:$0xff]   ;;  %v7417_v6 = vrot.slane %v17086_v46, %v17017_v2 }
 0xb55   :  { %12022 = vmatpush1.bf16.msra.mxu1 %v15568_v4  ;;  %12194 = vmatpush1.bf16.msra.mxu0 %v15571_v8  ;;  %v7413_v4 = vrot.slane %v17086_v46, %v17036_v32  ;;  %v7421_v8 = vrot.slane %v17086_v46, %v777_v39 }
 0xb56   :  { %12023 = vmatprep.subr.bf16.mxu1 %v15576_v51  ;;  %12195 = vmatprep.subr.bf16.mxu0 %v15579_v48  ;;  %v15640_v48 = vld [vmem:[#allocation27 + $0xa10] ss:$28 sps:$4 sm:$0xff]  }
 0xb59   :  { %12024 = vmatpush1.bf16.msra.mxu1 %v15574_v60  ;;  %12196 = vmatpush1.bf16.msra.mxu0 %v15577_v9  ;;  %v15643_v60 = vld [vmem:[#allocation27 + $0xa18] ss:$28 sps:$4 sm:$0xff]  }
 0xb5a   :  { %12025 = vmatprep.subr.bf16.mxu1 %v15582_v10  ;;  %12197 = vmatprep.subr.bf16.mxu0 %v15585_v11 }
 0xb5d   :  { %12026 = vmatpush1.bf16.msra.mxu1 %v15580_v12  ;;  %12198 = vmatpush1.bf16.msra.mxu0 %v15583_v13  ;;  %v15648_v12 = vld [vmem:[#allocation27 + $0xa4c] ss:$28 sps:$4 sm:$0xff]   ;;  %v15651_v13 = vld [vmem:[#allocation27 + $0xa54] ss:$28 sps:$4 sm:$0xff]  }
 0xb5e   :  { %12027 = vmatprep.subr.bf16.mxu1 %v15588_v14  ;;  %12199 = vmatprep.subr.bf16.mxu0 %v15591_v16 }
 0xb61   :  { %12028 = vmatpush1.bf16.msra.mxu1 %v15586_v17  ;;  %12200 = vmatpush1.bf16.msra.mxu0 %v15589_v19 }
 0xb62   :  { %12029 = vmatprep.subr.bf16.mxu1 %v15594_v20  ;;  %12201 = vmatprep.subr.bf16.mxu0 %v15597_v22 }
 0xb65   :  { %12030 = vmatpush1.bf16.msra.mxu1 %v15592_v24  ;;  %12202 = vmatpush1.bf16.msra.mxu0 %v15595_v25 }
 0xb66   :  { %12031 = vmatprep.subr.bf16.mxu1 %v15600_v26  ;;  %12203 = vmatprep.subr.bf16.mxu0 %v15603_v27  ;;  %v15646_v26 = vld [vmem:[#allocation27 + $0xa48] ss:$28 sps:$4 sm:$0xff]   ;;  %v15649_v27 = vld [vmem:[#allocation27 + $0xa50] ss:$28 sps:$4 sm:$0xff]  }
 0xb69   :  { %12032 = vmatpush1.bf16.msra.mxu1 %v15598_v28  ;;  %12204 = vmatpush1.bf16.msra.mxu0 %v15601_v33 }
 0xb6a   :  { %12033 = vmatprep.subr.bf16.mxu1 %v15606_v34  ;;  %12205 = vmatprep.subr.bf16.mxu0 %v15609_v15  ;;  %v15654_v15 = vld [vmem:[#allocation27 + $0xa84] ss:$28 sps:$4 sm:$0xff]  }
 0xb6d   :  { %12034 = vmatpush1.bf16.msra.mxu1 %v15604_v59  ;;  %12206 = vmatpush1.bf16.msra.mxu0 %v15607_v41  ;;  %v15657_v59 = vld [vmem:[#allocation27 + $0xa8c] ss:$28 sps:$4 sm:$0xff]  }
 0xb6e   :  { %12035 = vmatprep.subr.bf16.mxu1 %v15612_v42  ;;  %12207 = vmatprep.subr.bf16.mxu0 %v15615_v43 }
 0xb71   :  { %12036 = vmatpush1.bf16.msra.mxu1 %v15610_v47  ;;  %12208 = vmatpush1.bf16.msra.mxu0 %v15613_v23 }
 0xb72   :  { %12037 = vmatprep.subr.bf16.mxu1 %v15618_v49  ;;  %12209 = vmatprep.subr.bf16.mxu0 %v15621_v31 }
 0xb75   :  { %12038 = vmatpush1.bf16.msra.mxu1 %v15616_v35  ;;  %12210 = vmatpush1.bf16.msra.mxu0 %v15619_v3 }
 0xb76   :  { %12039 = vmatprep.subr.bf16.mxu1 %v15624_v52  ;;  %12211 = vmatprep.subr.bf16.mxu0 %v15627_v54  ;;  %v15652_v52 = vld [vmem:[#allocation27 + $0xa80] ss:$28 sps:$4 sm:$0xff]   ;;  %v15655_v54 = vld [vmem:[#allocation27 + $0xa88] ss:$28 sps:$4 sm:$0xff]  }
 0xb79   :  { %12040 = vmatpush1.bf16.msra.mxu1 %v15622_v40  ;;  %12212 = vmatpush1.bf16.msra.mxu0 %v15625_v55  ;;  %v15660_v55 = vld [vmem:[#allocation27 + $0xabc] ss:$28 sps:$4 sm:$0xff]  }
 0xb7a   :  { %12041 = vmatprep.subr.bf16.mxu1 %v15630_v56  ;;  %12213 = vmatprep.subr.bf16.mxu0 %v15633_v57  ;;  %v15663_v56 = vld [vmem:[#allocation27 + $0xac4] ss:$28 sps:$4 sm:$0xff]   ;;  %v15658_v57 = vld [vmem:[#allocation27 + $0xab8] ss:$28 sps:$4 sm:$0xff]  }
 0xb7d   :  { %12042 = vmatpush1.bf16.msra.mxu1 %v15628_v58  ;;  %12214 = vmatpush1.bf16.msra.mxu0 %v15631_v37  ;;  %v15661_v58 = vld [vmem:[#allocation27 + $0xac0] ss:$28 sps:$4 sm:$0xff]   ;;  %v15666_v37 = vld [vmem:[#allocation27 + $0xaf4] ss:$28 sps:$4 sm:$0xff]  }
 0xb7e   :  { %12043 = vmatprep.subr.bf16.mxu1 %v15636_v61  ;;  %12215 = vmatprep.subr.bf16.mxu0 %v15639_v63  ;;  %v15669_v61 = vld [vmem:[#allocation27 + $0xafc] ss:$28 sps:$4 sm:$0xff]   ;;  %v15664_v63 = vld [vmem:[#allocation27 + $0xaf0] ss:$28 sps:$4 sm:$0xff]  }
 0xb81   :  { %12044 = vmatpush1.bf16.msra.mxu1 %v15634_v1  ;;  %12216 = vmatpush1.bf16.msra.mxu0 %v15637_v45  ;;  %v8959_v51 = vpop.f32.mrb[32].mxu1  ;;  %v15667_v1 = vld [vmem:[#allocation27 + $0xaf8] ss:$28 sps:$4 sm:$0xff]   ;;  %v15672_v45 = vld [vmem:[#allocation27 + $0xb2c] ss:$28 sps:$4 sm:$0xff]  }
 0xb82   :  { %v14555_v9 = vadd.f32 %v8959_v51, %v7409_v29  ;;  %v9045_v10 = vpop.f32.mrb[28].mxu0  ;;  %v8961_v11 = vpop.f32.mrb[33].mxu1  ;;  %12045 = vmatprep.subr.bf16.mxu1 %v15642_v36  ;;  %12217 = vmatprep.subr.bf16.mxu0 %v15645_v50  ;;  %v15670_v36 = vld [vmem:[#allocation27 + $0xb28] ss:$28 sps:$4 sm:$0xff]   ;;  %v15673_v50 = vld [vmem:[#allocation27 + $0xb30] ss:$28 sps:$4 sm:$0xff]  }
 0xb83   :  { %v14559_v14 = vadd.f32 %v9045_v10, %v7417_v6  ;;  %v14556_v16 = vadd.f32 %v8961_v11, %v7413_v4  ;;  %v9047_v17 = vpop.f32.mrb[29].mxu0  ;;  %v8963_v19 = vpop.f32.mrb[34].mxu1  ;;  %v15679_v51 = vld [vmem:[#allocation27 + $0xb68] ss:$28 sps:$4 sm:$0xff]   ;;  %v15685_v10 = vld [vmem:[#allocation27 + $0xba0] ss:$28 sps:$4 sm:$0xff]  }
 0xb84   :  { %v14560_v20 = vadd.f32 %v9047_v17, %v7421_v8  ;;  %v14557_v53 = vadd.f32 %v8963_v19, %v7409_v29  ;;  %v9049_v22 = vpop.f32.mrb[30].mxu0  ;;  %v8965_v39 = vpop.f32.mrb[35].mxu1  ;;  %v9058_v28 = vmax.f32 %v14555_v9, 0.0  ;;  %v15675_v29 = vld [vmem:[#allocation27 + $0xb34] ss:$28 sps:$4 sm:$0xff]  }
 0xb85   :  { %v14561_v46 = vadd.f32 %v9049_v22, %v7417_v6  ;;  %v14558_v24 = vadd.f32 %v8965_v39, %v7413_v4  ;;  %v9051_v25 = vpop.f32.mrb[31].mxu0  ;;  %12046 = vmatpush1.bf16.msra.mxu1 %v15640_v48  ;;  %12218 = vmatpush1.bf16.msra.mxu0 %v15643_v60  ;;  %v9060_v41 = vmax.f32 %v14559_v14, 0.0  ;;  %v9059_v42 = vmax.f32 %v14556_v16, 0.0  ;;  %v15678_v6 = vld [vmem:[#allocation27 + $0xb64] ss:$28 sps:$4 sm:$0xff]  }
 0xb86   :  { %v9066_v33 = vmax.f32 %v14557_v53, 0.0  ;;  %v14562_v34 = vadd.f32 %v9051_v25, %v7421_v8  ;;  %12047 = vmatprep.subr.bf16.mxu1 %v15648_v12  ;;  %12219 = vmatprep.subr.bf16.mxu0 %v15651_v13  ;;  %v9061_v23 = vmax.f32 %v14560_v20, 0.0  ;;  %v15681_v4 = vld [vmem:[#allocation27 + $0xb6c] ss:$28 sps:$4 sm:$0xff]   ;;  %v15676_v8 = vld [vmem:[#allocation27 + $0xb60] ss:$28 sps:$4 sm:$0xff]  }
 0xb87   :  { %v9068_v43 = vmax.f32 %v14561_v46, 0.0  ;;  %v9067_v47 = vmax.f32 %v14558_v24, 0.0  ;;  %v15684_v48 = vld [vmem:[#allocation27 + $0xb9c] ss:$28 sps:$4 sm:$0xff]   ;;  %v15687_v60 = vld [vmem:[#allocation27 + $0xba4] ss:$28 sps:$4 sm:$0xff]  }
 0xb88   :  { %v17121_v49 = vpack.c.bf16 %v9066_v33, %v9058_v28  ;;  %v9069_v31 = vmax.f32 %v14562_v34, 0.0  ;;  %v15682_v9 = vld [vmem:[#allocation27 + $0xb98] ss:$28 sps:$4 sm:$0xff]   ;;  %v15688_v13 = vld [vmem:[#allocation27 + $0xbd0] ss:$28 sps:$4 sm:$0xff]  }
 0xb89   :  { %v17123_v35 = vpack.c.bf16 %v9068_v43, %v9060_v41  ;;  %v17125_v3 = vpack.c.bf16 %v9067_v47, %v9059_v42  ;;  %12048 = vmatpush1.bf16.msra.mxu1 %v15646_v26  ;;  %12220 = vmatpush1.bf16.msra.mxu0 %v15649_v27  ;;  %v15690_v11 = vld [vmem:[#allocation27 + $0xbd4] ss:$28 sps:$4 sm:$0xff]   ;;  %v15693_v12 = vld [vmem:[#allocation27 + $0xbdc] ss:$28 sps:$4 sm:$0xff]   ;;  %v15696_v16 = vld [vmem:[#allocation27 + $0xc0c] ss:$28 sps:$4 sm:$0xff]  }
 0xb8a   :  { %v17127_v40 = vpack.c.bf16 %v9069_v31, %v9061_v23  ;;  %12060 = vmatprep.subr.bf16.mxu1 %v15654_v15  ;;  %12232 = vmatprep.subr.bf16.mxu0 %v15657_v59  ;;  %v15691_v14 = vld [vmem:[#allocation27 + $0xbd8] ss:$28 sps:$4 sm:$0xff]   ;;  %v15694_v19 = vld [vmem:[#allocation27 + $0xc08] ss:$28 sps:$4 sm:$0xff]   ;;  %v15697_v20 = vld [vmem:[#allocation27 + $0xc10] ss:$28 sps:$4 sm:$0xff]  }
 0xb8b   :  { %12049 = vmatprep.mubr.bf16.mxu1 %v17125_v3  ;;  %12221 = vmatprep.mubr.bf16.mxu0 %v17125_v3  ;;  %v15699_v17 = vld [vmem:[#allocation27 + $0xc14] ss:$28 sps:$4 sm:$0xff]   ;;  %v15702_v53 = vld [vmem:[#allocation27 + $0xc44] ss:$28 sps:$4 sm:$0xff]   ;;  %v15705_v22 = vld [vmem:[#allocation27 + $0xc4c] ss:$28 sps:$4 sm:$0xff]  }
 0xb8c   :  { %12050 = vmatmul.mubr.bf16.vlgmr.msra.gmra.mrb[36].mxu1 %v17121_v49  ;;  %12222 = vmatmul.mubr.bf16.vlgmr.msra.gmra.mrb[32].mxu0 %v17121_v49  ;;  %v15700_v39 = vld [vmem:[#allocation27 + $0xc40] ss:$28 sps:$4 sm:$0xff]   ;;  %v15703_v46 = vld [vmem:[#allocation27 + $0xc48] ss:$28 sps:$4 sm:$0xff]   ;;  %v15706_v26 = vld [vmem:[#allocation27 + $0xc78] ss:$28 sps:$4 sm:$0xff]  }
 0xb8d   :  { %12061 = vmatpush1.bf16.msra.mxu1 %v15652_v52  ;;  %12233 = vmatpush1.bf16.msra.mxu0 %v15655_v54  ;;  %v15708_v24 = vld [vmem:[#allocation27 + $0xc7c] ss:$28 sps:$4 sm:$0xff]   ;;  %v15711_v25 = vld [vmem:[#allocation27 + $0xc84] ss:$28 sps:$4 sm:$0xff]   ;;  %v15714_v28 = vld [vmem:[#allocation27 + $0xcb4] ss:$28 sps:$4 sm:$0xff]  }
 0xb8e   :  { %12092 = vmatprep.mubr.bf16.mxu1 %v17127_v40  ;;  %12264 = vmatprep.mubr.bf16.mxu0 %v17127_v40  ;;  %v15709_v27 = vld [vmem:[#allocation27 + $0xc80] ss:$28 sps:$4 sm:$0xff]   ;;  %v15712_v34 = vld [vmem:[#allocation27 + $0xcb0] ss:$28 sps:$4 sm:$0xff]   ;;  %v15715_v15 = vld [vmem:[#allocation27 + $0xcb8] ss:$28 sps:$4 sm:$0xff]  }
 0xb8f   :  { %12062 = vmatprep.subr.bf16.mxu1 %v15660_v55  ;;  %12234 = vmatprep.subr.bf16.mxu0 %v15663_v56  ;;  %v15717_v33 = vld [vmem:[#allocation27 + $0xcbc] ss:$28 sps:$4 sm:$0xff]   ;;  %v15720_v59 = vld [vmem:[#allocation27 + $0xcec] ss:$28 sps:$4 sm:$0xff]   ;;  %v15723_v41 = vld [vmem:[#allocation27 + $0xcf4] ss:$28 sps:$4 sm:$0xff]  }
 0xb90   :  { %v15718_v42 = vld [vmem:[#allocation27 + $0xce8] ss:$28 sps:$4 sm:$0xff]   ;;  %v15721_v43 = vld [vmem:[#allocation27 + $0xcf0] ss:$28 sps:$4 sm:$0xff]   ;;  %v15724_v31 = vld [vmem:[#allocation27 + $0xd20] ss:$28 sps:$4 sm:$0xff]  }
 0xb91   :  { %12063 = vmatpush1.bf16.msra.mxu1 %v15658_v57  ;;  %12235 = vmatpush1.bf16.msra.mxu0 %v15661_v58  ;;  %v15726_v47 = vld [vmem:[#allocation27 + $0xd24] ss:$28 sps:$4 sm:$0xff]   ;;  %v15729_v23 = vld [vmem:[#allocation27 + $0xd2c] ss:$28 sps:$4 sm:$0xff]   ;;  %v15732_v54 = vld [vmem:[#allocation27 + $0xd5c] ss:$28 sps:$4 sm:$0xff]  }
 0xb92   :  { %12064 = vmatprep.subr.bf16.mxu1 %v15666_v37  ;;  %12236 = vmatprep.subr.bf16.mxu0 %v15669_v61  ;;  %v15727_v52 = vld [vmem:[#allocation27 + $0xd28] ss:$28 sps:$4 sm:$0xff]   ;;  %v15730_v56 = vld [vmem:[#allocation27 + $0xd58] ss:$28 sps:$4 sm:$0xff]   ;;  %v15733_v57 = vld [vmem:[#allocation27 + $0xd60] ss:$28 sps:$4 sm:$0xff]  }
 0xb93   :  { %v15735_v55 = vld [vmem:[#allocation27 + $0xd64] ss:$28 sps:$4 sm:$0xff]   ;;  %v15738_v58 = vld [vmem:[#allocation27 + $0xd94] ss:$28 sps:$4 sm:$0xff]   ;;  %v15741_v37 = vld [vmem:[#allocation27 + $0xd9c] ss:$28 sps:$4 sm:$0xff]  }
 0xb94   :  { %v15736_v61 = vld [vmem:[#allocation27 + $0xd90] ss:$28 sps:$4 sm:$0xff]  }
 0xb95   :  { %12065 = vmatpush1.bf16.msra.mxu1 %v15664_v63  ;;  %12237 = vmatpush1.bf16.msra.mxu0 %v15667_v1  ;;  %v15739_v63 = vld [vmem:[#allocation27 + $0xd98] ss:$28 sps:$4 sm:$0xff]   ;;  %v15744_v1 = vld [vmem:[#allocation27 + $0xdcc] ss:$28 sps:$4 sm:$0xff]  }
 0xb96   :  { %12066 = vmatprep.subr.bf16.mxu1 %v15672_v45  ;;  %12238 = vmatprep.subr.bf16.mxu0 %v15675_v29  ;;  %v15747_v45 = vld [vmem:[#allocation27 + $0xdd4] ss:$28 sps:$4 sm:$0xff]   ;;  %v15742_v29 = vld [vmem:[#allocation27 + $0xdc8] ss:$28 sps:$4 sm:$0xff]  }
 0xb99   :  { %12067 = vmatpush1.bf16.msra.mxu1 %v15670_v36  ;;  %12239 = vmatpush1.bf16.msra.mxu0 %v15673_v50  ;;  %v15745_v36 = vld [vmem:[#allocation27 + $0xdd0] ss:$28 sps:$4 sm:$0xff]  }
 0xb9a   :  { %12068 = vmatprep.subr.bf16.mxu1 %v15678_v6  ;;  %12240 = vmatprep.subr.bf16.mxu0 %v15681_v4  ;;  %v15750_v50 = vld [vmem:[#allocation27 + $0x14] ss:$28 sps:$4 sm:$0xff]  }
 0xb9b   :  { %v15751_v6 = vld [vmem:[#allocation27 + $0x1d8] ss:$28 sps:$4 sm:$0xff]   ;;  %v15748_v4 = vld [vmem:[#allocation27 + $0x10] ss:$28 sps:$4 sm:$0xff]  }
 0xb9d   :  { %12069 = vmatpush1.bf16.msra.mxu1 %v15676_v8  ;;  %12241 = vmatpush1.bf16.msra.mxu0 %v15679_v51  ;;  %v15752_v8 = vld [vmem:[#allocation27 + $0x18] ss:$28 sps:$4 sm:$0xff]   ;;  %v15755_v51 = vld [vmem:[#allocation27 + $0x4c] ss:$28 sps:$4 sm:$0xff]  }
 0xb9e   :  { %12070 = vmatprep.subr.bf16.mxu1 %v15684_v48  ;;  %12242 = vmatprep.subr.bf16.mxu0 %v15687_v60  ;;  %v15756_v48 = vld [vmem:[#allocation27 + $0x210] ss:$28 sps:$4 sm:$0xff]   ;;  %v15753_v60 = vld [vmem:[#allocation27 + $0x48] ss:$28 sps:$4 sm:$0xff]  }
 0xba1   :  { %12071 = vmatpush1.bf16.msra.mxu1 %v15682_v9  ;;  %12243 = vmatpush1.bf16.msra.mxu0 %v15685_v10  ;;  %v15757_v9 = vld [vmem:[#allocation27 + $0x50] ss:$28 sps:$4 sm:$0xff]   ;;  %v15760_v10 = vld [vmem:[#allocation27 + $0x84] ss:$28 sps:$4 sm:$0xff]  }
 0xba2   :  { %12072 = vmatprep.subr.bf16.mxu1 %v15690_v11  ;;  %12244 = vmatprep.subr.bf16.mxu0 %v15693_v12  ;;  %v15761_v11 = vld [vmem:[#allocation27 + $0x248] ss:$28 sps:$4 sm:$0xff]   ;;  %v15758_v12 = vld [vmem:[#allocation27 + $0x80] ss:$28 sps:$4 sm:$0xff]  }
 0xba5   :  { %12073 = vmatpush1.bf16.msra.mxu1 %v15688_v13  ;;  %12245 = vmatpush1.bf16.msra.mxu0 %v15691_v14  ;;  %v15762_v13 = vld [vmem:[#allocation27 + $0x88] ss:$28 sps:$4 sm:$0xff]   ;;  %v15765_v14 = vld [vmem:[#allocation27 + $0xbc] ss:$28 sps:$4 sm:$0xff]  }
 0xba6   :  { %12074 = vmatprep.subr.bf16.mxu1 %v15696_v16  ;;  %12246 = vmatprep.subr.bf16.mxu0 %v15699_v17  ;;  %v15766_v16 = vld [vmem:[#allocation27 + $0x280] ss:$28 sps:$4 sm:$0xff]   ;;  %v15763_v17 = vld [vmem:[#allocation27 + $0xb8] ss:$28 sps:$4 sm:$0xff]  }
 0xba9   :  { %12075 = vmatpush1.bf16.msra.mxu1 %v15694_v19  ;;  %12247 = vmatpush1.bf16.msra.mxu0 %v15697_v20  ;;  %v15767_v19 = vld [vmem:[#allocation27 + $0xc0] ss:$28 sps:$4 sm:$0xff]   ;;  %v15770_v20 = vld [vmem:[#allocation27 + $0xf4] ss:$28 sps:$4 sm:$0xff]  }
 0xbaa   :  { %12076 = vmatprep.subr.bf16.mxu1 %v15702_v53  ;;  %12248 = vmatprep.subr.bf16.mxu0 %v15705_v22  ;;  %v15768_v53 = vld [vmem:[#allocation27 + $0xf0] ss:$28 sps:$4 sm:$0xff]   ;;  %v15772_v22 = vld [vmem:[#allocation27 + $0xf8] ss:$28 sps:$4 sm:$0xff]  }
 0xbad   :  { %12077 = vmatpush1.bf16.msra.mxu1 %v15700_v39  ;;  %12249 = vmatpush1.bf16.msra.mxu0 %v15703_v46  ;;  %v15775_v39 = vld [vmem:[#allocation27 + $0x12c] ss:$28 sps:$4 sm:$0xff]  }
 0xbae   :  { %12078 = vmatprep.subr.bf16.mxu1 %v15708_v24  ;;  %12250 = vmatprep.subr.bf16.mxu0 %v15711_v25  ;;  %v15776_v46 = vld [vmem:[#allocation27 + $0x2f0] ss:$28 sps:$4 sm:$0xff]   ;;  %v15773_v24 = vld [vmem:[#allocation27 + $0x128] ss:$28 sps:$4 sm:$0xff]  }
 0xbaf   :  { %v15777_v25 = vld [vmem:[#allocation27 + $0x130] ss:$28 sps:$4 sm:$0xff]  }
 0xbb1   :  { %12079 = vmatpush1.bf16.msra.mxu1 %v15706_v26  ;;  %12251 = vmatpush1.bf16.msra.mxu0 %v15709_v27  ;;  %v15780_v26 = vld [vmem:[#allocation27 + $0x164] ss:$28 sps:$4 sm:$0xff]  }
 0xbb2   :  { %12080 = vmatprep.subr.bf16.mxu1 %v15714_v28  ;;  %12252 = vmatprep.subr.bf16.mxu0 %v15717_v33  ;;  %v15781_v27 = vld [vmem:[#allocation27 + $0x328] ss:$28 sps:$4 sm:$0xff]   ;;  %v15778_v28 = vld [vmem:[#allocation27 + $0x160] ss:$28 sps:$4 sm:$0xff]  }
 0xbb3   :  { %v15782_v33 = vld [vmem:[#allocation27 + $0x168] ss:$28 sps:$4 sm:$0xff]  }
 0xbb5   :  { %12081 = vmatpush1.bf16.msra.mxu1 %v15712_v34  ;;  %12253 = vmatpush1.bf16.msra.mxu0 %v15715_v15  ;;  %v15785_v34 = vld [vmem:[#allocation27 + $0x19c] ss:$28 sps:$4 sm:$0xff]  }
 0xbb6   :  { %12082 = vmatprep.subr.bf16.mxu1 %v15720_v59  ;;  %12254 = vmatprep.subr.bf16.mxu0 %v15723_v41  ;;  %v15786_v15 = vld [vmem:[#allocation27 + $0x360] ss:$28 sps:$4 sm:$0xff]   ;;  %v15783_v59 = vld [vmem:[#allocation27 + $0x198] ss:$28 sps:$4 sm:$0xff]  }
 0xbb7   :  { %v15787_v41 = vld [vmem:[#allocation27 + $0x1a0] ss:$28 sps:$4 sm:$0xff]  }
 0xbb9   :  { %12083 = vmatpush1.bf16.msra.mxu1 %v15718_v42  ;;  %12255 = vmatpush1.bf16.msra.mxu0 %v15721_v43  ;;  %v15790_v42 = vld [vmem:[#allocation27 + $0x1d4] ss:$28 sps:$4 sm:$0xff]  }
 0xbba   :  { %12084 = vmatprep.subr.bf16.mxu1 %v15726_v47  ;;  %12256 = vmatprep.subr.bf16.mxu0 %v15729_v23  ;;  %v15791_v43 = vld [vmem:[#allocation27 + $0x558] ss:$28 sps:$4 sm:$0xff]   ;;  %v15788_v47 = vld [vmem:[#allocation27 + $0x1d0] ss:$28 sps:$4 sm:$0xff]  }
 0xbbb   :  { %v15792_v23 = vld [vmem:[#allocation27 + $0x398] ss:$28 sps:$4 sm:$0xff]  }
 0xbbd   :  { %12085 = vmatpush1.bf16.msra.mxu1 %v15724_v31  ;;  %12257 = vmatpush1.bf16.msra.mxu0 %v15727_v52  ;;  %v15795_v31 = vld [vmem:[#allocation27 + $0x20c] ss:$28 sps:$4 sm:$0xff]  }
 0xbbe   :  { %12086 = vmatprep.subr.bf16.mxu1 %v15732_v54  ;;  %12258 = vmatprep.subr.bf16.mxu0 %v15735_v55  ;;  %v15796_v52 = vld [vmem:[#allocation27 + $0x590] ss:$28 sps:$4 sm:$0xff]   ;;  %v15793_v54 = vld [vmem:[#allocation27 + $0x208] ss:$28 sps:$4 sm:$0xff]  }
 0xbbf   :  { %v15797_v55 = vld [vmem:[#allocation27 + $0x3d0] ss:$28 sps:$4 sm:$0xff]  }
 0xbc1   :  { %12087 = vmatpush1.bf16.msra.mxu1 %v15730_v56  ;;  %12259 = vmatpush1.bf16.msra.mxu0 %v15733_v57  ;;  %v15800_v56 = vld [vmem:[#allocation27 + $0x244] ss:$28 sps:$4 sm:$0xff]  }
 0xbc2   :  { %12088 = vmatprep.subr.bf16.mxu1 %v15738_v58  ;;  %12260 = vmatprep.subr.bf16.mxu0 %v15741_v37  ;;  %v15801_v57 = vld [vmem:[#allocation27 + $0x5c8] ss:$28 sps:$4 sm:$0xff]   ;;  %v15798_v58 = vld [vmem:[#allocation27 + $0x240] ss:$28 sps:$4 sm:$0xff]  }
 0xbc3   :  { %v15802_v37 = vld [vmem:[#allocation27 + $0x408] ss:$28 sps:$4 sm:$0xff]  }
 0xbc5   :  { %12089 = vmatpush1.bf16.msra.mxu1 %v15736_v61  ;;  %12261 = vmatpush1.bf16.msra.mxu0 %v15739_v63  ;;  %v15805_v61 = vld [vmem:[#allocation27 + $0x27c] ss:$28 sps:$4 sm:$0xff]  }
 0xbc6   :  { %12090 = vmatprep.subr.bf16.mxu1 %v15744_v1  ;;  %12262 = vmatprep.subr.bf16.mxu0 %v15747_v45  ;;  %v15806_v63 = vld [vmem:[#allocation27 + $0x600] ss:$28 sps:$4 sm:$0xff]   ;;  %v15803_v1 = vld [vmem:[#allocation27 + $0x278] ss:$28 sps:$4 sm:$0xff]  }
 0xbc7   :  { %v15807_v45 = vld [vmem:[#allocation27 + $0x440] ss:$28 sps:$4 sm:$0xff]  }
 0xbc9   :  { %12091 = vmatpush1.bf16.msra.mxu1 %v15742_v29  ;;  %12263 = vmatpush1.bf16.msra.mxu0 %v15745_v36  ;;  %v15810_v29 = vld [vmem:[#allocation27 + $0x2b4] ss:$28 sps:$4 sm:$0xff]  }
 0xbca   :  { %12275 = vmatprep.subr.bf16.mxu1 %v15750_v50  ;;  %14407 = vmatprep.subr.bf16.mxu0 %v15751_v6  ;;  %v15811_v36 = vld [vmem:[#allocation27 + $0x638] ss:$28 sps:$4 sm:$0xff]   ;;  %v15808_v50 = vld [vmem:[#allocation27 + $0x2b0] ss:$28 sps:$4 sm:$0xff]  }
 0xbcb   :  { %v15812_v6 = vld [vmem:[#allocation27 + $0x478] ss:$28 sps:$4 sm:$0xff]  }
 0xbcc   :  { %12093 = vmatmul.mubr.bf16.vlgmr.msra.gmra.mrb[36].mxu1 %v17123_v35  ;;  %12265 = vmatmul.mubr.bf16.vlgmr.msra.gmra.mrb[32].mxu0 %v17123_v35 }
 0xbcd   :  { %12276 = vmatpush1.bf16.msra.mxu1 %v15748_v4  ;;  %12307 = vmatprep.mubr.bf16.mxu1 %v17100_v21  ;;  %v15815_v4 = vld [vmem:[#allocation27 + $0x2ec] ss:$28 sps:$4 sm:$0xff]  }
 0xbce   :  { %14408 = vmatpush3.bf16.msra.mxu0 %v15752_v8  ;;  %12479 = vmatprep.mubr.bf16.mxu0 %v17100_v21  ;;  %v15771_v21 = vld [vmem:[#allocation27 + $0x2b8] ss:$28 sps:$4 sm:$0xff]   ;;  %v15816_v8 = vld [vmem:[#allocation27 + $0x670] ss:$28 sps:$4 sm:$0xff]  }
 0xbcf   :  { %12277 = vmatprep.subr.bf16.mxu1 %v15755_v51  ;;  %14409 = vmatprep.subr.bf16.mxu0 %v15756_v48  ;;  %v15813_v51 = vld [vmem:[#allocation27 + $0x2e8] ss:$28 sps:$4 sm:$0xff]   ;;  %v15817_v48 = vld [vmem:[#allocation27 + $0x4b0] ss:$28 sps:$4 sm:$0xff]  }
 0xbd1   :  { %12278 = vmatpush1.bf16.msra.mxu1 %v15753_v60  ;;  %v15820_v60 = vld [vmem:[#allocation27 + $0x324] ss:$28 sps:$4 sm:$0xff]  }
 0xbd2   :  { %14410 = vmatpush3.bf16.msra.mxu0 %v15757_v9  ;;  %12279 = vmatprep.subr.bf16.mxu1 %v15760_v10  ;;  %v15821_v9 = vld [vmem:[#allocation27 + $0x6a8] ss:$28 sps:$4 sm:$0xff]   ;;  %v15818_v10 = vld [vmem:[#allocation27 + $0x320] ss:$28 sps:$4 sm:$0xff]  }
 0xbd3   :  { %14411 = vmatprep.subr.bf16.mxu0 %v15761_v11  ;;  %v15822_v11 = vld [vmem:[#allocation27 + $0x4e8] ss:$28 sps:$4 sm:$0xff]  }
 0xbd5   :  { %12280 = vmatpush1.bf16.msra.mxu1 %v15758_v12  ;;  %v15825_v12 = vld [vmem:[#allocation27 + $0x35c] ss:$28 sps:$4 sm:$0xff]  }
 0xbd6   :  { %14412 = vmatpush3.bf16.msra.mxu0 %v15762_v13  ;;  %12281 = vmatprep.subr.bf16.mxu1 %v15765_v14  ;;  %v15826_v13 = vld [vmem:[#allocation27 + $0x6e0] ss:$28 sps:$4 sm:$0xff]   ;;  %v15823_v14 = vld [vmem:[#allocation27 + $0x358] ss:$28 sps:$4 sm:$0xff]  }
 0xbd7   :  { %14413 = vmatprep.subr.bf16.mxu0 %v15766_v16  ;;  %v15827_v16 = vld [vmem:[#allocation27 + $0x520] ss:$28 sps:$4 sm:$0xff]  }
 0xbd9   :  { %12282 = vmatpush1.bf16.msra.mxu1 %v15763_v17  ;;  %v15830_v17 = vld [vmem:[#allocation27 + $0x394] ss:$28 sps:$4 sm:$0xff]  }
 0xbda   :  { %14414 = vmatpush3.bf16.msra.mxu0 %v15767_v19  ;;  %12283 = vmatprep.subr.bf16.mxu1 %v15770_v20  ;;  %v15831_v19 = vld [vmem:[#allocation27 + $0x8d8] ss:$28 sps:$4 sm:$0xff]   ;;  %v15828_v20 = vld [vmem:[#allocation27 + $0x390] ss:$28 sps:$4 sm:$0xff]  }
 0xbdb   :  { %14415 = vmatprep.subr.bf16.mxu0 %v15771_v21  ;;  %v15832_v21 = vld [vmem:[#allocation27 + $0x718] ss:$28 sps:$4 sm:$0xff]  }
 0xbdd   :  { %12284 = vmatpush1.bf16.msra.mxu1 %v15768_v53  ;;  %v15835_v53 = vld [vmem:[#allocation27 + $0x3cc] ss:$28 sps:$4 sm:$0xff]  }
 0xbde   :  { %14416 = vmatpush3.bf16.msra.mxu0 %v15772_v22  ;;  %12285 = vmatprep.subr.bf16.mxu1 %v15775_v39  ;;  %v15836_v22 = vld [vmem:[#allocation27 + $0x910] ss:$28 sps:$4 sm:$0xff]   ;;  %v15833_v39 = vld [vmem:[#allocation27 + $0x3c8] ss:$28 sps:$4 sm:$0xff]  }
 0xbdf   :  { %14417 = vmatprep.subr.bf16.mxu0 %v15776_v46  ;;  %v15837_v46 = vld [vmem:[#allocation27 + $0x750] ss:$28 sps:$4 sm:$0xff]  }
 0xbe1   :  { %12286 = vmatpush1.bf16.msra.mxu1 %v15773_v24  ;;  %v15840_v24 = vld [vmem:[#allocation27 + $0x404] ss:$28 sps:$4 sm:$0xff]  }
 0xbe2   :  { %14418 = vmatpush3.bf16.msra.mxu0 %v15777_v25  ;;  %12287 = vmatprep.subr.bf16.mxu1 %v15780_v26  ;;  %v15841_v25 = vld [vmem:[#allocation27 + $0x948] ss:$28 sps:$4 sm:$0xff]   ;;  %v15838_v26 = vld [vmem:[#allocation27 + $0x400] ss:$28 sps:$4 sm:$0xff]  }
 0xbe3   :  { %14419 = vmatprep.subr.bf16.mxu0 %v15781_v27  ;;  %v15845_v27 = vld [vmem:[#allocation27 + $0x43c] ss:$28 sps:$4 sm:$0xff]  }
 0xbe5   :  { %12288 = vmatpush1.bf16.msra.mxu1 %v15778_v28  ;;  %v15846_v28 = vld [vmem:[#allocation27 + $0x980] ss:$28 sps:$4 sm:$0xff]  }
 0xbe6   :  { %14420 = vmatpush3.bf16.msra.mxu0 %v15782_v33  ;;  %12289 = vmatprep.subr.bf16.mxu1 %v15785_v34  ;;  %v15843_v33 = vld [vmem:[#allocation27 + $0x438] ss:$28 sps:$4 sm:$0xff]  }
 0xbe7   :  { %14421 = vmatprep.subr.bf16.mxu0 %v15786_v15  ;;  %v15850_v34 = vld [vmem:[#allocation27 + $0x474] ss:$28 sps:$4 sm:$0xff]  }
 0xbe8   :  { %v15851_v15 = vld [vmem:[#allocation27 + $0x9b8] ss:$28 sps:$4 sm:$0xff]  }
 0xbe9   :  { %12290 = vmatpush1.bf16.msra.mxu1 %v15783_v59  ;;  %v15848_v59 = vld [vmem:[#allocation27 + $0x470] ss:$28 sps:$4 sm:$0xff]  }
 0xbea   :  { %14422 = vmatpush3.bf16.msra.mxu0 %v15787_v41  ;;  %12291 = vmatprep.subr.bf16.mxu1 %v15790_v42  ;;  %v15852_v41 = vld [vmem:[#allocation27 + $0x7f8] ss:$28 sps:$4 sm:$0xff]   ;;  %v15855_v42 = vld [vmem:[#allocation27 + $0x4ac] ss:$28 sps:$4 sm:$0xff]  }
 0xbeb   :  { %14429 = vmatprep.subr.bf16.mxu0 %v15791_v43  ;;  %v15856_v43 = vld [vmem:[#allocation27 + $0x9f0] ss:$28 sps:$4 sm:$0xff]  }
 0xbed   :  { %12480 = vmatmul.mubr.bf16.vlgmr.msra.gmra.mrb[36].mxu0 %v17096_v44  ;;  %12292 = vmatpush1.bf16.msra.mxu1 %v15788_v47  ;;  %v15853_v47 = vld [vmem:[#allocation27 + $0x4a8] ss:$28 sps:$4 sm:$0xff]  }
 0xbee   :  { %14430 = vmatpush3.bf16.msra.mxu0 %v15792_v23  ;;  %12520 = vmatprep.mubr.bf16.mxu0 %v17102_v38  ;;  %v15857_v23 = vld [vmem:[#allocation27 + $0x830] ss:$28 sps:$4 sm:$0xff]  }
 0xbef   :  { %12293 = vmatprep.subr.bf16.mxu1 %v15795_v31  ;;  %14431 = vmatprep.subr.bf16.mxu0 %v15796_v52  ;;  %v15860_v31 = vld [vmem:[#allocation27 + $0x4e4] ss:$28 sps:$4 sm:$0xff]  }
 0xbf0   :  { %v15861_v52 = vld [vmem:[#allocation27 + $0xa28] ss:$28 sps:$4 sm:$0xff]  }
 0xbf1   :  { %12294 = vmatpush1.bf16.msra.mxu1 %v15793_v54  ;;  %v15858_v54 = vld [vmem:[#allocation27 + $0x4e0] ss:$28 sps:$4 sm:$0xff]  }
 0xbf2   :  { %14432 = vmatpush3.bf16.msra.mxu0 %v15797_v55  ;;  %12295 = vmatprep.subr.bf16.mxu1 %v15800_v56  ;;  %v15862_v55 = vld [vmem:[#allocation27 + $0x868] ss:$28 sps:$4 sm:$0xff]   ;;  %v15865_v56 = vld [vmem:[#allocation27 + $0x51c] ss:$28 sps:$4 sm:$0xff]  }
 0xbf3   :  { %14433 = vmatprep.subr.bf16.mxu0 %v15801_v57  ;;  %v15866_v57 = vld [vmem:[#allocation27 + $0xa60] ss:$28 sps:$4 sm:$0xff]  }
 0xbf5   :  { %12296 = vmatpush1.bf16.msra.mxu1 %v15798_v58  ;;  %v15863_v58 = vld [vmem:[#allocation27 + $0x518] ss:$28 sps:$4 sm:$0xff]  }
 0xbf6   :  { %14434 = vmatpush3.bf16.msra.mxu0 %v15802_v37  ;;  %12297 = vmatprep.subr.bf16.mxu1 %v15805_v61  ;;  %v15867_v37 = vld [vmem:[#allocation27 + $0x8a0] ss:$28 sps:$4 sm:$0xff]   ;;  %v15870_v61 = vld [vmem:[#allocation27 + $0x554] ss:$28 sps:$4 sm:$0xff]  }
 0xbf7   :  { %14435 = vmatprep.subr.bf16.mxu0 %v15806_v63  ;;  %v15871_v63 = vld [vmem:[#allocation27 + $0xc58] ss:$28 sps:$4 sm:$0xff]  }
 0xbf9   :  { %12298 = vmatpush1.bf16.msra.mxu1 %v15803_v1  ;;  %v15868_v1 = vld [vmem:[#allocation27 + $0x550] ss:$28 sps:$4 sm:$0xff]  }
 0xbfa   :  { %14436 = vmatpush3.bf16.msra.mxu0 %v15807_v45  ;;  %12299 = vmatprep.subr.bf16.mxu1 %v15810_v29  ;;  %v15872_v45 = vld [vmem:[#allocation27 + $0xa98] ss:$28 sps:$4 sm:$0xff]   ;;  %v15875_v29 = vld [vmem:[#allocation27 + $0x58c] ss:$28 sps:$4 sm:$0xff]  }
 0xbfb   :  { %14437 = vmatprep.subr.bf16.mxu0 %v15811_v36  ;;  %v15876_v36 = vld [vmem:[#allocation27 + $0xc90] ss:$28 sps:$4 sm:$0xff]  }
 0xbfd   :  { %12300 = vmatpush1.bf16.msra.mxu1 %v15808_v50  ;;  %v15873_v50 = vld [vmem:[#allocation27 + $0x588] ss:$28 sps:$4 sm:$0xff]  }
 0xbfe   :  { %14438 = vmatpush3.bf16.msra.mxu0 %v15812_v6  ;;  %12301 = vmatprep.subr.bf16.mxu1 %v15815_v4  ;;  %v15877_v6 = vld [vmem:[#allocation27 + $0xad0] ss:$28 sps:$4 sm:$0xff]   ;;  %v15880_v4 = vld [vmem:[#allocation27 + $0x5c4] ss:$28 sps:$4 sm:$0xff]  }
 0xbff   :  { %14439 = vmatprep.subr.bf16.mxu0 %v15816_v8  ;;  %v15881_v8 = vld [vmem:[#allocation27 + $0xcc8] ss:$28 sps:$4 sm:$0xff]  }
 0xc01   :  { %12302 = vmatpush1.bf16.msra.mxu1 %v15813_v51  ;;  %v15878_v51 = vld [vmem:[#allocation27 + $0x5c0] ss:$28 sps:$4 sm:$0xff]  }
 0xc02   :  { %14440 = vmatpush3.bf16.msra.mxu0 %v15817_v48  ;;  %12303 = vmatprep.subr.bf16.mxu1 %v15820_v60  ;;  %v15882_v48 = vld [vmem:[#allocation27 + $0xb08] ss:$28 sps:$4 sm:$0xff]   ;;  %v15885_v60 = vld [vmem:[#allocation27 + $0x5fc] ss:$28 sps:$4 sm:$0xff]  }
 0xc03   :  { %14441 = vmatprep.subr.bf16.mxu0 %v15821_v9  ;;  %v15886_v9 = vld [vmem:[#allocation27 + $0xd00] ss:$28 sps:$4 sm:$0xff]  }
 0xc05   :  { %12304 = vmatpush1.bf16.msra.mxu1 %v15818_v10  ;;  %v15883_v10 = vld [vmem:[#allocation27 + $0x5f8] ss:$28 sps:$4 sm:$0xff]  }
 0xc06   :  { %14442 = vmatpush3.bf16.msra.mxu0 %v15822_v11  ;;  %12305 = vmatprep.subr.bf16.mxu1 %v15825_v12  ;;  %v15887_v11 = vld [vmem:[#allocation27 + $0xb40] ss:$28 sps:$4 sm:$0xff]   ;;  %v15890_v12 = vld [vmem:[#allocation27 + $0x634] ss:$28 sps:$4 sm:$0xff]  }
 0xc07   :  { %14443 = vmatprep.subr.bf16.mxu0 %v15826_v13  ;;  %v15891_v13 = vld [vmem:[#allocation27 + $0xd38] ss:$28 sps:$4 sm:$0xff]  }
 0xc09   :  { %12306 = vmatpush1.bf16.msra.mxu1 %v15823_v14  ;;  %v15888_v14 = vld [vmem:[#allocation27 + $0x630] ss:$28 sps:$4 sm:$0xff]  }
 0xc0a   :  { %14444 = vmatpush3.bf16.msra.mxu0 %v15827_v16  ;;  %12318 = vmatprep.subr.bf16.mxu1 %v15830_v17  ;;  %v15892_v16 = vld [vmem:[#allocation27 + $0xb78] ss:$28 sps:$4 sm:$0xff]   ;;  %v15895_v17 = vld [vmem:[#allocation27 + $0x66c] ss:$28 sps:$4 sm:$0xff]  }
 0xc0b   :  { %14451 = vmatprep.subr.bf16.mxu0 %v15831_v19  ;;  %v15896_v19 = vld [vmem:[#allocation27 + $0xd70] ss:$28 sps:$4 sm:$0xff]  }
 0xc0c   :  { %12308 = vmatmul.mubr.bf16.vlgmr.msra.gmra.mrb[40].mxu1 %v17096_v44  ;;  %v15842_v44 = vld [vmem:[#allocation27 + $0x788] ss:$28 sps:$4 sm:$0xff]  }
 0xc0d   :  { %12521 = vmatmul.mubr.bf16.vlgmr.msra.gmra.mrb[40].mxu0 %v17098_v18  ;;  %12319 = vmatpush1.bf16.msra.mxu1 %v15828_v20  ;;  %v15893_v20 = vld [vmem:[#allocation27 + $0x668] ss:$28 sps:$4 sm:$0xff]  }
 0xc0e   :  { %12350 = vmatprep.mubr.bf16.mxu1 %v17102_v38  ;;  %14452 = vmatpush3.bf16.msra.mxu0 %v15832_v21  ;;  %v15847_v38 = vld [vmem:[#allocation27 + $0x7c0] ss:$28 sps:$4 sm:$0xff]   ;;  %v15897_v21 = vld [vmem:[#allocation27 + $0xbb0] ss:$28 sps:$4 sm:$0xff]  }
 0xc0f   :  { %12561 = vmatprep.mubr.bf16.mxu0 %v17125_v3  ;;  %12320 = vmatprep.subr.bf16.mxu1 %v15835_v53  ;;  %v15900_v53 = vld [vmem:[#allocation27 + $0x6a4] ss:$28 sps:$4 sm:$0xff]  }
 0xc10   :  { %14453 = vmatprep.subr.bf16.mxu0 %v15836_v22  ;;  %v15901_v22 = vld [vmem:[#allocation27 + $0xda8] ss:$28 sps:$4 sm:$0xff]  }
 0xc11   :  { %12321 = vmatpush1.bf16.msra.mxu1 %v15833_v39  ;;  %v15898_v39 = vld [vmem:[#allocation27 + $0x6a0] ss:$28 sps:$4 sm:$0xff]  }
 0xc12   :  { %14454 = vmatpush3.bf16.msra.mxu0 %v15837_v46  ;;  %12322 = vmatprep.subr.bf16.mxu1 %v15840_v24  ;;  %v15902_v46 = vld [vmem:[#allocation27 + $0xbe8] ss:$28 sps:$4 sm:$0xff]   ;;  %v15905_v24 = vld [vmem:[#allocation27 + $0x6dc] ss:$28 sps:$4 sm:$0xff]  }
 0xc13   :  { %14455 = vmatprep.subr.bf16.mxu0 %v15841_v25  ;;  %v15906_v25 = vld [vmem:[#allocation27 + $0xde0] ss:$28 sps:$4 sm:$0xff]  }
 0xc15   :  { %12323 = vmatpush1.bf16.msra.mxu1 %v15838_v26  ;;  %v15903_v26 = vld [vmem:[#allocation27 + $0x6d8] ss:$28 sps:$4 sm:$0xff]  }
 0xc16   :  { %14456 = vmatpush3.bf16.msra.mxu0 %v15842_v44  ;;  %12324 = vmatprep.subr.bf16.mxu1 %v15845_v27  ;;  %v15907_v44 = vld [vmem:[#allocation27 + $0xc20] ss:$28 sps:$4 sm:$0xff]   ;;  %v15910_v27 = vld [vmem:[#allocation27 + $0x714] ss:$28 sps:$4 sm:$0xff]  }
 0xc17   :  { %14457 = vmatprep.subr.bf16.mxu0 %v15846_v28  ;;  %v15908_v28 = vld [vmem:[#allocation27 + $0x710] ss:$28 sps:$4 sm:$0xff]  }
 0xc19   :  { %12325 = vmatpush1.bf16.msra.mxu1 %v15843_v33  ;;  %v15913_v33 = vld [vmem:[#allocation27 + $0x74c] ss:$28 sps:$4 sm:$0xff]  }
 0xc1a   :  { %14458 = vmatpush3.bf16.msra.mxu0 %v15847_v38  ;;  %12326 = vmatprep.subr.bf16.mxu1 %v15850_v34  ;;  %v15911_v38 = vld [vmem:[#allocation27 + $0x748] ss:$28 sps:$4 sm:$0xff]  }
 0xc1b   :  { %14459 = vmatprep.subr.bf16.mxu0 %v15851_v15  ;;  %v15916_v34 = vld [vmem:[#allocation27 + $0x784] ss:$28 sps:$4 sm:$0xff]  }
 0xc1c   :  { %v15914_v15 = vld [vmem:[#allocation27 + $0x780] ss:$28 sps:$4 sm:$0xff]  }
 0xc1d   :  { %12327 = vmatpush1.bf16.msra.mxu1 %v15848_v59  ;;  %v15919_v59 = vld [vmem:[#allocation27 + $0x7bc] ss:$28 sps:$4 sm:$0xff]  }
 0xc1e   :  { %14460 = vmatpush3.bf16.msra.mxu0 %v15852_v41  ;;  %12328 = vmatprep.subr.bf16.mxu1 %v15855_v42  ;;  %v15917_v41 = vld [vmem:[#allocation27 + $0x7b8] ss:$28 sps:$4 sm:$0xff]  }
 0xc1f   :  { %14461 = vmatprep.subr.bf16.mxu0 %v15856_v43  ;;  %v15922_v42 = vld [vmem:[#allocation27 + $0x7f4] ss:$28 sps:$4 sm:$0xff]  }
 0xc20   :  { %v15920_v43 = vld [vmem:[#allocation27 + $0x7f0] ss:$28 sps:$4 sm:$0xff]  }
 0xc21   :  { %12329 = vmatpush1.bf16.msra.mxu1 %v15853_v47  ;;  %v15923_v47 = vld [vmem:[#allocation27 + $0x828] ss:$28 sps:$4 sm:$0xff]  }
 0xc22   :  { %14462 = vmatpush3.bf16.msra.mxu0 %v15857_v23  ;;  %12330 = vmatprep.subr.bf16.mxu1 %v15860_v31  ;;  %v15928_v23 = vld [vmem:[#allocation27 + $0x864] ss:$28 sps:$4 sm:$0xff]   ;;  %v15931_v31 = vld [vmem:[#allocation27 + $0x89c] ss:$28 sps:$4 sm:$0xff]  }
 0xc23   :  { %14463 = vmatprep.subr.bf16.mxu0 %v15861_v52  ;;  %v15929_v52 = vld [vmem:[#allocation27 + $0x898] ss:$28 sps:$4 sm:$0xff]  }
 0xc25   :  { %12331 = vmatpush1.bf16.msra.mxu1 %v15858_v54  ;;  %v15934_v54 = vld [vmem:[#allocation27 + $0x8d4] ss:$28 sps:$4 sm:$0xff]  }
 0xc26   :  { %14464 = vmatpush3.bf16.msra.mxu0 %v15862_v55  ;;  %12332 = vmatprep.subr.bf16.mxu1 %v15865_v56  ;;  %v15932_v55 = vld [vmem:[#allocation27 + $0x8d0] ss:$28 sps:$4 sm:$0xff]  }
 0xc27   :  { %14465 = vmatprep.subr.bf16.mxu0 %v15866_v57  ;;  %v15937_v56 = vld [vmem:[#allocation27 + $0x90c] ss:$28 sps:$4 sm:$0xff]  }
 0xc28   :  { %v15935_v57 = vld [vmem:[#allocation27 + $0x908] ss:$28 sps:$4 sm:$0xff]  }
 0xc29   :  { %12333 = vmatpush1.bf16.msra.mxu1 %v15863_v58  ;;  %v15940_v58 = vld [vmem:[#allocation27 + $0x944] ss:$28 sps:$4 sm:$0xff]  }
 0xc2a   :  { %14466 = vmatpush3.bf16.msra.mxu0 %v15867_v37  ;;  %12334 = vmatprep.subr.bf16.mxu1 %v15870_v61  ;;  %v15938_v37 = vld [vmem:[#allocation27 + $0x940] ss:$28 sps:$4 sm:$0xff]  }
 0xc2b   :  { %14473 = vmatprep.subr.bf16.mxu0 %v15871_v63  ;;  %v15943_v61 = vld [vmem:[#allocation27 + $0x97c] ss:$28 sps:$4 sm:$0xff]  }
 0xc2c   :  { %v15941_v63 = vld [vmem:[#allocation27 + $0x978] ss:$28 sps:$4 sm:$0xff]  }
 0xc2d   :  { %12562 = vmatmul.mubr.bf16.vlgmr.msra.gmra.mrb[44].mxu0 %v17121_v49  ;;  %12335 = vmatpush1.bf16.msra.mxu1 %v15868_v1  ;;  %v15946_v1 = vld [vmem:[#allocation27 + $0x9b4] ss:$28 sps:$4 sm:$0xff]  }
 0xc2e   :  { %14474 = vmatpush3.bf16.msra.mxu0 %v15872_v45  ;;  %12602 = vmatprep.mubr.bf16.mxu0 %v17127_v40  ;;  %v15944_v45 = vld [vmem:[#allocation27 + $0x9b0] ss:$28 sps:$4 sm:$0xff]  }
 0xc2f   :  { %12336 = vmatprep.subr.bf16.mxu1 %v15875_v29  ;;  %14475 = vmatprep.subr.bf16.mxu0 %v15876_v36  ;;  %v15949_v29 = vld [vmem:[#allocation27 + $0x9ec] ss:$28 sps:$4 sm:$0xff]  }
 0xc30   :  { %v15947_v36 = vld [vmem:[#allocation27 + $0x9e8] ss:$28 sps:$4 sm:$0xff]  }
 0xc31   :  { %12337 = vmatpush1.bf16.msra.mxu1 %v15873_v50  ;;  %v15952_v50 = vld [vmem:[#allocation27 + $0xa24] ss:$28 sps:$4 sm:$0xff]  }
 0xc32   :  { %14476 = vmatpush3.bf16.msra.mxu0 %v15877_v6  ;;  %12338 = vmatprep.subr.bf16.mxu1 %v15880_v4  ;;  %v15950_v6 = vld [vmem:[#allocation27 + $0xa20] ss:$28 sps:$4 sm:$0xff]  }
 0xc33   :  { %14477 = vmatprep.subr.bf16.mxu0 %v15881_v8  ;;  %v15955_v4 = vld [vmem:[#allocation27 + $0xa5c] ss:$28 sps:$4 sm:$0xff]  }
 0xc34   :  { %v15953_v8 = vld [vmem:[#allocation27 + $0xa58] ss:$28 sps:$4 sm:$0xff]  }
 0xc35   :  { %12339 = vmatpush1.bf16.msra.mxu1 %v15878_v51  ;;  %v15958_v51 = vld [vmem:[#allocation27 + $0xa94] ss:$28 sps:$4 sm:$0xff]  }
 0xc36   :  { %14478 = vmatpush3.bf16.msra.mxu0 %v15882_v48  ;;  %12340 = vmatprep.subr.bf16.mxu1 %v15885_v60  ;;  %v15956_v48 = vld [vmem:[#allocation27 + $0xa90] ss:$28 sps:$4 sm:$0xff]  }
 0xc37   :  { %14479 = vmatprep.subr.bf16.mxu0 %v15886_v9  ;;  %v15961_v60 = vld [vmem:[#allocation27 + $0xacc] ss:$28 sps:$4 sm:$0xff]  }
 0xc38   :  { %v15959_v9 = vld [vmem:[#allocation27 + $0xac8] ss:$28 sps:$4 sm:$0xff]  }
 0xc39   :  { %12341 = vmatpush1.bf16.msra.mxu1 %v15883_v10  ;;  %v15964_v10 = vld [vmem:[#allocation27 + $0xb04] ss:$28 sps:$4 sm:$0xff]  }
 0xc3a   :  { %14480 = vmatpush3.bf16.msra.mxu0 %v15887_v11  ;;  %12342 = vmatprep.subr.bf16.mxu1 %v15890_v12  ;;  %v15962_v11 = vld [vmem:[#allocation27 + $0xb00] ss:$28 sps:$4 sm:$0xff]  }
 0xc3b   :  { %14481 = vmatprep.subr.bf16.mxu0 %v15891_v13  ;;  %v15967_v12 = vld [vmem:[#allocation27 + $0xb3c] ss:$28 sps:$4 sm:$0xff]  }
 0xc3c   :  { %v15965_v13 = vld [vmem:[#allocation27 + $0xb38] ss:$28 sps:$4 sm:$0xff]  }
 0xc3d   :  { %12343 = vmatpush1.bf16.msra.mxu1 %v15888_v14  ;;  %v15970_v14 = vld [vmem:[#allocation27 + $0xb74] ss:$28 sps:$4 sm:$0xff]  }
 0xc3e   :  { %14482 = vmatpush3.bf16.msra.mxu0 %v15892_v16  ;;  %12344 = vmatprep.subr.bf16.mxu1 %v15895_v17  ;;  %v15968_v16 = vld [vmem:[#allocation27 + $0xb70] ss:$28 sps:$4 sm:$0xff]   ;;  %v17152_v17 = vld [vmem:[#allocation28] sm:$0xff] }
 0xc3f   :  { %14483 = vmatprep.subr.bf16.mxu0 %v15896_v19  ;;  %v9603_v19 = vrot.slane %v17152_v17, %v16991_v5 }
 0xc41   :  { %12345 = vmatpush1.bf16.msra.mxu1 %v15893_v20  ;;  %v9599_v20 = vrot.slane %v17152_v17, %v16974_v0 }
 0xc42   :  { %14484 = vmatpush3.bf16.msra.mxu0 %v15897_v21  ;;  %12346 = vmatprep.subr.bf16.mxu1 %v15900_v53  ;;  %v9607_v21 = vrot.slane %v17152_v17, %v16994_v7  ;;  %v15971_v53 = vld [vmem:[#allocation27 + $0xba8] ss:$28 sps:$4 sm:$0xff]  }
 0xc43   :  { %14485 = vmatprep.subr.bf16.mxu0 %v15901_v22  ;;  %v15976_v22 = vld [vmem:[#allocation27 + $0xbe4] ss:$28 sps:$4 sm:$0xff]  }
 0xc45   :  { %12347 = vmatpush1.bf16.msra.mxu1 %v15898_v39 }
 0xc46   :  { %14486 = vmatpush3.bf16.msra.mxu0 %v15902_v46  ;;  %12348 = vmatprep.subr.bf16.mxu1 %v15905_v24 }
 0xc47   :  { %14487 = vmatprep.subr.bf16.mxu0 %v15906_v25 }
 0xc49   :  { %12349 = vmatpush1.bf16.msra.mxu1 %v15903_v26 }
 0xc4a   :  { %14488 = vmatpush3.bf16.msra.mxu0 %v15907_v44  ;;  %12361 = vmatprep.subr.bf16.mxu1 %v15910_v27 }
 0xc4c   :  { %12351 = vmatmul.mubr.bf16.vlgmr.msra.gmra.mrb[40].mxu1 %v17098_v18  ;;  %v15925_v18 = vld [vmem:[#allocation27 + $0x82c] ss:$28 sps:$4 sm:$0xff]  }
 0xc4d   :  { %12603 = vmatmul.mubr.bf16.vlgmr.msra.gmra.mrb[48].mxu0 %v17123_v35  ;;  %12362 = vmatpush1.bf16.msra.mxu1 %v15908_v28 }
 0xc4e   :  { %12393 = vmatprep.mubr.bf16.mxu1 %v17125_v3  ;;  %12363 = vmatprep.subr.bf16.mxu1 %v15913_v33  ;;  %v15926_v3 = vld [vmem:[#allocation27 + $0x860] ss:$28 sps:$4 sm:$0xff]  }
 0xc4f   :  { %v15974_v33 = vld [vmem:[#allocation27 + $0xbe0] ss:$28 sps:$4 sm:$0xff]  }
 0xc51   :  { %12364 = vmatpush1.bf16.msra.mxu1 %v15911_v38  ;;  %v15979_v38 = vld [vmem:[#allocation27 + $0xc1c] ss:$28 sps:$4 sm:$0xff]  }
 0xc52   :  { %12365 = vmatprep.subr.bf16.mxu1 %v15916_v34 }
 0xc55   :  { %12366 = vmatpush1.bf16.msra.mxu1 %v15914_v15 }
 0xc56   :  { %12367 = vmatprep.subr.bf16.mxu1 %v15919_v59 }
 0xc59   :  { %12368 = vmatpush1.bf16.msra.mxu1 %v15917_v41 }
 0xc5a   :  { %12369 = vmatprep.subr.bf16.mxu1 %v15922_v42 }
 0xc5d   :  { %12370 = vmatpush1.bf16.msra.mxu1 %v15920_v43 }
 0xc5e   :  { %12371 = vmatprep.subr.bf16.mxu1 %v15925_v18 }
 0xc61   :  { %12372 = vmatpush1.bf16.msra.mxu1 %v15923_v47 }
 0xc62   :  { %12373 = vmatprep.subr.bf16.mxu1 %v15928_v23 }
 0xc65   :  { %12374 = vmatpush1.bf16.msra.mxu1 %v15926_v3 }
 0xc66   :  { %12375 = vmatprep.subr.bf16.mxu1 %v15931_v31  ;;  %v15977_v31 = vld [vmem:[#allocation27 + $0xc18] ss:$28 sps:$4 sm:$0xff]  }
 0xc69   :  { %12376 = vmatpush1.bf16.msra.mxu1 %v15929_v52 }
 0xc6a   :  { %12377 = vmatprep.subr.bf16.mxu1 %v15934_v54  ;;  %v15982_v54 = vld [vmem:[#allocation27 + $0xc54] ss:$28 sps:$4 sm:$0xff]  }
 0xc6d   :  { %12378 = vmatpush1.bf16.msra.mxu1 %v15932_v55 }
 0xc6e   :  { %12379 = vmatprep.subr.bf16.mxu1 %v15937_v56  ;;  %v15980_v56 = vld [vmem:[#allocation27 + $0xc50] ss:$28 sps:$4 sm:$0xff]  }
 0xc71   :  { %12380 = vmatpush1.bf16.msra.mxu1 %v15935_v57  ;;  %v15985_v57 = vld [vmem:[#allocation27 + $0xc8c] ss:$28 sps:$4 sm:$0xff]  }
 0xc72   :  { %12381 = vmatprep.subr.bf16.mxu1 %v15940_v58  ;;  %v15983_v58 = vld [vmem:[#allocation27 + $0xc88] ss:$28 sps:$4 sm:$0xff]  }
 0xc75   :  { %12382 = vmatpush1.bf16.msra.mxu1 %v15938_v37 }
 0xc76   :  { %12383 = vmatprep.subr.bf16.mxu1 %v15943_v61  ;;  %v15988_v61 = vld [vmem:[#allocation27 + $0xcc4] ss:$28 sps:$4 sm:$0xff]  }
 0xc79   :  { %12384 = vmatpush1.bf16.msra.mxu1 %v15941_v63 }
 0xc7a   :  { %12385 = vmatprep.subr.bf16.mxu1 %v15946_v1 }
 0xc7d   :  { %12386 = vmatpush1.bf16.msra.mxu1 %v15944_v45 }
 0xc7e   :  { %12387 = vmatprep.subr.bf16.mxu1 %v15949_v29 }
 0xc81   :  { %12388 = vmatpush1.bf16.msra.mxu1 %v15947_v36 }
 0xc82   :  { %12389 = vmatprep.subr.bf16.mxu1 %v15952_v50 }
 0xc85   :  { %12390 = vmatpush1.bf16.msra.mxu1 %v15950_v6  ;;  %v15986_v6 = vld [vmem:[#allocation27 + $0xcc0] ss:$28 sps:$4 sm:$0xff]  }
 0xc86   :  { %12391 = vmatprep.subr.bf16.mxu1 %v15955_v4 }
 0xc89   :  { %12392 = vmatpush1.bf16.msra.mxu1 %v15953_v8 }
 0xc8a   :  { %12404 = vmatprep.subr.bf16.mxu1 %v15958_v51  ;;  %v15991_v51 = vld [vmem:[#allocation27 + $0xcfc] ss:$28 sps:$4 sm:$0xff]  }
 0xc8c   :  { %12394 = vmatmul.mubr.bf16.vlgmr.msra.gmra.mrb[40].mxu1 %v17121_v49  ;;  %v15973_v49 = vld [vmem:[#allocation27 + $0xbac] ss:$28 sps:$4 sm:$0xff]  }
 0xc8d   :  { %12405 = vmatpush1.bf16.msra.mxu1 %v15956_v48  ;;  %12436 = vmatprep.mubr.bf16.mxu1 %v17127_v40  ;;  %v9595_v40 = vrot.slane %v17152_v17, %v16971_v62 }
 0xc8e   :  { %12406 = vmatprep.subr.bf16.mxu1 %v15961_v60 }
 0xc91   :  { %12407 = vmatpush1.bf16.msra.mxu1 %v15959_v9 }
 0xc92   :  { %12408 = vmatprep.subr.bf16.mxu1 %v15964_v10 }
 0xc95   :  { %12409 = vmatpush1.bf16.msra.mxu1 %v15962_v11 }
 0xc96   :  { %12410 = vmatprep.subr.bf16.mxu1 %v15967_v12 }
 0xc99   :  { %12411 = vmatpush1.bf16.msra.mxu1 %v15965_v13  ;;  %v15989_v13 = vld [vmem:[#allocation27 + $0xcf8] ss:$28 sps:$4 sm:$0xff]  }
 0xc9a   :  { %12412 = vmatprep.subr.bf16.mxu1 %v15970_v14 }
 0xc9d   :  { %12413 = vmatpush1.bf16.msra.mxu1 %v15968_v16  ;;  %v15994_v16 = vld [vmem:[#allocation27 + $0xd34] ss:$28 sps:$4 sm:$0xff]  }
 0xc9e   :  { %12414 = vmatprep.subr.bf16.mxu1 %v15973_v49  ;;  %v15992_v49 = vld [vmem:[#allocation27 + $0xd30] ss:$28 sps:$4 sm:$0xff]  }
 0xc9f   :  { %v12094_v39 = vpop.f32.mrb[36].mxu1  ;;  %v12266_v46 = vpop.f32.mrb[32].mxu0 }
 0xca0   :  { %v14563_v24 = vadd.f32 %v12094_v39, %v9595_v40  ;;  %v14567_v25 = vadd.f32 %v12266_v46, %v9603_v19  ;;  %v12096_v26 = vpop.f32.mrb[37].mxu1  ;;  %v12268_v44 = vpop.f32.mrb[33].mxu0  ;;  %v16000_v46 = vld [vmem:[#allocation27 + $0xda4] ss:$28 sps:$4 sm:$0xff]  }
 0xca1   :  { %v14564_v62 = vadd.f32 %v12096_v26, %v9599_v20  ;;  %v14568_v27 = vadd.f32 %v12268_v44, %v9607_v21  ;;  %v12098_v28 = vpop.f32.mrb[38].mxu1  ;;  %v12270_v5 = vpop.f32.mrb[34].mxu0  ;;  %12415 = vmatpush1.bf16.msra.mxu1 %v15971_v53  ;;  %v15995_v53 = vld [vmem:[#allocation27 + $0xd68] ss:$28 sps:$4 sm:$0xff]  }
 0xca2   :  { %v14346_v0 = vmul.f32 -1.442695, %v14563_v24  ;;  %v14348_v34 = vmul.f32 -1.442695, %v14567_v25  ;;  %v14565_v15 = vadd.f32 %v12098_v28, %v9595_v40  ;;  %v14569_v7 = vadd.f32 %v12270_v5, %v9603_v19  ;;  %v12100_v59 = vpop.f32.mrb[39].mxu1  ;;  %v12272_v41 = vpop.f32.mrb[35].mxu0  ;;  %12416 = vmatprep.subr.bf16.mxu1 %v15976_v22 }
 0xca3   :  { %v14347_v42 = vmul.f32 -1.442695, %v14564_v62  ;;  %v14349_v43 = vmul.f32 -1.442695, %v14568_v27  ;;  %v14566_v18 = vadd.f32 %v12100_v59, %v9599_v20  ;;  %v14570_v47 = vadd.f32 %v12272_v41, %v9607_v21  ;;  %v15997_v40 = vld [vmem:[#allocation27 + $0xd6c] ss:$28 sps:$4 sm:$0xff]  }
 0xca4   :  { %16004 = vpow2.f32 %v14346_v0  ;;  %v14353_v23 = vmul.f32 -1.442695, %v14565_v15  ;;  %v14355_v3 = vmul.f32 -1.442695, %v14569_v7  ;;  %v15998_v28 = vld [vmem:[#allocation27 + $0xda0] ss:$28 sps:$4 sm:$0xff]  }
 0xca5   :  { %16006 = vpow2.f32 %v14348_v34  ;;  %12417 = vmatpush1.bf16.msra.mxu1 %v15974_v33  ;;  %v14354_v52 = vmul.f32 -1.442695, %v14566_v18  ;;  %v14356_v55 = vmul.f32 -1.442695, %v14570_v47  ;;  %v16003_v34 = vld [vmem:[#allocation27 + $0xddc] ss:$28 sps:$4 sm:$0xff]  }
 0xca6   :  { %16008 = vpow2.f32 %v14347_v42  ;;  %12418 = vmatprep.subr.bf16.mxu1 %v15979_v38  ;;  %v16001_v41 = vld [vmem:[#allocation27 + $0xdd8] ss:$28 sps:$4 sm:$0xff]   ;;  %v9619_v42 = vrot.slane %v17152_v17, %v17017_v2 }
 0xca7   :  { %16010 = vpow2.f32 %v14349_v43 }
 0xca8   :  { %16012 = vpow2.f32 %v14353_v23 }
 0xca9   :  { %16014 = vpow2.f32 %v14355_v3  ;;  %12419 = vmatpush1.bf16.msra.mxu1 %v15977_v31 }
 0xcaa   :  { %16016 = vpow2.f32 %v14354_v52  ;;  %12420 = vmatprep.subr.bf16.mxu1 %v15982_v54 }
 0xcab   :  { %16018 = vpow2.f32 %v14356_v55 }
 0xcad   :  { %12421 = vmatpush1.bf16.msra.mxu1 %v15980_v56 }
 0xcae   :  { %v16005_v37 = vpop.eup %16004  ;;  %12422 = vmatprep.subr.bf16.mxu1 %v15985_v57 }
 0xcaf   :  { %v16007_v63 = vpop.eup %16006  ;;  %v12653_v1 = vadd.f32 1.0, %v16005_v37 }
 0xcb0   :  { %v16009_v45 = vpop.eup %16008  ;;  %v12655_v29 = vadd.f32 1.0, %v16007_v63 }
 0xcb1   :  { %v16011_v36 = vpop.eup %16010  ;;  %16020 = vrcp.f32 %v12653_v1  ;;  %v12654_v50 = vadd.f32 1.0, %v16009_v45  ;;  %12423 = vmatpush1.bf16.msra.mxu1 %v15983_v58 }
 0xcb2   :  { %v16013_v4 = vpop.eup %16012  ;;  %16022 = vrcp.f32 %v12655_v29  ;;  %v12656_v8 = vadd.f32 1.0, %v16011_v36  ;;  %12424 = vmatprep.subr.bf16.mxu1 %v15988_v61 }
 0xcb3   :  { %v16015_v48 = vpop.eup %16014  ;;  %16024 = vrcp.f32 %v12654_v50  ;;  %v12660_v60 = vadd.f32 1.0, %v16013_v4 }
 0xcb4   :  { %v16017_v9 = vpop.eup %16016  ;;  %16026 = vrcp.f32 %v12656_v8  ;;  %v12662_v10 = vadd.f32 1.0, %v16015_v48 }
 0xcb5   :  { %v16019_v11 = vpop.eup %16018  ;;  %16028 = vrcp.f32 %v12660_v60  ;;  %v12661_v12 = vadd.f32 1.0, %v16017_v9  ;;  %12425 = vmatpush1.bf16.msra.mxu1 %v15986_v6 }
 0xcb6   :  { %16030 = vrcp.f32 %v12662_v10  ;;  %v12663_v14 = vadd.f32 1.0, %v16019_v11  ;;  %12426 = vmatprep.subr.bf16.mxu1 %v15991_v51 }
 0xcb7   :  { %16032 = vrcp.f32 %v12661_v12 }
 0xcb8   :  { %16034 = vrcp.f32 %v12663_v14 }
 0xcb9   :  { %12427 = vmatpush1.bf16.msra.mxu1 %v15989_v13 }
 0xcba   :  { %12428 = vmatprep.subr.bf16.mxu1 %v15994_v16 }
 0xcbb   :  { %v16021_v19 = vpop.eup %16020 }
 0xcbc   :  { %v16023_v20 = vpop.eup %16022 }
 0xcbd   :  { %v16025_v21 = vpop.eup %16024  ;;  %12429 = vmatpush1.bf16.msra.mxu1 %v15992_v49 }
 0xcbe   :  { %v16027_v22 = vpop.eup %16026  ;;  %v14368_v39 = vpack.c.bf16 %v16025_v21, %v16021_v19  ;;  %12430 = vmatprep.subr.bf16.mxu1 %v15997_v40  ;;  %v9611_v40 = vrot.slane %v17152_v17, %v17033_v30  ;;  %v9615_v19 = vrot.slane %v17152_v17, %v17036_v32 }
 0xcbf   :  { %v16029_v24 = vpop.eup %16028  ;;  %v14369_v25 = vpack.c.bf16 %v16027_v22, %v16023_v20 }
 0xcc0   :  { %v16031_v26 = vpop.eup %16030  ;;  %12739 = vst [vmem:[%s17212_s19] sm:$0xff] %v14368_v39  ;;  %v14423_v44 = vpop.f32.mrb[36].mxu0 }
 0xcc1   :  { %v16033_v62 = vpop.eup %16032  ;;  %12740 = vst [vmem:[%s17212_s19 + $0x8] sm:$0xff] %v14369_v25  ;;  %v14424_v27 = vpop.f32.mrb[37].mxu0  ;;  %12431 = vmatpush1.bf16.msra.mxu1 %v15995_v53 }
 0xcc2   :  { %v16035_v5 = vpop.eup %16034  ;;  %v14372_v33 = vpack.c.bf16 %v16033_v62, %v16029_v24  ;;  %v14425_v38 = vadd.f32 %v14424_v27, %v14423_v44  ;;  %v14426_v0 = vpop.f32.mrb[38].mxu0  ;;  %12432 = vmatprep.subr.bf16.mxu1 %v16000_v46 }
 0xcc3   :  { %v14373_v15 = vpack.c.bf16 %v16035_v5, %v16031_v26  ;;  %v14427_v7 = vpop.f32.mrb[39].mxu0 }
 0xcc4   :  { %12743 = vst [vmem:[%s17212_s19 + $0x1c] sm:$0xff] %v14372_v33  ;;  %v14428_v59 = vadd.f32 %v14427_v7, %v14426_v0  ;;  %v12482_v47 = vadd.f32 %v14425_v38, %v9619_v42 }
 0xcc5   :  { %12744 = vst [vmem:[%s17212_s19 + $0x24] sm:$0xff] %v14373_v15  ;;  %12433 = vmatpush1.bf16.msra.mxu1 %v15998_v28 }
 0xcc6   :  { %12434 = vmatprep.subr.bf16.mxu1 %v16003_v34  ;;  %v12485_v52 = vadd.f32 %v14428_v59, %v9619_v42 }
 0xcc9   :  { %12435 = vmatpush1.bf16.msra.mxu1 %v16001_v41 }
 0xccc   :  { %12437 = vmatmul.mubr.bf16.vlgmr.msra.gmra.mrb[40].mxu1 %v17123_v35 }
 0xce0   :  { %v14445_v43 = vpop.f32.mrb[40].mxu0 }
 0xce1   :  { %v14446_v18 = vpop.f32.mrb[41].mxu0 }
 0xce2   :  { %v14447_v23 = vadd.f32 %v14446_v18, %v14445_v43  ;;  %v14448_v3 = vpop.f32.mrb[42].mxu0 }
 0xce3   :  { %v14449_v31 = vpop.f32.mrb[43].mxu0 }
 0xce4   :  { %v12523_v54 = vadd.f32 %v14447_v23, %v12482_v47  ;;  %v14450_v55 = vadd.f32 %v14449_v31, %v14448_v3 }
 0xce6   :  { %v12526_v56 = vadd.f32 %v14450_v55, %v12485_v52 }
 0xd00   :  { %v14467_v57 = vpop.f32.mrb[44].mxu0 }
 0xd01   :  { %v14468_v58 = vpop.f32.mrb[45].mxu0 }
 0xd02   :  { %v14469_v37 = vadd.f32 %v14468_v58, %v14467_v57  ;;  %v14470_v61 = vpop.f32.mrb[46].mxu0 }
 0xd03   :  { %v14471_v63 = vpop.f32.mrb[47].mxu0 }
 0xd04   :  { %v12564_v1 = vadd.f32 %v14469_v37, %v12523_v54  ;;  %v14472_v35 = vadd.f32 %v14471_v63, %v14470_v61 }
 0xd06   :  { %v12567_v45 = vadd.f32 %v14472_v35, %v12526_v56 }
 0xd20   :  { %v14489_v29 = vpop.f32.mrb[48].mxu0 }
 0xd21   :  { %v14490_v2 = vpop.f32.mrb[49].mxu0 }
 0xd22   :  { %v14491_v36 = vadd.f32 %v14490_v2, %v14489_v29  ;;  %v14492_v50 = vpop.f32.mrb[50].mxu0 }
 0xd23   :  { %v14493_v6 = vpop.f32.mrb[51].mxu0 }
 0xd24   :  { %v12605_v4 = vadd.f32 %v14491_v36, %v12564_v1  ;;  %v14494_v8 = vadd.f32 %v14493_v6, %v14492_v50 }
 0xd26   :  { %v14352_v51 = vmul.f32 -1.442695, %v12605_v4  ;;  %v12608_v48 = vadd.f32 %v14494_v8, %v12567_v45 }
 0xd28   :  { %16036 = vpow2.f32 %v14352_v51  ;;  %v14359_v60 = vmul.f32 -1.442695, %v12608_v48 }
 0xd2a   :  { %16038 = vpow2.f32 %v14359_v60 }
 0xd32   :  { %v16037_v9 = vpop.eup %16036 }
 0xd33   :  { %v12659_v10 = vadd.f32 1.0, %v16037_v9 }
 0xd34   :  { %v16039_v11 = vpop.eup %16038 }
 0xd35   :  { %16040 = vrcp.f32 %v12659_v10  ;;  %v12666_v12 = vadd.f32 1.0, %v16039_v11 }
 0xd37   :  { %16042 = vrcp.f32 %v12666_v12 }
 0xd3f   :  { %v16041_v13 = vpop.eup %16040 }
 0xd40   :  { %v14371_v14 = vpack.c.bf16 %v16041_v13, %v16041_v13 }
 0xd41   :  { %v16043_v16 = vpop.eup %16042 }
 0xd42   :  { %12742 = vst [vmem:[%s17212_s19 + $0x18] sm:$0xf] %v14371_v14  ;;  %v14375_v49 = vpack.c.bf16 %v16043_v16, %v16043_v16 }
 0xd44   :  { %12746 = vst [vmem:[%s17212_s19 + $0x34] sm:$0xf] %v14375_v49 }
 0xd9f   :  { %v12438_v20 = vpop.f32.mrb[40].mxu1 }
 0xda0   :  { %v14571_v21 = vadd.f32 %v12438_v20, %v9611_v40  ;;  %v12440_v53 = vpop.f32.mrb[41].mxu1 }
 0xda1   :  { %v14572_v22 = vadd.f32 %v12440_v53, %v9615_v19  ;;  %v12442_v39 = vpop.f32.mrb[42].mxu1 }
 0xda2   :  { %v14350_v46 = vmul.f32 -1.442695, %v14571_v21  ;;  %v14573_v24 = vadd.f32 %v12442_v39, %v9611_v40  ;;  %v12444_v25 = vpop.f32.mrb[43].mxu1 }
 0xda3   :  { %v14351_v26 = vmul.f32 -1.442695, %v14572_v22  ;;  %v14574_v44 = vadd.f32 %v12444_v25, %v9615_v19 }
 0xda4   :  { %16044 = vpow2.f32 %v14350_v46  ;;  %v14357_v62 = vmul.f32 -1.442695, %v14573_v24 }
 0xda5   :  { %16046 = vpow2.f32 %v14351_v26  ;;  %v14358_v27 = vmul.f32 -1.442695, %v14574_v44 }
 0xda6   :  { %16048 = vpow2.f32 %v14357_v62 }
 0xda7   :  { %16050 = vpow2.f32 %v14358_v27 }
 0xdae   :  { %v16045_v30 = vpop.eup %16044 }
 0xdaf   :  { %v16047_v28 = vpop.eup %16046  ;;  %v12657_v5 = vadd.f32 1.0, %v16045_v30 }
 0xdb0   :  { %v16049_v32 = vpop.eup %16048  ;;  %v12658_v17 = vadd.f32 1.0, %v16047_v28 }
 0xdb1   :  { %v16051_v33 = vpop.eup %16050  ;;  %16052 = vrcp.f32 %v12657_v5  ;;  %v12664_v38 = vadd.f32 1.0, %v16049_v32 }
 0xdb2   :  { %16054 = vrcp.f32 %v12658_v17  ;;  %v12665_v0 = vadd.f32 1.0, %v16051_v33 }
 0xdb3   :  { %16056 = vrcp.f32 %v12664_v38 }
 0xdb4   :  { %16058 = vrcp.f32 %v12665_v0 }
 0xdbb   :  { %v16053_v34 = vpop.eup %16052 }
 0xdbc   :  { %v16055_v15 = vpop.eup %16054 }
 0xdbd   :  { %v16057_v7 = vpop.eup %16056  ;;  %v14370_v59 = vpack.c.bf16 %v16055_v15, %v16053_v34 }
 0xdbe   :  { %v16059_v41 = vpop.eup %16058 }
 0xdbf   :  { %12741 = vst [vmem:[%s17212_s19 + $0x10] sm:$0xff] %v14370_v59  ;;  %v14374_v42 = vpack.c.bf16 %v16059_v41, %v16057_v7 }
 0xdc1   :  { %12745 = vst [vmem:[%s17212_s19 + $0x2c] sm:$0xff] %v14374_v42 }
 0xdc2   :  { %12751 = vsyncpa [#allocation3], 1 }
 0xdc3   :  { %12752 = vsyncpa [#allocation5], 1 }
 0xdc4   :  { %12753 = vsyncpa [#allocation8], 1 }
 0xdc5   :  { %12754 = vsyncpa [#allocation11], 1 }
 0xdc6   :  { %12755 = vsyncpa [#allocation14], 1 }
 0xdc7   :  { %12756 = vsyncpa [#allocation17], 1 }
 0xdc8   :  { %12757 = vsyncpa [#allocation20], 1 }
 0xdc9   :  { %12758 = vsyncpa [#allocation23], 1 }
 0xdca   :  { %12759 = vsyncpa [#allocation26], 1 }
 0xdcb   :  { %12760 = vsyncpa [#allocation29], 1 }

</bundles_post_ra>
